<compile_context>
chip_gen: v6e
topology: v6e:2x2x1
jax: 0.10.0
libtpu: 0.0.40
codegen_flags: <defaults>
</compile_context>

<pallas_src>
import math

import jax
import jax.numpy as jnp
from jax.experimental import pallas as pl
from jax.experimental.pallas import tpu as pltpu


# ---------------------------------------------------------------------------
# Model hyper-parameters (consistent with the PyTorch module defaults)
# ---------------------------------------------------------------------------
VOCAB = 50
VOCAB_PAD = 64                     # embedding table zero-padded to an aligned contraction dim
DMODEL = 32
OUTPUT_SIZE = 5
MAX_LEN = 16
N_LAYERS = 4
HEADS = 8
KEY_DIM = DMODEL // HEADS          # 4
FFNN_HIDDEN = DMODEL * 4           # 128
LN_EPS = 1e-5                      # nn.LayerNorm default

BATCH = 2
SEQ = 8


# ---------------------------------------------------------------------------
# Kernel helpers
# ---------------------------------------------------------------------------
def _layernorm(x, w, b, eps=LN_EPS):
    mu = jnp.mean(x, axis=-1, keepdims=True)
    var = jnp.mean((x - mu) ** 2, axis=-1, keepdims=True)
    return (x - mu) * jax.lax.rsqrt(var + eps) * w + b


# ---------------------------------------------------------------------------
# Single fused kernel:
#   embedding (one-hot matmul) + pos-enc
#   + 4 x (MHA + residual + LN1 + FFN + residual + LN2)
#   + max-pool over seq + final linear + log_softmax.
# No grid: total resident footprint (~0.3 MiB) lives in VMEM.
# ---------------------------------------------------------------------------
def _make_fused_kernel(B, S):
    D = DMODEL
    KD = KEY_DIM
    N = B * S
    scale = 1.0 / math.sqrt(KEY_DIM)

    def kernel(tok_ref, emb_ref, pe_ref,
               wqkv_ref, wo_ref,
               ln1w_ref, ln1b_ref,
               w1_ref, b1_ref, w2_ref, b2_ref,
               ln2w_ref, ln2b_ref,
               outw_ref, outb_ref,
               o_ref):
        # ---- embedding lookup as a one-hot MXU matmul (tokens < VOCAB; padded rows are zero) ----
        tok = tok_ref[...]                                                   # (N, 1) int32
        vocab_iota = jax.lax.broadcasted_iota(jnp.int32, (N, VOCAB_PAD), 1)
        onehot = (tok == vocab_iota).astype(jnp.float32)                     # (N, VOCAB_PAD)
        x2 = jnp.dot(onehot, emb_ref[...],
                     preferred_element_type=jnp.float32)                     # (N, D)

        # ---- positional encoding (dropout = identity, eval mode) ----
        x2 = (x2.reshape(B, S, D) + pe_ref[0:S, :]).reshape(N, D)

        for l in range(N_LAYERS):                                            # static unroll
            # ---- fused QKV projection: one matmul ----
            qkv = jnp.dot(x2, wqkv_ref[l],
                          preferred_element_type=jnp.float32)                # (N, 3D)
            q = (qkv[:, 0 * D:1 * D] * scale).reshape(B, S, D)               # scale folded into q
            k = qkv[:, 1 * D:2 * D].reshape(B, S, D)
            v = qkv[:, 2 * D:3 * D].reshape(B, S, D)

            # ---- per-head scores, stacked along a major axis (cheap) ----
            score_list = []
            for h in range(HEADS):
                lo = h * KD
                score_list.append(
                    jnp.einsum('bqd,bkd->bqk',
                               q[:, :, lo:lo + KD], k[:, :, lo:lo + KD],
                               preferred_element_type=jnp.float32))          # (B, S, S)
            scores = jnp.stack(score_list)                                   # (H, B, S, S)

            # ---- ONE softmax over all heads; reciprocal on the EUP ----
            m = jnp.max(scores, axis=-1, keepdims=True)
            p = jnp.exp(scores - m)
            p = p * pl.reciprocal(jnp.sum(p, axis=-1, keepdims=True), approx=True)

            # ---- head outputs folded directly into the output projection (no lane concat) ----
            attn = jnp.zeros((N, D), jnp.float32)
            for h in range(HEADS):
                lo = h * KD
                out_h = jnp.einsum('bqk,bkd->bqd', p[h], v[:, :, lo:lo + KD],
                                   preferred_element_type=jnp.float32)       # (B, S, KD)
                attn = attn + jnp.dot(out_h.reshape(N, KD), wo_ref[l, h],
                                      preferred_element_type=jnp.float32)    # (N, D)

            # ---- residual + layernorm 1 ----
            y = _layernorm(x2 + attn, ln1w_ref[l], ln1b_ref[l])

            # ---- feed-forward network (dropout = identity, eval mode) ----
            h1 = jnp.dot(y, w1_ref[l], preferred_element_type=jnp.float32) + b1_ref[l]
            h1 = jnp.maximum(h1, 0.0)
            ff = jnp.dot(h1, w2_ref[l], preferred_element_type=jnp.float32) + b2_ref[l]

            # ---- residual + layernorm 2 ----
            x2 = _layernorm(y + ff, ln2w_ref[l], ln2b_ref[l])

        # ---- head: global max-pool over sequence + linear + log_softmax ----
        pooled = jnp.max(x2.reshape(B, S, D), axis=1)                        # (B, D)
        logits = jnp.dot(pooled, outw_ref[...],
                         preferred_element_type=jnp.float32) + outb_ref[...]
        mx = jnp.max(logits, axis=-1, keepdims=True)
        z = logits - mx
        lse = jnp.log(jnp.sum(jnp.exp(z), axis=-1, keepdims=True))
        o_ref[...] = z - lse                                                 # (B, OUTPUT_SIZE)

    return kernel


def run_fused_transformer(tokens, params):
    """tokens: (B, S) int32.  Returns (B, OUTPUT_SIZE) log-probs."""
    B, S = tokens.shape
    kernel = _make_fused_kernel(B, S)
    return pl.pallas_call(
        kernel,
        out_shape=jax.ShapeDtypeStruct((B, OUTPUT_SIZE), jnp.float32),
        # no grid, no tiling: resident footprint ~0.3 MiB, far below VMEM on v5e/v6e/v7x
        compiler_params=pltpu.CompilerParams(vmem_limit_bytes=16 * 1024 * 1024),
    )(tokens.reshape(B * S, 1),
      params["embedding"], params["pos_encoding"],
      params["wqkv"], params["wo"],
      params["ln1_w"], params["ln1_b"],
      params["w1"], params["b1"], params["w2"], params["b2"],
      params["ln2_w"], params["ln2_b"],
      params["out_w"], params["out_b"])


# ---------------------------------------------------------------------------
# Parameter init (deterministic, synthetic) — weights stored in (in, out) layout
# (transpose of PyTorch nn.Linear storage; real checkpoints must be transposed on load).
# ---------------------------------------------------------------------------
def positional_encoding(max_len, dmodel, padding_idx=0):
    positions = jnp.repeat(jnp.arange(float(max_len))[:, None], dmodel, axis=1)
    dimensions = jnp.tile(jnp.arange(float(dmodel))[None, :], (max_len, 1))
    arg = positions / jnp.power(10000.0, 2.0 * dimensions / dmodel)
    pe = jnp.zeros((max_len, dmodel), jnp.float32)
    pe = pe.at[:, 0::2].set(jnp.sin(arg[:, 0::2]))
    pe = pe.at[:, 1::2].set(jnp.cos(arg[:, 1::2]))
    if padding_idx:   # matches PyTorch module: padding_idx=0 is falsy -> no zeroing
        pe = pe.at[padding_idx].set(0.0)
    return pe                                                   # (max_len, dmodel)


def init_params(key):
    keys = jax.random.split(key, 2 + N_LAYERS)
    emb = 0.1 * jax.random.normal(keys[0], (VOCAB, DMODEL), jnp.float32)
    emb_padded = jnp.zeros((VOCAB_PAD, DMODEL), jnp.float32).at[:VOCAB].set(emb)
    params = {
        "embedding": emb_padded,                                # (VOCAB_PAD, D), rows >= VOCAB are 0
        "out_w": 0.1 * jax.random.normal(keys[1], (DMODEL, OUTPUT_SIZE), jnp.float32),
        "out_b": jnp.zeros((1, OUTPUT_SIZE), jnp.float32),
        "pos_encoding": positional_encoding(MAX_LEN, DMODEL),   # precomputed constant table
    }
    wqkv, wo, w1, w2 = [], [], [], []
    for n in range(N_LAYERS):
        ks = jax.random.split(keys[2 + n], 4)
        wqkv.append(0.1 * jax.random.normal(ks[0], (DMODEL, 3 * DMODEL), jnp.float32))
        wo.append(0.1 * jax.random.normal(ks[1], (DMODEL, DMODEL), jnp.float32))
        w1.append(0.1 * jax.random.normal(ks[2], (DMODEL, FFNN_HIDDEN), jnp.float32))
        w2.append(0.1 * jax.random.normal(ks[3], (FFNN_HIDDEN, DMODEL), jnp.float32))
    params.update({
        "wqkv": jnp.stack(wqkv),                                              # (L, D, 3D)
        # output projection pre-split per head: (L, H, KEY_DIM, D)
        "wo": jnp.stack(wo).reshape(N_LAYERS, HEADS, KEY_DIM, DMODEL),
        "w1": jnp.stack(w1),                                                  # (L, D, H_ff)
        "w2": jnp.stack(w2),                                                  # (L, H_ff, D)
        "b1": jnp.zeros((N_LAYERS, 1, FFNN_HIDDEN), jnp.float32),
        "b2": jnp.zeros((N_LAYERS, 1, DMODEL), jnp.float32),
        "ln1_w": jnp.ones((N_LAYERS, 1, DMODEL), jnp.float32),
        "ln1_b": jnp.zeros((N_LAYERS, 1, DMODEL), jnp.float32),
        "ln2_w": jnp.ones((N_LAYERS, 1, DMODEL), jnp.float32),
        "ln2_b": jnp.zeros((N_LAYERS, 1, DMODEL), jnp.float32),
    })
    return params


@jax.jit
def transformer_forward(params, tokens, input_lengths):
    del input_lengths  # only used for 'avg' pooling; default pooling is 'max'
    # entire forward (embedding -> blocks -> head) is one fused Pallas kernel
    return run_fused_transformer(tokens, params)


if __name__ == "__main__":
    key = jax.random.PRNGKey(0)
    pkey, tkey = jax.random.split(key)
    params = init_params(pkey)

    tokens = jax.random.randint(tkey, (BATCH, SEQ), 0, VOCAB, dtype=jnp.int32)
    input_lengths = jnp.full((BATCH,), SEQ, dtype=jnp.int32)

    out = transformer_forward(params, tokens, input_lengths)
    out = jax.block_until_ready(out)
    assert out.shape == (BATCH, OUTPUT_SIZE)
    # log_softmax rows should (approximately) sum to 1 after exp
    assert jnp.allclose(jnp.sum(jnp.exp(out), axis=-1), 1.0, atol=1e-4)
    print("KERNEL_OK")
</pallas_src>

<mosaic_0001>
module attributes {stable_mosaic.version = 11 : i64} {
  func.func @kernel(%arg0: memref<16x1xi32, #tpu.memory_space<vmem>>, %arg1: memref<64x32xf32, #tpu.memory_space<vmem>>, %arg2: memref<16x32xf32, #tpu.memory_space<vmem>>, %arg3: memref<4x32x96xf32, #tpu.memory_space<vmem>>, %arg4: memref<4x8x4x32xf32, #tpu.memory_space<vmem>>, %arg5: memref<4x1x32xf32, #tpu.memory_space<vmem>>, %arg6: memref<4x1x32xf32, #tpu.memory_space<vmem>>, %arg7: memref<4x32x128xf32, #tpu.memory_space<vmem>>, %arg8: memref<4x1x128xf32, #tpu.memory_space<vmem>>, %arg9: memref<4x128x32xf32, #tpu.memory_space<vmem>>, %arg10: memref<4x1x32xf32, #tpu.memory_space<vmem>>, %arg11: memref<4x1x32xf32, #tpu.memory_space<vmem>>, %arg12: memref<4x1x32xf32, #tpu.memory_space<vmem>>, %arg13: memref<32x5xf32, #tpu.memory_space<vmem>>, %arg14: memref<1x5xf32, #tpu.memory_space<vmem>>, %arg15: memref<2x5xf32, #tpu.memory_space<vmem>>) attributes {dimension_semantics = [], scalar_prefetch = 0 : i64, scratch_operands = 0 : i64, tpu.core_type = #tpu.core_type<tc>} {
    %c0 = arith.constant 0 : index
    %c0_0 = arith.constant 0 : index
    %0 = vector.load %arg0[%c0, %c0_0] : memref<16x1xi32, #tpu.memory_space<vmem>>, vector<16x1xi32>
    %1 = tpu.iota {dimensions = array<i32: 1>} : vector<16x64xi32>
    %2 = vector.broadcast %0 : vector<16x1xi32> to vector<16x64xi32>
    %3 = arith.cmpi eq, %2, %1 : vector<16x64xi32>
    %4 = arith.extui %3 : vector<16x64xi1> to vector<16x64xi32>
    %5 = arith.sitofp %4 : vector<16x64xi32> to vector<16x64xf32>
    %c0_1 = arith.constant 0 : index
    %c0_2 = arith.constant 0 : index
    %6 = vector.load %arg1[%c0_1, %c0_2] : memref<64x32xf32, #tpu.memory_space<vmem>>, vector<64x32xf32>
    %cst = arith.constant dense<0.000000e+00> : vector<16x32xf32>
    %7 = tpu.matmul %5, %6, %cst {dimension_numbers = #tpu.dot_dimension_numbers<[1], [0], [0], [1], [0, 0, 1, 1], [], []>} : vector<16x64xf32>, vector<64x32xf32>, vector<16x32xf32> -> vector<16x32xf32>
    %8 = vector.shape_cast %7 : vector<16x32xf32> to vector<2x8x32xf32>
    %c0_3 = arith.constant 0 : index
    %c0_4 = arith.constant 0 : index
    %9 = vector.load %arg2[%c0_3, %c0_4] : memref<16x32xf32, #tpu.memory_space<vmem>>, vector<8x32xf32>
    %10 = vector.shape_cast %9 : vector<8x32xf32> to vector<1x8x32xf32>
    %11 = vector.broadcast %10 : vector<1x8x32xf32> to vector<2x8x32xf32>
    %12 = arith.addf %8, %11 : vector<2x8x32xf32>
    %13 = vector.shape_cast %12 : vector<2x8x32xf32> to vector<16x32xf32>
    %c0_5 = arith.constant 0 : index
    %c0_6 = arith.constant 0 : index
    %c0_7 = arith.constant 0 : index
    %14 = vector.load %arg3[%c0_5, %c0_6, %c0_7] : memref<4x32x96xf32, #tpu.memory_space<vmem>>, vector<1x32x96xf32>
    %15 = vector.shape_cast %14 : vector<1x32x96xf32> to vector<32x96xf32>
    %cst_8 = arith.constant dense<0.000000e+00> : vector<16x96xf32>
    %16 = tpu.matmul %13, %15, %cst_8 {dimension_numbers = #tpu.dot_dimension_numbers<[1], [0], [0], [1], [0, 0, 1, 1], [], []>} : vector<16x32xf32>, vector<32x96xf32>, vector<16x96xf32> -> vector<16x96xf32>
    %17 = vector.extract_strided_slice %16 {offsets = [0, 0], sizes = [16, 32], strides = [1, 1]} : vector<16x96xf32> to vector<16x32xf32>
    %cst_9 = arith.constant 5.000000e-01 : f32
    %18 = vector.broadcast %cst_9 : f32 to vector<16x32xf32>
    %19 = arith.mulf %17, %18 : vector<16x32xf32>
    %20 = vector.shape_cast %19 : vector<16x32xf32> to vector<2x8x32xf32>
    %21 = vector.extract_strided_slice %16 {offsets = [0, 32], sizes = [16, 32], strides = [1, 1]} : vector<16x96xf32> to vector<16x32xf32>
    %22 = vector.shape_cast %21 : vector<16x32xf32> to vector<2x8x32xf32>
    %23 = vector.extract_strided_slice %16 {offsets = [0, 64], sizes = [16, 32], strides = [1, 1]} : vector<16x96xf32> to vector<16x32xf32>
    %24 = vector.shape_cast %23 : vector<16x32xf32> to vector<2x8x32xf32>
    %25 = vector.extract_strided_slice %20 {offsets = [0, 0, 0], sizes = [2, 8, 4], strides = [1, 1, 1]} : vector<2x8x32xf32> to vector<2x8x4xf32>
    %26 = vector.extract_strided_slice %22 {offsets = [0, 0, 0], sizes = [2, 8, 4], strides = [1, 1, 1]} : vector<2x8x32xf32> to vector<2x8x4xf32>
    "tpu.trace_start"() <{level = 10 : i32, message = "bqd,bkd->bqk"}> : () -> ()
    %cst_10 = arith.constant dense<0.000000e+00> : vector<2x8x8xf32>
    %27 = tpu.matmul %25, %26, %cst_10 {dimension_numbers = #tpu.dot_dimension_numbers<[2], [2], [1], [1], [0, 0, 0, 1, 1, 1], [0], [0]>} : vector<2x8x4xf32>, vector<2x8x4xf32>, vector<2x8x8xf32> -> vector<2x8x8xf32>
    "tpu.trace_stop"() : () -> ()
    %28 = vector.extract_strided_slice %20 {offsets = [0, 0, 4], sizes = [2, 8, 4], strides = [1, 1, 1]} : vector<2x8x32xf32> to vector<2x8x4xf32>
    %29 = vector.extract_strided_slice %22 {offsets = [0, 0, 4], sizes = [2, 8, 4], strides = [1, 1, 1]} : vector<2x8x32xf32> to vector<2x8x4xf32>
    "tpu.trace_start"() <{level = 10 : i32, message = "bqd,bkd->bqk"}> : () -> ()
    %cst_11 = arith.constant dense<0.000000e+00> : vector<2x8x8xf32>
    %30 = tpu.matmul %28, %29, %cst_11 {dimension_numbers = #tpu.dot_dimension_numbers<[2], [2], [1], [1], [0, 0, 0, 1, 1, 1], [0], [0]>} : vector<2x8x4xf32>, vector<2x8x4xf32>, vector<2x8x8xf32> -> vector<2x8x8xf32>
    "tpu.trace_stop"() : () -> ()
    %31 = vector.extract_strided_slice %20 {offsets = [0, 0, 8], sizes = [2, 8, 4], strides = [1, 1, 1]} : vector<2x8x32xf32> to vector<2x8x4xf32>
    %32 = vector.extract_strided_slice %22 {offsets = [0, 0, 8], sizes = [2, 8, 4], strides = [1, 1, 1]} : vector<2x8x32xf32> to vector<2x8x4xf32>
    "tpu.trace_start"() <{level = 10 : i32, message = "bqd,bkd->bqk"}> : () -> ()
    %cst_12 = arith.constant dense<0.000000e+00> : vector<2x8x8xf32>
    %33 = tpu.matmul %31, %32, %cst_12 {dimension_numbers = #tpu.dot_dimension_numbers<[2], [2], [1], [1], [0, 0, 0, 1, 1, 1], [0], [0]>} : vector<2x8x4xf32>, vector<2x8x4xf32>, vector<2x8x8xf32> -> vector<2x8x8xf32>
    "tpu.trace_stop"() : () -> ()
    %34 = vector.extract_strided_slice %20 {offsets = [0, 0, 12], sizes = [2, 8, 4], strides = [1, 1, 1]} : vector<2x8x32xf32> to vector<2x8x4xf32>
    %35 = vector.extract_strided_slice %22 {offsets = [0, 0, 12], sizes = [2, 8, 4], strides = [1, 1, 1]} : vector<2x8x32xf32> to vector<2x8x4xf32>
    "tpu.trace_start"() <{level = 10 : i32, message = "bqd,bkd->bqk"}> : () -> ()
    %cst_13 = arith.constant dense<0.000000e+00> : vector<2x8x8xf32>
    %36 = tpu.matmul %34, %35, %cst_13 {dimension_numbers = #tpu.dot_dimension_numbers<[2], [2], [1], [1], [0, 0, 0, 1, 1, 1], [0], [0]>} : vector<2x8x4xf32>, vector<2x8x4xf32>, vector<2x8x8xf32> -> vector<2x8x8xf32>
    "tpu.trace_stop"() : () -> ()
    %37 = vector.extract_strided_slice %20 {offsets = [0, 0, 16], sizes = [2, 8, 4], strides = [1, 1, 1]} : vector<2x8x32xf32> to vector<2x8x4xf32>
    %38 = vector.extract_strided_slice %22 {offsets = [0, 0, 16], sizes = [2, 8, 4], strides = [1, 1, 1]} : vector<2x8x32xf32> to vector<2x8x4xf32>
    "tpu.trace_start"() <{level = 10 : i32, message = "bqd,bkd->bqk"}> : () -> ()
    %cst_14 = arith.constant dense<0.000000e+00> : vector<2x8x8xf32>
    %39 = tpu.matmul %37, %38, %cst_14 {dimension_numbers = #tpu.dot_dimension_numbers<[2], [2], [1], [1], [0, 0, 0, 1, 1, 1], [0], [0]>} : vector<2x8x4xf32>, vector<2x8x4xf32>, vector<2x8x8xf32> -> vector<2x8x8xf32>
    "tpu.trace_stop"() : () -> ()
    %40 = vector.extract_strided_slice %20 {offsets = [0, 0, 20], sizes = [2, 8, 4], strides = [1, 1, 1]} : vector<2x8x32xf32> to vector<2x8x4xf32>
    %41 = vector.extract_strided_slice %22 {offsets = [0, 0, 20], sizes = [2, 8, 4], strides = [1, 1, 1]} : vector<2x8x32xf32> to vector<2x8x4xf32>
    "tpu.trace_start"() <{level = 10 : i32, message = "bqd,bkd->bqk"}> : () -> ()
    %cst_15 = arith.constant dense<0.000000e+00> : vector<2x8x8xf32>
    %42 = tpu.matmul %40, %41, %cst_15 {dimension_numbers = #tpu.dot_dimension_numbers<[2], [2], [1], [1], [0, 0, 0, 1, 1, 1], [0], [0]>} : vector<2x8x4xf32>, vector<2x8x4xf32>, vector<2x8x8xf32> -> vector<2x8x8xf32>
    "tpu.trace_stop"() : () -> ()
    %43 = vector.extract_strided_slice %20 {offsets = [0, 0, 24], sizes = [2, 8, 4], strides = [1, 1, 1]} : vector<2x8x32xf32> to vector<2x8x4xf32>
    %44 = vector.extract_strided_slice %22 {offsets = [0, 0, 24], sizes = [2, 8, 4], strides = [1, 1, 1]} : vector<2x8x32xf32> to vector<2x8x4xf32>
    "tpu.trace_start"() <{level = 10 : i32, message = "bqd,bkd->bqk"}> : () -> ()
    %cst_16 = arith.constant dense<0.000000e+00> : vector<2x8x8xf32>
    %45 = tpu.matmul %43, %44, %cst_16 {dimension_numbers = #tpu.dot_dimension_numbers<[2], [2], [1], [1], [0, 0, 0, 1, 1, 1], [0], [0]>} : vector<2x8x4xf32>, vector<2x8x4xf32>, vector<2x8x8xf32> -> vector<2x8x8xf32>
    "tpu.trace_stop"() : () -> ()
    %46 = vector.extract_strided_slice %20 {offsets = [0, 0, 28], sizes = [2, 8, 4], strides = [1, 1, 1]} : vector<2x8x32xf32> to vector<2x8x4xf32>
    %47 = vector.extract_strided_slice %22 {offsets = [0, 0, 28], sizes = [2, 8, 4], strides = [1, 1, 1]} : vector<2x8x32xf32> to vector<2x8x4xf32>
    "tpu.trace_start"() <{level = 10 : i32, message = "bqd,bkd->bqk"}> : () -> ()
    %cst_17 = arith.constant dense<0.000000e+00> : vector<2x8x8xf32>
    %48 = tpu.matmul %46, %47, %cst_17 {dimension_numbers = #tpu.dot_dimension_numbers<[2], [2], [1], [1], [0, 0, 0, 1, 1, 1], [0], [0]>} : vector<2x8x4xf32>, vector<2x8x4xf32>, vector<2x8x8xf32> -> vector<2x8x8xf32>
    "tpu.trace_stop"() : () -> ()
    %49 = vector.shape_cast %27 : vector<2x8x8xf32> to vector<1x2x8x8xf32>
    %50 = vector.shape_cast %30 : vector<2x8x8xf32> to vector<1x2x8x8xf32>
    %51 = vector.shape_cast %33 : vector<2x8x8xf32> to vector<1x2x8x8xf32>
    %52 = vector.shape_cast %36 : vector<2x8x8xf32> to vector<1x2x8x8xf32>
    %53 = vector.shape_cast %39 : vector<2x8x8xf32> to vector<1x2x8x8xf32>
    %54 = vector.shape_cast %42 : vector<2x8x8xf32> to vector<1x2x8x8xf32>
    %55 = vector.shape_cast %45 : vector<2x8x8xf32> to vector<1x2x8x8xf32>
    %56 = vector.shape_cast %48 : vector<2x8x8xf32> to vector<1x2x8x8xf32>
    %57 = tpu.concatenate %49, %50, %51, %52, %53, %54, %55, %56 in 0 : vector<1x2x8x8xf32>, vector<1x2x8x8xf32>, vector<1x2x8x8xf32>, vector<1x2x8x8xf32>, vector<1x2x8x8xf32>, vector<1x2x8x8xf32>, vector<1x2x8x8xf32>, vector<1x2x8x8xf32> -> vector<8x2x8x8xf32>
    %cst_18 = arith.constant dense<0xFF800000> : vector<8x2x8xf32>
    %58 = vector.multi_reduction <maximumf>, %57, %cst_18 [3] : vector<8x2x8x8xf32> to vector<8x2x8xf32>
    %59 = vector.shape_cast %58 : vector<8x2x8xf32> to vector<8x2x8x1xf32>
    %60 = vector.broadcast %59 : vector<8x2x8x1xf32> to vector<8x2x8x8xf32>
    %61 = arith.subf %57, %60 : vector<8x2x8x8xf32>
    %62 = math.exp %61 : vector<8x2x8x8xf32>
    %cst_19 = arith.constant dense<0.000000e+00> : vector<8x2x8xf32>
    %63 = vector.multi_reduction <add>, %62, %cst_19 [3] : vector<8x2x8x8xf32> to vector<8x2x8xf32>
    %64 = vector.shape_cast %63 : vector<8x2x8xf32> to vector<8x2x8x1xf32>
    %65 = tpu.reciprocal %64 {approx = true} : vector<8x2x8x1xf32> -> vector<8x2x8x1xf32>
    %66 = vector.broadcast %65 : vector<8x2x8x1xf32> to vector<8x2x8x8xf32>
    %67 = arith.mulf %62, %66 : vector<8x2x8x8xf32>
    %cst_20 = arith.constant 0.000000e+00 : f32
    %68 = vector.broadcast %cst_20 : f32 to vector<16x32xf32>
    %69 = vector.extract_strided_slice %67 {offsets = [0, 0, 0, 0], sizes = [1, 2, 8, 8], strides = [1, 1, 1, 1]} : vector<8x2x8x8xf32> to vector<1x2x8x8xf32>
    %70 = vector.shape_cast %69 : vector<1x2x8x8xf32> to vector<2x8x8xf32>
    %71 = vector.extract_strided_slice %24 {offsets = [0, 0, 0], sizes = [2, 8, 4], strides = [1, 1, 1]} : vector<2x8x32xf32> to vector<2x8x4xf32>
    "tpu.trace_start"() <{level = 10 : i32, message = "bqk,bkd->bqd"}> : () -> ()
    %cst_21 = arith.constant dense<0.000000e+00> : vector<2x8x4xf32>
    %72 = tpu.matmul %70, %71, %cst_21 {dimension_numbers = #tpu.dot_dimension_numbers<[2], [1], [1], [2], [0, 0, 0, 1, 1, 2], [0], [0]>} : vector<2x8x8xf32>, vector<2x8x4xf32>, vector<2x8x4xf32> -> vector<2x8x4xf32>
    "tpu.trace_stop"() : () -> ()
    %73 = vector.shape_cast %72 : vector<2x8x4xf32> to vector<16x4xf32>
    %c0_22 = arith.constant 0 : index
    %c0_23 = arith.constant 0 : index
    %c0_24 = arith.constant 0 : index
    %c0_25 = arith.constant 0 : index
    %74 = vector.load %arg4[%c0_22, %c0_23, %c0_24, %c0_25] : memref<4x8x4x32xf32, #tpu.memory_space<vmem>>, vector<1x1x4x32xf32>
    %75 = vector.shape_cast %74 : vector<1x1x4x32xf32> to vector<4x32xf32>
    %cst_26 = arith.constant dense<0.000000e+00> : vector<16x32xf32>
    %76 = tpu.matmul %73, %75, %cst_26 {dimension_numbers = #tpu.dot_dimension_numbers<[1], [0], [0], [1], [0, 0, 1, 1], [], []>} : vector<16x4xf32>, vector<4x32xf32>, vector<16x32xf32> -> vector<16x32xf32>
    %77 = arith.addf %68, %76 : vector<16x32xf32>
    %78 = vector.extract_strided_slice %67 {offsets = [1, 0, 0, 0], sizes = [1, 2, 8, 8], strides = [1, 1, 1, 1]} : vector<8x2x8x8xf32> to vector<1x2x8x8xf32>
    %79 = vector.shape_cast %78 : vector<1x2x8x8xf32> to vector<2x8x8xf32>
    %80 = vector.extract_strided_slice %24 {offsets = [0, 0, 4], sizes = [2, 8, 4], strides = [1, 1, 1]} : vector<2x8x32xf32> to vector<2x8x4xf32>
    "tpu.trace_start"() <{level = 10 : i32, message = "bqk,bkd->bqd"}> : () -> ()
    %cst_27 = arith.constant dense<0.000000e+00> : vector<2x8x4xf32>
    %81 = tpu.matmul %79, %80, %cst_27 {dimension_numbers = #tpu.dot_dimension_numbers<[2], [1], [1], [2], [0, 0, 0, 1, 1, 2], [0], [0]>} : vector<2x8x8xf32>, vector<2x8x4xf32>, vector<2x8x4xf32> -> vector<2x8x4xf32>
    "tpu.trace_stop"() : () -> ()
    %82 = vector.shape_cast %81 : vector<2x8x4xf32> to vector<16x4xf32>
    %c0_28 = arith.constant 0 : index
    %c1 = arith.constant 1 : index
    %c0_29 = arith.constant 0 : index
    %c0_30 = arith.constant 0 : index
    %83 = vector.load %arg4[%c0_28, %c1, %c0_29, %c0_30] : memref<4x8x4x32xf32, #tpu.memory_space<vmem>>, vector<1x1x4x32xf32>
    %84 = vector.shape_cast %83 : vector<1x1x4x32xf32> to vector<4x32xf32>
    %cst_31 = arith.constant dense<0.000000e+00> : vector<16x32xf32>
    %85 = tpu.matmul %82, %84, %cst_31 {dimension_numbers = #tpu.dot_dimension_numbers<[1], [0], [0], [1], [0, 0, 1, 1], [], []>} : vector<16x4xf32>, vector<4x32xf32>, vector<16x32xf32> -> vector<16x32xf32>
    %86 = arith.addf %77, %85 : vector<16x32xf32>
    %87 = vector.extract_strided_slice %67 {offsets = [2, 0, 0, 0], sizes = [1, 2, 8, 8], strides = [1, 1, 1, 1]} : vector<8x2x8x8xf32> to vector<1x2x8x8xf32>
    %88 = vector.shape_cast %87 : vector<1x2x8x8xf32> to vector<2x8x8xf32>
    %89 = vector.extract_strided_slice %24 {offsets = [0, 0, 8], sizes = [2, 8, 4], strides = [1, 1, 1]} : vector<2x8x32xf32> to vector<2x8x4xf32>
    "tpu.trace_start"() <{level = 10 : i32, message = "bqk,bkd->bqd"}> : () -> ()
    %cst_32 = arith.constant dense<0.000000e+00> : vector<2x8x4xf32>
    %90 = tpu.matmul %88, %89, %cst_32 {dimension_numbers = #tpu.dot_dimension_numbers<[2], [1], [1], [2], [0, 0, 0, 1, 1, 2], [0], [0]>} : vector<2x8x8xf32>, vector<2x8x4xf32>, vector<2x8x4xf32> -> vector<2x8x4xf32>
    "tpu.trace_stop"() : () -> ()
    %91 = vector.shape_cast %90 : vector<2x8x4xf32> to vector<16x4xf32>
    %c0_33 = arith.constant 0 : index
    %c2 = arith.constant 2 : index
    %c0_34 = arith.constant 0 : index
    %c0_35 = arith.constant 0 : index
    %92 = vector.load %arg4[%c0_33, %c2, %c0_34, %c0_35] : memref<4x8x4x32xf32, #tpu.memory_space<vmem>>, vector<1x1x4x32xf32>
    %93 = vector.shape_cast %92 : vector<1x1x4x32xf32> to vector<4x32xf32>
    %cst_36 = arith.constant dense<0.000000e+00> : vector<16x32xf32>
    %94 = tpu.matmul %91, %93, %cst_36 {dimension_numbers = #tpu.dot_dimension_numbers<[1], [0], [0], [1], [0, 0, 1, 1], [], []>} : vector<16x4xf32>, vector<4x32xf32>, vector<16x32xf32> -> vector<16x32xf32>
    %95 = arith.addf %86, %94 : vector<16x32xf32>
    %96 = vector.extract_strided_slice %67 {offsets = [3, 0, 0, 0], sizes = [1, 2, 8, 8], strides = [1, 1, 1, 1]} : vector<8x2x8x8xf32> to vector<1x2x8x8xf32>
    %97 = vector.shape_cast %96 : vector<1x2x8x8xf32> to vector<2x8x8xf32>
    %98 = vector.extract_strided_slice %24 {offsets = [0, 0, 12], sizes = [2, 8, 4], strides = [1, 1, 1]} : vector<2x8x32xf32> to vector<2x8x4xf32>
    "tpu.trace_start"() <{level = 10 : i32, message = "bqk,bkd->bqd"}> : () -> ()
    %cst_37 = arith.constant dense<0.000000e+00> : vector<2x8x4xf32>
    %99 = tpu.matmul %97, %98, %cst_37 {dimension_numbers = #tpu.dot_dimension_numbers<[2], [1], [1], [2], [0, 0, 0, 1, 1, 2], [0], [0]>} : vector<2x8x8xf32>, vector<2x8x4xf32>, vector<2x8x4xf32> -> vector<2x8x4xf32>
    "tpu.trace_stop"() : () -> ()
    %100 = vector.shape_cast %99 : vector<2x8x4xf32> to vector<16x4xf32>
    %c0_38 = arith.constant 0 : index
    %c3 = arith.constant 3 : index
    %c0_39 = arith.constant 0 : index
    %c0_40 = arith.constant 0 : index
    %101 = vector.load %arg4[%c0_38, %c3, %c0_39, %c0_40] : memref<4x8x4x32xf32, #tpu.memory_space<vmem>>, vector<1x1x4x32xf32>
    %102 = vector.shape_cast %101 : vector<1x1x4x32xf32> to vector<4x32xf32>
    %cst_41 = arith.constant dense<0.000000e+00> : vector<16x32xf32>
    %103 = tpu.matmul %100, %102, %cst_41 {dimension_numbers = #tpu.dot_dimension_numbers<[1], [0], [0], [1], [0, 0, 1, 1], [], []>} : vector<16x4xf32>, vector<4x32xf32>, vector<16x32xf32> -> vector<16x32xf32>
    %104 = arith.addf %95, %103 : vector<16x32xf32>
    %105 = vector.extract_strided_slice %67 {offsets = [4, 0, 0, 0], sizes = [1, 2, 8, 8], strides = [1, 1, 1, 1]} : vector<8x2x8x8xf32> to vector<1x2x8x8xf32>
    %106 = vector.shape_cast %105 : vector<1x2x8x8xf32> to vector<2x8x8xf32>
    %107 = vector.extract_strided_slice %24 {offsets = [0, 0, 16], sizes = [2, 8, 4], strides = [1, 1, 1]} : vector<2x8x32xf32> to vector<2x8x4xf32>
    "tpu.trace_start"() <{level = 10 : i32, message = "bqk,bkd->bqd"}> : () -> ()
    %cst_42 = arith.constant dense<0.000000e+00> : vector<2x8x4xf32>
    %108 = tpu.matmul %106, %107, %cst_42 {dimension_numbers = #tpu.dot_dimension_numbers<[2], [1], [1], [2], [0, 0, 0, 1, 1, 2], [0], [0]>} : vector<2x8x8xf32>, vector<2x8x4xf32>, vector<2x8x4xf32> -> vector<2x8x4xf32>
    "tpu.trace_stop"() : () -> ()
    %109 = vector.shape_cast %108 : vector<2x8x4xf32> to vector<16x4xf32>
    %c0_43 = arith.constant 0 : index
    %c4 = arith.constant 4 : index
    %c0_44 = arith.constant 0 : index
    %c0_45 = arith.constant 0 : index
    %110 = vector.load %arg4[%c0_43, %c4, %c0_44, %c0_45] : memref<4x8x4x32xf32, #tpu.memory_space<vmem>>, vector<1x1x4x32xf32>
    %111 = vector.shape_cast %110 : vector<1x1x4x32xf32> to vector<4x32xf32>
    %cst_46 = arith.constant dense<0.000000e+00> : vector<16x32xf32>
    %112 = tpu.matmul %109, %111, %cst_46 {dimension_numbers = #tpu.dot_dimension_numbers<[1], [0], [0], [1], [0, 0, 1, 1], [], []>} : vector<16x4xf32>, vector<4x32xf32>, vector<16x32xf32> -> vector<16x32xf32>
    %113 = arith.addf %104, %112 : vector<16x32xf32>
    %114 = vector.extract_strided_slice %67 {offsets = [5, 0, 0, 0], sizes = [1, 2, 8, 8], strides = [1, 1, 1, 1]} : vector<8x2x8x8xf32> to vector<1x2x8x8xf32>
    %115 = vector.shape_cast %114 : vector<1x2x8x8xf32> to vector<2x8x8xf32>
    %116 = vector.extract_strided_slice %24 {offsets = [0, 0, 20], sizes = [2, 8, 4], strides = [1, 1, 1]} : vector<2x8x32xf32> to vector<2x8x4xf32>
    "tpu.trace_start"() <{level = 10 : i32, message = "bqk,bkd->bqd"}> : () -> ()
    %cst_47 = arith.constant dense<0.000000e+00> : vector<2x8x4xf32>
    %117 = tpu.matmul %115, %116, %cst_47 {dimension_numbers = #tpu.dot_dimension_numbers<[2], [1], [1], [2], [0, 0, 0, 1, 1, 2], [0], [0]>} : vector<2x8x8xf32>, vector<2x8x4xf32>, vector<2x8x4xf32> -> vector<2x8x4xf32>
    "tpu.trace_stop"() : () -> ()
    %118 = vector.shape_cast %117 : vector<2x8x4xf32> to vector<16x4xf32>
    %c0_48 = arith.constant 0 : index
    %c5 = arith.constant 5 : index
    %c0_49 = arith.constant 0 : index
    %c0_50 = arith.constant 0 : index
    %119 = vector.load %arg4[%c0_48, %c5, %c0_49, %c0_50] : memref<4x8x4x32xf32, #tpu.memory_space<vmem>>, vector<1x1x4x32xf32>
    %120 = vector.shape_cast %119 : vector<1x1x4x32xf32> to vector<4x32xf32>
    %cst_51 = arith.constant dense<0.000000e+00> : vector<16x32xf32>
    %121 = tpu.matmul %118, %120, %cst_51 {dimension_numbers = #tpu.dot_dimension_numbers<[1], [0], [0], [1], [0, 0, 1, 1], [], []>} : vector<16x4xf32>, vector<4x32xf32>, vector<16x32xf32> -> vector<16x32xf32>
    %122 = arith.addf %113, %121 : vector<16x32xf32>
    %123 = vector.extract_strided_slice %67 {offsets = [6, 0, 0, 0], sizes = [1, 2, 8, 8], strides = [1, 1, 1, 1]} : vector<8x2x8x8xf32> to vector<1x2x8x8xf32>
    %124 = vector.shape_cast %123 : vector<1x2x8x8xf32> to vector<2x8x8xf32>
    %125 = vector.extract_strided_slice %24 {offsets = [0, 0, 24], sizes = [2, 8, 4], strides = [1, 1, 1]} : vector<2x8x32xf32> to vector<2x8x4xf32>
    "tpu.trace_start"() <{level = 10 : i32, message = "bqk,bkd->bqd"}> : () -> ()
    %cst_52 = arith.constant dense<0.000000e+00> : vector<2x8x4xf32>
    %126 = tpu.matmul %124, %125, %cst_52 {dimension_numbers = #tpu.dot_dimension_numbers<[2], [1], [1], [2], [0, 0, 0, 1, 1, 2], [0], [0]>} : vector<2x8x8xf32>, vector<2x8x4xf32>, vector<2x8x4xf32> -> vector<2x8x4xf32>
    "tpu.trace_stop"() : () -> ()
    %127 = vector.shape_cast %126 : vector<2x8x4xf32> to vector<16x4xf32>
    %c0_53 = arith.constant 0 : index
    %c6 = arith.constant 6 : index
    %c0_54 = arith.constant 0 : index
    %c0_55 = arith.constant 0 : index
    %128 = vector.load %arg4[%c0_53, %c6, %c0_54, %c0_55] : memref<4x8x4x32xf32, #tpu.memory_space<vmem>>, vector<1x1x4x32xf32>
    %129 = vector.shape_cast %128 : vector<1x1x4x32xf32> to vector<4x32xf32>
    %cst_56 = arith.constant dense<0.000000e+00> : vector<16x32xf32>
    %130 = tpu.matmul %127, %129, %cst_56 {dimension_numbers = #tpu.dot_dimension_numbers<[1], [0], [0], [1], [0, 0, 1, 1], [], []>} : vector<16x4xf32>, vector<4x32xf32>, vector<16x32xf32> -> vector<16x32xf32>
    %131 = arith.addf %122, %130 : vector<16x32xf32>
    %132 = vector.extract_strided_slice %67 {offsets = [7, 0, 0, 0], sizes = [1, 2, 8, 8], strides = [1, 1, 1, 1]} : vector<8x2x8x8xf32> to vector<1x2x8x8xf32>
    %133 = vector.shape_cast %132 : vector<1x2x8x8xf32> to vector<2x8x8xf32>
    %134 = vector.extract_strided_slice %24 {offsets = [0, 0, 28], sizes = [2, 8, 4], strides = [1, 1, 1]} : vector<2x8x32xf32> to vector<2x8x4xf32>
    "tpu.trace_start"() <{level = 10 : i32, message = "bqk,bkd->bqd"}> : () -> ()
    %cst_57 = arith.constant dense<0.000000e+00> : vector<2x8x4xf32>
    %135 = tpu.matmul %133, %134, %cst_57 {dimension_numbers = #tpu.dot_dimension_numbers<[2], [1], [1], [2], [0, 0, 0, 1, 1, 2], [0], [0]>} : vector<2x8x8xf32>, vector<2x8x4xf32>, vector<2x8x4xf32> -> vector<2x8x4xf32>
    "tpu.trace_stop"() : () -> ()
    %136 = vector.shape_cast %135 : vector<2x8x4xf32> to vector<16x4xf32>
    %c0_58 = arith.constant 0 : index
    %c7 = arith.constant 7 : index
    %c0_59 = arith.constant 0 : index
    %c0_60 = arith.constant 0 : index
    %137 = vector.load %arg4[%c0_58, %c7, %c0_59, %c0_60] : memref<4x8x4x32xf32, #tpu.memory_space<vmem>>, vector<1x1x4x32xf32>
    %138 = vector.shape_cast %137 : vector<1x1x4x32xf32> to vector<4x32xf32>
    %cst_61 = arith.constant dense<0.000000e+00> : vector<16x32xf32>
    %139 = tpu.matmul %136, %138, %cst_61 {dimension_numbers = #tpu.dot_dimension_numbers<[1], [0], [0], [1], [0, 0, 1, 1], [], []>} : vector<16x4xf32>, vector<4x32xf32>, vector<16x32xf32> -> vector<16x32xf32>
    %140 = arith.addf %131, %139 : vector<16x32xf32>
    %141 = arith.addf %13, %140 : vector<16x32xf32>
    %c0_62 = arith.constant 0 : index
    %c0_63 = arith.constant 0 : index
    %c0_64 = arith.constant 0 : index
    %142 = vector.load %arg5[%c0_62, %c0_63, %c0_64] : memref<4x1x32xf32, #tpu.memory_space<vmem>>, vector<1x1x32xf32>
    %143 = vector.shape_cast %142 : vector<1x1x32xf32> to vector<1x32xf32>
    %c0_65 = arith.constant 0 : index
    %c0_66 = arith.constant 0 : index
    %c0_67 = arith.constant 0 : index
    %144 = vector.load %arg6[%c0_65, %c0_66, %c0_67] : memref<4x1x32xf32, #tpu.memory_space<vmem>>, vector<1x1x32xf32>
    %145 = vector.shape_cast %144 : vector<1x1x32xf32> to vector<1x32xf32>
    %cst_68 = arith.constant dense<0.000000e+00> : vector<16xf32>
    %146 = vector.multi_reduction <add>, %141, %cst_68 [1] : vector<16x32xf32> to vector<16xf32>
    %147 = vector.shape_cast %146 : vector<16xf32> to vector<16x1xf32>
    %cst_69 = arith.constant 3.200000e+01 : f32
    %148 = vector.broadcast %cst_69 : f32 to vector<16x1xf32>
    %149 = arith.divf %147, %148 : vector<16x1xf32>
    %150 = vector.broadcast %149 : vector<16x1xf32> to vector<16x32xf32>
    %151 = arith.subf %141, %150 : vector<16x32xf32>
    %152 = arith.mulf %151, %151 : vector<16x32xf32>
    %cst_70 = arith.constant dense<0.000000e+00> : vector<16xf32>
    %153 = vector.multi_reduction <add>, %152, %cst_70 [1] : vector<16x32xf32> to vector<16xf32>
    %154 = vector.shape_cast %153 : vector<16xf32> to vector<16x1xf32>
    %cst_71 = arith.constant 3.200000e+01 : f32
    %155 = vector.broadcast %cst_71 : f32 to vector<16x1xf32>
    %156 = arith.divf %154, %155 : vector<16x1xf32>
    %157 = vector.broadcast %149 : vector<16x1xf32> to vector<16x32xf32>
    %158 = arith.subf %141, %157 : vector<16x32xf32>
    %cst_72 = arith.constant 9.99999974E-6 : f32
    %159 = vector.broadcast %cst_72 : f32 to vector<16x1xf32>
    %160 = arith.addf %156, %159 : vector<16x1xf32>
    %161 = math.rsqrt %160 : vector<16x1xf32>
    %162 = vector.broadcast %161 : vector<16x1xf32> to vector<16x32xf32>
    %163 = arith.mulf %158, %162 : vector<16x32xf32>
    %164 = vector.broadcast %143 : vector<1x32xf32> to vector<16x32xf32>
    %165 = arith.mulf %163, %164 : vector<16x32xf32>
    %166 = vector.broadcast %145 : vector<1x32xf32> to vector<16x32xf32>
    %167 = arith.addf %165, %166 : vector<16x32xf32>
    %c0_73 = arith.constant 0 : index
    %c0_74 = arith.constant 0 : index
    %c0_75 = arith.constant 0 : index
    %168 = vector.load %arg7[%c0_73, %c0_74, %c0_75] : memref<4x32x128xf32, #tpu.memory_space<vmem>>, vector<1x32x128xf32>
    %169 = vector.shape_cast %168 : vector<1x32x128xf32> to vector<32x128xf32>
    %cst_76 = arith.constant dense<0.000000e+00> : vector<16x128xf32>
    %170 = tpu.matmul %167, %169, %cst_76 {dimension_numbers = #tpu.dot_dimension_numbers<[1], [0], [0], [1], [0, 0, 1, 1], [], []>} : vector<16x32xf32>, vector<32x128xf32>, vector<16x128xf32> -> vector<16x128xf32>
    %c0_77 = arith.constant 0 : index
    %c0_78 = arith.constant 0 : index
    %c0_79 = arith.constant 0 : index
    %171 = vector.load %arg8[%c0_77, %c0_78, %c0_79] : memref<4x1x128xf32, #tpu.memory_space<vmem>>, vector<1x1x128xf32>
    %172 = vector.shape_cast %171 : vector<1x1x128xf32> to vector<1x128xf32>
    %173 = vector.broadcast %172 : vector<1x128xf32> to vector<16x128xf32>
    %174 = arith.addf %170, %173 : vector<16x128xf32>
    %cst_80 = arith.constant 0.000000e+00 : f32
    %175 = vector.broadcast %cst_80 : f32 to vector<16x128xf32>
    %176 = arith.maximumf %174, %175 : vector<16x128xf32>
    %c0_81 = arith.constant 0 : index
    %c0_82 = arith.constant 0 : index
    %c0_83 = arith.constant 0 : index
    %177 = vector.load %arg9[%c0_81, %c0_82, %c0_83] : memref<4x128x32xf32, #tpu.memory_space<vmem>>, vector<1x128x32xf32>
    %178 = vector.shape_cast %177 : vector<1x128x32xf32> to vector<128x32xf32>
    %cst_84 = arith.constant dense<0.000000e+00> : vector<16x32xf32>
    %179 = tpu.matmul %176, %178, %cst_84 {dimension_numbers = #tpu.dot_dimension_numbers<[1], [0], [0], [1], [0, 0, 1, 1], [], []>} : vector<16x128xf32>, vector<128x32xf32>, vector<16x32xf32> -> vector<16x32xf32>
    %c0_85 = arith.constant 0 : index
    %c0_86 = arith.constant 0 : index
    %c0_87 = arith.constant 0 : index
    %180 = vector.load %arg10[%c0_85, %c0_86, %c0_87] : memref<4x1x32xf32, #tpu.memory_space<vmem>>, vector<1x1x32xf32>
    %181 = vector.shape_cast %180 : vector<1x1x32xf32> to vector<1x32xf32>
    %182 = vector.broadcast %181 : vector<1x32xf32> to vector<16x32xf32>
    %183 = arith.addf %179, %182 : vector<16x32xf32>
    %184 = arith.addf %167, %183 : vector<16x32xf32>
    %c0_88 = arith.constant 0 : index
    %c0_89 = arith.constant 0 : index
    %c0_90 = arith.constant 0 : index
    %185 = vector.load %arg11[%c0_88, %c0_89, %c0_90] : memref<4x1x32xf32, #tpu.memory_space<vmem>>, vector<1x1x32xf32>
    %186 = vector.shape_cast %185 : vector<1x1x32xf32> to vector<1x32xf32>
    %c0_91 = arith.constant 0 : index
    %c0_92 = arith.constant 0 : index
    %c0_93 = arith.constant 0 : index
    %187 = vector.load %arg12[%c0_91, %c0_92, %c0_93] : memref<4x1x32xf32, #tpu.memory_space<vmem>>, vector<1x1x32xf32>
    %188 = vector.shape_cast %187 : vector<1x1x32xf32> to vector<1x32xf32>
    %cst_94 = arith.constant dense<0.000000e+00> : vector<16xf32>
    %189 = vector.multi_reduction <add>, %184, %cst_94 [1] : vector<16x32xf32> to vector<16xf32>
    %190 = vector.shape_cast %189 : vector<16xf32> to vector<16x1xf32>
    %cst_95 = arith.constant 3.200000e+01 : f32
    %191 = vector.broadcast %cst_95 : f32 to vector<16x1xf32>
    %192 = arith.divf %190, %191 : vector<16x1xf32>
    %193 = vector.broadcast %192 : vector<16x1xf32> to vector<16x32xf32>
    %194 = arith.subf %184, %193 : vector<16x32xf32>
    %195 = arith.mulf %194, %194 : vector<16x32xf32>
    %cst_96 = arith.constant dense<0.000000e+00> : vector<16xf32>
    %196 = vector.multi_reduction <add>, %195, %cst_96 [1] : vector<16x32xf32> to vector<16xf32>
    %197 = vector.shape_cast %196 : vector<16xf32> to vector<16x1xf32>
    %cst_97 = arith.constant 3.200000e+01 : f32
    %198 = vector.broadcast %cst_97 : f32 to vector<16x1xf32>
    %199 = arith.divf %197, %198 : vector<16x1xf32>
    %200 = vector.broadcast %192 : vector<16x1xf32> to vector<16x32xf32>
    %201 = arith.subf %184, %200 : vector<16x32xf32>
    %cst_98 = arith.constant 9.99999974E-6 : f32
    %202 = vector.broadcast %cst_98 : f32 to vector<16x1xf32>
    %203 = arith.addf %199, %202 : vector<16x1xf32>
    %204 = math.rsqrt %203 : vector<16x1xf32>
    %205 = vector.broadcast %204 : vector<16x1xf32> to vector<16x32xf32>
    %206 = arith.mulf %201, %205 : vector<16x32xf32>
    %207 = vector.broadcast %186 : vector<1x32xf32> to vector<16x32xf32>
    %208 = arith.mulf %206, %207 : vector<16x32xf32>
    %209 = vector.broadcast %188 : vector<1x32xf32> to vector<16x32xf32>
    %210 = arith.addf %208, %209 : vector<16x32xf32>
    %c1_99 = arith.constant 1 : index
    %c0_100 = arith.constant 0 : index
    %c0_101 = arith.constant 0 : index
    %211 = vector.load %arg3[%c1_99, %c0_100, %c0_101] : memref<4x32x96xf32, #tpu.memory_space<vmem>>, vector<1x32x96xf32>
    %212 = vector.shape_cast %211 : vector<1x32x96xf32> to vector<32x96xf32>
    %cst_102 = arith.constant dense<0.000000e+00> : vector<16x96xf32>
    %213 = tpu.matmul %210, %212, %cst_102 {dimension_numbers = #tpu.dot_dimension_numbers<[1], [0], [0], [1], [0, 0, 1, 1], [], []>} : vector<16x32xf32>, vector<32x96xf32>, vector<16x96xf32> -> vector<16x96xf32>
    %214 = vector.extract_strided_slice %213 {offsets = [0, 0], sizes = [16, 32], strides = [1, 1]} : vector<16x96xf32> to vector<16x32xf32>
    %cst_103 = arith.constant 5.000000e-01 : f32
    %215 = vector.broadcast %cst_103 : f32 to vector<16x32xf32>
    %216 = arith.mulf %214, %215 : vector<16x32xf32>
    %217 = vector.shape_cast %216 : vector<16x32xf32> to vector<2x8x32xf32>
    %218 = vector.extract_strided_slice %213 {offsets = [0, 32], sizes = [16, 32], strides = [1, 1]} : vector<16x96xf32> to vector<16x32xf32>
    %219 = vector.shape_cast %218 : vector<16x32xf32> to vector<2x8x32xf32>
    %220 = vector.extract_strided_slice %213 {offsets = [0, 64], sizes = [16, 32], strides = [1, 1]} : vector<16x96xf32> to vector<16x32xf32>
    %221 = vector.shape_cast %220 : vector<16x32xf32> to vector<2x8x32xf32>
    %222 = vector.extract_strided_slice %217 {offsets = [0, 0, 0], sizes = [2, 8, 4], strides = [1, 1, 1]} : vector<2x8x32xf32> to vector<2x8x4xf32>
    %223 = vector.extract_strided_slice %219 {offsets = [0, 0, 0], sizes = [2, 8, 4], strides = [1, 1, 1]} : vector<2x8x32xf32> to vector<2x8x4xf32>
    "tpu.trace_start"() <{level = 10 : i32, message = "bqd,bkd->bqk"}> : () -> ()
    %cst_104 = arith.constant dense<0.000000e+00> : vector<2x8x8xf32>
    %224 = tpu.matmul %222, %223, %cst_104 {dimension_numbers = #tpu.dot_dimension_numbers<[2], [2], [1], [1], [0, 0, 0, 1, 1, 1], [0], [0]>} : vector<2x8x4xf32>, vector<2x8x4xf32>, vector<2x8x8xf32> -> vector<2x8x8xf32>
    "tpu.trace_stop"() : () -> ()
    %225 = vector.extract_strided_slice %217 {offsets = [0, 0, 4], sizes = [2, 8, 4], strides = [1, 1, 1]} : vector<2x8x32xf32> to vector<2x8x4xf32>
    %226 = vector.extract_strided_slice %219 {offsets = [0, 0, 4], sizes = [2, 8, 4], strides = [1, 1, 1]} : vector<2x8x32xf32> to vector<2x8x4xf32>
    "tpu.trace_start"() <{level = 10 : i32, message = "bqd,bkd->bqk"}> : () -> ()
    %cst_105 = arith.constant dense<0.000000e+00> : vector<2x8x8xf32>
    %227 = tpu.matmul %225, %226, %cst_105 {dimension_numbers = #tpu.dot_dimension_numbers<[2], [2], [1], [1], [0, 0, 0, 1, 1, 1], [0], [0]>} : vector<2x8x4xf32>, vector<2x8x4xf32>, vector<2x8x8xf32> -> vector<2x8x8xf32>
    "tpu.trace_stop"() : () -> ()
    %228 = vector.extract_strided_slice %217 {offsets = [0, 0, 8], sizes = [2, 8, 4], strides = [1, 1, 1]} : vector<2x8x32xf32> to vector<2x8x4xf32>
    %229 = vector.extract_strided_slice %219 {offsets = [0, 0, 8], sizes = [2, 8, 4], strides = [1, 1, 1]} : vector<2x8x32xf32> to vector<2x8x4xf32>
    "tpu.trace_start"() <{level = 10 : i32, message = "bqd,bkd->bqk"}> : () -> ()
    %cst_106 = arith.constant dense<0.000000e+00> : vector<2x8x8xf32>
    %230 = tpu.matmul %228, %229, %cst_106 {dimension_numbers = #tpu.dot_dimension_numbers<[2], [2], [1], [1], [0, 0, 0, 1, 1, 1], [0], [0]>} : vector<2x8x4xf32>, vector<2x8x4xf32>, vector<2x8x8xf32> -> vector<2x8x8xf32>
    "tpu.trace_stop"() : () -> ()
    %231 = vector.extract_strided_slice %217 {offsets = [0, 0, 12], sizes = [2, 8, 4], strides = [1, 1, 1]} : vector<2x8x32xf32> to vector<2x8x4xf32>
    %232 = vector.extract_strided_slice %219 {offsets = [0, 0, 12], sizes = [2, 8, 4], strides = [1, 1, 1]} : vector<2x8x32xf32> to vector<2x8x4xf32>
    "tpu.trace_start"() <{level = 10 : i32, message = "bqd,bkd->bqk"}> : () -> ()
    %cst_107 = arith.constant dense<0.000000e+00> : vector<2x8x8xf32>
    %233 = tpu.matmul %231, %232, %cst_107 {dimension_numbers = #tpu.dot_dimension_numbers<[2], [2], [1], [1], [0, 0, 0, 1, 1, 1], [0], [0]>} : vector<2x8x4xf32>, vector<2x8x4xf32>, vector<2x8x8xf32> -> vector<2x8x8xf32>
    "tpu.trace_stop"() : () -> ()
    %234 = vector.extract_strided_slice %217 {offsets = [0, 0, 16], sizes = [2, 8, 4], strides = [1, 1, 1]} : vector<2x8x32xf32> to vector<2x8x4xf32>
    %235 = vector.extract_strided_slice %219 {offsets = [0, 0, 16], sizes = [2, 8, 4], strides = [1, 1, 1]} : vector<2x8x32xf32> to vector<2x8x4xf32>
    "tpu.trace_start"() <{level = 10 : i32, message = "bqd,bkd->bqk"}> : () -> ()
    %cst_108 = arith.constant dense<0.000000e+00> : vector<2x8x8xf32>
    %236 = tpu.matmul %234, %235, %cst_108 {dimension_numbers = #tpu.dot_dimension_numbers<[2], [2], [1], [1], [0, 0, 0, 1, 1, 1], [0], [0]>} : vector<2x8x4xf32>, vector<2x8x4xf32>, vector<2x8x8xf32> -> vector<2x8x8xf32>
    "tpu.trace_stop"() : () -> ()
    %237 = vector.extract_strided_slice %217 {offsets = [0, 0, 20], sizes = [2, 8, 4], strides = [1, 1, 1]} : vector<2x8x32xf32> to vector<2x8x4xf32>
    %238 = vector.extract_strided_slice %219 {offsets = [0, 0, 20], sizes = [2, 8, 4], strides = [1, 1, 1]} : vector<2x8x32xf32> to vector<2x8x4xf32>
    "tpu.trace_start"() <{level = 10 : i32, message = "bqd,bkd->bqk"}> : () -> ()
    %cst_109 = arith.constant dense<0.000000e+00> : vector<2x8x8xf32>
    %239 = tpu.matmul %237, %238, %cst_109 {dimension_numbers = #tpu.dot_dimension_numbers<[2], [2], [1], [1], [0, 0, 0, 1, 1, 1], [0], [0]>} : vector<2x8x4xf32>, vector<2x8x4xf32>, vector<2x8x8xf32> -> vector<2x8x8xf32>
    "tpu.trace_stop"() : () -> ()
    %240 = vector.extract_strided_slice %217 {offsets = [0, 0, 24], sizes = [2, 8, 4], strides = [1, 1, 1]} : vector<2x8x32xf32> to vector<2x8x4xf32>
    %241 = vector.extract_strided_slice %219 {offsets = [0, 0, 24], sizes = [2, 8, 4], strides = [1, 1, 1]} : vector<2x8x32xf32> to vector<2x8x4xf32>
    "tpu.trace_start"() <{level = 10 : i32, message = "bqd,bkd->bqk"}> : () -> ()
    %cst_110 = arith.constant dense<0.000000e+00> : vector<2x8x8xf32>
    %242 = tpu.matmul %240, %241, %cst_110 {dimension_numbers = #tpu.dot_dimension_numbers<[2], [2], [1], [1], [0, 0, 0, 1, 1, 1], [0], [0]>} : vector<2x8x4xf32>, vector<2x8x4xf32>, vector<2x8x8xf32> -> vector<2x8x8xf32>
    "tpu.trace_stop"() : () -> ()
    %243 = vector.extract_strided_slice %217 {offsets = [0, 0, 28], sizes = [2, 8, 4], strides = [1, 1, 1]} : vector<2x8x32xf32> to vector<2x8x4xf32>
    %244 = vector.extract_strided_slice %219 {offsets = [0, 0, 28], sizes = [2, 8, 4], strides = [1, 1, 1]} : vector<2x8x32xf32> to vector<2x8x4xf32>
    "tpu.trace_start"() <{level = 10 : i32, message = "bqd,bkd->bqk"}> : () -> ()
    %cst_111 = arith.constant dense<0.000000e+00> : vector<2x8x8xf32>
    %245 = tpu.matmul %243, %244, %cst_111 {dimension_numbers = #tpu.dot_dimension_numbers<[2], [2], [1], [1], [0, 0, 0, 1, 1, 1], [0], [0]>} : vector<2x8x4xf32>, vector<2x8x4xf32>, vector<2x8x8xf32> -> vector<2x8x8xf32>
    "tpu.trace_stop"() : () -> ()
    %246 = vector.shape_cast %224 : vector<2x8x8xf32> to vector<1x2x8x8xf32>
    %247 = vector.shape_cast %227 : vector<2x8x8xf32> to vector<1x2x8x8xf32>
    %248 = vector.shape_cast %230 : vector<2x8x8xf32> to vector<1x2x8x8xf32>
    %249 = vector.shape_cast %233 : vector<2x8x8xf32> to vector<1x2x8x8xf32>
    %250 = vector.shape_cast %236 : vector<2x8x8xf32> to vector<1x2x8x8xf32>
    %251 = vector.shape_cast %239 : vector<2x8x8xf32> to vector<1x2x8x8xf32>
    %252 = vector.shape_cast %242 : vector<2x8x8xf32> to vector<1x2x8x8xf32>
    %253 = vector.shape_cast %245 : vector<2x8x8xf32> to vector<1x2x8x8xf32>
    %254 = tpu.concatenate %246, %247, %248, %249, %250, %251, %252, %253 in 0 : vector<1x2x8x8xf32>, vector<1x2x8x8xf32>, vector<1x2x8x8xf32>, vector<1x2x8x8xf32>, vector<1x2x8x8xf32>, vector<1x2x8x8xf32>, vector<1x2x8x8xf32>, vector<1x2x8x8xf32> -> vector<8x2x8x8xf32>
    %cst_112 = arith.constant dense<0xFF800000> : vector<8x2x8xf32>
    %255 = vector.multi_reduction <maximumf>, %254, %cst_112 [3] : vector<8x2x8x8xf32> to vector<8x2x8xf32>
    %256 = vector.shape_cast %255 : vector<8x2x8xf32> to vector<8x2x8x1xf32>
    %257 = vector.broadcast %256 : vector<8x2x8x1xf32> to vector<8x2x8x8xf32>
    %258 = arith.subf %254, %257 : vector<8x2x8x8xf32>
    %259 = math.exp %258 : vector<8x2x8x8xf32>
    %cst_113 = arith.constant dense<0.000000e+00> : vector<8x2x8xf32>
    %260 = vector.multi_reduction <add>, %259, %cst_113 [3] : vector<8x2x8x8xf32> to vector<8x2x8xf32>
    %261 = vector.shape_cast %260 : vector<8x2x8xf32> to vector<8x2x8x1xf32>
    %262 = tpu.reciprocal %261 {approx = true} : vector<8x2x8x1xf32> -> vector<8x2x8x1xf32>
    %263 = vector.broadcast %262 : vector<8x2x8x1xf32> to vector<8x2x8x8xf32>
    %264 = arith.mulf %259, %263 : vector<8x2x8x8xf32>
    %cst_114 = arith.constant 0.000000e+00 : f32
    %265 = vector.broadcast %cst_114 : f32 to vector<16x32xf32>
    %266 = vector.extract_strided_slice %264 {offsets = [0, 0, 0, 0], sizes = [1, 2, 8, 8], strides = [1, 1, 1, 1]} : vector<8x2x8x8xf32> to vector<1x2x8x8xf32>
    %267 = vector.shape_cast %266 : vector<1x2x8x8xf32> to vector<2x8x8xf32>
    %268 = vector.extract_strided_slice %221 {offsets = [0, 0, 0], sizes = [2, 8, 4], strides = [1, 1, 1]} : vector<2x8x32xf32> to vector<2x8x4xf32>
    "tpu.trace_start"() <{level = 10 : i32, message = "bqk,bkd->bqd"}> : () -> ()
    %cst_115 = arith.constant dense<0.000000e+00> : vector<2x8x4xf32>
    %269 = tpu.matmul %267, %268, %cst_115 {dimension_numbers = #tpu.dot_dimension_numbers<[2], [1], [1], [2], [0, 0, 0, 1, 1, 2], [0], [0]>} : vector<2x8x8xf32>, vector<2x8x4xf32>, vector<2x8x4xf32> -> vector<2x8x4xf32>
    "tpu.trace_stop"() : () -> ()
    %270 = vector.shape_cast %269 : vector<2x8x4xf32> to vector<16x4xf32>
    %c1_116 = arith.constant 1 : index
    %c0_117 = arith.constant 0 : index
    %c0_118 = arith.constant 0 : index
    %c0_119 = arith.constant 0 : index
    %271 = vector.load %arg4[%c1_116, %c0_117, %c0_118, %c0_119] : memref<4x8x4x32xf32, #tpu.memory_space<vmem>>, vector<1x1x4x32xf32>
    %272 = vector.shape_cast %271 : vector<1x1x4x32xf32> to vector<4x32xf32>
    %cst_120 = arith.constant dense<0.000000e+00> : vector<16x32xf32>
    %273 = tpu.matmul %270, %272, %cst_120 {dimension_numbers = #tpu.dot_dimension_numbers<[1], [0], [0], [1], [0, 0, 1, 1], [], []>} : vector<16x4xf32>, vector<4x32xf32>, vector<16x32xf32> -> vector<16x32xf32>
    %274 = arith.addf %265, %273 : vector<16x32xf32>
    %275 = vector.extract_strided_slice %264 {offsets = [1, 0, 0, 0], sizes = [1, 2, 8, 8], strides = [1, 1, 1, 1]} : vector<8x2x8x8xf32> to vector<1x2x8x8xf32>
    %276 = vector.shape_cast %275 : vector<1x2x8x8xf32> to vector<2x8x8xf32>
    %277 = vector.extract_strided_slice %221 {offsets = [0, 0, 4], sizes = [2, 8, 4], strides = [1, 1, 1]} : vector<2x8x32xf32> to vector<2x8x4xf32>
    "tpu.trace_start"() <{level = 10 : i32, message = "bqk,bkd->bqd"}> : () -> ()
    %cst_121 = arith.constant dense<0.000000e+00> : vector<2x8x4xf32>
    %278 = tpu.matmul %276, %277, %cst_121 {dimension_numbers = #tpu.dot_dimension_numbers<[2], [1], [1], [2], [0, 0, 0, 1, 1, 2], [0], [0]>} : vector<2x8x8xf32>, vector<2x8x4xf32>, vector<2x8x4xf32> -> vector<2x8x4xf32>
    "tpu.trace_stop"() : () -> ()
    %279 = vector.shape_cast %278 : vector<2x8x4xf32> to vector<16x4xf32>
    %c1_122 = arith.constant 1 : index
    %c1_123 = arith.constant 1 : index
    %c0_124 = arith.constant 0 : index
    %c0_125 = arith.constant 0 : index
    %280 = vector.load %arg4[%c1_122, %c1_123, %c0_124, %c0_125] : memref<4x8x4x32xf32, #tpu.memory_space<vmem>>, vector<1x1x4x32xf32>
    %281 = vector.shape_cast %280 : vector<1x1x4x32xf32> to vector<4x32xf32>
    %cst_126 = arith.constant dense<0.000000e+00> : vector<16x32xf32>
    %282 = tpu.matmul %279, %281, %cst_126 {dimension_numbers = #tpu.dot_dimension_numbers<[1], [0], [0], [1], [0, 0, 1, 1], [], []>} : vector<16x4xf32>, vector<4x32xf32>, vector<16x32xf32> -> vector<16x32xf32>
    %283 = arith.addf %274, %282 : vector<16x32xf32>
    %284 = vector.extract_strided_slice %264 {offsets = [2, 0, 0, 0], sizes = [1, 2, 8, 8], strides = [1, 1, 1, 1]} : vector<8x2x8x8xf32> to vector<1x2x8x8xf32>
    %285 = vector.shape_cast %284 : vector<1x2x8x8xf32> to vector<2x8x8xf32>
    %286 = vector.extract_strided_slice %221 {offsets = [0, 0, 8], sizes = [2, 8, 4], strides = [1, 1, 1]} : vector<2x8x32xf32> to vector<2x8x4xf32>
    "tpu.trace_start"() <{level = 10 : i32, message = "bqk,bkd->bqd"}> : () -> ()
    %cst_127 = arith.constant dense<0.000000e+00> : vector<2x8x4xf32>
    %287 = tpu.matmul %285, %286, %cst_127 {dimension_numbers = #tpu.dot_dimension_numbers<[2], [1], [1], [2], [0, 0, 0, 1, 1, 2], [0], [0]>} : vector<2x8x8xf32>, vector<2x8x4xf32>, vector<2x8x4xf32> -> vector<2x8x4xf32>
    "tpu.trace_stop"() : () -> ()
    %288 = vector.shape_cast %287 : vector<2x8x4xf32> to vector<16x4xf32>
    %c1_128 = arith.constant 1 : index
    %c2_129 = arith.constant 2 : index
    %c0_130 = arith.constant 0 : index
    %c0_131 = arith.constant 0 : index
    %289 = vector.load %arg4[%c1_128, %c2_129, %c0_130, %c0_131] : memref<4x8x4x32xf32, #tpu.memory_space<vmem>>, vector<1x1x4x32xf32>
    %290 = vector.shape_cast %289 : vector<1x1x4x32xf32> to vector<4x32xf32>
    %cst_132 = arith.constant dense<0.000000e+00> : vector<16x32xf32>
    %291 = tpu.matmul %288, %290, %cst_132 {dimension_numbers = #tpu.dot_dimension_numbers<[1], [0], [0], [1], [0, 0, 1, 1], [], []>} : vector<16x4xf32>, vector<4x32xf32>, vector<16x32xf32> -> vector<16x32xf32>
    %292 = arith.addf %283, %291 : vector<16x32xf32>
    %293 = vector.extract_strided_slice %264 {offsets = [3, 0, 0, 0], sizes = [1, 2, 8, 8], strides = [1, 1, 1, 1]} : vector<8x2x8x8xf32> to vector<1x2x8x8xf32>
    %294 = vector.shape_cast %293 : vector<1x2x8x8xf32> to vector<2x8x8xf32>
    %295 = vector.extract_strided_slice %221 {offsets = [0, 0, 12], sizes = [2, 8, 4], strides = [1, 1, 1]} : vector<2x8x32xf32> to vector<2x8x4xf32>
    "tpu.trace_start"() <{level = 10 : i32, message = "bqk,bkd->bqd"}> : () -> ()
    %cst_133 = arith.constant dense<0.000000e+00> : vector<2x8x4xf32>
    %296 = tpu.matmul %294, %295, %cst_133 {dimension_numbers = #tpu.dot_dimension_numbers<[2], [1], [1], [2], [0, 0, 0, 1, 1, 2], [0], [0]>} : vector<2x8x8xf32>, vector<2x8x4xf32>, vector<2x8x4xf32> -> vector<2x8x4xf32>
    "tpu.trace_stop"() : () -> ()
    %297 = vector.shape_cast %296 : vector<2x8x4xf32> to vector<16x4xf32>
    %c1_134 = arith.constant 1 : index
    %c3_135 = arith.constant 3 : index
    %c0_136 = arith.constant 0 : index
    %c0_137 = arith.constant 0 : index
    %298 = vector.load %arg4[%c1_134, %c3_135, %c0_136, %c0_137] : memref<4x8x4x32xf32, #tpu.memory_space<vmem>>, vector<1x1x4x32xf32>
    %299 = vector.shape_cast %298 : vector<1x1x4x32xf32> to vector<4x32xf32>
    %cst_138 = arith.constant dense<0.000000e+00> : vector<16x32xf32>
    %300 = tpu.matmul %297, %299, %cst_138 {dimension_numbers = #tpu.dot_dimension_numbers<[1], [0], [0], [1], [0, 0, 1, 1], [], []>} : vector<16x4xf32>, vector<4x32xf32>, vector<16x32xf32> -> vector<16x32xf32>
    %301 = arith.addf %292, %300 : vector<16x32xf32>
    %302 = vector.extract_strided_slice %264 {offsets = [4, 0, 0, 0], sizes = [1, 2, 8, 8], strides = [1, 1, 1, 1]} : vector<8x2x8x8xf32> to vector<1x2x8x8xf32>
    %303 = vector.shape_cast %302 : vector<1x2x8x8xf32> to vector<2x8x8xf32>
    %304 = vector.extract_strided_slice %221 {offsets = [0, 0, 16], sizes = [2, 8, 4], strides = [1, 1, 1]} : vector<2x8x32xf32> to vector<2x8x4xf32>
    "tpu.trace_start"() <{level = 10 : i32, message = "bqk,bkd->bqd"}> : () -> ()
    %cst_139 = arith.constant dense<0.000000e+00> : vector<2x8x4xf32>
    %305 = tpu.matmul %303, %304, %cst_139 {dimension_numbers = #tpu.dot_dimension_numbers<[2], [1], [1], [2], [0, 0, 0, 1, 1, 2], [0], [0]>} : vector<2x8x8xf32>, vector<2x8x4xf32>, vector<2x8x4xf32> -> vector<2x8x4xf32>
    "tpu.trace_stop"() : () -> ()
    %306 = vector.shape_cast %305 : vector<2x8x4xf32> to vector<16x4xf32>
    %c1_140 = arith.constant 1 : index
    %c4_141 = arith.constant 4 : index
    %c0_142 = arith.constant 0 : index
    %c0_143 = arith.constant 0 : index
    %307 = vector.load %arg4[%c1_140, %c4_141, %c0_142, %c0_143] : memref<4x8x4x32xf32, #tpu.memory_space<vmem>>, vector<1x1x4x32xf32>
    %308 = vector.shape_cast %307 : vector<1x1x4x32xf32> to vector<4x32xf32>
    %cst_144 = arith.constant dense<0.000000e+00> : vector<16x32xf32>
    %309 = tpu.matmul %306, %308, %cst_144 {dimension_numbers = #tpu.dot_dimension_numbers<[1], [0], [0], [1], [0, 0, 1, 1], [], []>} : vector<16x4xf32>, vector<4x32xf32>, vector<16x32xf32> -> vector<16x32xf32>
    %310 = arith.addf %301, %309 : vector<16x32xf32>
    %311 = vector.extract_strided_slice %264 {offsets = [5, 0, 0, 0], sizes = [1, 2, 8, 8], strides = [1, 1, 1, 1]} : vector<8x2x8x8xf32> to vector<1x2x8x8xf32>
    %312 = vector.shape_cast %311 : vector<1x2x8x8xf32> to vector<2x8x8xf32>
    %313 = vector.extract_strided_slice %221 {offsets = [0, 0, 20], sizes = [2, 8, 4], strides = [1, 1, 1]} : vector<2x8x32xf32> to vector<2x8x4xf32>
    "tpu.trace_start"() <{level = 10 : i32, message = "bqk,bkd->bqd"}> : () -> ()
    %cst_145 = arith.constant dense<0.000000e+00> : vector<2x8x4xf32>
    %314 = tpu.matmul %312, %313, %cst_145 {dimension_numbers = #tpu.dot_dimension_numbers<[2], [1], [1], [2], [0, 0, 0, 1, 1, 2], [0], [0]>} : vector<2x8x8xf32>, vector<2x8x4xf32>, vector<2x8x4xf32> -> vector<2x8x4xf32>
    "tpu.trace_stop"() : () -> ()
    %315 = vector.shape_cast %314 : vector<2x8x4xf32> to vector<16x4xf32>
    %c1_146 = arith.constant 1 : index
    %c5_147 = arith.constant 5 : index
    %c0_148 = arith.constant 0 : index
    %c0_149 = arith.constant 0 : index
    %316 = vector.load %arg4[%c1_146, %c5_147, %c0_148, %c0_149] : memref<4x8x4x32xf32, #tpu.memory_space<vmem>>, vector<1x1x4x32xf32>
    %317 = vector.shape_cast %316 : vector<1x1x4x32xf32> to vector<4x32xf32>
    %cst_150 = arith.constant dense<0.000000e+00> : vector<16x32xf32>
    %318 = tpu.matmul %315, %317, %cst_150 {dimension_numbers = #tpu.dot_dimension_numbers<[1], [0], [0], [1], [0, 0, 1, 1], [], []>} : vector<16x4xf32>, vector<4x32xf32>, vector<16x32xf32> -> vector<16x32xf32>
    %319 = arith.addf %310, %318 : vector<16x32xf32>
    %320 = vector.extract_strided_slice %264 {offsets = [6, 0, 0, 0], sizes = [1, 2, 8, 8], strides = [1, 1, 1, 1]} : vector<8x2x8x8xf32> to vector<1x2x8x8xf32>
    %321 = vector.shape_cast %320 : vector<1x2x8x8xf32> to vector<2x8x8xf32>
    %322 = vector.extract_strided_slice %221 {offsets = [0, 0, 24], sizes = [2, 8, 4], strides = [1, 1, 1]} : vector<2x8x32xf32> to vector<2x8x4xf32>
    "tpu.trace_start"() <{level = 10 : i32, message = "bqk,bkd->bqd"}> : () -> ()
    %cst_151 = arith.constant dense<0.000000e+00> : vector<2x8x4xf32>
    %323 = tpu.matmul %321, %322, %cst_151 {dimension_numbers = #tpu.dot_dimension_numbers<[2], [1], [1], [2], [0, 0, 0, 1, 1, 2], [0], [0]>} : vector<2x8x8xf32>, vector<2x8x4xf32>, vector<2x8x4xf32> -> vector<2x8x4xf32>
    "tpu.trace_stop"() : () -> ()
    %324 = vector.shape_cast %323 : vector<2x8x4xf32> to vector<16x4xf32>
    %c1_152 = arith.constant 1 : index
    %c6_153 = arith.constant 6 : index
    %c0_154 = arith.constant 0 : index
    %c0_155 = arith.constant 0 : index
    %325 = vector.load %arg4[%c1_152, %c6_153, %c0_154, %c0_155] : memref<4x8x4x32xf32, #tpu.memory_space<vmem>>, vector<1x1x4x32xf32>
    %326 = vector.shape_cast %325 : vector<1x1x4x32xf32> to vector<4x32xf32>
    %cst_156 = arith.constant dense<0.000000e+00> : vector<16x32xf32>
    %327 = tpu.matmul %324, %326, %cst_156 {dimension_numbers = #tpu.dot_dimension_numbers<[1], [0], [0], [1], [0, 0, 1, 1], [], []>} : vector<16x4xf32>, vector<4x32xf32>, vector<16x32xf32> -> vector<16x32xf32>
    %328 = arith.addf %319, %327 : vector<16x32xf32>
    %329 = vector.extract_strided_slice %264 {offsets = [7, 0, 0, 0], sizes = [1, 2, 8, 8], strides = [1, 1, 1, 1]} : vector<8x2x8x8xf32> to vector<1x2x8x8xf32>
    %330 = vector.shape_cast %329 : vector<1x2x8x8xf32> to vector<2x8x8xf32>
    %331 = vector.extract_strided_slice %221 {offsets = [0, 0, 28], sizes = [2, 8, 4], strides = [1, 1, 1]} : vector<2x8x32xf32> to vector<2x8x4xf32>
    "tpu.trace_start"() <{level = 10 : i32, message = "bqk,bkd->bqd"}> : () -> ()
    %cst_157 = arith.constant dense<0.000000e+00> : vector<2x8x4xf32>
    %332 = tpu.matmul %330, %331, %cst_157 {dimension_numbers = #tpu.dot_dimension_numbers<[2], [1], [1], [2], [0, 0, 0, 1, 1, 2], [0], [0]>} : vector<2x8x8xf32>, vector<2x8x4xf32>, vector<2x8x4xf32> -> vector<2x8x4xf32>
    "tpu.trace_stop"() : () -> ()
    %333 = vector.shape_cast %332 : vector<2x8x4xf32> to vector<16x4xf32>
    %c1_158 = arith.constant 1 : index
    %c7_159 = arith.constant 7 : index
    %c0_160 = arith.constant 0 : index
    %c0_161 = arith.constant 0 : index
    %334 = vector.load %arg4[%c1_158, %c7_159, %c0_160, %c0_161] : memref<4x8x4x32xf32, #tpu.memory_space<vmem>>, vector<1x1x4x32xf32>
    %335 = vector.shape_cast %334 : vector<1x1x4x32xf32> to vector<4x32xf32>
    %cst_162 = arith.constant dense<0.000000e+00> : vector<16x32xf32>
    %336 = tpu.matmul %333, %335, %cst_162 {dimension_numbers = #tpu.dot_dimension_numbers<[1], [0], [0], [1], [0, 0, 1, 1], [], []>} : vector<16x4xf32>, vector<4x32xf32>, vector<16x32xf32> -> vector<16x32xf32>
    %337 = arith.addf %328, %336 : vector<16x32xf32>
    %338 = arith.addf %210, %337 : vector<16x32xf32>
    %c1_163 = arith.constant 1 : index
    %c0_164 = arith.constant 0 : index
    %c0_165 = arith.constant 0 : index
    %339 = vector.load %arg5[%c1_163, %c0_164, %c0_165] : memref<4x1x32xf32, #tpu.memory_space<vmem>>, vector<1x1x32xf32>
    %340 = vector.shape_cast %339 : vector<1x1x32xf32> to vector<1x32xf32>
    %c1_166 = arith.constant 1 : index
    %c0_167 = arith.constant 0 : index
    %c0_168 = arith.constant 0 : index
    %341 = vector.load %arg6[%c1_166, %c0_167, %c0_168] : memref<4x1x32xf32, #tpu.memory_space<vmem>>, vector<1x1x32xf32>
    %342 = vector.shape_cast %341 : vector<1x1x32xf32> to vector<1x32xf32>
    %cst_169 = arith.constant dense<0.000000e+00> : vector<16xf32>
    %343 = vector.multi_reduction <add>, %338, %cst_169 [1] : vector<16x32xf32> to vector<16xf32>
    %344 = vector.shape_cast %343 : vector<16xf32> to vector<16x1xf32>
    %cst_170 = arith.constant 3.200000e+01 : f32
    %345 = vector.broadcast %cst_170 : f32 to vector<16x1xf32>
    %346 = arith.divf %344, %345 : vector<16x1xf32>
    %347 = vector.broadcast %346 : vector<16x1xf32> to vector<16x32xf32>
    %348 = arith.subf %338, %347 : vector<16x32xf32>
    %349 = arith.mulf %348, %348 : vector<16x32xf32>
    %cst_171 = arith.constant dense<0.000000e+00> : vector<16xf32>
    %350 = vector.multi_reduction <add>, %349, %cst_171 [1] : vector<16x32xf32> to vector<16xf32>
    %351 = vector.shape_cast %350 : vector<16xf32> to vector<16x1xf32>
    %cst_172 = arith.constant 3.200000e+01 : f32
    %352 = vector.broadcast %cst_172 : f32 to vector<16x1xf32>
    %353 = arith.divf %351, %352 : vector<16x1xf32>
    %354 = vector.broadcast %346 : vector<16x1xf32> to vector<16x32xf32>
    %355 = arith.subf %338, %354 : vector<16x32xf32>
    %cst_173 = arith.constant 9.99999974E-6 : f32
    %356 = vector.broadcast %cst_173 : f32 to vector<16x1xf32>
    %357 = arith.addf %353, %356 : vector<16x1xf32>
    %358 = math.rsqrt %357 : vector<16x1xf32>
    %359 = vector.broadcast %358 : vector<16x1xf32> to vector<16x32xf32>
    %360 = arith.mulf %355, %359 : vector<16x32xf32>
    %361 = vector.broadcast %340 : vector<1x32xf32> to vector<16x32xf32>
    %362 = arith.mulf %360, %361 : vector<16x32xf32>
    %363 = vector.broadcast %342 : vector<1x32xf32> to vector<16x32xf32>
    %364 = arith.addf %362, %363 : vector<16x32xf32>
    %c1_174 = arith.constant 1 : index
    %c0_175 = arith.constant 0 : index
    %c0_176 = arith.constant 0 : index
    %365 = vector.load %arg7[%c1_174, %c0_175, %c0_176] : memref<4x32x128xf32, #tpu.memory_space<vmem>>, vector<1x32x128xf32>
    %366 = vector.shape_cast %365 : vector<1x32x128xf32> to vector<32x128xf32>
    %cst_177 = arith.constant dense<0.000000e+00> : vector<16x128xf32>
    %367 = tpu.matmul %364, %366, %cst_177 {dimension_numbers = #tpu.dot_dimension_numbers<[1], [0], [0], [1], [0, 0, 1, 1], [], []>} : vector<16x32xf32>, vector<32x128xf32>, vector<16x128xf32> -> vector<16x128xf32>
    %c1_178 = arith.constant 1 : index
    %c0_179 = arith.constant 0 : index
    %c0_180 = arith.constant 0 : index
    %368 = vector.load %arg8[%c1_178, %c0_179, %c0_180] : memref<4x1x128xf32, #tpu.memory_space<vmem>>, vector<1x1x128xf32>
    %369 = vector.shape_cast %368 : vector<1x1x128xf32> to vector<1x128xf32>
    %370 = vector.broadcast %369 : vector<1x128xf32> to vector<16x128xf32>
    %371 = arith.addf %367, %370 : vector<16x128xf32>
    %cst_181 = arith.constant 0.000000e+00 : f32
    %372 = vector.broadcast %cst_181 : f32 to vector<16x128xf32>
    %373 = arith.maximumf %371, %372 : vector<16x128xf32>
    %c1_182 = arith.constant 1 : index
    %c0_183 = arith.constant 0 : index
    %c0_184 = arith.constant 0 : index
    %374 = vector.load %arg9[%c1_182, %c0_183, %c0_184] : memref<4x128x32xf32, #tpu.memory_space<vmem>>, vector<1x128x32xf32>
    %375 = vector.shape_cast %374 : vector<1x128x32xf32> to vector<128x32xf32>
    %cst_185 = arith.constant dense<0.000000e+00> : vector<16x32xf32>
    %376 = tpu.matmul %373, %375, %cst_185 {dimension_numbers = #tpu.dot_dimension_numbers<[1], [0], [0], [1], [0, 0, 1, 1], [], []>} : vector<16x128xf32>, vector<128x32xf32>, vector<16x32xf32> -> vector<16x32xf32>
    %c1_186 = arith.constant 1 : index
    %c0_187 = arith.constant 0 : index
    %c0_188 = arith.constant 0 : index
    %377 = vector.load %arg10[%c1_186, %c0_187, %c0_188] : memref<4x1x32xf32, #tpu.memory_space<vmem>>, vector<1x1x32xf32>
    %378 = vector.shape_cast %377 : vector<1x1x32xf32> to vector<1x32xf32>
    %379 = vector.broadcast %378 : vector<1x32xf32> to vector<16x32xf32>
    %380 = arith.addf %376, %379 : vector<16x32xf32>
    %381 = arith.addf %364, %380 : vector<16x32xf32>
    %c1_189 = arith.constant 1 : index
    %c0_190 = arith.constant 0 : index
    %c0_191 = arith.constant 0 : index
    %382 = vector.load %arg11[%c1_189, %c0_190, %c0_191] : memref<4x1x32xf32, #tpu.memory_space<vmem>>, vector<1x1x32xf32>
    %383 = vector.shape_cast %382 : vector<1x1x32xf32> to vector<1x32xf32>
    %c1_192 = arith.constant 1 : index
    %c0_193 = arith.constant 0 : index
    %c0_194 = arith.constant 0 : index
    %384 = vector.load %arg12[%c1_192, %c0_193, %c0_194] : memref<4x1x32xf32, #tpu.memory_space<vmem>>, vector<1x1x32xf32>
    %385 = vector.shape_cast %384 : vector<1x1x32xf32> to vector<1x32xf32>
    %cst_195 = arith.constant dense<0.000000e+00> : vector<16xf32>
    %386 = vector.multi_reduction <add>, %381, %cst_195 [1] : vector<16x32xf32> to vector<16xf32>
    %387 = vector.shape_cast %386 : vector<16xf32> to vector<16x1xf32>
    %cst_196 = arith.constant 3.200000e+01 : f32
    %388 = vector.broadcast %cst_196 : f32 to vector<16x1xf32>
    %389 = arith.divf %387, %388 : vector<16x1xf32>
    %390 = vector.broadcast %389 : vector<16x1xf32> to vector<16x32xf32>
    %391 = arith.subf %381, %390 : vector<16x32xf32>
    %392 = arith.mulf %391, %391 : vector<16x32xf32>
    %cst_197 = arith.constant dense<0.000000e+00> : vector<16xf32>
    %393 = vector.multi_reduction <add>, %392, %cst_197 [1] : vector<16x32xf32> to vector<16xf32>
    %394 = vector.shape_cast %393 : vector<16xf32> to vector<16x1xf32>
    %cst_198 = arith.constant 3.200000e+01 : f32
    %395 = vector.broadcast %cst_198 : f32 to vector<16x1xf32>
    %396 = arith.divf %394, %395 : vector<16x1xf32>
    %397 = vector.broadcast %389 : vector<16x1xf32> to vector<16x32xf32>
    %398 = arith.subf %381, %397 : vector<16x32xf32>
    %cst_199 = arith.constant 9.99999974E-6 : f32
    %399 = vector.broadcast %cst_199 : f32 to vector<16x1xf32>
    %400 = arith.addf %396, %399 : vector<16x1xf32>
    %401 = math.rsqrt %400 : vector<16x1xf32>
    %402 = vector.broadcast %401 : vector<16x1xf32> to vector<16x32xf32>
    %403 = arith.mulf %398, %402 : vector<16x32xf32>
    %404 = vector.broadcast %383 : vector<1x32xf32> to vector<16x32xf32>
    %405 = arith.mulf %403, %404 : vector<16x32xf32>
    %406 = vector.broadcast %385 : vector<1x32xf32> to vector<16x32xf32>
    %407 = arith.addf %405, %406 : vector<16x32xf32>
    %c2_200 = arith.constant 2 : index
    %c0_201 = arith.constant 0 : index
    %c0_202 = arith.constant 0 : index
    %408 = vector.load %arg3[%c2_200, %c0_201, %c0_202] : memref<4x32x96xf32, #tpu.memory_space<vmem>>, vector<1x32x96xf32>
    %409 = vector.shape_cast %408 : vector<1x32x96xf32> to vector<32x96xf32>
    %cst_203 = arith.constant dense<0.000000e+00> : vector<16x96xf32>
    %410 = tpu.matmul %407, %409, %cst_203 {dimension_numbers = #tpu.dot_dimension_numbers<[1], [0], [0], [1], [0, 0, 1, 1], [], []>} : vector<16x32xf32>, vector<32x96xf32>, vector<16x96xf32> -> vector<16x96xf32>
    %411 = vector.extract_strided_slice %410 {offsets = [0, 0], sizes = [16, 32], strides = [1, 1]} : vector<16x96xf32> to vector<16x32xf32>
    %cst_204 = arith.constant 5.000000e-01 : f32
    %412 = vector.broadcast %cst_204 : f32 to vector<16x32xf32>
    %413 = arith.mulf %411, %412 : vector<16x32xf32>
    %414 = vector.shape_cast %413 : vector<16x32xf32> to vector<2x8x32xf32>
    %415 = vector.extract_strided_slice %410 {offsets = [0, 32], sizes = [16, 32], strides = [1, 1]} : vector<16x96xf32> to vector<16x32xf32>
    %416 = vector.shape_cast %415 : vector<16x32xf32> to vector<2x8x32xf32>
    %417 = vector.extract_strided_slice %410 {offsets = [0, 64], sizes = [16, 32], strides = [1, 1]} : vector<16x96xf32> to vector<16x32xf32>
    %418 = vector.shape_cast %417 : vector<16x32xf32> to vector<2x8x32xf32>
    %419 = vector.extract_strided_slice %414 {offsets = [0, 0, 0], sizes = [2, 8, 4], strides = [1, 1, 1]} : vector<2x8x32xf32> to vector<2x8x4xf32>
    %420 = vector.extract_strided_slice %416 {offsets = [0, 0, 0], sizes = [2, 8, 4], strides = [1, 1, 1]} : vector<2x8x32xf32> to vector<2x8x4xf32>
    "tpu.trace_start"() <{level = 10 : i32, message = "bqd,bkd->bqk"}> : () -> ()
    %cst_205 = arith.constant dense<0.000000e+00> : vector<2x8x8xf32>
    %421 = tpu.matmul %419, %420, %cst_205 {dimension_numbers = #tpu.dot_dimension_numbers<[2], [2], [1], [1], [0, 0, 0, 1, 1, 1], [0], [0]>} : vector<2x8x4xf32>, vector<2x8x4xf32>, vector<2x8x8xf32> -> vector<2x8x8xf32>
    "tpu.trace_stop"() : () -> ()
    %422 = vector.extract_strided_slice %414 {offsets = [0, 0, 4], sizes = [2, 8, 4], strides = [1, 1, 1]} : vector<2x8x32xf32> to vector<2x8x4xf32>
    %423 = vector.extract_strided_slice %416 {offsets = [0, 0, 4], sizes = [2, 8, 4], strides = [1, 1, 1]} : vector<2x8x32xf32> to vector<2x8x4xf32>
    "tpu.trace_start"() <{level = 10 : i32, message = "bqd,bkd->bqk"}> : () -> ()
    %cst_206 = arith.constant dense<0.000000e+00> : vector<2x8x8xf32>
    %424 = tpu.matmul %422, %423, %cst_206 {dimension_numbers = #tpu.dot_dimension_numbers<[2], [2], [1], [1], [0, 0, 0, 1, 1, 1], [0], [0]>} : vector<2x8x4xf32>, vector<2x8x4xf32>, vector<2x8x8xf32> -> vector<2x8x8xf32>
    "tpu.trace_stop"() : () -> ()
    %425 = vector.extract_strided_slice %414 {offsets = [0, 0, 8], sizes = [2, 8, 4], strides = [1, 1, 1]} : vector<2x8x32xf32> to vector<2x8x4xf32>
    %426 = vector.extract_strided_slice %416 {offsets = [0, 0, 8], sizes = [2, 8, 4], strides = [1, 1, 1]} : vector<2x8x32xf32> to vector<2x8x4xf32>
    "tpu.trace_start"() <{level = 10 : i32, message = "bqd,bkd->bqk"}> : () -> ()
    %cst_207 = arith.constant dense<0.000000e+00> : vector<2x8x8xf32>
    %427 = tpu.matmul %425, %426, %cst_207 {dimension_numbers = #tpu.dot_dimension_numbers<[2], [2], [1], [1], [0, 0, 0, 1, 1, 1], [0], [0]>} : vector<2x8x4xf32>, vector<2x8x4xf32>, vector<2x8x8xf32> -> vector<2x8x8xf32>
    "tpu.trace_stop"() : () -> ()
    %428 = vector.extract_strided_slice %414 {offsets = [0, 0, 12], sizes = [2, 8, 4], strides = [1, 1, 1]} : vector<2x8x32xf32> to vector<2x8x4xf32>
    %429 = vector.extract_strided_slice %416 {offsets = [0, 0, 12], sizes = [2, 8, 4], strides = [1, 1, 1]} : vector<2x8x32xf32> to vector<2x8x4xf32>
    "tpu.trace_start"() <{level = 10 : i32, message = "bqd,bkd->bqk"}> : () -> ()
    %cst_208 = arith.constant dense<0.000000e+00> : vector<2x8x8xf32>
    %430 = tpu.matmul %428, %429, %cst_208 {dimension_numbers = #tpu.dot_dimension_numbers<[2], [2], [1], [1], [0, 0, 0, 1, 1, 1], [0], [0]>} : vector<2x8x4xf32>, vector<2x8x4xf32>, vector<2x8x8xf32> -> vector<2x8x8xf32>
    "tpu.trace_stop"() : () -> ()
    %431 = vector.extract_strided_slice %414 {offsets = [0, 0, 16], sizes = [2, 8, 4], strides = [1, 1, 1]} : vector<2x8x32xf32> to vector<2x8x4xf32>
    %432 = vector.extract_strided_slice %416 {offsets = [0, 0, 16], sizes = [2, 8, 4], strides = [1, 1, 1]} : vector<2x8x32xf32> to vector<2x8x4xf32>
    "tpu.trace_start"() <{level = 10 : i32, message = "bqd,bkd->bqk"}> : () -> ()
    %cst_209 = arith.constant dense<0.000000e+00> : vector<2x8x8xf32>
    %433 = tpu.matmul %431, %432, %cst_209 {dimension_numbers = #tpu.dot_dimension_numbers<[2], [2], [1], [1], [0, 0, 0, 1, 1, 1], [0], [0]>} : vector<2x8x4xf32>, vector<2x8x4xf32>, vector<2x8x8xf32> -> vector<2x8x8xf32>
    "tpu.trace_stop"() : () -> ()
    %434 = vector.extract_strided_slice %414 {offsets = [0, 0, 20], sizes = [2, 8, 4], strides = [1, 1, 1]} : vector<2x8x32xf32> to vector<2x8x4xf32>
    %435 = vector.extract_strided_slice %416 {offsets = [0, 0, 20], sizes = [2, 8, 4], strides = [1, 1, 1]} : vector<2x8x32xf32> to vector<2x8x4xf32>
    "tpu.trace_start"() <{level = 10 : i32, message = "bqd,bkd->bqk"}> : () -> ()
    %cst_210 = arith.constant dense<0.000000e+00> : vector<2x8x8xf32>
    %436 = tpu.matmul %434, %435, %cst_210 {dimension_numbers = #tpu.dot_dimension_numbers<[2], [2], [1], [1], [0, 0, 0, 1, 1, 1], [0], [0]>} : vector<2x8x4xf32>, vector<2x8x4xf32>, vector<2x8x8xf32> -> vector<2x8x8xf32>
    "tpu.trace_stop"() : () -> ()
    %437 = vector.extract_strided_slice %414 {offsets = [0, 0, 24], sizes = [2, 8, 4], strides = [1, 1, 1]} : vector<2x8x32xf32> to vector<2x8x4xf32>
    %438 = vector.extract_strided_slice %416 {offsets = [0, 0, 24], sizes = [2, 8, 4], strides = [1, 1, 1]} : vector<2x8x32xf32> to vector<2x8x4xf32>
    "tpu.trace_start"() <{level = 10 : i32, message = "bqd,bkd->bqk"}> : () -> ()
    %cst_211 = arith.constant dense<0.000000e+00> : vector<2x8x8xf32>
    %439 = tpu.matmul %437, %438, %cst_211 {dimension_numbers = #tpu.dot_dimension_numbers<[2], [2], [1], [1], [0, 0, 0, 1, 1, 1], [0], [0]>} : vector<2x8x4xf32>, vector<2x8x4xf32>, vector<2x8x8xf32> -> vector<2x8x8xf32>
    "tpu.trace_stop"() : () -> ()
    %440 = vector.extract_strided_slice %414 {offsets = [0, 0, 28], sizes = [2, 8, 4], strides = [1, 1, 1]} : vector<2x8x32xf32> to vector<2x8x4xf32>
    %441 = vector.extract_strided_slice %416 {offsets = [0, 0, 28], sizes = [2, 8, 4], strides = [1, 1, 1]} : vector<2x8x32xf32> to vector<2x8x4xf32>
    "tpu.trace_start"() <{level = 10 : i32, message = "bqd,bkd->bqk"}> : () -> ()
    %cst_212 = arith.constant dense<0.000000e+00> : vector<2x8x8xf32>
    %442 = tpu.matmul %440, %441, %cst_212 {dimension_numbers = #tpu.dot_dimension_numbers<[2], [2], [1], [1], [0, 0, 0, 1, 1, 1], [0], [0]>} : vector<2x8x4xf32>, vector<2x8x4xf32>, vector<2x8x8xf32> -> vector<2x8x8xf32>
    "tpu.trace_stop"() : () -> ()
    %443 = vector.shape_cast %421 : vector<2x8x8xf32> to vector<1x2x8x8xf32>
    %444 = vector.shape_cast %424 : vector<2x8x8xf32> to vector<1x2x8x8xf32>
    %445 = vector.shape_cast %427 : vector<2x8x8xf32> to vector<1x2x8x8xf32>
    %446 = vector.shape_cast %430 : vector<2x8x8xf32> to vector<1x2x8x8xf32>
    %447 = vector.shape_cast %433 : vector<2x8x8xf32> to vector<1x2x8x8xf32>
    %448 = vector.shape_cast %436 : vector<2x8x8xf32> to vector<1x2x8x8xf32>
    %449 = vector.shape_cast %439 : vector<2x8x8xf32> to vector<1x2x8x8xf32>
    %450 = vector.shape_cast %442 : vector<2x8x8xf32> to vector<1x2x8x8xf32>
    %451 = tpu.concatenate %443, %444, %445, %446, %447, %448, %449, %450 in 0 : vector<1x2x8x8xf32>, vector<1x2x8x8xf32>, vector<1x2x8x8xf32>, vector<1x2x8x8xf32>, vector<1x2x8x8xf32>, vector<1x2x8x8xf32>, vector<1x2x8x8xf32>, vector<1x2x8x8xf32> -> vector<8x2x8x8xf32>
    %cst_213 = arith.constant dense<0xFF800000> : vector<8x2x8xf32>
    %452 = vector.multi_reduction <maximumf>, %451, %cst_213 [3] : vector<8x2x8x8xf32> to vector<8x2x8xf32>
    %453 = vector.shape_cast %452 : vector<8x2x8xf32> to vector<8x2x8x1xf32>
    %454 = vector.broadcast %453 : vector<8x2x8x1xf32> to vector<8x2x8x8xf32>
    %455 = arith.subf %451, %454 : vector<8x2x8x8xf32>
    %456 = math.exp %455 : vector<8x2x8x8xf32>
    %cst_214 = arith.constant dense<0.000000e+00> : vector<8x2x8xf32>
    %457 = vector.multi_reduction <add>, %456, %cst_214 [3] : vector<8x2x8x8xf32> to vector<8x2x8xf32>
    %458 = vector.shape_cast %457 : vector<8x2x8xf32> to vector<8x2x8x1xf32>
    %459 = tpu.reciprocal %458 {approx = true} : vector<8x2x8x1xf32> -> vector<8x2x8x1xf32>
    %460 = vector.broadcast %459 : vector<8x2x8x1xf32> to vector<8x2x8x8xf32>
    %461 = arith.mulf %456, %460 : vector<8x2x8x8xf32>
    %cst_215 = arith.constant 0.000000e+00 : f32
    %462 = vector.broadcast %cst_215 : f32 to vector<16x32xf32>
    %463 = vector.extract_strided_slice %461 {offsets = [0, 0, 0, 0], sizes = [1, 2, 8, 8], strides = [1, 1, 1, 1]} : vector<8x2x8x8xf32> to vector<1x2x8x8xf32>
    %464 = vector.shape_cast %463 : vector<1x2x8x8xf32> to vector<2x8x8xf32>
    %465 = vector.extract_strided_slice %418 {offsets = [0, 0, 0], sizes = [2, 8, 4], strides = [1, 1, 1]} : vector<2x8x32xf32> to vector<2x8x4xf32>
    "tpu.trace_start"() <{level = 10 : i32, message = "bqk,bkd->bqd"}> : () -> ()
    %cst_216 = arith.constant dense<0.000000e+00> : vector<2x8x4xf32>
    %466 = tpu.matmul %464, %465, %cst_216 {dimension_numbers = #tpu.dot_dimension_numbers<[2], [1], [1], [2], [0, 0, 0, 1, 1, 2], [0], [0]>} : vector<2x8x8xf32>, vector<2x8x4xf32>, vector<2x8x4xf32> -> vector<2x8x4xf32>
    "tpu.trace_stop"() : () -> ()
    %467 = vector.shape_cast %466 : vector<2x8x4xf32> to vector<16x4xf32>
    %c2_217 = arith.constant 2 : index
    %c0_218 = arith.constant 0 : index
    %c0_219 = arith.constant 0 : index
    %c0_220 = arith.constant 0 : index
    %468 = vector.load %arg4[%c2_217, %c0_218, %c0_219, %c0_220] : memref<4x8x4x32xf32, #tpu.memory_space<vmem>>, vector<1x1x4x32xf32>
    %469 = vector.shape_cast %468 : vector<1x1x4x32xf32> to vector<4x32xf32>
    %cst_221 = arith.constant dense<0.000000e+00> : vector<16x32xf32>
    %470 = tpu.matmul %467, %469, %cst_221 {dimension_numbers = #tpu.dot_dimension_numbers<[1], [0], [0], [1], [0, 0, 1, 1], [], []>} : vector<16x4xf32>, vector<4x32xf32>, vector<16x32xf32> -> vector<16x32xf32>
    %471 = arith.addf %462, %470 : vector<16x32xf32>
    %472 = vector.extract_strided_slice %461 {offsets = [1, 0, 0, 0], sizes = [1, 2, 8, 8], strides = [1, 1, 1, 1]} : vector<8x2x8x8xf32> to vector<1x2x8x8xf32>
    %473 = vector.shape_cast %472 : vector<1x2x8x8xf32> to vector<2x8x8xf32>
    %474 = vector.extract_strided_slice %418 {offsets = [0, 0, 4], sizes = [2, 8, 4], strides = [1, 1, 1]} : vector<2x8x32xf32> to vector<2x8x4xf32>
    "tpu.trace_start"() <{level = 10 : i32, message = "bqk,bkd->bqd"}> : () -> ()
    %cst_222 = arith.constant dense<0.000000e+00> : vector<2x8x4xf32>
    %475 = tpu.matmul %473, %474, %cst_222 {dimension_numbers = #tpu.dot_dimension_numbers<[2], [1], [1], [2], [0, 0, 0, 1, 1, 2], [0], [0]>} : vector<2x8x8xf32>, vector<2x8x4xf32>, vector<2x8x4xf32> -> vector<2x8x4xf32>
    "tpu.trace_stop"() : () -> ()
    %476 = vector.shape_cast %475 : vector<2x8x4xf32> to vector<16x4xf32>
    %c2_223 = arith.constant 2 : index
    %c1_224 = arith.constant 1 : index
    %c0_225 = arith.constant 0 : index
    %c0_226 = arith.constant 0 : index
    %477 = vector.load %arg4[%c2_223, %c1_224, %c0_225, %c0_226] : memref<4x8x4x32xf32, #tpu.memory_space<vmem>>, vector<1x1x4x32xf32>
    %478 = vector.shape_cast %477 : vector<1x1x4x32xf32> to vector<4x32xf32>
    %cst_227 = arith.constant dense<0.000000e+00> : vector<16x32xf32>
    %479 = tpu.matmul %476, %478, %cst_227 {dimension_numbers = #tpu.dot_dimension_numbers<[1], [0], [0], [1], [0, 0, 1, 1], [], []>} : vector<16x4xf32>, vector<4x32xf32>, vector<16x32xf32> -> vector<16x32xf32>
    %480 = arith.addf %471, %479 : vector<16x32xf32>
    %481 = vector.extract_strided_slice %461 {offsets = [2, 0, 0, 0], sizes = [1, 2, 8, 8], strides = [1, 1, 1, 1]} : vector<8x2x8x8xf32> to vector<1x2x8x8xf32>
    %482 = vector.shape_cast %481 : vector<1x2x8x8xf32> to vector<2x8x8xf32>
    %483 = vector.extract_strided_slice %418 {offsets = [0, 0, 8], sizes = [2, 8, 4], strides = [1, 1, 1]} : vector<2x8x32xf32> to vector<2x8x4xf32>
    "tpu.trace_start"() <{level = 10 : i32, message = "bqk,bkd->bqd"}> : () -> ()
    %cst_228 = arith.constant dense<0.000000e+00> : vector<2x8x4xf32>
    %484 = tpu.matmul %482, %483, %cst_228 {dimension_numbers = #tpu.dot_dimension_numbers<[2], [1], [1], [2], [0, 0, 0, 1, 1, 2], [0], [0]>} : vector<2x8x8xf32>, vector<2x8x4xf32>, vector<2x8x4xf32> -> vector<2x8x4xf32>
    "tpu.trace_stop"() : () -> ()
    %485 = vector.shape_cast %484 : vector<2x8x4xf32> to vector<16x4xf32>
    %c2_229 = arith.constant 2 : index
    %c2_230 = arith.constant 2 : index
    %c0_231 = arith.constant 0 : index
    %c0_232 = arith.constant 0 : index
    %486 = vector.load %arg4[%c2_229, %c2_230, %c0_231, %c0_232] : memref<4x8x4x32xf32, #tpu.memory_space<vmem>>, vector<1x1x4x32xf32>
    %487 = vector.shape_cast %486 : vector<1x1x4x32xf32> to vector<4x32xf32>
    %cst_233 = arith.constant dense<0.000000e+00> : vector<16x32xf32>
    %488 = tpu.matmul %485, %487, %cst_233 {dimension_numbers = #tpu.dot_dimension_numbers<[1], [0], [0], [1], [0, 0, 1, 1], [], []>} : vector<16x4xf32>, vector<4x32xf32>, vector<16x32xf32> -> vector<16x32xf32>
    %489 = arith.addf %480, %488 : vector<16x32xf32>
    %490 = vector.extract_strided_slice %461 {offsets = [3, 0, 0, 0], sizes = [1, 2, 8, 8], strides = [1, 1, 1, 1]} : vector<8x2x8x8xf32> to vector<1x2x8x8xf32>
    %491 = vector.shape_cast %490 : vector<1x2x8x8xf32> to vector<2x8x8xf32>
    %492 = vector.extract_strided_slice %418 {offsets = [0, 0, 12], sizes = [2, 8, 4], strides = [1, 1, 1]} : vector<2x8x32xf32> to vector<2x8x4xf32>
    "tpu.trace_start"() <{level = 10 : i32, message = "bqk,bkd->bqd"}> : () -> ()
    %cst_234 = arith.constant dense<0.000000e+00> : vector<2x8x4xf32>
    %493 = tpu.matmul %491, %492, %cst_234 {dimension_numbers = #tpu.dot_dimension_numbers<[2], [1], [1], [2], [0, 0, 0, 1, 1, 2], [0], [0]>} : vector<2x8x8xf32>, vector<2x8x4xf32>, vector<2x8x4xf32> -> vector<2x8x4xf32>
    "tpu.trace_stop"() : () -> ()
    %494 = vector.shape_cast %493 : vector<2x8x4xf32> to vector<16x4xf32>
    %c2_235 = arith.constant 2 : index
    %c3_236 = arith.constant 3 : index
    %c0_237 = arith.constant 0 : index
    %c0_238 = arith.constant 0 : index
    %495 = vector.load %arg4[%c2_235, %c3_236, %c0_237, %c0_238] : memref<4x8x4x32xf32, #tpu.memory_space<vmem>>, vector<1x1x4x32xf32>
    %496 = vector.shape_cast %495 : vector<1x1x4x32xf32> to vector<4x32xf32>
    %cst_239 = arith.constant dense<0.000000e+00> : vector<16x32xf32>
    %497 = tpu.matmul %494, %496, %cst_239 {dimension_numbers = #tpu.dot_dimension_numbers<[1], [0], [0], [1], [0, 0, 1, 1], [], []>} : vector<16x4xf32>, vector<4x32xf32>, vector<16x32xf32> -> vector<16x32xf32>
    %498 = arith.addf %489, %497 : vector<16x32xf32>
    %499 = vector.extract_strided_slice %461 {offsets = [4, 0, 0, 0], sizes = [1, 2, 8, 8], strides = [1, 1, 1, 1]} : vector<8x2x8x8xf32> to vector<1x2x8x8xf32>
    %500 = vector.shape_cast %499 : vector<1x2x8x8xf32> to vector<2x8x8xf32>
    %501 = vector.extract_strided_slice %418 {offsets = [0, 0, 16], sizes = [2, 8, 4], strides = [1, 1, 1]} : vector<2x8x32xf32> to vector<2x8x4xf32>
    "tpu.trace_start"() <{level = 10 : i32, message = "bqk,bkd->bqd"}> : () -> ()
    %cst_240 = arith.constant dense<0.000000e+00> : vector<2x8x4xf32>
    %502 = tpu.matmul %500, %501, %cst_240 {dimension_numbers = #tpu.dot_dimension_numbers<[2], [1], [1], [2], [0, 0, 0, 1, 1, 2], [0], [0]>} : vector<2x8x8xf32>, vector<2x8x4xf32>, vector<2x8x4xf32> -> vector<2x8x4xf32>
    "tpu.trace_stop"() : () -> ()
    %503 = vector.shape_cast %502 : vector<2x8x4xf32> to vector<16x4xf32>
    %c2_241 = arith.constant 2 : index
    %c4_242 = arith.constant 4 : index
    %c0_243 = arith.constant 0 : index
    %c0_244 = arith.constant 0 : index
    %504 = vector.load %arg4[%c2_241, %c4_242, %c0_243, %c0_244] : memref<4x8x4x32xf32, #tpu.memory_space<vmem>>, vector<1x1x4x32xf32>
    %505 = vector.shape_cast %504 : vector<1x1x4x32xf32> to vector<4x32xf32>
    %cst_245 = arith.constant dense<0.000000e+00> : vector<16x32xf32>
    %506 = tpu.matmul %503, %505, %cst_245 {dimension_numbers = #tpu.dot_dimension_numbers<[1], [0], [0], [1], [0, 0, 1, 1], [], []>} : vector<16x4xf32>, vector<4x32xf32>, vector<16x32xf32> -> vector<16x32xf32>
    %507 = arith.addf %498, %506 : vector<16x32xf32>
    %508 = vector.extract_strided_slice %461 {offsets = [5, 0, 0, 0], sizes = [1, 2, 8, 8], strides = [1, 1, 1, 1]} : vector<8x2x8x8xf32> to vector<1x2x8x8xf32>
    %509 = vector.shape_cast %508 : vector<1x2x8x8xf32> to vector<2x8x8xf32>
    %510 = vector.extract_strided_slice %418 {offsets = [0, 0, 20], sizes = [2, 8, 4], strides = [1, 1, 1]} : vector<2x8x32xf32> to vector<2x8x4xf32>
    "tpu.trace_start"() <{level = 10 : i32, message = "bqk,bkd->bqd"}> : () -> ()
    %cst_246 = arith.constant dense<0.000000e+00> : vector<2x8x4xf32>
    %511 = tpu.matmul %509, %510, %cst_246 {dimension_numbers = #tpu.dot_dimension_numbers<[2], [1], [1], [2], [0, 0, 0, 1, 1, 2], [0], [0]>} : vector<2x8x8xf32>, vector<2x8x4xf32>, vector<2x8x4xf32> -> vector<2x8x4xf32>
    "tpu.trace_stop"() : () -> ()
    %512 = vector.shape_cast %511 : vector<2x8x4xf32> to vector<16x4xf32>
    %c2_247 = arith.constant 2 : index
    %c5_248 = arith.constant 5 : index
    %c0_249 = arith.constant 0 : index
    %c0_250 = arith.constant 0 : index
    %513 = vector.load %arg4[%c2_247, %c5_248, %c0_249, %c0_250] : memref<4x8x4x32xf32, #tpu.memory_space<vmem>>, vector<1x1x4x32xf32>
    %514 = vector.shape_cast %513 : vector<1x1x4x32xf32> to vector<4x32xf32>
    %cst_251 = arith.constant dense<0.000000e+00> : vector<16x32xf32>
    %515 = tpu.matmul %512, %514, %cst_251 {dimension_numbers = #tpu.dot_dimension_numbers<[1], [0], [0], [1], [0, 0, 1, 1], [], []>} : vector<16x4xf32>, vector<4x32xf32>, vector<16x32xf32> -> vector<16x32xf32>
    %516 = arith.addf %507, %515 : vector<16x32xf32>
    %517 = vector.extract_strided_slice %461 {offsets = [6, 0, 0, 0], sizes = [1, 2, 8, 8], strides = [1, 1, 1, 1]} : vector<8x2x8x8xf32> to vector<1x2x8x8xf32>
    %518 = vector.shape_cast %517 : vector<1x2x8x8xf32> to vector<2x8x8xf32>
    %519 = vector.extract_strided_slice %418 {offsets = [0, 0, 24], sizes = [2, 8, 4], strides = [1, 1, 1]} : vector<2x8x32xf32> to vector<2x8x4xf32>
    "tpu.trace_start"() <{level = 10 : i32, message = "bqk,bkd->bqd"}> : () -> ()
    %cst_252 = arith.constant dense<0.000000e+00> : vector<2x8x4xf32>
    %520 = tpu.matmul %518, %519, %cst_252 {dimension_numbers = #tpu.dot_dimension_numbers<[2], [1], [1], [2], [0, 0, 0, 1, 1, 2], [0], [0]>} : vector<2x8x8xf32>, vector<2x8x4xf32>, vector<2x8x4xf32> -> vector<2x8x4xf32>
    "tpu.trace_stop"() : () -> ()
    %521 = vector.shape_cast %520 : vector<2x8x4xf32> to vector<16x4xf32>
    %c2_253 = arith.constant 2 : index
    %c6_254 = arith.constant 6 : index
    %c0_255 = arith.constant 0 : index
    %c0_256 = arith.constant 0 : index
    %522 = vector.load %arg4[%c2_253, %c6_254, %c0_255, %c0_256] : memref<4x8x4x32xf32, #tpu.memory_space<vmem>>, vector<1x1x4x32xf32>
    %523 = vector.shape_cast %522 : vector<1x1x4x32xf32> to vector<4x32xf32>
    %cst_257 = arith.constant dense<0.000000e+00> : vector<16x32xf32>
    %524 = tpu.matmul %521, %523, %cst_257 {dimension_numbers = #tpu.dot_dimension_numbers<[1], [0], [0], [1], [0, 0, 1, 1], [], []>} : vector<16x4xf32>, vector<4x32xf32>, vector<16x32xf32> -> vector<16x32xf32>
    %525 = arith.addf %516, %524 : vector<16x32xf32>
    %526 = vector.extract_strided_slice %461 {offsets = [7, 0, 0, 0], sizes = [1, 2, 8, 8], strides = [1, 1, 1, 1]} : vector<8x2x8x8xf32> to vector<1x2x8x8xf32>
    %527 = vector.shape_cast %526 : vector<1x2x8x8xf32> to vector<2x8x8xf32>
    %528 = vector.extract_strided_slice %418 {offsets = [0, 0, 28], sizes = [2, 8, 4], strides = [1, 1, 1]} : vector<2x8x32xf32> to vector<2x8x4xf32>
    "tpu.trace_start"() <{level = 10 : i32, message = "bqk,bkd->bqd"}> : () -> ()
    %cst_258 = arith.constant dense<0.000000e+00> : vector<2x8x4xf32>
    %529 = tpu.matmul %527, %528, %cst_258 {dimension_numbers = #tpu.dot_dimension_numbers<[2], [1], [1], [2], [0, 0, 0, 1, 1, 2], [0], [0]>} : vector<2x8x8xf32>, vector<2x8x4xf32>, vector<2x8x4xf32> -> vector<2x8x4xf32>
    "tpu.trace_stop"() : () -> ()
    %530 = vector.shape_cast %529 : vector<2x8x4xf32> to vector<16x4xf32>
    %c2_259 = arith.constant 2 : index
    %c7_260 = arith.constant 7 : index
    %c0_261 = arith.constant 0 : index
    %c0_262 = arith.constant 0 : index
    %531 = vector.load %arg4[%c2_259, %c7_260, %c0_261, %c0_262] : memref<4x8x4x32xf32, #tpu.memory_space<vmem>>, vector<1x1x4x32xf32>
    %532 = vector.shape_cast %531 : vector<1x1x4x32xf32> to vector<4x32xf32>
    %cst_263 = arith.constant dense<0.000000e+00> : vector<16x32xf32>
    %533 = tpu.matmul %530, %532, %cst_263 {dimension_numbers = #tpu.dot_dimension_numbers<[1], [0], [0], [1], [0, 0, 1, 1], [], []>} : vector<16x4xf32>, vector<4x32xf32>, vector<16x32xf32> -> vector<16x32xf32>
    %534 = arith.addf %525, %533 : vector<16x32xf32>
    %535 = arith.addf %407, %534 : vector<16x32xf32>
    %c2_264 = arith.constant 2 : index
    %c0_265 = arith.constant 0 : index
    %c0_266 = arith.constant 0 : index
    %536 = vector.load %arg5[%c2_264, %c0_265, %c0_266] : memref<4x1x32xf32, #tpu.memory_space<vmem>>, vector<1x1x32xf32>
    %537 = vector.shape_cast %536 : vector<1x1x32xf32> to vector<1x32xf32>
    %c2_267 = arith.constant 2 : index
    %c0_268 = arith.constant 0 : index
    %c0_269 = arith.constant 0 : index
    %538 = vector.load %arg6[%c2_267, %c0_268, %c0_269] : memref<4x1x32xf32, #tpu.memory_space<vmem>>, vector<1x1x32xf32>
    %539 = vector.shape_cast %538 : vector<1x1x32xf32> to vector<1x32xf32>
    %cst_270 = arith.constant dense<0.000000e+00> : vector<16xf32>
    %540 = vector.multi_reduction <add>, %535, %cst_270 [1] : vector<16x32xf32> to vector<16xf32>
    %541 = vector.shape_cast %540 : vector<16xf32> to vector<16x1xf32>
    %cst_271 = arith.constant 3.200000e+01 : f32
    %542 = vector.broadcast %cst_271 : f32 to vector<16x1xf32>
    %543 = arith.divf %541, %542 : vector<16x1xf32>
    %544 = vector.broadcast %543 : vector<16x1xf32> to vector<16x32xf32>
    %545 = arith.subf %535, %544 : vector<16x32xf32>
    %546 = arith.mulf %545, %545 : vector<16x32xf32>
    %cst_272 = arith.constant dense<0.000000e+00> : vector<16xf32>
    %547 = vector.multi_reduction <add>, %546, %cst_272 [1] : vector<16x32xf32> to vector<16xf32>
    %548 = vector.shape_cast %547 : vector<16xf32> to vector<16x1xf32>
    %cst_273 = arith.constant 3.200000e+01 : f32
    %549 = vector.broadcast %cst_273 : f32 to vector<16x1xf32>
    %550 = arith.divf %548, %549 : vector<16x1xf32>
    %551 = vector.broadcast %543 : vector<16x1xf32> to vector<16x32xf32>
    %552 = arith.subf %535, %551 : vector<16x32xf32>
    %cst_274 = arith.constant 9.99999974E-6 : f32
    %553 = vector.broadcast %cst_274 : f32 to vector<16x1xf32>
    %554 = arith.addf %550, %553 : vector<16x1xf32>
    %555 = math.rsqrt %554 : vector<16x1xf32>
    %556 = vector.broadcast %555 : vector<16x1xf32> to vector<16x32xf32>
    %557 = arith.mulf %552, %556 : vector<16x32xf32>
    %558 = vector.broadcast %537 : vector<1x32xf32> to vector<16x32xf32>
    %559 = arith.mulf %557, %558 : vector<16x32xf32>
    %560 = vector.broadcast %539 : vector<1x32xf32> to vector<16x32xf32>
    %561 = arith.addf %559, %560 : vector<16x32xf32>
    %c2_275 = arith.constant 2 : index
    %c0_276 = arith.constant 0 : index
    %c0_277 = arith.constant 0 : index
    %562 = vector.load %arg7[%c2_275, %c0_276, %c0_277] : memref<4x32x128xf32, #tpu.memory_space<vmem>>, vector<1x32x128xf32>
    %563 = vector.shape_cast %562 : vector<1x32x128xf32> to vector<32x128xf32>
    %cst_278 = arith.constant dense<0.000000e+00> : vector<16x128xf32>
    %564 = tpu.matmul %561, %563, %cst_278 {dimension_numbers = #tpu.dot_dimension_numbers<[1], [0], [0], [1], [0, 0, 1, 1], [], []>} : vector<16x32xf32>, vector<32x128xf32>, vector<16x128xf32> -> vector<16x128xf32>
    %c2_279 = arith.constant 2 : index
    %c0_280 = arith.constant 0 : index
    %c0_281 = arith.constant 0 : index
    %565 = vector.load %arg8[%c2_279, %c0_280, %c0_281] : memref<4x1x128xf32, #tpu.memory_space<vmem>>, vector<1x1x128xf32>
    %566 = vector.shape_cast %565 : vector<1x1x128xf32> to vector<1x128xf32>
    %567 = vector.broadcast %566 : vector<1x128xf32> to vector<16x128xf32>
    %568 = arith.addf %564, %567 : vector<16x128xf32>
    %cst_282 = arith.constant 0.000000e+00 : f32
    %569 = vector.broadcast %cst_282 : f32 to vector<16x128xf32>
    %570 = arith.maximumf %568, %569 : vector<16x128xf32>
    %c2_283 = arith.constant 2 : index
    %c0_284 = arith.constant 0 : index
    %c0_285 = arith.constant 0 : index
    %571 = vector.load %arg9[%c2_283, %c0_284, %c0_285] : memref<4x128x32xf32, #tpu.memory_space<vmem>>, vector<1x128x32xf32>
    %572 = vector.shape_cast %571 : vector<1x128x32xf32> to vector<128x32xf32>
    %cst_286 = arith.constant dense<0.000000e+00> : vector<16x32xf32>
    %573 = tpu.matmul %570, %572, %cst_286 {dimension_numbers = #tpu.dot_dimension_numbers<[1], [0], [0], [1], [0, 0, 1, 1], [], []>} : vector<16x128xf32>, vector<128x32xf32>, vector<16x32xf32> -> vector<16x32xf32>
    %c2_287 = arith.constant 2 : index
    %c0_288 = arith.constant 0 : index
    %c0_289 = arith.constant 0 : index
    %574 = vector.load %arg10[%c2_287, %c0_288, %c0_289] : memref<4x1x32xf32, #tpu.memory_space<vmem>>, vector<1x1x32xf32>
    %575 = vector.shape_cast %574 : vector<1x1x32xf32> to vector<1x32xf32>
    %576 = vector.broadcast %575 : vector<1x32xf32> to vector<16x32xf32>
    %577 = arith.addf %573, %576 : vector<16x32xf32>
    %578 = arith.addf %561, %577 : vector<16x32xf32>
    %c2_290 = arith.constant 2 : index
    %c0_291 = arith.constant 0 : index
    %c0_292 = arith.constant 0 : index
    %579 = vector.load %arg11[%c2_290, %c0_291, %c0_292] : memref<4x1x32xf32, #tpu.memory_space<vmem>>, vector<1x1x32xf32>
    %580 = vector.shape_cast %579 : vector<1x1x32xf32> to vector<1x32xf32>
    %c2_293 = arith.constant 2 : index
    %c0_294 = arith.constant 0 : index
    %c0_295 = arith.constant 0 : index
    %581 = vector.load %arg12[%c2_293, %c0_294, %c0_295] : memref<4x1x32xf32, #tpu.memory_space<vmem>>, vector<1x1x32xf32>
    %582 = vector.shape_cast %581 : vector<1x1x32xf32> to vector<1x32xf32>
    %cst_296 = arith.constant dense<0.000000e+00> : vector<16xf32>
    %583 = vector.multi_reduction <add>, %578, %cst_296 [1] : vector<16x32xf32> to vector<16xf32>
    %584 = vector.shape_cast %583 : vector<16xf32> to vector<16x1xf32>
    %cst_297 = arith.constant 3.200000e+01 : f32
    %585 = vector.broadcast %cst_297 : f32 to vector<16x1xf32>
    %586 = arith.divf %584, %585 : vector<16x1xf32>
    %587 = vector.broadcast %586 : vector<16x1xf32> to vector<16x32xf32>
    %588 = arith.subf %578, %587 : vector<16x32xf32>
    %589 = arith.mulf %588, %588 : vector<16x32xf32>
    %cst_298 = arith.constant dense<0.000000e+00> : vector<16xf32>
    %590 = vector.multi_reduction <add>, %589, %cst_298 [1] : vector<16x32xf32> to vector<16xf32>
    %591 = vector.shape_cast %590 : vector<16xf32> to vector<16x1xf32>
    %cst_299 = arith.constant 3.200000e+01 : f32
    %592 = vector.broadcast %cst_299 : f32 to vector<16x1xf32>
    %593 = arith.divf %591, %592 : vector<16x1xf32>
    %594 = vector.broadcast %586 : vector<16x1xf32> to vector<16x32xf32>
    %595 = arith.subf %578, %594 : vector<16x32xf32>
    %cst_300 = arith.constant 9.99999974E-6 : f32
    %596 = vector.broadcast %cst_300 : f32 to vector<16x1xf32>
    %597 = arith.addf %593, %596 : vector<16x1xf32>
    %598 = math.rsqrt %597 : vector<16x1xf32>
    %599 = vector.broadcast %598 : vector<16x1xf32> to vector<16x32xf32>
    %600 = arith.mulf %595, %599 : vector<16x32xf32>
    %601 = vector.broadcast %580 : vector<1x32xf32> to vector<16x32xf32>
    %602 = arith.mulf %600, %601 : vector<16x32xf32>
    %603 = vector.broadcast %582 : vector<1x32xf32> to vector<16x32xf32>
    %604 = arith.addf %602, %603 : vector<16x32xf32>
    %c3_301 = arith.constant 3 : index
    %c0_302 = arith.constant 0 : index
    %c0_303 = arith.constant 0 : index
    %605 = vector.load %arg3[%c3_301, %c0_302, %c0_303] : memref<4x32x96xf32, #tpu.memory_space<vmem>>, vector<1x32x96xf32>
    %606 = vector.shape_cast %605 : vector<1x32x96xf32> to vector<32x96xf32>
    %cst_304 = arith.constant dense<0.000000e+00> : vector<16x96xf32>
    %607 = tpu.matmul %604, %606, %cst_304 {dimension_numbers = #tpu.dot_dimension_numbers<[1], [0], [0], [1], [0, 0, 1, 1], [], []>} : vector<16x32xf32>, vector<32x96xf32>, vector<16x96xf32> -> vector<16x96xf32>
    %608 = vector.extract_strided_slice %607 {offsets = [0, 0], sizes = [16, 32], strides = [1, 1]} : vector<16x96xf32> to vector<16x32xf32>
    %cst_305 = arith.constant 5.000000e-01 : f32
    %609 = vector.broadcast %cst_305 : f32 to vector<16x32xf32>
    %610 = arith.mulf %608, %609 : vector<16x32xf32>
    %611 = vector.shape_cast %610 : vector<16x32xf32> to vector<2x8x32xf32>
    %612 = vector.extract_strided_slice %607 {offsets = [0, 32], sizes = [16, 32], strides = [1, 1]} : vector<16x96xf32> to vector<16x32xf32>
    %613 = vector.shape_cast %612 : vector<16x32xf32> to vector<2x8x32xf32>
    %614 = vector.extract_strided_slice %607 {offsets = [0, 64], sizes = [16, 32], strides = [1, 1]} : vector<16x96xf32> to vector<16x32xf32>
    %615 = vector.shape_cast %614 : vector<16x32xf32> to vector<2x8x32xf32>
    %616 = vector.extract_strided_slice %611 {offsets = [0, 0, 0], sizes = [2, 8, 4], strides = [1, 1, 1]} : vector<2x8x32xf32> to vector<2x8x4xf32>
    %617 = vector.extract_strided_slice %613 {offsets = [0, 0, 0], sizes = [2, 8, 4], strides = [1, 1, 1]} : vector<2x8x32xf32> to vector<2x8x4xf32>
    "tpu.trace_start"() <{level = 10 : i32, message = "bqd,bkd->bqk"}> : () -> ()
    %cst_306 = arith.constant dense<0.000000e+00> : vector<2x8x8xf32>
    %618 = tpu.matmul %616, %617, %cst_306 {dimension_numbers = #tpu.dot_dimension_numbers<[2], [2], [1], [1], [0, 0, 0, 1, 1, 1], [0], [0]>} : vector<2x8x4xf32>, vector<2x8x4xf32>, vector<2x8x8xf32> -> vector<2x8x8xf32>
    "tpu.trace_stop"() : () -> ()
    %619 = vector.extract_strided_slice %611 {offsets = [0, 0, 4], sizes = [2, 8, 4], strides = [1, 1, 1]} : vector<2x8x32xf32> to vector<2x8x4xf32>
    %620 = vector.extract_strided_slice %613 {offsets = [0, 0, 4], sizes = [2, 8, 4], strides = [1, 1, 1]} : vector<2x8x32xf32> to vector<2x8x4xf32>
    "tpu.trace_start"() <{level = 10 : i32, message = "bqd,bkd->bqk"}> : () -> ()
    %cst_307 = arith.constant dense<0.000000e+00> : vector<2x8x8xf32>
    %621 = tpu.matmul %619, %620, %cst_307 {dimension_numbers = #tpu.dot_dimension_numbers<[2], [2], [1], [1], [0, 0, 0, 1, 1, 1], [0], [0]>} : vector<2x8x4xf32>, vector<2x8x4xf32>, vector<2x8x8xf32> -> vector<2x8x8xf32>
    "tpu.trace_stop"() : () -> ()
    %622 = vector.extract_strided_slice %611 {offsets = [0, 0, 8], sizes = [2, 8, 4], strides = [1, 1, 1]} : vector<2x8x32xf32> to vector<2x8x4xf32>
    %623 = vector.extract_strided_slice %613 {offsets = [0, 0, 8], sizes = [2, 8, 4], strides = [1, 1, 1]} : vector<2x8x32xf32> to vector<2x8x4xf32>
    "tpu.trace_start"() <{level = 10 : i32, message = "bqd,bkd->bqk"}> : () -> ()
    %cst_308 = arith.constant dense<0.000000e+00> : vector<2x8x8xf32>
    %624 = tpu.matmul %622, %623, %cst_308 {dimension_numbers = #tpu.dot_dimension_numbers<[2], [2], [1], [1], [0, 0, 0, 1, 1, 1], [0], [0]>} : vector<2x8x4xf32>, vector<2x8x4xf32>, vector<2x8x8xf32> -> vector<2x8x8xf32>
    "tpu.trace_stop"() : () -> ()
    %625 = vector.extract_strided_slice %611 {offsets = [0, 0, 12], sizes = [2, 8, 4], strides = [1, 1, 1]} : vector<2x8x32xf32> to vector<2x8x4xf32>
    %626 = vector.extract_strided_slice %613 {offsets = [0, 0, 12], sizes = [2, 8, 4], strides = [1, 1, 1]} : vector<2x8x32xf32> to vector<2x8x4xf32>
    "tpu.trace_start"() <{level = 10 : i32, message = "bqd,bkd->bqk"}> : () -> ()
    %cst_309 = arith.constant dense<0.000000e+00> : vector<2x8x8xf32>
    %627 = tpu.matmul %625, %626, %cst_309 {dimension_numbers = #tpu.dot_dimension_numbers<[2], [2], [1], [1], [0, 0, 0, 1, 1, 1], [0], [0]>} : vector<2x8x4xf32>, vector<2x8x4xf32>, vector<2x8x8xf32> -> vector<2x8x8xf32>
    "tpu.trace_stop"() : () -> ()
    %628 = vector.extract_strided_slice %611 {offsets = [0, 0, 16], sizes = [2, 8, 4], strides = [1, 1, 1]} : vector<2x8x32xf32> to vector<2x8x4xf32>
    %629 = vector.extract_strided_slice %613 {offsets = [0, 0, 16], sizes = [2, 8, 4], strides = [1, 1, 1]} : vector<2x8x32xf32> to vector<2x8x4xf32>
    "tpu.trace_start"() <{level = 10 : i32, message = "bqd,bkd->bqk"}> : () -> ()
    %cst_310 = arith.constant dense<0.000000e+00> : vector<2x8x8xf32>
    %630 = tpu.matmul %628, %629, %cst_310 {dimension_numbers = #tpu.dot_dimension_numbers<[2], [2], [1], [1], [0, 0, 0, 1, 1, 1], [0], [0]>} : vector<2x8x4xf32>, vector<2x8x4xf32>, vector<2x8x8xf32> -> vector<2x8x8xf32>
    "tpu.trace_stop"() : () -> ()
    %631 = vector.extract_strided_slice %611 {offsets = [0, 0, 20], sizes = [2, 8, 4], strides = [1, 1, 1]} : vector<2x8x32xf32> to vector<2x8x4xf32>
    %632 = vector.extract_strided_slice %613 {offsets = [0, 0, 20], sizes = [2, 8, 4], strides = [1, 1, 1]} : vector<2x8x32xf32> to vector<2x8x4xf32>
    "tpu.trace_start"() <{level = 10 : i32, message = "bqd,bkd->bqk"}> : () -> ()
    %cst_311 = arith.constant dense<0.000000e+00> : vector<2x8x8xf32>
    %633 = tpu.matmul %631, %632, %cst_311 {dimension_numbers = #tpu.dot_dimension_numbers<[2], [2], [1], [1], [0, 0, 0, 1, 1, 1], [0], [0]>} : vector<2x8x4xf32>, vector<2x8x4xf32>, vector<2x8x8xf32> -> vector<2x8x8xf32>
    "tpu.trace_stop"() : () -> ()
    %634 = vector.extract_strided_slice %611 {offsets = [0, 0, 24], sizes = [2, 8, 4], strides = [1, 1, 1]} : vector<2x8x32xf32> to vector<2x8x4xf32>
    %635 = vector.extract_strided_slice %613 {offsets = [0, 0, 24], sizes = [2, 8, 4], strides = [1, 1, 1]} : vector<2x8x32xf32> to vector<2x8x4xf32>
    "tpu.trace_start"() <{level = 10 : i32, message = "bqd,bkd->bqk"}> : () -> ()
    %cst_312 = arith.constant dense<0.000000e+00> : vector<2x8x8xf32>
    %636 = tpu.matmul %634, %635, %cst_312 {dimension_numbers = #tpu.dot_dimension_numbers<[2], [2], [1], [1], [0, 0, 0, 1, 1, 1], [0], [0]>} : vector<2x8x4xf32>, vector<2x8x4xf32>, vector<2x8x8xf32> -> vector<2x8x8xf32>
    "tpu.trace_stop"() : () -> ()
    %637 = vector.extract_strided_slice %611 {offsets = [0, 0, 28], sizes = [2, 8, 4], strides = [1, 1, 1]} : vector<2x8x32xf32> to vector<2x8x4xf32>
    %638 = vector.extract_strided_slice %613 {offsets = [0, 0, 28], sizes = [2, 8, 4], strides = [1, 1, 1]} : vector<2x8x32xf32> to vector<2x8x4xf32>
    "tpu.trace_start"() <{level = 10 : i32, message = "bqd,bkd->bqk"}> : () -> ()
    %cst_313 = arith.constant dense<0.000000e+00> : vector<2x8x8xf32>
    %639 = tpu.matmul %637, %638, %cst_313 {dimension_numbers = #tpu.dot_dimension_numbers<[2], [2], [1], [1], [0, 0, 0, 1, 1, 1], [0], [0]>} : vector<2x8x4xf32>, vector<2x8x4xf32>, vector<2x8x8xf32> -> vector<2x8x8xf32>
    "tpu.trace_stop"() : () -> ()
    %640 = vector.shape_cast %618 : vector<2x8x8xf32> to vector<1x2x8x8xf32>
    %641 = vector.shape_cast %621 : vector<2x8x8xf32> to vector<1x2x8x8xf32>
    %642 = vector.shape_cast %624 : vector<2x8x8xf32> to vector<1x2x8x8xf32>
    %643 = vector.shape_cast %627 : vector<2x8x8xf32> to vector<1x2x8x8xf32>
    %644 = vector.shape_cast %630 : vector<2x8x8xf32> to vector<1x2x8x8xf32>
    %645 = vector.shape_cast %633 : vector<2x8x8xf32> to vector<1x2x8x8xf32>
    %646 = vector.shape_cast %636 : vector<2x8x8xf32> to vector<1x2x8x8xf32>
    %647 = vector.shape_cast %639 : vector<2x8x8xf32> to vector<1x2x8x8xf32>
    %648 = tpu.concatenate %640, %641, %642, %643, %644, %645, %646, %647 in 0 : vector<1x2x8x8xf32>, vector<1x2x8x8xf32>, vector<1x2x8x8xf32>, vector<1x2x8x8xf32>, vector<1x2x8x8xf32>, vector<1x2x8x8xf32>, vector<1x2x8x8xf32>, vector<1x2x8x8xf32> -> vector<8x2x8x8xf32>
    %cst_314 = arith.constant dense<0xFF800000> : vector<8x2x8xf32>
    %649 = vector.multi_reduction <maximumf>, %648, %cst_314 [3] : vector<8x2x8x8xf32> to vector<8x2x8xf32>
    %650 = vector.shape_cast %649 : vector<8x2x8xf32> to vector<8x2x8x1xf32>
    %651 = vector.broadcast %650 : vector<8x2x8x1xf32> to vector<8x2x8x8xf32>
    %652 = arith.subf %648, %651 : vector<8x2x8x8xf32>
    %653 = math.exp %652 : vector<8x2x8x8xf32>
    %cst_315 = arith.constant dense<0.000000e+00> : vector<8x2x8xf32>
    %654 = vector.multi_reduction <add>, %653, %cst_315 [3] : vector<8x2x8x8xf32> to vector<8x2x8xf32>
    %655 = vector.shape_cast %654 : vector<8x2x8xf32> to vector<8x2x8x1xf32>
    %656 = tpu.reciprocal %655 {approx = true} : vector<8x2x8x1xf32> -> vector<8x2x8x1xf32>
    %657 = vector.broadcast %656 : vector<8x2x8x1xf32> to vector<8x2x8x8xf32>
    %658 = arith.mulf %653, %657 : vector<8x2x8x8xf32>
    %cst_316 = arith.constant 0.000000e+00 : f32
    %659 = vector.broadcast %cst_316 : f32 to vector<16x32xf32>
    %660 = vector.extract_strided_slice %658 {offsets = [0, 0, 0, 0], sizes = [1, 2, 8, 8], strides = [1, 1, 1, 1]} : vector<8x2x8x8xf32> to vector<1x2x8x8xf32>
    %661 = vector.shape_cast %660 : vector<1x2x8x8xf32> to vector<2x8x8xf32>
    %662 = vector.extract_strided_slice %615 {offsets = [0, 0, 0], sizes = [2, 8, 4], strides = [1, 1, 1]} : vector<2x8x32xf32> to vector<2x8x4xf32>
    "tpu.trace_start"() <{level = 10 : i32, message = "bqk,bkd->bqd"}> : () -> ()
    %cst_317 = arith.constant dense<0.000000e+00> : vector<2x8x4xf32>
    %663 = tpu.matmul %661, %662, %cst_317 {dimension_numbers = #tpu.dot_dimension_numbers<[2], [1], [1], [2], [0, 0, 0, 1, 1, 2], [0], [0]>} : vector<2x8x8xf32>, vector<2x8x4xf32>, vector<2x8x4xf32> -> vector<2x8x4xf32>
    "tpu.trace_stop"() : () -> ()
    %664 = vector.shape_cast %663 : vector<2x8x4xf32> to vector<16x4xf32>
    %c3_318 = arith.constant 3 : index
    %c0_319 = arith.constant 0 : index
    %c0_320 = arith.constant 0 : index
    %c0_321 = arith.constant 0 : index
    %665 = vector.load %arg4[%c3_318, %c0_319, %c0_320, %c0_321] : memref<4x8x4x32xf32, #tpu.memory_space<vmem>>, vector<1x1x4x32xf32>
    %666 = vector.shape_cast %665 : vector<1x1x4x32xf32> to vector<4x32xf32>
    %cst_322 = arith.constant dense<0.000000e+00> : vector<16x32xf32>
    %667 = tpu.matmul %664, %666, %cst_322 {dimension_numbers = #tpu.dot_dimension_numbers<[1], [0], [0], [1], [0, 0, 1, 1], [], []>} : vector<16x4xf32>, vector<4x32xf32>, vector<16x32xf32> -> vector<16x32xf32>
    %668 = arith.addf %659, %667 : vector<16x32xf32>
    %669 = vector.extract_strided_slice %658 {offsets = [1, 0, 0, 0], sizes = [1, 2, 8, 8], strides = [1, 1, 1, 1]} : vector<8x2x8x8xf32> to vector<1x2x8x8xf32>
    %670 = vector.shape_cast %669 : vector<1x2x8x8xf32> to vector<2x8x8xf32>
    %671 = vector.extract_strided_slice %615 {offsets = [0, 0, 4], sizes = [2, 8, 4], strides = [1, 1, 1]} : vector<2x8x32xf32> to vector<2x8x4xf32>
    "tpu.trace_start"() <{level = 10 : i32, message = "bqk,bkd->bqd"}> : () -> ()
    %cst_323 = arith.constant dense<0.000000e+00> : vector<2x8x4xf32>
    %672 = tpu.matmul %670, %671, %cst_323 {dimension_numbers = #tpu.dot_dimension_numbers<[2], [1], [1], [2], [0, 0, 0, 1, 1, 2], [0], [0]>} : vector<2x8x8xf32>, vector<2x8x4xf32>, vector<2x8x4xf32> -> vector<2x8x4xf32>
    "tpu.trace_stop"() : () -> ()
    %673 = vector.shape_cast %672 : vector<2x8x4xf32> to vector<16x4xf32>
    %c3_324 = arith.constant 3 : index
    %c1_325 = arith.constant 1 : index
    %c0_326 = arith.constant 0 : index
    %c0_327 = arith.constant 0 : index
    %674 = vector.load %arg4[%c3_324, %c1_325, %c0_326, %c0_327] : memref<4x8x4x32xf32, #tpu.memory_space<vmem>>, vector<1x1x4x32xf32>
    %675 = vector.shape_cast %674 : vector<1x1x4x32xf32> to vector<4x32xf32>
    %cst_328 = arith.constant dense<0.000000e+00> : vector<16x32xf32>
    %676 = tpu.matmul %673, %675, %cst_328 {dimension_numbers = #tpu.dot_dimension_numbers<[1], [0], [0], [1], [0, 0, 1, 1], [], []>} : vector<16x4xf32>, vector<4x32xf32>, vector<16x32xf32> -> vector<16x32xf32>
    %677 = arith.addf %668, %676 : vector<16x32xf32>
    %678 = vector.extract_strided_slice %658 {offsets = [2, 0, 0, 0], sizes = [1, 2, 8, 8], strides = [1, 1, 1, 1]} : vector<8x2x8x8xf32> to vector<1x2x8x8xf32>
    %679 = vector.shape_cast %678 : vector<1x2x8x8xf32> to vector<2x8x8xf32>
    %680 = vector.extract_strided_slice %615 {offsets = [0, 0, 8], sizes = [2, 8, 4], strides = [1, 1, 1]} : vector<2x8x32xf32> to vector<2x8x4xf32>
    "tpu.trace_start"() <{level = 10 : i32, message = "bqk,bkd->bqd"}> : () -> ()
    %cst_329 = arith.constant dense<0.000000e+00> : vector<2x8x4xf32>
    %681 = tpu.matmul %679, %680, %cst_329 {dimension_numbers = #tpu.dot_dimension_numbers<[2], [1], [1], [2], [0, 0, 0, 1, 1, 2], [0], [0]>} : vector<2x8x8xf32>, vector<2x8x4xf32>, vector<2x8x4xf32> -> vector<2x8x4xf32>
    "tpu.trace_stop"() : () -> ()
    %682 = vector.shape_cast %681 : vector<2x8x4xf32> to vector<16x4xf32>
    %c3_330 = arith.constant 3 : index
    %c2_331 = arith.constant 2 : index
    %c0_332 = arith.constant 0 : index
    %c0_333 = arith.constant 0 : index
    %683 = vector.load %arg4[%c3_330, %c2_331, %c0_332, %c0_333] : memref<4x8x4x32xf32, #tpu.memory_space<vmem>>, vector<1x1x4x32xf32>
    %684 = vector.shape_cast %683 : vector<1x1x4x32xf32> to vector<4x32xf32>
    %cst_334 = arith.constant dense<0.000000e+00> : vector<16x32xf32>
    %685 = tpu.matmul %682, %684, %cst_334 {dimension_numbers = #tpu.dot_dimension_numbers<[1], [0], [0], [1], [0, 0, 1, 1], [], []>} : vector<16x4xf32>, vector<4x32xf32>, vector<16x32xf32> -> vector<16x32xf32>
    %686 = arith.addf %677, %685 : vector<16x32xf32>
    %687 = vector.extract_strided_slice %658 {offsets = [3, 0, 0, 0], sizes = [1, 2, 8, 8], strides = [1, 1, 1, 1]} : vector<8x2x8x8xf32> to vector<1x2x8x8xf32>
    %688 = vector.shape_cast %687 : vector<1x2x8x8xf32> to vector<2x8x8xf32>
    %689 = vector.extract_strided_slice %615 {offsets = [0, 0, 12], sizes = [2, 8, 4], strides = [1, 1, 1]} : vector<2x8x32xf32> to vector<2x8x4xf32>
    "tpu.trace_start"() <{level = 10 : i32, message = "bqk,bkd->bqd"}> : () -> ()
    %cst_335 = arith.constant dense<0.000000e+00> : vector<2x8x4xf32>
    %690 = tpu.matmul %688, %689, %cst_335 {dimension_numbers = #tpu.dot_dimension_numbers<[2], [1], [1], [2], [0, 0, 0, 1, 1, 2], [0], [0]>} : vector<2x8x8xf32>, vector<2x8x4xf32>, vector<2x8x4xf32> -> vector<2x8x4xf32>
    "tpu.trace_stop"() : () -> ()
    %691 = vector.shape_cast %690 : vector<2x8x4xf32> to vector<16x4xf32>
    %c3_336 = arith.constant 3 : index
    %c3_337 = arith.constant 3 : index
    %c0_338 = arith.constant 0 : index
    %c0_339 = arith.constant 0 : index
    %692 = vector.load %arg4[%c3_336, %c3_337, %c0_338, %c0_339] : memref<4x8x4x32xf32, #tpu.memory_space<vmem>>, vector<1x1x4x32xf32>
    %693 = vector.shape_cast %692 : vector<1x1x4x32xf32> to vector<4x32xf32>
    %cst_340 = arith.constant dense<0.000000e+00> : vector<16x32xf32>
    %694 = tpu.matmul %691, %693, %cst_340 {dimension_numbers = #tpu.dot_dimension_numbers<[1], [0], [0], [1], [0, 0, 1, 1], [], []>} : vector<16x4xf32>, vector<4x32xf32>, vector<16x32xf32> -> vector<16x32xf32>
    %695 = arith.addf %686, %694 : vector<16x32xf32>
    %696 = vector.extract_strided_slice %658 {offsets = [4, 0, 0, 0], sizes = [1, 2, 8, 8], strides = [1, 1, 1, 1]} : vector<8x2x8x8xf32> to vector<1x2x8x8xf32>
    %697 = vector.shape_cast %696 : vector<1x2x8x8xf32> to vector<2x8x8xf32>
    %698 = vector.extract_strided_slice %615 {offsets = [0, 0, 16], sizes = [2, 8, 4], strides = [1, 1, 1]} : vector<2x8x32xf32> to vector<2x8x4xf32>
    "tpu.trace_start"() <{level = 10 : i32, message = "bqk,bkd->bqd"}> : () -> ()
    %cst_341 = arith.constant dense<0.000000e+00> : vector<2x8x4xf32>
    %699 = tpu.matmul %697, %698, %cst_341 {dimension_numbers = #tpu.dot_dimension_numbers<[2], [1], [1], [2], [0, 0, 0, 1, 1, 2], [0], [0]>} : vector<2x8x8xf32>, vector<2x8x4xf32>, vector<2x8x4xf32> -> vector<2x8x4xf32>
    "tpu.trace_stop"() : () -> ()
    %700 = vector.shape_cast %699 : vector<2x8x4xf32> to vector<16x4xf32>
    %c3_342 = arith.constant 3 : index
    %c4_343 = arith.constant 4 : index
    %c0_344 = arith.constant 0 : index
    %c0_345 = arith.constant 0 : index
    %701 = vector.load %arg4[%c3_342, %c4_343, %c0_344, %c0_345] : memref<4x8x4x32xf32, #tpu.memory_space<vmem>>, vector<1x1x4x32xf32>
    %702 = vector.shape_cast %701 : vector<1x1x4x32xf32> to vector<4x32xf32>
    %cst_346 = arith.constant dense<0.000000e+00> : vector<16x32xf32>
    %703 = tpu.matmul %700, %702, %cst_346 {dimension_numbers = #tpu.dot_dimension_numbers<[1], [0], [0], [1], [0, 0, 1, 1], [], []>} : vector<16x4xf32>, vector<4x32xf32>, vector<16x32xf32> -> vector<16x32xf32>
    %704 = arith.addf %695, %703 : vector<16x32xf32>
    %705 = vector.extract_strided_slice %658 {offsets = [5, 0, 0, 0], sizes = [1, 2, 8, 8], strides = [1, 1, 1, 1]} : vector<8x2x8x8xf32> to vector<1x2x8x8xf32>
    %706 = vector.shape_cast %705 : vector<1x2x8x8xf32> to vector<2x8x8xf32>
    %707 = vector.extract_strided_slice %615 {offsets = [0, 0, 20], sizes = [2, 8, 4], strides = [1, 1, 1]} : vector<2x8x32xf32> to vector<2x8x4xf32>
    "tpu.trace_start"() <{level = 10 : i32, message = "bqk,bkd->bqd"}> : () -> ()
    %cst_347 = arith.constant dense<0.000000e+00> : vector<2x8x4xf32>
    %708 = tpu.matmul %706, %707, %cst_347 {dimension_numbers = #tpu.dot_dimension_numbers<[2], [1], [1], [2], [0, 0, 0, 1, 1, 2], [0], [0]>} : vector<2x8x8xf32>, vector<2x8x4xf32>, vector<2x8x4xf32> -> vector<2x8x4xf32>
    "tpu.trace_stop"() : () -> ()
    %709 = vector.shape_cast %708 : vector<2x8x4xf32> to vector<16x4xf32>
    %c3_348 = arith.constant 3 : index
    %c5_349 = arith.constant 5 : index
    %c0_350 = arith.constant 0 : index
    %c0_351 = arith.constant 0 : index
    %710 = vector.load %arg4[%c3_348, %c5_349, %c0_350, %c0_351] : memref<4x8x4x32xf32, #tpu.memory_space<vmem>>, vector<1x1x4x32xf32>
    %711 = vector.shape_cast %710 : vector<1x1x4x32xf32> to vector<4x32xf32>
    %cst_352 = arith.constant dense<0.000000e+00> : vector<16x32xf32>
    %712 = tpu.matmul %709, %711, %cst_352 {dimension_numbers = #tpu.dot_dimension_numbers<[1], [0], [0], [1], [0, 0, 1, 1], [], []>} : vector<16x4xf32>, vector<4x32xf32>, vector<16x32xf32> -> vector<16x32xf32>
    %713 = arith.addf %704, %712 : vector<16x32xf32>
    %714 = vector.extract_strided_slice %658 {offsets = [6, 0, 0, 0], sizes = [1, 2, 8, 8], strides = [1, 1, 1, 1]} : vector<8x2x8x8xf32> to vector<1x2x8x8xf32>
    %715 = vector.shape_cast %714 : vector<1x2x8x8xf32> to vector<2x8x8xf32>
    %716 = vector.extract_strided_slice %615 {offsets = [0, 0, 24], sizes = [2, 8, 4], strides = [1, 1, 1]} : vector<2x8x32xf32> to vector<2x8x4xf32>
    "tpu.trace_start"() <{level = 10 : i32, message = "bqk,bkd->bqd"}> : () -> ()
    %cst_353 = arith.constant dense<0.000000e+00> : vector<2x8x4xf32>
    %717 = tpu.matmul %715, %716, %cst_353 {dimension_numbers = #tpu.dot_dimension_numbers<[2], [1], [1], [2], [0, 0, 0, 1, 1, 2], [0], [0]>} : vector<2x8x8xf32>, vector<2x8x4xf32>, vector<2x8x4xf32> -> vector<2x8x4xf32>
    "tpu.trace_stop"() : () -> ()
    %718 = vector.shape_cast %717 : vector<2x8x4xf32> to vector<16x4xf32>
    %c3_354 = arith.constant 3 : index
    %c6_355 = arith.constant 6 : index
    %c0_356 = arith.constant 0 : index
    %c0_357 = arith.constant 0 : index
    %719 = vector.load %arg4[%c3_354, %c6_355, %c0_356, %c0_357] : memref<4x8x4x32xf32, #tpu.memory_space<vmem>>, vector<1x1x4x32xf32>
    %720 = vector.shape_cast %719 : vector<1x1x4x32xf32> to vector<4x32xf32>
    %cst_358 = arith.constant dense<0.000000e+00> : vector<16x32xf32>
    %721 = tpu.matmul %718, %720, %cst_358 {dimension_numbers = #tpu.dot_dimension_numbers<[1], [0], [0], [1], [0, 0, 1, 1], [], []>} : vector<16x4xf32>, vector<4x32xf32>, vector<16x32xf32> -> vector<16x32xf32>
    %722 = arith.addf %713, %721 : vector<16x32xf32>
    %723 = vector.extract_strided_slice %658 {offsets = [7, 0, 0, 0], sizes = [1, 2, 8, 8], strides = [1, 1, 1, 1]} : vector<8x2x8x8xf32> to vector<1x2x8x8xf32>
    %724 = vector.shape_cast %723 : vector<1x2x8x8xf32> to vector<2x8x8xf32>
    %725 = vector.extract_strided_slice %615 {offsets = [0, 0, 28], sizes = [2, 8, 4], strides = [1, 1, 1]} : vector<2x8x32xf32> to vector<2x8x4xf32>
    "tpu.trace_start"() <{level = 10 : i32, message = "bqk,bkd->bqd"}> : () -> ()
    %cst_359 = arith.constant dense<0.000000e+00> : vector<2x8x4xf32>
    %726 = tpu.matmul %724, %725, %cst_359 {dimension_numbers = #tpu.dot_dimension_numbers<[2], [1], [1], [2], [0, 0, 0, 1, 1, 2], [0], [0]>} : vector<2x8x8xf32>, vector<2x8x4xf32>, vector<2x8x4xf32> -> vector<2x8x4xf32>
    "tpu.trace_stop"() : () -> ()
    %727 = vector.shape_cast %726 : vector<2x8x4xf32> to vector<16x4xf32>
    %c3_360 = arith.constant 3 : index
    %c7_361 = arith.constant 7 : index
    %c0_362 = arith.constant 0 : index
    %c0_363 = arith.constant 0 : index
    %728 = vector.load %arg4[%c3_360, %c7_361, %c0_362, %c0_363] : memref<4x8x4x32xf32, #tpu.memory_space<vmem>>, vector<1x1x4x32xf32>
    %729 = vector.shape_cast %728 : vector<1x1x4x32xf32> to vector<4x32xf32>
    %cst_364 = arith.constant dense<0.000000e+00> : vector<16x32xf32>
    %730 = tpu.matmul %727, %729, %cst_364 {dimension_numbers = #tpu.dot_dimension_numbers<[1], [0], [0], [1], [0, 0, 1, 1], [], []>} : vector<16x4xf32>, vector<4x32xf32>, vector<16x32xf32> -> vector<16x32xf32>
    %731 = arith.addf %722, %730 : vector<16x32xf32>
    %732 = arith.addf %604, %731 : vector<16x32xf32>
    %c3_365 = arith.constant 3 : index
    %c0_366 = arith.constant 0 : index
    %c0_367 = arith.constant 0 : index
    %733 = vector.load %arg5[%c3_365, %c0_366, %c0_367] : memref<4x1x32xf32, #tpu.memory_space<vmem>>, vector<1x1x32xf32>
    %734 = vector.shape_cast %733 : vector<1x1x32xf32> to vector<1x32xf32>
    %c3_368 = arith.constant 3 : index
    %c0_369 = arith.constant 0 : index
    %c0_370 = arith.constant 0 : index
    %735 = vector.load %arg6[%c3_368, %c0_369, %c0_370] : memref<4x1x32xf32, #tpu.memory_space<vmem>>, vector<1x1x32xf32>
    %736 = vector.shape_cast %735 : vector<1x1x32xf32> to vector<1x32xf32>
    %cst_371 = arith.constant dense<0.000000e+00> : vector<16xf32>
    %737 = vector.multi_reduction <add>, %732, %cst_371 [1] : vector<16x32xf32> to vector<16xf32>
    %738 = vector.shape_cast %737 : vector<16xf32> to vector<16x1xf32>
    %cst_372 = arith.constant 3.200000e+01 : f32
    %739 = vector.broadcast %cst_372 : f32 to vector<16x1xf32>
    %740 = arith.divf %738, %739 : vector<16x1xf32>
    %741 = vector.broadcast %740 : vector<16x1xf32> to vector<16x32xf32>
    %742 = arith.subf %732, %741 : vector<16x32xf32>
    %743 = arith.mulf %742, %742 : vector<16x32xf32>
    %cst_373 = arith.constant dense<0.000000e+00> : vector<16xf32>
    %744 = vector.multi_reduction <add>, %743, %cst_373 [1] : vector<16x32xf32> to vector<16xf32>
    %745 = vector.shape_cast %744 : vector<16xf32> to vector<16x1xf32>
    %cst_374 = arith.constant 3.200000e+01 : f32
    %746 = vector.broadcast %cst_374 : f32 to vector<16x1xf32>
    %747 = arith.divf %745, %746 : vector<16x1xf32>
    %748 = vector.broadcast %740 : vector<16x1xf32> to vector<16x32xf32>
    %749 = arith.subf %732, %748 : vector<16x32xf32>
    %cst_375 = arith.constant 9.99999974E-6 : f32
    %750 = vector.broadcast %cst_375 : f32 to vector<16x1xf32>
    %751 = arith.addf %747, %750 : vector<16x1xf32>
    %752 = math.rsqrt %751 : vector<16x1xf32>
    %753 = vector.broadcast %752 : vector<16x1xf32> to vector<16x32xf32>
    %754 = arith.mulf %749, %753 : vector<16x32xf32>
    %755 = vector.broadcast %734 : vector<1x32xf32> to vector<16x32xf32>
    %756 = arith.mulf %754, %755 : vector<16x32xf32>
    %757 = vector.broadcast %736 : vector<1x32xf32> to vector<16x32xf32>
    %758 = arith.addf %756, %757 : vector<16x32xf32>
    %c3_376 = arith.constant 3 : index
    %c0_377 = arith.constant 0 : index
    %c0_378 = arith.constant 0 : index
    %759 = vector.load %arg7[%c3_376, %c0_377, %c0_378] : memref<4x32x128xf32, #tpu.memory_space<vmem>>, vector<1x32x128xf32>
    %760 = vector.shape_cast %759 : vector<1x32x128xf32> to vector<32x128xf32>
    %cst_379 = arith.constant dense<0.000000e+00> : vector<16x128xf32>
    %761 = tpu.matmul %758, %760, %cst_379 {dimension_numbers = #tpu.dot_dimension_numbers<[1], [0], [0], [1], [0, 0, 1, 1], [], []>} : vector<16x32xf32>, vector<32x128xf32>, vector<16x128xf32> -> vector<16x128xf32>
    %c3_380 = arith.constant 3 : index
    %c0_381 = arith.constant 0 : index
    %c0_382 = arith.constant 0 : index
    %762 = vector.load %arg8[%c3_380, %c0_381, %c0_382] : memref<4x1x128xf32, #tpu.memory_space<vmem>>, vector<1x1x128xf32>
    %763 = vector.shape_cast %762 : vector<1x1x128xf32> to vector<1x128xf32>
    %764 = vector.broadcast %763 : vector<1x128xf32> to vector<16x128xf32>
    %765 = arith.addf %761, %764 : vector<16x128xf32>
    %cst_383 = arith.constant 0.000000e+00 : f32
    %766 = vector.broadcast %cst_383 : f32 to vector<16x128xf32>
    %767 = arith.maximumf %765, %766 : vector<16x128xf32>
    %c3_384 = arith.constant 3 : index
    %c0_385 = arith.constant 0 : index
    %c0_386 = arith.constant 0 : index
    %768 = vector.load %arg9[%c3_384, %c0_385, %c0_386] : memref<4x128x32xf32, #tpu.memory_space<vmem>>, vector<1x128x32xf32>
    %769 = vector.shape_cast %768 : vector<1x128x32xf32> to vector<128x32xf32>
    %cst_387 = arith.constant dense<0.000000e+00> : vector<16x32xf32>
    %770 = tpu.matmul %767, %769, %cst_387 {dimension_numbers = #tpu.dot_dimension_numbers<[1], [0], [0], [1], [0, 0, 1, 1], [], []>} : vector<16x128xf32>, vector<128x32xf32>, vector<16x32xf32> -> vector<16x32xf32>
    %c3_388 = arith.constant 3 : index
    %c0_389 = arith.constant 0 : index
    %c0_390 = arith.constant 0 : index
    %771 = vector.load %arg10[%c3_388, %c0_389, %c0_390] : memref<4x1x32xf32, #tpu.memory_space<vmem>>, vector<1x1x32xf32>
    %772 = vector.shape_cast %771 : vector<1x1x32xf32> to vector<1x32xf32>
    %773 = vector.broadcast %772 : vector<1x32xf32> to vector<16x32xf32>
    %774 = arith.addf %770, %773 : vector<16x32xf32>
    %775 = arith.addf %758, %774 : vector<16x32xf32>
    %c3_391 = arith.constant 3 : index
    %c0_392 = arith.constant 0 : index
    %c0_393 = arith.constant 0 : index
    %776 = vector.load %arg11[%c3_391, %c0_392, %c0_393] : memref<4x1x32xf32, #tpu.memory_space<vmem>>, vector<1x1x32xf32>
    %777 = vector.shape_cast %776 : vector<1x1x32xf32> to vector<1x32xf32>
    %c3_394 = arith.constant 3 : index
    %c0_395 = arith.constant 0 : index
    %c0_396 = arith.constant 0 : index
    %778 = vector.load %arg12[%c3_394, %c0_395, %c0_396] : memref<4x1x32xf32, #tpu.memory_space<vmem>>, vector<1x1x32xf32>
    %779 = vector.shape_cast %778 : vector<1x1x32xf32> to vector<1x32xf32>
    %cst_397 = arith.constant dense<0.000000e+00> : vector<16xf32>
    %780 = vector.multi_reduction <add>, %775, %cst_397 [1] : vector<16x32xf32> to vector<16xf32>
    %781 = vector.shape_cast %780 : vector<16xf32> to vector<16x1xf32>
    %cst_398 = arith.constant 3.200000e+01 : f32
    %782 = vector.broadcast %cst_398 : f32 to vector<16x1xf32>
    %783 = arith.divf %781, %782 : vector<16x1xf32>
    %784 = vector.broadcast %783 : vector<16x1xf32> to vector<16x32xf32>
    %785 = arith.subf %775, %784 : vector<16x32xf32>
    %786 = arith.mulf %785, %785 : vector<16x32xf32>
    %cst_399 = arith.constant dense<0.000000e+00> : vector<16xf32>
    %787 = vector.multi_reduction <add>, %786, %cst_399 [1] : vector<16x32xf32> to vector<16xf32>
    %788 = vector.shape_cast %787 : vector<16xf32> to vector<16x1xf32>
    %cst_400 = arith.constant 3.200000e+01 : f32
    %789 = vector.broadcast %cst_400 : f32 to vector<16x1xf32>
    %790 = arith.divf %788, %789 : vector<16x1xf32>
    %791 = vector.broadcast %783 : vector<16x1xf32> to vector<16x32xf32>
    %792 = arith.subf %775, %791 : vector<16x32xf32>
    %cst_401 = arith.constant 9.99999974E-6 : f32
    %793 = vector.broadcast %cst_401 : f32 to vector<16x1xf32>
    %794 = arith.addf %790, %793 : vector<16x1xf32>
    %795 = math.rsqrt %794 : vector<16x1xf32>
    %796 = vector.broadcast %795 : vector<16x1xf32> to vector<16x32xf32>
    %797 = arith.mulf %792, %796 : vector<16x32xf32>
    %798 = vector.broadcast %777 : vector<1x32xf32> to vector<16x32xf32>
    %799 = arith.mulf %797, %798 : vector<16x32xf32>
    %800 = vector.broadcast %779 : vector<1x32xf32> to vector<16x32xf32>
    %801 = arith.addf %799, %800 : vector<16x32xf32>
    %802 = vector.shape_cast %801 : vector<16x32xf32> to vector<2x8x32xf32>
    %cst_402 = arith.constant dense<0xFF800000> : vector<2x32xf32>
    %803 = vector.multi_reduction <maximumf>, %802, %cst_402 [1] : vector<2x8x32xf32> to vector<2x32xf32>
    %c0_403 = arith.constant 0 : index
    %c0_404 = arith.constant 0 : index
    %804 = vector.load %arg13[%c0_403, %c0_404] : memref<32x5xf32, #tpu.memory_space<vmem>>, vector<32x5xf32>
    %cst_405 = arith.constant dense<0.000000e+00> : vector<2x5xf32>
    %805 = tpu.matmul %803, %804, %cst_405 {dimension_numbers = #tpu.dot_dimension_numbers<[1], [0], [0], [1], [0, 0, 1, 1], [], []>} : vector<2x32xf32>, vector<32x5xf32>, vector<2x5xf32> -> vector<2x5xf32>
    %c0_406 = arith.constant 0 : index
    %c0_407 = arith.constant 0 : index
    %806 = vector.load %arg14[%c0_406, %c0_407] : memref<1x5xf32, #tpu.memory_space<vmem>>, vector<1x5xf32>
    %807 = vector.broadcast %806 : vector<1x5xf32> to vector<2x5xf32>
    %808 = arith.addf %805, %807 : vector<2x5xf32>
    %cst_408 = arith.constant dense<0xFF800000> : vector<2xf32>
    %809 = vector.multi_reduction <maximumf>, %808, %cst_408 [1] : vector<2x5xf32> to vector<2xf32>
    %810 = vector.shape_cast %809 : vector<2xf32> to vector<2x1xf32>
    %811 = vector.broadcast %810 : vector<2x1xf32> to vector<2x5xf32>
    %812 = arith.subf %808, %811 : vector<2x5xf32>
    %813 = math.exp %812 : vector<2x5xf32>
    %cst_409 = arith.constant dense<0.000000e+00> : vector<2xf32>
    %814 = vector.multi_reduction <add>, %813, %cst_409 [1] : vector<2x5xf32> to vector<2xf32>
    %815 = vector.shape_cast %814 : vector<2xf32> to vector<2x1xf32>
    %816 = math.log %815 : vector<2x1xf32>
    %817 = vector.broadcast %816 : vector<2x1xf32> to vector<2x5xf32>
    %818 = arith.subf %812, %817 : vector<2x5xf32>
    %c0_410 = arith.constant 0 : index
    %c0_411 = arith.constant 0 : index
    %819 = vector.load %arg15[%c0_410, %c0_411] : memref<2x5xf32, #tpu.memory_space<vmem>>, vector<2x5xf32>
    tpu.vector_store %arg15[%c0_410, %c0_411], %818 {strides = array<i32>} : memref<2x5xf32, #tpu.memory_space<vmem>>, vector<2x5xf32>,
    return
  }
}

</mosaic_0001>

<bundles_post_ra>
// kernel: transformer_forward.1
= control target key start
LH: loop header
LB: loop body
LE: loop exit
PB: predicated region body
PF: predicated region fallthrough
CT: control target
= control target key end

     0   :  { %s19767_s0 = inlined_call_operand.vmem [shape: s32[16,1], index: 0, kind: input, shape index: {}]   ;;  %s19768_s1 = inlined_call_operand.vmem [shape: f32[64,32], index: 1, kind: input, shape index: {}]   ;;  %s19769_s2 = inlined_call_operand.vmem [shape: f32[16,32], index: 2, kind: input, shape index: {}]   ;;  %s19770_s3 = inlined_call_operand.vmem [shape: f32[4,32,96], index: 3, kind: input, shape index: {}]   ;;  %s19771_s4 = inlined_call_operand.vmem [shape: f32[4,8,4,32], index: 4, kind: input, shape index: {}]   ;;  %s19772_s5 = inlined_call_operand.vmem [shape: f32[4,1,32], index: 5, kind: input, shape index: {}]   ;;  %s19773_s6 = inlined_call_operand.vmem [shape: f32[4,1,32], index: 6, kind: input, shape index: {}]   ;;  %s19774_s7 = inlined_call_operand.vmem [shape: f32[4,32,128], index: 7, kind: input, shape index: {}]   ;;  %s19775_s8 = inlined_call_operand.vmem [shape: f32[4,1,128], index: 8, kind: input, shape index: {}]   ;;  %s19776_s9 = inlined_call_operand.vmem [shape: f32[4,128,32], index: 9, kind: input, shape index: {}]   ;;  %s19777_s10 = inlined_call_operand.vmem [shape: f32[4,1,32], index: 10, kind: input, shape index: {}]   ;;  %s19778_s11 = inlined_call_operand.vmem [shape: f32[4,1,32], index: 11, kind: input, shape index: {}]   ;;  %s19779_s12 = inlined_call_operand.vmem [shape: f32[4,1,32], index: 12, kind: input, shape index: {}]   ;;  %s19780_s13 = inlined_call_operand.vmem [shape: f32[32,5], index: 13, kind: input, shape index: {}]   ;;  %s19781_s14 = inlined_call_operand.vmem [shape: f32[1,5], index: 14, kind: input, shape index: {}]   ;;  %s19782_s15 = inlined_call_operand.hbm [shape: f32[2,5], index: 15, kind: output, shape index: {}]  }
   0x1   :  { %19840 = sst [smem:[#allocation5_spill]] %s19780_s13 }
   0x2   :  { %19841 = sst [smem:[#allocation6_spill]] %s19781_s14 }
   0x3   :  { %19842 = sst [smem:[#allocation7_spill]] %s19782_s15 }
   0x4   :  { %v51_v0 = vld [vmem:[%s19767_s0] sm:$0xff]  ;;  %v74_v1 = vld [vmem:[%s19768_s1 + $0x38] sm:$0xff]  ;;  %v17506_v2 = vmov 0   ;;  %v73_v3 = vld [vmem:[%s19768_s1 + $0x30] sm:$0xff]  ;;  %v17507_v6 = vmov 0.0  }
   0x5   :  { %17191 = vset.pattern.permute.xlu0 %v17506_v2  ;;  %16106 = vmatprep.subr.mxu0 %v74_v1  ;;  %v72_v4 = vld [vmem:[%s19768_s1 + $0x28] sm:$0xff] }
   0x6   :  { %56 = vperm.xlu0 %17191, %v51_v0   ;;  %16107 = vmatpush3.msra.mxu0 %v74_v1  ;;  %v52_v5 = vld [vmem:[%s19767_s0 + $0x8] sm:$0xff] }
   0x7   :  { %16108 = vmatprep.subr.mxu0 %v73_v3  ;;  %16136 = vmatprep.subr.mxu1 %v17507_v6 }
   0x8   :  { %20 = vsyncpa [#allocation3], 0  ;;  %16109 = vmatpush3.msra.mxu0 %v73_v3  ;;  %v71_v7 = vld [vmem:[%s19768_s1 + $0x20] sm:$0xff]  ;;  %v70_v8 = vld [vmem:[%s19768_s1 + $0x18] sm:$0xff]  ;;  %v53_v13 = vlaneseq  ;;  %vm75_vm0 = vcmask 523264   ;;  %vm164_vm3 = vcmask 261120  }
   0x9   :  { %16110 = vmatprep.subr.mxu0 %v72_v4  ;;  %v69_v9 = vld [vmem:[%s19768_s1 + $0x10] sm:$0xff]  ;;  %v68_v10 = vld [vmem:[%s19768_s1 + $0x8] sm:$0xff]  ;;  %v67_v11 = vld [vmem:[%s19768_s1] sm:$0xff]  ;;  %vm17508_vm4 = vmmov 0   ;;  %s19827_s16 = smov 96   ;;  %s19821_s0 = smov 124  }
   0xa   :  { %59 = vperm.xlu0 %17191, %v52_v5   ;;  %16111 = vmatpush3.msra.mxu0 %v72_v4  ;;  %v163_v12 = vld [vmem:[%s19770_s3 + $0x18] sm:$0xff]  ;;  %v54_v14 = vand.u32 127, %v53_v13  ;;  %v162_v19 = vld [vmem:[%s19770_s3 + $0x10] sm:$0xff]  ;;  %v161_v20 = vld [vmem:[%s19770_s3 + $0x8] sm:$0xff]  ;;  %s19823_s17 = smov 88   ;;  %s19819_s18 = smov 120  }
   0xb   :  { %16112 = vmatprep.subr.mxu0 %v71_v7  ;;  %v160_v21 = vld [vmem:[%s19770_s3] sm:$0xff]  ;;  %16138 = vmatprep.mubr.msk.f32.mxu1 %vm17508_vm4, %v17507_v6  ;;  %s19817_s19 = smov 84   ;;  %s19815_s20 = smov 116   ;;  %vm251_vm5 = vcmask 31744   ;;  %vm1497_vm6 = vcmask 64512   ;;  %vm1987_vm7 = vcmask 1043456  }
   0xc   :  { %16113 = vmatpush3.msra.mxu0 %v71_v7  ;;  %v157_v23 = vld [vmem:[%s19769_s2] sm:$0xff]  ;;  %s19825_s2 = smov 92   ;;  %s19813_s21 = smov 80   ;;  %vm15062_vm8 = vcmask 1041409   ;;  %vm15136_vm9 = vcmask 33792  }
   0xd   :  { %16114 = vmatprep.subr.mxu0 %v70_v8  ;;  %s19811_s22 = smov 112   ;;  %s19809_s23 = smov 76  }
   0xe   :  { %16115 = vmatpush3.msra.mxu0 %v70_v8  ;;  %s19807_s1 = smov 108   ;;  %s19805_s24 = smov 72  }
   0xf   :  { %16116 = vmatprep.subr.mxu0 %v69_v9  ;;  %s19803_s25 = smov 104   ;;  %s19789_s26 = smov 68  }
  0x10   :  { %16117 = vmatpush3.msra.mxu0 %v69_v9  ;;  %s19787_s27 = smov 100   ;;  %s19785_s28 = smov 64  }
  0x11   :  { %16118 = vmatprep.subr.mxu0 %v68_v10  ;;  %s19783_s29 = smov 60   ;;  %s19801_s30 = smov 56  }
  0x12   :  { %16119 = vmatpush3.msra.mxu0 %v68_v10  ;;  %s19856_s15 = smov 96   ;;  %s19858_s13 = smov 88  }
  0x13   :  { %16120 = vmatprep.subr.mxu0 %v67_v11  ;;  %s19859_s14 = smov 124  }
  0x14   :  { %16121 = vmatpush3.msra.mxu0 %v67_v11 }
  0x15   :  { %16125 = vmatprep.subr.mxu0 %v163_v12 }
  0x81   :  { %v57_v15 = vpop.permute.xlu0 %56 }
  0x82   :  { %vm61_vm1 = vcmp.eq.s32.totalorder %v57_v15, %v54_v14 }
  0x83   :  { %v15164_v16 = vsel %vm61_vm1, 1.0, %v17507_v6 }
  0x84   :  { %16122 = vmatprep.mubr.msk.f32.mxu0 %vm75_vm0, %v15164_v16 }
  0x85   :  { %v60_v17 = vpop.permute.xlu0 %59 }
  0x86   :  { %vm62_vm2 = vcmp.eq.s32.totalorder %v60_v17, %v54_v14 }
  0x87   :  { %v15165_v18 = vsel %vm62_vm2, 1.0, %v17507_v6 }
  0x88   :  { %16123 = vmatmul.mubr.msk.f32.vlgmr.msra.gmra.mxu0 %vm75_vm0, %v15165_v18 }
  0x89   :  { %16126 = vmatpush3.msra.mxu0 %v163_v12 }
  0x8a   :  { %16127 = vmatprep.subr.mxu0 %v162_v19 }
  0x8b   :  { %16128 = vmatpush3.msra.mxu0 %v162_v19 }
  0x8c   :  { %16129 = vmatprep.subr.mxu0 %v161_v20 }
  0x8d   :  { %16130 = vmatpush3.msra.mxu0 %v161_v20 }
  0x8e   :  { %16131 = vmatprep.subr.mxu0 %v160_v21 }
  0x8f   :  { %16132 = vmatpush3.msra.mxu0 %v160_v21 }
  0x90   :  { %16146 = vmatprep.subr.mxu0 %v17507_v6 }
 0x148   :  { %v16124_v22 = vpop.f32.mrf.mxu0 }
 0x149   :  { %v17664_v26 = vadd.f32 %v16124_v22, %v157_v23 }
 0x14a   :  { %v148_v24 = vpop.f32.mrf.mxu0 }
 0x14b   :  { %v17662_v25 = vadd.f32 %v157_v23, %v148_v24 }
 0x14d   :  { %16133 = vmatprep.mubr.msk.f32.mxu0 %vm164_vm3, %v17662_v25 }
 0x14e   :  { %16134 = vmatmul.mubr.msk.f32.vlgmr.msra.gmra.mxu0 %vm164_vm3, %v17664_v26 }
 0x14f   :  { %16148 = vmatprep.mubr.msk.f32.mxu0 %vm17508_vm4, %v17507_v6 }
 0x20e   :  { %v17674_v27 = vpop.f32.mrf.mxu0 }
 0x20f   :  { %v17694_v30 = vmul.f32 0.5, %v17674_v27 }
 0x210   :  { %v17676_v28 = vpop.f32.mrf.mxu0 }
 0x211   :  { %407 = vrot.lane.b32.xlu0 %v17676_v28, %s19825_s2  ;;  %249 = vrot.lane.b32.xlu1 %v17676_v28, %s19827_s16  ;;  %v17683_v29 = vmul.f32 0.5, %v17676_v28 }
 0x215   :  { %328 = vrot.lane.b32.xlu1 %v17674_v27, %s19827_s16  ;;  %405 = vrot.lane.b32.xlu0 %v17683_v29, %s19821_s0 }
 0x219   :  { %485 = vrot.lane.b32.xlu1 %v17674_v27, %s19825_s2  ;;  %563 = vrot.lane.b32.xlu0 %v17676_v28, %s19823_s17 }
 0x21d   :  { %483 = vrot.lane.b32.xlu1 %v17694_v30, %s19821_s0  ;;  %561 = vrot.lane.b32.xlu0 %v17683_v29, %s19819_s18 }
 0x221   :  { %641 = vrot.lane.b32.xlu1 %v17674_v27, %s19823_s17  ;;  %719 = vrot.lane.b32.xlu0 %v17676_v28, %s19817_s19 }
 0x225   :  { %639 = vrot.lane.b32.xlu1 %v17694_v30, %s19819_s18  ;;  %717 = vrot.lane.b32.xlu0 %v17683_v29, %s19815_s20 }
 0x229   :  { %797 = vrot.lane.b32.xlu1 %v17674_v27, %s19817_s19 }
 0x22d   :  { %795 = vrot.lane.b32.xlu1 %v17694_v30, %s19815_s20 }
 0x283   :  { %v408_v31 = vpop.permute.xlu0 %407  ;;  %v250_v32 = vpop.permute.xlu1 %249 }
 0x284   :  { %16137 = vmatpush3.xpose.msk.msra.mxu1 %vm251_vm5, %v250_v32  ;;  %16147 = vmatpush3.xpose.msk.msra.mxu0 %vm251_vm5, %v408_v31 }
 0x285   :  { %16141 = vmatprep.subr.mxu1 %v17507_v6  ;;  %16156 = vmatprep.subr.mxu0 %v17507_v6 }
 0x287   :  { %v329_v33 = vpop.permute.xlu1 %328  ;;  %v406_v34 = vpop.permute.xlu0 %405  ;;  %16139 = vmatmul.mubr.msk.f32.vlgmr.msra.gmra.mxu1 %vm251_vm5, %v17683_v29 }
 0x288   :  { %16142 = vmatpush3.xpose.msk.msra.mxu1 %vm251_vm5, %v329_v33  ;;  %16149 = vmatmul.mubr.msk.f32.vlgmr.msra.gmra.mxu0 %vm251_vm5, %v406_v34 }
 0x289   :  { %16143 = vmatprep.mubr.msk.f32.mxu1 %vm17508_vm4, %v17507_v6  ;;  %16151 = vmatprep.subr.mxu1 %v17507_v6 }
 0x28a   :  { %16158 = vmatprep.mubr.msk.f32.mxu0 %vm17508_vm4, %v17507_v6 }
 0x28b   :  { %v486_v35 = vpop.permute.xlu1 %485  ;;  %v564_v36 = vpop.permute.xlu0 %563  ;;  %16144 = vmatmul.mubr.msk.f32.vlgmr.msra.gmra.mxu1 %vm251_vm5, %v17694_v30 }
 0x28c   :  { %16152 = vmatpush3.xpose.msk.msra.mxu1 %vm251_vm5, %v486_v35  ;;  %16157 = vmatpush3.xpose.msk.msra.mxu0 %vm251_vm5, %v564_v36 }
 0x28d   :  { %16153 = vmatprep.mubr.msk.f32.mxu1 %vm17508_vm4, %v17507_v6  ;;  %16166 = vmatprep.subr.mxu0 %v17507_v6 }
 0x28e   :  { %16161 = vmatprep.subr.mxu1 %v17507_v6 }
 0x28f   :  { %v484_v37 = vpop.permute.xlu1 %483  ;;  %v562_v38 = vpop.permute.xlu0 %561 }
 0x290   :  { %16154 = vmatmul.mubr.msk.f32.vlgmr.msra.gmra.mxu1 %vm251_vm5, %v484_v37  ;;  %16159 = vmatmul.mubr.msk.f32.vlgmr.msra.gmra.mxu0 %vm251_vm5, %v562_v38 }
 0x291   :  { %16168 = vmatprep.mubr.msk.f32.mxu0 %vm17508_vm4, %v17507_v6  ;;  %16163 = vmatprep.mubr.msk.f32.mxu1 %vm17508_vm4, %v17507_v6 }
 0x293   :  { %v642_v39 = vpop.permute.xlu1 %641  ;;  %v720_v40 = vpop.permute.xlu0 %719 }
 0x294   :  { %16162 = vmatpush3.xpose.msk.msra.mxu1 %vm251_vm5, %v642_v39  ;;  %16167 = vmatpush3.xpose.msk.msra.mxu0 %vm251_vm5, %v720_v40 }
 0x295   :  { %16171 = vmatprep.subr.mxu1 %v17507_v6  ;;  %16176 = vmatprep.subr.mxu0 %v17507_v6 }
 0x297   :  { %v640_v41 = vpop.permute.xlu1 %639  ;;  %v718_v42 = vpop.permute.xlu0 %717 }
 0x298   :  { %16164 = vmatmul.mubr.msk.f32.vlgmr.msra.gmra.mxu1 %vm251_vm5, %v640_v41  ;;  %16169 = vmatmul.mubr.msk.f32.vlgmr.msra.gmra.mxu0 %vm251_vm5, %v718_v42 }
 0x299   :  { %16173 = vmatprep.mubr.msk.f32.mxu1 %vm17508_vm4, %v17507_v6  ;;  %16178 = vmatprep.mubr.msk.f32.mxu0 %vm17508_vm4, %v17507_v6 }
 0x29b   :  { %v798_v43 = vpop.permute.xlu1 %797 }
 0x29c   :  { %16172 = vmatpush3.xpose.msk.msra.mxu1 %vm251_vm5, %v798_v43 }
 0x29d   :  { %16181 = vmatprep.subr.mxu1 %v17507_v6 }
 0x29f   :  { %v796_v44 = vpop.permute.xlu1 %795 }
 0x2a0   :  { %16174 = vmatmul.mubr.msk.f32.vlgmr.msra.gmra.mxu1 %vm251_vm5, %v796_v44 }
 0x2a1   :  { %16183 = vmatprep.mubr.msk.f32.mxu1 %vm17508_vm4, %v17507_v6 }
 0x347   :  { %v323_v45 = vpop.f32.mrf.mxu1 }
 0x348   :  { %v479_v46 = vpop.f32.mrf.mxu0  ;;  %v1498_v47 = vsel %vm1497_vm6, %v323_v45, -inf }
 0x349   :  { %1499 = vmax.xlane.f32.xlu0 %v1498_v47  ;;  %v16140_v48 = vpop.f32.mrf.mxu1  ;;  %v1504_v51 = vsel %vm1497_vm6, %v479_v46, -inf }
 0x34a   :  { %v16150_v49 = vpop.f32.mrf.mxu0 }
 0x34b   :  { %v401_v50 = vpop.f32.mrf.mxu1 }
 0x34c   :  { %v1501_v52 = vsel %vm1497_vm6, %v401_v50, -inf }
 0x34d   :  { %1505 = vmax.xlane.f32.xlu0 %v1504_v51  ;;  %1502 = vmax.xlane.f32.xlu1 %v1501_v52  ;;  %v16145_v53 = vpop.f32.mrf.mxu1 }
 0x350   :  { %v557_v54 = vpop.f32.mrf.mxu1  ;;  %v17757_v55 = vpop.f32.mrf.mxu0 }
 0x351   :  { %v1507_v56 = vsel %vm1497_vm6, %v557_v54, -inf  ;;  %v1510_v44 = vsel %vm1497_vm6, %v17757_v55, -inf }
 0x352   :  { %v16160_v57 = vpop.f32.mrf.mxu0  ;;  %1508 = vmax.xlane.f32.xlu0 %v1507_v56  ;;  %v16155_v58 = vpop.f32.mrf.mxu1 }
 0x358   :  { %v17760_v59 = vpop.f32.mrf.mxu1  ;;  %v17762_v60 = vpop.f32.mrf.mxu0 }
 0x35a   :  { %v16165_v61 = vpop.f32.mrf.mxu1  ;;  %v16170_v62 = vpop.f32.mrf.mxu0 }
 0x35e   :  { %953 = vrot.lane.b32.xlu1 %v17674_v27, %s19813_s21 }
 0x360   :  { %v17766_v63 = vpop.f32.mrf.mxu1 }
 0x362   :  { %951 = vrot.lane.b32.xlu1 %v17694_v30, %s19811_s22  ;;  %v16175_v0 = vpop.f32.mrf.mxu1 }
 0x366   :  { %1109 = vrot.lane.b32.xlu1 %v17674_v27, %s19809_s23 }
 0x368   :  { %875 = vrot.lane.b32.xlu0 %v17676_v28, %s19813_s21 }
 0x36a   :  { %1107 = vrot.lane.b32.xlu1 %v17694_v30, %s19807_s1 }
 0x36c   :  { %873 = vrot.lane.b32.xlu0 %v17683_v29, %s19811_s22 }
 0x36e   :  { %1265 = vrot.lane.b32.xlu1 %v17674_v27, %s19805_s24 }
 0x370   :  { %1031 = vrot.lane.b32.xlu0 %v17676_v28, %s19809_s23 }
 0x372   :  { %1263 = vrot.lane.b32.xlu1 %v17694_v30, %s19803_s25 }
 0x374   :  { %1029 = vrot.lane.b32.xlu0 %v17683_v29, %s19807_s1  ;;  %s19845_s1 = smov 104  }
 0x376   :  { %1421 = vrot.lane.b32.xlu1 %v17674_v27, %s19789_s26 }
 0x378   :  { %1187 = vrot.lane.b32.xlu0 %v17676_v28, %s19805_s24  ;;  %s19846_s24 = smov 68  }
 0x37a   :  { %1419 = vrot.lane.b32.xlu1 %v17694_v30, %s19787_s27 }
 0x37c   :  { %1185 = vrot.lane.b32.xlu0 %v17683_v29, %s19803_s25  ;;  %s19843_s25 = smov 108  }
 0x37e   :  { %1750 = vrot.lane.b32.xlu1 %v17674_v27, %s19785_s28 }
 0x380   :  { %1343 = vrot.lane.b32.xlu0 %v17676_v28, %s19789_s26  ;;  %s19799_s26 = smov 52  }
 0x384   :  { %1341 = vrot.lane.b32.xlu0 %v17683_v29, %s19787_s27  ;;  %s19793_s27 = smov 44  }
 0x388   :  { %1674 = vrot.lane.b32.xlu0 %v17676_v28, %s19785_s28  ;;  %s19848_s28 = smov 64  }
 0x3d2   :  { %v1500_v1 = vpop.xlane.xlu0 %1499 }
 0x3d3   :  { %v1546_v2 = vsub.f32 %v323_v45, %v1500_v1  ;;  %v1513_v45 = vsel %vm1497_vm6, %v17760_v59, -inf }
 0x3d5   :  { %v1562_v3 = vmul.f32 1.442695, %v1546_v2 }
 0x3d6   :  { %v1506_v4 = vpop.xlane.xlu0 %1505  ;;  %v1503_v5 = vpop.xlane.xlu1 %1502 }
 0x3d7   :  { %17192 = vpow2.f32 %v1562_v3  ;;  %v1548_v7 = vsub.f32 %v479_v46, %v1506_v4  ;;  %v1547_v8 = vsub.f32 %v401_v50, %v1503_v5  ;;  %v1516_v46 = vsel %vm1497_vm6, %v17762_v60, -inf }
 0x3d9   :  { %v1566_v9 = vmul.f32 1.442695, %v1548_v7  ;;  %v1564_v10 = vmul.f32 1.442695, %v1547_v8 }
 0x3da   :  { %v954_v11 = vpop.permute.xlu1 %953 }
 0x3db   :  { %17194 = vpow2.f32 %v1566_v9  ;;  %16182 = vmatpush3.xpose.msk.msra.mxu1 %vm251_vm5, %v954_v11  ;;  %v1509_v12 = vpop.xlane.xlu0 %1508 }
 0x3dc   :  { %17196 = vpow2.f32 %v1564_v10  ;;  %v1549_v13 = vsub.f32 %v557_v54, %v1509_v12  ;;  %16191 = vmatprep.subr.mxu1 %v17507_v6 }
 0x3de   :  { %v1568_v14 = vmul.f32 1.442695, %v1549_v13  ;;  %v952_v15 = vpop.permute.xlu1 %951 }
 0x3df   :  { %16184 = vmatmul.mubr.msk.f32.vlgmr.msra.gmra.mxu1 %vm251_vm5, %v952_v15  ;;  %v876_v16 = vpop.permute.xlu0 %875 }
 0x3e0   :  { %17198 = vpow2.f32 %v1568_v14  ;;  %16177 = vmatpush3.xpose.msk.msra.mxu0 %vm251_vm5, %v876_v16  ;;  %16193 = vmatprep.mubr.msk.f32.mxu1 %vm17508_vm4, %v17507_v6 }
 0x3e1   :  { %16186 = vmatprep.subr.mxu0 %v17507_v6 }
 0x3e2   :  { %v1110_v17 = vpop.permute.xlu1 %1109 }
 0x3e3   :  { %16192 = vmatpush3.xpose.msk.msra.mxu1 %vm251_vm5, %v1110_v17  ;;  %v874_v18 = vpop.permute.xlu0 %873 }
 0x3e4   :  { %v17810_v19 = vpop.eup %17192  ;;  %16179 = vmatmul.mubr.msk.f32.vlgmr.msra.gmra.mxu0 %vm251_vm5, %v874_v18  ;;  %16201 = vmatprep.subr.mxu1 %v17507_v6 }
 0x3e5   :  { %v1594_v20 = vsel %vm1497_vm6, %v17810_v19, 0.0  ;;  %16188 = vmatprep.mubr.msk.f32.mxu0 %vm17508_vm4, %v17507_v6 }
 0x3e6   :  { %1595 = vadd.xlane.f32.xlu1 %v1594_v20  ;;  %v1108_v21 = vpop.permute.xlu1 %1107 }
 0x3e7   :  { %16194 = vmatmul.mubr.msk.f32.vlgmr.msra.gmra.mxu1 %vm251_vm5, %v1108_v21  ;;  %v1032_v22 = vpop.permute.xlu0 %1031 }
 0x3e8   :  { %v17819_v23 = vpop.eup %17194  ;;  %16187 = vmatpush3.xpose.msk.msra.mxu0 %vm251_vm5, %v1032_v22  ;;  %16203 = vmatprep.mubr.msk.f32.mxu1 %vm17508_vm4, %v17507_v6 }
 0x3e9   :  { %v17824_v24 = vpop.eup %17196  ;;  %v1600_v29 = vsel %vm1497_vm6, %v17819_v23, 0.0  ;;  %16196 = vmatprep.subr.mxu0 %v17507_v6 }
 0x3ea   :  { %1601 = vadd.xlane.f32.xlu1 %v1600_v29  ;;  %v1266_v30 = vpop.permute.xlu1 %1265  ;;  %v1597_v31 = vsel %vm1497_vm6, %v17824_v24, 0.0 }
 0x3eb   :  { %1598 = vadd.xlane.f32.xlu0 %v1597_v31  ;;  %16202 = vmatpush3.xpose.msk.msra.mxu1 %vm251_vm5, %v1266_v30  ;;  %v1030_v32 = vpop.permute.xlu0 %1029  ;;  %v1826_v30 = vld [vmem:[%s19771_s4] sm:$0xf]  ;;  %v15206_v31 = vld [vmem:[%s19771_s4 + $0x4] sm:$0xf] }
 0x3ec   :  { %16189 = vmatmul.mubr.msk.f32.vlgmr.msra.gmra.mxu0 %vm251_vm5, %v1030_v32  ;;  %16211 = vmatprep.subr.mxu1 %v17507_v6 }
 0x3ed   :  { %v17834_v33 = vpop.eup %17198  ;;  %16198 = vmatprep.mubr.msk.f32.mxu0 %vm17508_vm4, %v17507_v6 }
 0x3ee   :  { %v1264_v34 = vpop.permute.xlu1 %1263  ;;  %v1603_v35 = vsel %vm1497_vm6, %v17834_v33, 0.0 }
 0x3ef   :  { %16204 = vmatmul.mubr.msk.f32.vlgmr.msra.gmra.mxu1 %vm251_vm5, %v1264_v34  ;;  %1604 = vadd.xlane.f32.xlu1 %v1603_v35  ;;  %v1188_v36 = vpop.permute.xlu0 %1187 }
 0x3f0   :  { %16197 = vmatpush3.xpose.msk.msra.mxu0 %vm251_vm5, %v1188_v36  ;;  %16213 = vmatprep.mubr.msk.f32.mxu1 %vm17508_vm4, %v17507_v6 }
 0x3f1   :  { %16206 = vmatprep.subr.mxu0 %v17507_v6 }
 0x3f2   :  { %v1422_v37 = vpop.permute.xlu1 %1421 }
 0x3f3   :  { %16212 = vmatpush3.xpose.msk.msra.mxu1 %vm251_vm5, %v1422_v37  ;;  %v1186_v38 = vpop.permute.xlu0 %1185 }
 0x3f4   :  { %16199 = vmatmul.mubr.msk.f32.vlgmr.msra.gmra.mxu0 %vm251_vm5, %v1186_v38  ;;  %16221 = vmatprep.subr.mxu1 %v17507_v6  ;;  %v1519_v38 = vsel %vm1497_vm6, %v17766_v63, -inf }
 0x3f5   :  { %16208 = vmatprep.mubr.msk.f32.mxu0 %vm17508_vm4, %v17507_v6 }
 0x3f6   :  { %v1420_v39 = vpop.permute.xlu1 %1419 }
 0x3f7   :  { %16214 = vmatmul.mubr.msk.f32.vlgmr.msra.gmra.mxu1 %vm251_vm5, %v1420_v39  ;;  %v1344_v40 = vpop.permute.xlu0 %1343 }
 0x3f8   :  { %16207 = vmatpush3.xpose.msk.msra.mxu0 %vm251_vm5, %v1344_v40  ;;  %16223 = vmatprep.mubr.msk.f32.mxu1 %vm17508_vm4, %v17507_v6 }
 0x3f9   :  { %16216 = vmatprep.subr.mxu0 %v17507_v6 }
 0x3fa   :  { %v1751_v41 = vpop.permute.xlu1 %1750 }
 0x3fb   :  { %16222 = vmatpush3.msra.mxu1 %v1751_v41  ;;  %v1342_v42 = vpop.permute.xlu0 %1341 }
 0x3fc   :  { %16209 = vmatmul.mubr.msk.f32.vlgmr.msra.gmra.mxu0 %vm251_vm5, %v1342_v42  ;;  %16231 = vmatprep.subr.mxu1 %v17507_v6 }
 0x3fd   :  { %16218 = vmatprep.mubr.msk.f32.mxu0 %vm17508_vm4, %v17507_v6 }
 0x3ff   :  { %v1675_v43 = vpop.permute.xlu0 %1674 }
 0x400   :  { %1903 = vrot.lane.b32.xlu1 %v17674_v27, %s19783_s29  ;;  %16217 = vmatpush3.msra.mxu0 %v1675_v43 }
 0x401   :  { %1827 = vrot.lane.b32.xlu0 %v17676_v28, %s19783_s29  ;;  %16226 = vmatprep.subr.mxu0 %v17507_v6  ;;  %s19791_s29 = smov 48  }
 0x420   :  { %1511 = vmax.xlane.f32.xlu0 %v1510_v44 }
 0x424   :  { %1514 = vmax.xlane.f32.xlu1 %v1513_v45 }
 0x435   :  { %2150 = vrot.lane.b32.xlu1 %v17676_v28, %s19801_s30 }
 0x459   :  { %1517 = vmax.xlane.f32.xlu1 %v1516_v46 }
 0x46f   :  { %v1596_v47 = vpop.xlane.xlu1 %1595 }
 0x470   :  { %17200 = vrcp.f32 %v1596_v47 }
 0x473   :  { %v1602_v48 = vpop.xlane.xlu1 %1601 }
 0x474   :  { %17202 = vrcp.f32 %v1602_v48  ;;  %v1599_v49 = vpop.xlane.xlu0 %1598 }
 0x475   :  { %17204 = vrcp.f32 %v1599_v49 }
 0x478   :  { %v1605_v50 = vpop.xlane.xlu1 %1604  ;;  %v1828_v53 = vpop.permute.xlu0 %1827 }
 0x479   :  { %17206 = vrcp.f32 %v1605_v50 }
 0x47c   :  { %v1904_v61 = vpop.permute.xlu1 %1903 }
 0x47d   :  { %v17201_v51 = vpop.eup %17200 }
 0x47e   :  { %v1658_v52 = vmul.f32 %v17201_v51, %v17810_v19 }
 0x480   :  { %16219 = vmatmul.mubr.msk.f32.vlgmr.msra.gmra.mxu0 %vm1497_vm6, %v1658_v52 }
 0x481   :  { %v17203_v54 = vpop.eup %17202  ;;  %16227 = vmatpush3.msra.mxu0 %v1828_v53  ;;  %16228 = vmatprep.mubr.msk.f32.mxu0 %vm17508_vm4, %v17507_v6 }
 0x482   :  { %v17205_v56 = vpop.eup %17204  ;;  %v1660_v57 = vmul.f32 %v17203_v54, %v17819_v23  ;;  %16236 = vmatprep.subr.msk.mxu0 %vm1987_vm7, %v15206_v31 }
 0x483   :  { %v1659_v58 = vmul.f32 %v17205_v56, %v17824_v24 }
 0x484   :  { %16229 = vmatmul.mubr.msk.f32.vlgmr.msra.gmra.mxu0 %vm1497_vm6, %v1660_v57 }
 0x485   :  { %16224 = vmatmul.mubr.msk.f32.vlgmr.msra.gmra.mxu1 %vm1497_vm6, %v1659_v58  ;;  %16237 = vmatpush3.msk.msra.mxu0 %vm1987_vm7, %v15206_v31 }
 0x486   :  { %v17207_v62 = vpop.eup %17206  ;;  %16232 = vmatpush3.msra.mxu1 %v1904_v61  ;;  %16233 = vmatprep.mubr.msk.f32.mxu1 %vm17508_vm4, %v17507_v6 }
 0x487   :  { %v1661_v0 = vmul.f32 %v17207_v62, %v17834_v33  ;;  %16241 = vmatprep.subr.msk.mxu1 %vm1987_vm7, %v1826_v30  ;;  %16246 = vmatprep.subr.mxu0 %v17507_v6 }
 0x489   :  { %16234 = vmatmul.mubr.msk.f32.vlgmr.msra.gmra.mxu1 %vm1497_vm6, %v1661_v0 }
 0x48a   :  { %16242 = vmatpush3.msk.msra.mxu1 %vm1987_vm7, %v1826_v30 }
 0x48b   :  { %16251 = vmatprep.subr.mxu1 %v17507_v6 }
 0x49f   :  { %v17884_v1 = vpop.f32.mrf.mxu1 }
 0x4a1   :  { %v16185_v2 = vpop.f32.mrf.mxu1 }
 0x4a4   :  { %v17886_v3 = vpop.f32.mrf.mxu0 }
 0x4a5   :  { %v1522_v39 = vsel %vm1497_vm6, %v17886_v3, -inf }
 0x4a6   :  { %v16180_v4 = vpop.f32.mrf.mxu0 }
 0x4a7   :  { %v17888_v5 = vpop.f32.mrf.mxu1 }
 0x4a9   :  { %v1512_v7 = vpop.xlane.xlu0 %1511  ;;  %v16195_v8 = vpop.f32.mrf.mxu1 }
 0x4aa   :  { %v1550_v9 = vsub.f32 %v17757_v55, %v1512_v7  ;;  %v15215_v7 = vld [vmem:[%s19771_s4 + $0x8] sm:$0xf] }
 0x4ac   :  { %v1570_v10 = vmul.f32 1.442695, %v1550_v9  ;;  %v17891_v11 = vpop.f32.mrf.mxu0 }
 0x4ad   :  { %v1515_v12 = vpop.xlane.xlu1 %1514 }
 0x4ae   :  { %17208 = vpow2.f32 %v1570_v10  ;;  %v1551_v13 = vsub.f32 %v17760_v59, %v1515_v12  ;;  %v16190_v14 = vpop.f32.mrf.mxu0 }
 0x4af   :  { %v17894_v15 = vpop.f32.mrf.mxu1  ;;  %v1528_v14 = vsel %vm1497_vm6, %v17891_v11, -inf }
 0x4b0   :  { %v1572_v16 = vmul.f32 1.442695, %v1551_v13  ;;  %v1525_v13 = vsel %vm1497_vm6, %v17884_v1, -inf }
 0x4b1   :  { %v16205_v17 = vpop.f32.mrf.mxu1  ;;  %v2151_v32 = vpop.permute.xlu1 %2150 }
 0x4b2   :  { %17210 = vpow2.f32 %v1572_v16 }
 0x4b4   :  { %v17896_v18 = vpop.f32.mrf.mxu0 }
 0x4b6   :  { %v16200_v19 = vpop.f32.mrf.mxu0 }
 0x4b7   :  { %v17898_v20 = vpop.f32.mrf.mxu1 }
 0x4b9   :  { %v16215_v21 = vpop.f32.mrf.mxu1 }
 0x4bb   :  { %v17209_v55 = vpop.eup %17208 }
 0x4bc   :  { %v17900_v22 = vpop.f32.mrf.mxu0  ;;  %v1606_v23 = vsel %vm1497_vm6, %v17209_v55, 0.0 }
 0x4bd   :  { %1607 = vadd.xlane.f32.xlu0 %v1606_v23 }
 0x4be   :  { %v16210_v24 = vpop.f32.mrf.mxu0 }
 0x4bf   :  { %v17211_v59 = vpop.eup %17210 }
 0x4c0   :  { %v1609_v29 = vsel %vm1497_vm6, %v17211_v59, 0.0 }
 0x4c1   :  { %1610 = vadd.xlane.f32.xlu0 %v1609_v29 }
 0x4d7   :  { %2226 = vrot.lane.b32.xlu0 %v17674_v27, %s19801_s30  ;;  %s19844_s30 = smov 72  }
 0x4e2   :  { %v1518_v33 = vpop.xlane.xlu1 %1517 }
 0x4e3   :  { %v1552_v34 = vsub.f32 %v17762_v60, %v1518_v33 }
 0x4e5   :  { %v1574_v35 = vmul.f32 1.442695, %v1552_v34 }
 0x4e7   :  { %17212 = vpow2.f32 %v1574_v35 }
 0x4f4   :  { %v17213_v36 = vpop.eup %17212 }
 0x4f5   :  { %v1612_v37 = vsel %vm1497_vm6, %v17213_v36, 0.0 }
 0x4f6   :  { %1613 = vadd.xlane.f32.xlu1 %v1612_v37  ;;  %1520 = vmax.xlane.f32.xlu0 %v1519_v38 }
 0x507   :  { %2390 = vrot.lane.b32.xlu1 %v17676_v28, %s19799_s26 }
 0x52b   :  { %1523 = vmax.xlane.f32.xlu1 %v1522_v39 }
 0x540   :  { %v1746_v40 = vpop.f32.mrf.mxu0 }
 0x541   :  { %16243 = vmatprep.mubr.msk.f32.mxu1 %vm251_vm5, %v1746_v40 }
 0x542   :  { %v16220_v60 = vpop.f32.mrf.mxu0 }
 0x543   :  { %v15221_v60 = vld [vmem:[%s19771_s4 + $0xc] sm:$0xf] }
 0x544   :  { %v1899_v41 = vpop.f32.mrf.mxu0 }
 0x545   :  { %v1822_v42 = vpop.f32.mrf.mxu1  ;;  %16238 = vmatprep.mubr.msk.f32.mxu0 %vm251_vm5, %v1899_v41 }
 0x546   :  { %v1608_v43 = vpop.xlane.xlu0 %1607  ;;  %16244 = vmatmul.mubr.msk.f32.vlgmr.msra.gmra.mxu1 %vm251_vm5, %v1822_v42  ;;  %v16230_v44 = vpop.f32.mrf.mxu0 }
 0x547   :  { %17214 = vrcp.f32 %v1608_v43  ;;  %v16225_v45 = vpop.f32.mrf.mxu1  ;;  %16253 = vmatprep.mubr.msk.f32.mxu1 %vm17508_vm4, %v17507_v6 }
 0x549   :  { %v1975_v46 = vpop.f32.mrf.mxu1 }
 0x54a   :  { %v1611_v47 = vpop.xlane.xlu0 %1610  ;;  %16239 = vmatmul.mubr.msk.f32.vlgmr.msra.gmra.mxu0 %vm251_vm5, %v1975_v46 }
 0x54b   :  { %17216 = vrcp.f32 %v1611_v47  ;;  %16247 = vmatpush3.msra.mxu0 %v2151_v32  ;;  %v16235_v48 = vpop.f32.mrf.mxu1  ;;  %16248 = vmatprep.mubr.msk.f32.mxu0 %vm17508_vm4, %v17507_v6 }
 0x54c   :  { %16256 = vmatprep.subr.msk.mxu0 %vm1987_vm7, %v15215_v7  ;;  %v1531_v48 = vsel %vm1497_vm6, %v17888_v5, -inf }
 0x54e   :  { %v2227_v49 = vpop.permute.xlu0 %2226 }
 0x54f   :  { %16252 = vmatpush3.msra.mxu1 %v2227_v49  ;;  %v1534_v49 = vsel %vm1497_vm6, %v17896_v18, -inf }
 0x550   :  { %16261 = vmatprep.subr.mxu1 %v17507_v6 }
 0x554   :  { %v17215_v50 = vpop.eup %17214 }
 0x555   :  { %v1662_v51 = vmul.f32 %v17215_v50, %v17209_v55 }
 0x557   :  { %16249 = vmatmul.mubr.msk.f32.vlgmr.msra.gmra.mxu0 %vm1497_vm6, %v1662_v51 }
 0x558   :  { %v17217_v52 = vpop.eup %17216  ;;  %16257 = vmatpush3.msk.msra.mxu0 %vm1987_vm7, %v15215_v7 }
 0x559   :  { %v1663_v53 = vmul.f32 %v17217_v52, %v17211_v59  ;;  %16266 = vmatprep.subr.mxu0 %v17507_v6 }
 0x55b   :  { %16254 = vmatmul.mubr.msk.f32.vlgmr.msra.gmra.mxu1 %vm1497_vm6, %v1663_v53 }
 0x55c   :  { %16263 = vmatprep.mubr.msk.f32.mxu1 %vm17508_vm4, %v17507_v6 }
 0x57f   :  { %v1614_v54 = vpop.xlane.xlu1 %1613  ;;  %v1521_v56 = vpop.xlane.xlu0 %1520 }
 0x580   :  { %17218 = vrcp.f32 %v1614_v54  ;;  %v1553_v57 = vsub.f32 %v17766_v63, %v1521_v56 }
 0x582   :  { %v1576_v58 = vmul.f32 1.442695, %v1553_v57 }
 0x583   :  { %v2391_v61 = vpop.permute.xlu1 %2390 }
 0x584   :  { %17220 = vpow2.f32 %v1576_v58  ;;  %16262 = vmatpush3.msra.mxu1 %v2391_v61 }
 0x585   :  { %16271 = vmatprep.subr.msk.mxu1 %vm1987_vm7, %v15221_v60 }
 0x58d   :  { %v17219_v62 = vpop.eup %17218 }
 0x58e   :  { %v1664_v0 = vmul.f32 %v17219_v62, %v17213_v36 }
 0x590   :  { %16264 = vmatmul.mubr.msk.f32.vlgmr.msra.gmra.mxu1 %vm1497_vm6, %v1664_v0 }
 0x591   :  { %v17221_v2 = vpop.eup %17220  ;;  %16272 = vmatpush3.msk.msra.mxu1 %vm1987_vm7, %v15221_v60 }
 0x592   :  { %v1615_v4 = vsel %vm1497_vm6, %v17221_v2, 0.0  ;;  %16281 = vmatprep.subr.mxu1 %v17507_v6 }
 0x593   :  { %1616 = vadd.xlane.f32.xlu0 %v1615_v4 }
 0x5a9   :  { %2466 = vrot.lane.b32.xlu0 %v17674_v27, %s19799_s26  ;;  %s19849_s26 = smov 60  }
 0x5b4   :  { %v1524_v63 = vpop.xlane.xlu1 %1523 }
 0x5b5   :  { %v1554_v8 = vsub.f32 %v17886_v3, %v1524_v63 }
 0x5b7   :  { %v1578_v9 = vmul.f32 1.442695, %v1554_v8 }
 0x5b9   :  { %17222 = vpow2.f32 %v1578_v9  ;;  %v15227_v9 = vld [vmem:[%s19771_s4 + $0x10] sm:$0xf] }
 0x5c6   :  { %v17223_v10 = vpop.eup %17222 }
 0x5c7   :  { %v1618_v12 = vsel %vm1497_vm6, %v17223_v10, 0.0 }
 0x5c8   :  { %1619 = vadd.xlane.f32.xlu1 %v1618_v12  ;;  %1526 = vmax.xlane.f32.xlu0 %v1525_v13 }
 0x5d9   :  { %2630 = vrot.lane.b32.xlu1 %v17676_v28, %s19791_s29 }
 0x5fd   :  { %1529 = vmax.xlane.f32.xlu1 %v1528_v14 }
 0x606   :  { %v16245_v16 = vpop.f32.mrf.mxu1 }
 0x608   :  { %v17961_v55 = vpop.f32.mrf.mxu1 }
 0x60a   :  { %v16240_v3 = vpop.f32.mrf.mxu0 }
 0x60b   :  { %v2147_v17 = vadd.f32 %v16245_v16, %v16240_v3 }
 0x60c   :  { %v17958_v19 = vpop.f32.mrf.mxu0 }
 0x617   :  { %v2222_v21 = vpop.f32.mrf.mxu0 }
 0x618   :  { %16258 = vmatprep.mubr.msk.f32.mxu0 %vm251_vm5, %v2222_v21  ;;  %v1537_v21 = vsel %vm1497_vm6, %v17894_v15, -inf }
 0x619   :  { %v16250_v23 = vpop.f32.mrf.mxu0 }
 0x61a   :  { %v1540_v23 = vsel %vm1497_vm6, %v17900_v22, -inf }
 0x61b   :  { %v2298_v24 = vpop.f32.mrf.mxu1 }
 0x61c   :  { %v1617_v59 = vpop.xlane.xlu0 %1616  ;;  %16259 = vmatmul.mubr.msk.f32.vlgmr.msra.gmra.mxu0 %vm251_vm5, %v2298_v24 }
 0x61d   :  { %17224 = vrcp.f32 %v1617_v59  ;;  %v16255_v29 = vpop.f32.mrf.mxu1  ;;  %16268 = vmatprep.mubr.msk.f32.mxu0 %vm17508_vm4, %v17507_v6 }
 0x620   :  { %v2467_v30 = vpop.permute.xlu0 %2466 }
 0x621   :  { %16267 = vmatpush3.msra.mxu0 %v2467_v30 }
 0x622   :  { %16276 = vmatprep.subr.mxu0 %v17507_v6 }
 0x62a   :  { %v17225_v31 = vpop.eup %17224 }
 0x62b   :  { %v1665_v32 = vmul.f32 %v17225_v31, %v17221_v2 }
 0x62d   :  { %16269 = vmatmul.mubr.msk.f32.vlgmr.msra.gmra.mxu0 %vm1497_vm6, %v1665_v32 }
 0x62e   :  { %16278 = vmatprep.mubr.msk.f32.mxu0 %vm17508_vm4, %v17507_v6 }
 0x650   :  { %v2462_v33 = vpop.f32.mrf.mxu1 }
 0x651   :  { %v1620_v34 = vpop.xlane.xlu1 %1619  ;;  %v1527_v35 = vpop.xlane.xlu0 %1526  ;;  %16273 = vmatprep.mubr.msk.f32.mxu1 %vm251_vm5, %v2462_v33 }
 0x652   :  { %17226 = vrcp.f32 %v1620_v34  ;;  %v1555_v36 = vsub.f32 %v17884_v1, %v1527_v35  ;;  %v16265_v37 = vpop.f32.mrf.mxu1 }
 0x654   :  { %v1580_v38 = vmul.f32 1.442695, %v1555_v36 }
 0x655   :  { %v2631_v39 = vpop.permute.xlu1 %2630 }
 0x656   :  { %17228 = vpow2.f32 %v1580_v38  ;;  %16277 = vmatpush3.msra.mxu0 %v2631_v39 }
 0x657   :  { %16286 = vmatprep.subr.msk.mxu0 %vm1987_vm7, %v15227_v9 }
 0x65f   :  { %v17227_v40 = vpop.eup %17226 }
 0x660   :  { %v1666_v41 = vmul.f32 %v17227_v40, %v17223_v10 }
 0x662   :  { %16279 = vmatmul.mubr.msk.f32.vlgmr.msra.gmra.mxu0 %vm1497_vm6, %v1666_v41 }
 0x663   :  { %v17229_v1 = vpop.eup %17228  ;;  %16287 = vmatpush3.msk.msra.mxu0 %vm1987_vm7, %v15227_v9 }
 0x664   :  { %v1621_v42 = vsel %vm1497_vm6, %v17229_v1, 0.0  ;;  %16296 = vmatprep.subr.mxu0 %v17507_v6 }
 0x665   :  { %1622 = vadd.xlane.f32.xlu0 %v1621_v42 }
 0x67b   :  { %2706 = vrot.lane.b32.xlu0 %v17674_v27, %s19791_s29  ;;  %s19795_s29 = smov 40  }
 0x686   :  { %v1530_v43 = vpop.xlane.xlu1 %1529 }
 0x687   :  { %v1556_v44 = vsub.f32 %v17891_v11, %v1530_v43 }
 0x689   :  { %v1582_v45 = vmul.f32 1.442695, %v1556_v44 }
 0x68b   :  { %17230 = vpow2.f32 %v1582_v45 }
 0x698   :  { %v17231_v46 = vpop.eup %17230 }
 0x699   :  { %v1624_v47 = vsel %vm1497_vm6, %v17231_v46, 0.0 }
 0x69a   :  { %1625 = vadd.xlane.f32.xlu1 %v1624_v47  ;;  %1532 = vmax.xlane.f32.xlu0 %v1531_v48 }
 0x6ab   :  { %2870 = vrot.lane.b32.xlu1 %v17676_v28, %s19793_s27 }
 0x6cf   :  { %1535 = vmax.xlane.f32.xlu1 %v1534_v49  ;;  %v1543_v49 = vsel %vm1497_vm6, %v17898_v20, -inf }
 0x6dc   :  { %v16260_v50 = vpop.f32.mrf.mxu0 }
 0x6dd   :  { %v2389_v11 = vadd.f32 %v16260_v50, %v2147_v17 }
 0x6de   :  { %v17990_v51 = vpop.f32.mrf.mxu0 }
 0x6ed   :  { %v2538_v52 = vpop.f32.mrf.mxu0 }
 0x6ee   :  { %v1623_v53 = vpop.xlane.xlu0 %1622  ;;  %16274 = vmatmul.mubr.msk.f32.vlgmr.msra.gmra.mxu1 %vm251_vm5, %v2538_v52 }
 0x6ef   :  { %17232 = vrcp.f32 %v1623_v53  ;;  %v16270_v54 = vpop.f32.mrf.mxu0  ;;  %16283 = vmatprep.mubr.msk.f32.mxu1 %vm17508_vm4, %v17507_v6 }
 0x6f2   :  { %v2707_v56 = vpop.permute.xlu0 %2706 }
 0x6f3   :  { %16282 = vmatpush3.msra.mxu1 %v2707_v56 }
 0x6f4   :  { %16291 = vmatprep.subr.mxu1 %v17507_v6 }
 0x6fc   :  { %v17233_v57 = vpop.eup %17232 }
 0x6fd   :  { %v1667_v58 = vmul.f32 %v17233_v57, %v17229_v1  ;;  %v15233_v1 = vld [vmem:[%s19771_s4 + $0x14] sm:$0xf] }
 0x6ff   :  { %16284 = vmatmul.mubr.msk.f32.vlgmr.msra.gmra.mxu1 %vm1497_vm6, %v1667_v58 }
 0x700   :  { %16293 = vmatprep.mubr.msk.f32.mxu1 %vm17508_vm4, %v17507_v6 }
 0x722   :  { %v2702_v61 = vpop.f32.mrf.mxu0 }
 0x723   :  { %v1626_v62 = vpop.xlane.xlu1 %1625  ;;  %v1533_v0 = vpop.xlane.xlu0 %1532  ;;  %16288 = vmatprep.mubr.msk.f32.mxu0 %vm251_vm5, %v2702_v61 }
 0x724   :  { %17234 = vrcp.f32 %v1626_v62  ;;  %v1557_v2 = vsub.f32 %v17888_v5, %v1533_v0  ;;  %v16280_v4 = vpop.f32.mrf.mxu0 }
 0x726   :  { %v1584_v7 = vmul.f32 1.442695, %v1557_v2 }
 0x727   :  { %v2871_v63 = vpop.permute.xlu1 %2870 }
 0x728   :  { %17236 = vpow2.f32 %v1584_v7  ;;  %16292 = vmatpush3.msra.mxu1 %v2871_v63 }
 0x729   :  { %16301 = vmatprep.subr.msk.mxu1 %vm1987_vm7, %v15233_v1 }
 0x731   :  { %v17235_v8 = vpop.eup %17234 }
 0x732   :  { %v1668_v10 = vmul.f32 %v17235_v8, %v17231_v46  ;;  %v15239_v8 = vld [vmem:[%s19771_s4 + $0x18] sm:$0xf] }
 0x734   :  { %16294 = vmatmul.mubr.msk.f32.vlgmr.msra.gmra.mxu1 %vm1497_vm6, %v1668_v10 }
 0x735   :  { %v17237_v5 = vpop.eup %17236  ;;  %16302 = vmatpush3.msk.msra.mxu1 %vm1987_vm7, %v15233_v1 }
 0x736   :  { %v1627_v12 = vsel %vm1497_vm6, %v17237_v5, 0.0  ;;  %16311 = vmatprep.subr.mxu1 %v17507_v6 }
 0x737   :  { %1628 = vadd.xlane.f32.xlu0 %v1627_v12 }
 0x74d   :  { %2946 = vrot.lane.b32.xlu0 %v17674_v27, %s19793_s27  ;;  %s19797_s27 = smov 36  }
 0x758   :  { %v1536_v13 = vpop.xlane.xlu1 %1535 }
 0x759   :  { %v1558_v14 = vsub.f32 %v17896_v18, %v1536_v13 }
 0x75b   :  { %v1586_v16 = vmul.f32 1.442695, %v1558_v14 }
 0x75d   :  { %17238 = vpow2.f32 %v1586_v16 }
 0x76a   :  { %v17239_v3 = vpop.eup %17238 }
 0x76b   :  { %v1630_v17 = vsel %vm1497_vm6, %v17239_v3, 0.0 }
 0x76c   :  { %1631 = vadd.xlane.f32.xlu1 %v1630_v17  ;;  %1538 = vmax.xlane.f32.xlu0 %v1537_v21 }
 0x77d   :  { %3110 = vrot.lane.b32.xlu1 %v17676_v28, %s19795_s29 }
 0x7a1   :  { %1541 = vmax.xlane.f32.xlu1 %v1540_v23 }
 0x7ae   :  { %v16275_v24 = vpop.f32.mrf.mxu1 }
 0x7af   :  { %v2629_v18 = vadd.f32 %v16275_v24, %v2389_v11 }
 0x7b0   :  { %v18019_v59 = vpop.f32.mrf.mxu1 }
 0x7bf   :  { %v2778_v29 = vpop.f32.mrf.mxu1 }
 0x7c0   :  { %v1629_v30 = vpop.xlane.xlu0 %1628  ;;  %16289 = vmatmul.mubr.msk.f32.vlgmr.msra.gmra.mxu0 %vm251_vm5, %v2778_v29 }
 0x7c1   :  { %17240 = vrcp.f32 %v1629_v30  ;;  %v16285_v31 = vpop.f32.mrf.mxu1  ;;  %16298 = vmatprep.mubr.msk.f32.mxu0 %vm17508_vm4, %v17507_v6 }
 0x7c4   :  { %v2947_v32 = vpop.permute.xlu0 %2946 }
 0x7c5   :  { %16297 = vmatpush3.msra.mxu0 %v2947_v32 }
 0x7c6   :  { %16306 = vmatprep.subr.mxu0 %v17507_v6 }
 0x7ce   :  { %v17241_v33 = vpop.eup %17240 }
 0x7cf   :  { %v1669_v34 = vmul.f32 %v17241_v33, %v17237_v5 }
 0x7d1   :  { %16299 = vmatmul.mubr.msk.f32.vlgmr.msra.gmra.mxu0 %vm1497_vm6, %v1669_v34  ;;  %v2142_v34 = vadd.f32 %v17961_v55, %v17958_v19 }
 0x7d2   :  { %16308 = vmatprep.mubr.msk.f32.mxu0 %vm17508_vm4, %v17507_v6 }
 0x7f4   :  { %v2942_v35 = vpop.f32.mrf.mxu1 }
 0x7f5   :  { %v1632_v36 = vpop.xlane.xlu1 %1631  ;;  %v1539_v37 = vpop.xlane.xlu0 %1538  ;;  %16303 = vmatprep.mubr.msk.f32.mxu1 %vm251_vm5, %v2942_v35  ;;  %v2388_v35 = vadd.f32 %v17990_v51, %v2142_v34 }
 0x7f6   :  { %17242 = vrcp.f32 %v1632_v36  ;;  %v1559_v38 = vsub.f32 %v17894_v15, %v1539_v37  ;;  %v16295_v39 = vpop.f32.mrf.mxu1 }
 0x7f7   :  { %v2628_v36 = vadd.f32 %v18019_v59, %v2388_v35 }
 0x7f8   :  { %v1588_v40 = vmul.f32 1.442695, %v1559_v38 }
 0x7f9   :  { %v3111_v60 = vpop.permute.xlu1 %3110 }
 0x7fa   :  { %17244 = vpow2.f32 %v1588_v40  ;;  %16307 = vmatpush3.msra.mxu0 %v3111_v60 }
 0x7fb   :  { %16316 = vmatprep.subr.msk.mxu0 %vm1987_vm7, %v15239_v8 }
 0x803   :  { %v17243_v41 = vpop.eup %17242 }
 0x804   :  { %v1670_v42 = vmul.f32 %v17243_v41, %v17239_v3 }
 0x806   :  { %16309 = vmatmul.mubr.msk.f32.vlgmr.msra.gmra.mxu0 %vm1497_vm6, %v1670_v42 }
 0x807   :  { %v17245_v15 = vpop.eup %17244  ;;  %16317 = vmatpush3.msk.msra.mxu0 %vm1987_vm7, %v15239_v8 }
 0x808   :  { %v1633_v43 = vsel %vm1497_vm6, %v17245_v15, 0.0  ;;  %16326 = vmatprep.subr.mxu0 %v17507_v6 }
 0x809   :  { %1634 = vadd.xlane.f32.xlu0 %v1633_v43 }
 0x81f   :  { %3186 = vrot.lane.b32.xlu0 %v17674_v27, %s19795_s29  ;;  %s19847_s29 = smov 100  }
 0x82a   :  { %v1542_v44 = vpop.xlane.xlu1 %1541 }
 0x82b   :  { %v1560_v45 = vsub.f32 %v17900_v22, %v1542_v44 }
 0x82d   :  { %v1590_v46 = vmul.f32 1.442695, %v1560_v45 }
 0x82f   :  { %17246 = vpow2.f32 %v1590_v46 }
 0x83c   :  { %v17247_v47 = vpop.eup %17246 }
 0x83d   :  { %v1636_v48 = vsel %vm1497_vm6, %v17247_v47, 0.0 }
 0x83e   :  { %1637 = vadd.xlane.f32.xlu1 %v1636_v48  ;;  %1544 = vmax.xlane.f32.xlu0 %v1543_v49  ;;  %v3640_v49 = vld [vmem:[%s19774_s7 + $0x18] sm:$0xff] }
 0x84f   :  { %3350 = vrot.lane.b32.xlu1 %v17676_v28, %s19797_s27 }
 0x880   :  { %v16290_v50 = vpop.f32.mrf.mxu0 }
 0x881   :  { %v2869_v11 = vadd.f32 %v16290_v50, %v2629_v18  ;;  %v15245_v18 = vld [vmem:[%s19771_s4 + $0x1c] sm:$0xf]  ;;  %v3639_v50 = vld [vmem:[%s19774_s7 + $0x10] sm:$0xff] }
 0x882   :  { %v18046_v52 = vpop.f32.mrf.mxu0 }
 0x883   :  { %v2868_v37 = vadd.f32 %v18046_v52, %v2628_v36  ;;  %v3637_v52 = vld [vmem:[%s19774_s7] sm:$0xff] }
 0x891   :  { %v3018_v53 = vpop.f32.mrf.mxu0 }
 0x892   :  { %v1635_v22 = vpop.xlane.xlu0 %1634  ;;  %16304 = vmatmul.mubr.msk.f32.vlgmr.msra.gmra.mxu1 %vm251_vm5, %v3018_v53  ;;  %v3746_v53 = vld [vmem:[%s19776_s9 + $0x78] sm:$0xff] }
 0x893   :  { %17248 = vrcp.f32 %v1635_v22  ;;  %v16300_v54 = vpop.f32.mrf.mxu0  ;;  %16313 = vmatprep.mubr.msk.f32.mxu1 %vm17508_vm4, %v17507_v6  ;;  %v3745_v22 = vld [vmem:[%s19776_s9 + $0x70] sm:$0xff] }
 0x894   :  { %v3744_v54 = vld [vmem:[%s19776_s9 + $0x68] sm:$0xff] }
 0x896   :  { %v3187_v56 = vpop.permute.xlu0 %3186 }
 0x897   :  { %16312 = vmatpush3.msra.mxu1 %v3187_v56  ;;  %v3743_v56 = vld [vmem:[%s19776_s9 + $0x60] sm:$0xff] }
 0x898   :  { %16321 = vmatprep.subr.mxu1 %v17507_v6 }
 0x8a0   :  { %v17249_v57 = vpop.eup %17248 }
 0x8a1   :  { %v1671_v58 = vmul.f32 %v17249_v57, %v17245_v15  ;;  %v3742_v57 = vld [vmem:[%s19776_s9 + $0x58] sm:$0xff] }
 0x8a3   :  { %16314 = vmatmul.mubr.msk.f32.vlgmr.msra.gmra.mxu1 %vm1497_vm6, %v1671_v58  ;;  %v3741_v58 = vld [vmem:[%s19776_s9 + $0x50] sm:$0xff] }
 0x8a4   :  { %16323 = vmatprep.mubr.msk.f32.mxu1 %vm17508_vm4, %v17507_v6 }
 0x8c6   :  { %v3182_v28 = vpop.f32.mrf.mxu0 }
 0x8c7   :  { %v1638_v61 = vpop.xlane.xlu1 %1637  ;;  %v1545_v62 = vpop.xlane.xlu0 %1544  ;;  %16318 = vmatprep.mubr.msk.f32.mxu0 %vm251_vm5, %v3182_v28  ;;  %v3740_v28 = vld [vmem:[%s19776_s9 + $0x48] sm:$0xff] }
 0x8c8   :  { %17250 = vrcp.f32 %v1638_v61  ;;  %v1561_v0 = vsub.f32 %v17898_v20, %v1545_v62  ;;  %v16310_v2 = vpop.f32.mrf.mxu0  ;;  %v3739_v61 = vld [vmem:[%s19776_s9 + $0x40] sm:$0xff]  ;;  %v3738_v62 = vld [vmem:[%s19776_s9 + $0x38] sm:$0xff] }
 0x8c9   :  { %v3736_v2 = vld [vmem:[%s19776_s9 + $0x28] sm:$0xff] }
 0x8ca   :  { %v1592_v4 = vmul.f32 1.442695, %v1561_v0  ;;  %v3737_v0 = vld [vmem:[%s19776_s9 + $0x30] sm:$0xff] }
 0x8cb   :  { %v3351_v7 = vpop.permute.xlu1 %3350 }
 0x8cc   :  { %17252 = vpow2.f32 %v1592_v4  ;;  %16322 = vmatpush3.msra.mxu1 %v3351_v7  ;;  %v3735_v4 = vld [vmem:[%s19776_s9 + $0x20] sm:$0xff] }
 0x8cd   :  { %16331 = vmatprep.subr.msk.mxu1 %vm1987_vm7, %v15245_v18 }
 0x8d5   :  { %v17251_v63 = vpop.eup %17250 }
 0x8d6   :  { %v1672_v9 = vmul.f32 %v17251_v63, %v17247_v47 }
 0x8d8   :  { %16324 = vmatmul.mubr.msk.f32.vlgmr.msra.gmra.mxu1 %vm1497_vm6, %v1672_v9 }
 0x8d9   :  { %v17253_v20 = vpop.eup %17252  ;;  %16332 = vmatpush3.msk.msra.mxu1 %vm1987_vm7, %v15245_v18  ;;  %v3733_v18 = vld [vmem:[%s19776_s9 + $0x10] sm:$0xff] }
 0x8da   :  { %v1639_v10 = vsel %vm1497_vm6, %v17253_v20, 0.0  ;;  %16347 = vmatprep.subr.mxu1 %v3746_v53 }
 0x8db   :  { %1640 = vadd.xlane.f32.xlu0 %v1639_v10 }
 0x8f1   :  { %3426 = vrot.lane.b32.xlu0 %v17674_v27, %s19797_s27  ;;  %s19850_s27 = smov 56  }
 0x952   :  { %v16305_v5 = vpop.f32.mrf.mxu1 }
 0x953   :  { %v3109_v12 = vadd.f32 %v16305_v5, %v2869_v11  ;;  %v3638_v11 = vld [vmem:[%s19774_s7 + $0x8] sm:$0xff] }
 0x954   :  { %v3099_v13 = vpop.f32.mrf.mxu1 }
 0x955   :  { %v3108_v38 = vadd.f32 %v3099_v13, %v2868_v37 }
 0x963   :  { %v3258_v14 = vpop.f32.mrf.mxu1 }
 0x964   :  { %v1641_v16 = vpop.xlane.xlu0 %1640  ;;  %16319 = vmatmul.mubr.msk.f32.vlgmr.msra.gmra.mxu0 %vm251_vm5, %v3258_v14 }
 0x965   :  { %17254 = vrcp.f32 %v1641_v16  ;;  %v16315_v3 = vpop.f32.mrf.mxu1  ;;  %16328 = vmatprep.mubr.msk.f32.mxu0 %vm17508_vm4, %v17507_v6 }
 0x968   :  { %v3427_v17 = vpop.permute.xlu0 %3426 }
 0x969   :  { %16327 = vmatpush3.msra.mxu0 %v3427_v17  ;;  %v15250_v17 = vld [vmem:[%s19773_s6] ss:$0 sm:$0xff] }
 0x96a   :  { %16336 = vmatprep.subr.mxu0 %v3640_v49 }
 0x972   :  { %v17255_v21 = vpop.eup %17254 }
 0x973   :  { %v1673_v23 = vmul.f32 %v17255_v21, %v17253_v20 }
 0x975   :  { %16329 = vmatmul.mubr.msk.f32.vlgmr.msra.gmra.mxu0 %vm1497_vm6, %v1673_v23 }
 0x976   :  { %16337 = vmatpush3.msra.mxu0 %v3640_v49  ;;  %v15259_v49 = vld [vmem:[%s19770_s3 + $0x30] sm:$0xff] }
 0x977   :  { %16338 = vmatprep.subr.mxu0 %v3639_v50 }
 0x978   :  { %16339 = vmatpush3.msra.mxu0 %v3639_v50  ;;  %v15258_v50 = vld [vmem:[%s19770_s3 + $0x28] sm:$0xff] }
 0x979   :  { %16340 = vmatprep.subr.mxu0 %v3638_v11 }
 0x97a   :  { %16341 = vmatpush3.msra.mxu0 %v3638_v11  ;;  %v15257_v11 = vld [vmem:[%s19770_s3 + $0x20] sm:$0xff] }
 0x97b   :  { %16342 = vmatprep.subr.mxu0 %v3637_v52 }
 0x97c   :  { %16343 = vmatpush3.msra.mxu0 %v3637_v52 }
 0x998   :  { %v3422_v24 = vpop.f32.mrf.mxu1 }
 0x999   :  { %16333 = vmatprep.mubr.msk.f32.mxu1 %vm251_vm5, %v3422_v24 }
 0x99a   :  { %v16325_v27 = vpop.f32.mrf.mxu1 }
 0x99b   :  { %v3734_v27 = vld [vmem:[%s19776_s9 + $0x18] sm:$0xff] }
 0xa24   :  { %v16320_v29 = vpop.f32.mrf.mxu0 }
 0xa25   :  { %v3349_v30 = vadd.f32 %v16320_v29, %v3109_v12  ;;  %v15249_v12 = vld [vmem:[%s19772_s5] ss:$0 sm:$0xff]  ;;  %v3732_v29 = vld [vmem:[%s19776_s9 + $0x8] sm:$0xff] }
 0xa26   :  { %v3339_v31 = vpop.f32.mrf.mxu0 }
 0xa27   :  { %v3348_v40 = vadd.f32 %v3339_v31, %v3108_v38  ;;  %v15251_v31 = vld [vmem:[%s19775_s8] ss:$0 sm:$0xff] }
 0xa28   :  { %v15254_v38 = vld [vmem:[%s19777_s10] ss:$0 sm:$0xff] }
 0xa35   :  { %v3498_v32 = vpop.f32.mrf.mxu0 }
 0xa36   :  { %16334 = vmatmul.mubr.msk.f32.vlgmr.msra.gmra.mxu1 %vm251_vm5, %v3498_v32 }
 0xa37   :  { %v16330_v33 = vpop.f32.mrf.mxu0  ;;  %16348 = vmatpush3.msra.mxu1 %v3746_v53 }
 0xa38   :  { %16349 = vmatprep.subr.mxu1 %v3745_v22 }
 0xa39   :  { %16350 = vmatpush3.msra.mxu1 %v3745_v22 }
 0xa3a   :  { %16351 = vmatprep.subr.mxu1 %v3744_v54 }
 0xa3b   :  { %16352 = vmatpush3.msra.mxu1 %v3744_v54 }
 0xa3c   :  { %16353 = vmatprep.subr.mxu1 %v3743_v56 }
 0xa3d   :  { %16354 = vmatpush3.msra.mxu1 %v3743_v56 }
 0xa3e   :  { %16355 = vmatprep.subr.mxu1 %v3742_v57 }
 0xa3f   :  { %16356 = vmatpush3.msra.mxu1 %v3742_v57 }
 0xa40   :  { %16357 = vmatprep.subr.mxu1 %v3741_v58 }
 0xa41   :  { %16358 = vmatpush3.msra.mxu1 %v3741_v58 }
 0xa42   :  { %16359 = vmatprep.subr.mxu1 %v3740_v28 }
 0xa43   :  { %16360 = vmatpush3.msra.mxu1 %v3740_v28  ;;  %v15255_v28 = vld [vmem:[%s19778_s11] ss:$0 sm:$0xff] }
 0xa44   :  { %16361 = vmatprep.subr.mxu1 %v3739_v61 }
 0xa45   :  { %16362 = vmatpush3.msra.mxu1 %v3739_v61 }
 0xa46   :  { %16363 = vmatprep.subr.mxu1 %v3738_v62 }
 0xa47   :  { %16364 = vmatpush3.msra.mxu1 %v3738_v62 }
 0xa48   :  { %16365 = vmatprep.subr.mxu1 %v3737_v0 }
 0xa49   :  { %16366 = vmatpush3.msra.mxu1 %v3737_v0 }
 0xa4a   :  { %16367 = vmatprep.subr.mxu1 %v3736_v2 }
 0xa4b   :  { %16368 = vmatpush3.msra.mxu1 %v3736_v2 }
 0xa4c   :  { %16369 = vmatprep.subr.mxu1 %v3735_v4 }
 0xa4d   :  { %16370 = vmatpush3.msra.mxu1 %v3735_v4  ;;  %v15256_v4 = vld [vmem:[%s19779_s12] ss:$0 sm:$0xff] }
 0xa4e   :  { %16371 = vmatprep.subr.mxu1 %v3734_v27 }
 0xa4f   :  { %16372 = vmatpush3.msra.mxu1 %v3734_v27 }
 0xa50   :  { %16373 = vmatprep.subr.mxu1 %v3733_v18 }
 0xa51   :  { %16374 = vmatpush3.msra.mxu1 %v3733_v18 }
 0xa52   :  { %16375 = vmatprep.subr.mxu1 %v3732_v29 }
 0xa53   :  { %16376 = vmatpush3.msra.mxu1 %v3732_v29 }
 0xaf6   :  { %v16335_v39 = vpop.f32.mrf.mxu1 }
 0xaf7   :  { %v3589_v60 = vadd.f32 %v16335_v39, %v3349_v30  ;;  %v3731_v30 = vld [vmem:[%s19776_s9] sm:$0xff] }
 0xaf8   :  { %v3579_v41 = vpop.f32.mrf.mxu1  ;;  %16377 = vmatprep.subr.mxu1 %v3731_v30 }
 0xaf9   :  { %v3588_v1 = vadd.f32 %v3579_v41, %v3348_v40  ;;  %v3591_v42 = vadd.f32 %v3589_v60, %v17664_v26  ;;  %16378 = vmatpush3.msra.mxu1 %v3731_v30 }
 0xafa   :  { %16418 = vmatprep.subr.mxu1 %v17507_v6 }
 0xafb   :  { %v3597_v15 = vsel %vm164_vm3, %v3591_v42, 0.0  ;;  %v3590_v43 = vadd.f32 %v3588_v1, %v17662_v25 }
 0xafc   :  { %3598 = vadd.xlane.f32.xlu0 %v3597_v15 }
 0xafd   :  { %v3594_v19 = vsel %vm164_vm3, %v3590_v43, 0.0 }
 0xafe   :  { %3595 = vadd.xlane.f32.xlu1 %v3594_v19 }
 0xb85   :  { %v3599_v55 = vpop.xlane.xlu0 %3598 }
 0xb86   :  { %v3602_v51 = vmul.f32 0.03125, %v3599_v55 }
 0xb87   :  { %v3596_v59 = vpop.xlane.xlu1 %3595 }
 0xb88   :  { %v18087_v44 = vsub.f32 %v3591_v42, %v3602_v51  ;;  %v3601_v45 = vmul.f32 0.03125, %v3596_v59 }
 0xb8a   :  { %v18089_v46 = vsub.f32 %v3590_v43, %v3601_v45  ;;  %v3606_v47 = vmul.f32 %v18087_v44, %v18087_v44 }
 0xb8c   :  { %v3610_v26 = vsel %vm164_vm3, %v3606_v47, 0.0  ;;  %v3605_v25 = vmul.f32 %v18089_v46, %v18089_v46 }
 0xb8d   :  { %3611 = vadd.xlane.f32.xlu0 %v3610_v26 }
 0xb8e   :  { %v3607_v48 = vsel %vm164_vm3, %v3605_v25, 0.0 }
 0xb8f   :  { %3608 = vadd.xlane.f32.xlu1 %v3607_v48  ;;  %v15260_v48 = vld [vmem:[%s19770_s3 + $0x38] sm:$0xff] }
 0xb90   :  { %16382 = vmatprep.subr.mxu0 %v15260_v48 }
 0xc16   :  { %v3612_v7 = vpop.xlane.xlu0 %3611 }
 0xc17   :  { %v3614_v63 = vmul.f32 0.03125, %v3612_v7 }
 0xc18   :  { %v3609_v8 = vpop.xlane.xlu1 %3608 }
 0xc19   :  { %v3616_v9 = vadd.f32 1e-05, %v3614_v63  ;;  %v3613_v20 = vmul.f32 0.03125, %v3609_v8 }
 0xc1b   :  { %17256 = vrsqrt.f32 %v3616_v9  ;;  %v3615_v10 = vadd.f32 1e-05, %v3613_v20 }
 0xc1d   :  { %17258 = vrsqrt.f32 %v3615_v10 }
 0xc28   :  { %v17257_v5 = vpop.eup %17256 }
 0xc29   :  { %v3620_v13 = vmul.f32 %v17257_v5, %v18087_v44 }
 0xc2a   :  { %v17259_v14 = vpop.eup %17258 }
 0xc2b   :  { %v3619_v16 = vmul.f32 %v17259_v14, %v18089_v46  ;;  %v3628_v3 = vmul.f32 %v15249_v12, %v3620_v13 }
 0xc2d   :  { %v3627_v21 = vmul.f32 %v15249_v12, %v3619_v16  ;;  %v3636_v24 = vadd.f32 %v15250_v17, %v3628_v3 }
 0xc2f   :  { %v3635_v23 = vadd.f32 %v15250_v17, %v3627_v21 }
 0xc31   :  { %16344 = vmatprep.mubr.msk.f32.mxu0 %vm164_vm3, %v3635_v23 }
 0xc32   :  { %16345 = vmatmul.mubr.msk.f32.vlgmr.msra.gmra.mxu0 %vm164_vm3, %v3636_v24 }
 0xc33   :  { %16383 = vmatpush3.msra.mxu0 %v15260_v48 }
 0xc34   :  { %16384 = vmatprep.subr.mxu0 %v15259_v49 }
 0xc35   :  { %16385 = vmatpush3.msra.mxu0 %v15259_v49 }
 0xc36   :  { %16386 = vmatprep.subr.mxu0 %v15258_v50 }
 0xc37   :  { %16387 = vmatpush3.msra.mxu0 %v15258_v50 }
 0xc38   :  { %16388 = vmatprep.subr.mxu0 %v15257_v11 }
 0xc39   :  { %16389 = vmatpush3.msra.mxu0 %v15257_v11 }
 0xc3a   :  { %16393 = vmatprep.subr.mxu0 %v17507_v6 }
 0xcf2   :  { %v16346_v32 = vpop.f32.mrf.mxu0 }
 0xcf3   :  { %v3726_v33 = vadd.f32 %v16346_v32, %v15251_v31 }
 0xcf4   :  { %v3720_v34 = vpop.f32.mrf.mxu0 }
 0xcf5   :  { %v3721_v35 = vadd.f32 %v15251_v31, %v3720_v34  ;;  %v3730_v37 = vmax.f32 %v3726_v33, 0.0 }
 0xcf7   :  { %v3729_v36 = vmax.f32 %v3721_v35, 0.0 }
 0xcf9   :  { %16379 = vmatprep.mubr.f32.mxu1 %v3729_v36 }
 0xcfa   :  { %16380 = vmatmul.mubr.f32.vlgmr.msra.gmra.mxu1 %v3730_v37 }
 0xcfb   :  { %16420 = vmatprep.mubr.msk.f32.mxu1 %vm17508_vm4, %v17507_v6 }
 0xdba   :  { %v16381_v39 = vpop.f32.mrf.mxu1 }
 0xdbb   :  { %v3826_v40 = vadd.f32 %v16381_v39, %v15254_v38 }
 0xdbc   :  { %v3820_v60 = vpop.f32.mrf.mxu1 }
 0xdbd   :  { %v3821_v41 = vadd.f32 %v15254_v38, %v3820_v60  ;;  %v3830_v1 = vadd.f32 %v3826_v40, %v3636_v24 }
 0xdbf   :  { %v3836_v42 = vsel %vm164_vm3, %v3830_v1, 0.0  ;;  %v3829_v15 = vadd.f32 %v3821_v41, %v3635_v23 }
 0xdc0   :  { %3837 = vadd.xlane.f32.xlu0 %v3836_v42 }
 0xdc1   :  { %v3833_v43 = vsel %vm164_vm3, %v3829_v15, 0.0 }
 0xdc2   :  { %3834 = vadd.xlane.f32.xlu1 %v3833_v43 }
 0xe49   :  { %v3838_v19 = vpop.xlane.xlu0 %3837 }
 0xe4a   :  { %v3840_v55 = vmul.f32 0.03125, %v3838_v19 }
 0xe4b   :  { %v3835_v51 = vpop.xlane.xlu1 %3834 }
 0xe4c   :  { %v3842_v59 = vsub.f32 %v3830_v1, %v3840_v55  ;;  %v3839_v44 = vmul.f32 0.03125, %v3835_v51 }
 0xe4e   :  { %v3841_v45 = vsub.f32 %v3829_v15, %v3839_v44  ;;  %v3844_v46 = vmul.f32 %v3842_v59, %v3842_v59 }
 0xe50   :  { %v3848_v47 = vsel %vm164_vm3, %v3844_v46, 0.0  ;;  %v3843_v26 = vmul.f32 %v3841_v45, %v3841_v45 }
 0xe51   :  { %3849 = vadd.xlane.f32.xlu0 %v3848_v47 }
 0xe52   :  { %v3845_v25 = vsel %vm164_vm3, %v3843_v26, 0.0 }
 0xe53   :  { %3846 = vadd.xlane.f32.xlu1 %v3845_v25 }
 0xeda   :  { %v3850_v52 = vpop.xlane.xlu0 %3849 }
 0xedb   :  { %v3852_v53 = vmul.f32 0.03125, %v3850_v52 }
 0xedc   :  { %v3847_v22 = vpop.xlane.xlu1 %3846 }
 0xedd   :  { %v3854_v54 = vadd.f32 1e-05, %v3852_v53  ;;  %v3851_v56 = vmul.f32 0.03125, %v3847_v22 }
 0xedf   :  { %17260 = vrsqrt.f32 %v3854_v54  ;;  %v3853_v57 = vadd.f32 1e-05, %v3851_v56 }
 0xee1   :  { %17262 = vrsqrt.f32 %v3853_v57 }
 0xeec   :  { %v17261_v58 = vpop.eup %17260 }
 0xeed   :  { %v3858_v61 = vmul.f32 %v17261_v58, %v3842_v59 }
 0xeee   :  { %v17263_v62 = vpop.eup %17262 }
 0xeef   :  { %v3857_v0 = vmul.f32 %v17263_v62, %v3841_v45  ;;  %v3866_v2 = vmul.f32 %v15255_v28, %v3858_v61 }
 0xef1   :  { %v3865_v7 = vmul.f32 %v15255_v28, %v3857_v0  ;;  %v18201_v8 = vadd.f32 %v15256_v4, %v3866_v2 }
 0xef3   :  { %v18199_v63 = vadd.f32 %v15256_v4, %v3865_v7 }
 0xef5   :  { %16390 = vmatprep.mubr.msk.f32.mxu0 %vm164_vm3, %v18199_v63 }
 0xef6   :  { %16391 = vmatmul.mubr.msk.f32.vlgmr.msra.gmra.mxu0 %vm164_vm3, %v18201_v8 }
 0xef7   :  { %16395 = vmatprep.mubr.msk.f32.mxu0 %vm17508_vm4, %v17507_v6 }
 0xfb6   :  { %v18209_v9 = vpop.f32.mrf.mxu0 }
 0xfb7   :  { %4042 = vrot.lane.b32.xlu0 %v18209_v9, %s19827_s16  ;;  %v18231_v5 = vmul.f32 0.5, %v18209_v9 }
 0xfb8   :  { %v18213_v20 = vpop.f32.mrf.mxu0 }
 0xfb9   :  { %3964 = vrot.lane.b32.xlu1 %v18213_v20, %s19827_s16  ;;  %v18224_v10 = vmul.f32 0.5, %v18213_v20  ;;  %s19857_s16 = smov 92  }
 0xfbb   :  { %4199 = vrot.lane.b32.xlu0 %v18209_v9, %s19825_s2 }
 0xfbd   :  { %4121 = vrot.lane.b32.xlu1 %v18213_v20, %s19825_s2  ;;  %s19862_s2 = smov 116  }
 0xfbf   :  { %4277 = vrot.lane.b32.xlu0 %v18213_v20, %s19823_s17 }
 0xfc1   :  { %4119 = vrot.lane.b32.xlu1 %v18224_v10, %s19821_s0 }
 0xfc3   :  { %4275 = vrot.lane.b32.xlu0 %v18224_v10, %s19819_s18 }
 0xfc5   :  { %4197 = vrot.lane.b32.xlu1 %v18231_v5, %s19821_s0  ;;  %s19860_s0 = smov 120  }
 0xfc7   :  { %4433 = vrot.lane.b32.xlu0 %v18213_v20, %s19817_s19 }
 0xfc9   :  { %4355 = vrot.lane.b32.xlu1 %v18209_v9, %s19823_s17  ;;  %s19863_s17 = smov 80  }
 0xfcb   :  { %4431 = vrot.lane.b32.xlu0 %v18224_v10, %s19815_s20 }
 0xfcd   :  { %4353 = vrot.lane.b32.xlu1 %v18231_v5, %s19819_s18  ;;  %s19855_s18 = smov 36  }
 0xfd1   :  { %4511 = vrot.lane.b32.xlu1 %v18209_v9, %s19817_s19  ;;  %s19854_s19 = smov 40  }
 0xfd5   :  { %4509 = vrot.lane.b32.xlu1 %v18231_v5, %s19815_s20  ;;  %s19851_s20 = smov 52  }
0x1029   :  { %v4043_v12 = vpop.permute.xlu0 %4042 }
0x102b   :  { %v3965_v13 = vpop.permute.xlu1 %3964 }
0x102c   :  { %16394 = vmatpush3.xpose.msk.msra.mxu0 %vm251_vm5, %v3965_v13 }
0x102d   :  { %v4200_v14 = vpop.permute.xlu0 %4199  ;;  %16398 = vmatprep.subr.mxu0 %v17507_v6 }
0x102f   :  { %v4122_v16 = vpop.permute.xlu1 %4121  ;;  %16396 = vmatmul.mubr.msk.f32.vlgmr.msra.gmra.mxu0 %vm251_vm5, %v18224_v10 }
0x1030   :  { %16399 = vmatpush3.xpose.msk.msra.mxu0 %vm251_vm5, %v4043_v12  ;;  %16400 = vmatprep.mubr.msk.f32.mxu0 %vm17508_vm4, %v17507_v6 }
0x1031   :  { %v4278_v3 = vpop.permute.xlu0 %4277  ;;  %16403 = vmatprep.subr.mxu0 %v17507_v6 }
0x1033   :  { %v4120_v17 = vpop.permute.xlu1 %4119  ;;  %16401 = vmatmul.mubr.msk.f32.vlgmr.msra.gmra.mxu0 %vm251_vm5, %v18231_v5 }
0x1034   :  { %16404 = vmatpush3.xpose.msk.msra.mxu0 %vm251_vm5, %v4122_v16  ;;  %16405 = vmatprep.mubr.msk.f32.mxu0 %vm17508_vm4, %v17507_v6 }
0x1035   :  { %16408 = vmatprep.subr.mxu0 %v17507_v6  ;;  %v4276_v21 = vpop.permute.xlu0 %4275 }
0x1037   :  { %v4198_v23 = vpop.permute.xlu1 %4197  ;;  %16406 = vmatmul.mubr.msk.f32.vlgmr.msra.gmra.mxu0 %vm251_vm5, %v4120_v17 }
0x1038   :  { %16409 = vmatpush3.xpose.msk.msra.mxu0 %vm251_vm5, %v4200_v14  ;;  %16410 = vmatprep.mubr.msk.f32.mxu0 %vm17508_vm4, %v17507_v6 }
0x1039   :  { %16413 = vmatprep.subr.mxu0 %v17507_v6  ;;  %v4434_v27 = vpop.permute.xlu0 %4433 }
0x103b   :  { %v4356_v24 = vpop.permute.xlu1 %4355  ;;  %16411 = vmatmul.mubr.msk.f32.vlgmr.msra.gmra.mxu0 %vm251_vm5, %v4198_v23 }
0x103c   :  { %16414 = vmatpush3.xpose.msk.msra.mxu0 %vm251_vm5, %v4278_v3  ;;  %16419 = vmatpush3.xpose.msk.msra.mxu1 %vm251_vm5, %v4356_v24 }
0x103d   :  { %16415 = vmatprep.mubr.msk.f32.mxu0 %vm17508_vm4, %v17507_v6  ;;  %16423 = vmatprep.subr.mxu0 %v17507_v6  ;;  %v4432_v29 = vpop.permute.xlu0 %4431 }
0x103e   :  { %16428 = vmatprep.subr.mxu1 %v17507_v6 }
0x103f   :  { %v4354_v18 = vpop.permute.xlu1 %4353  ;;  %16416 = vmatmul.mubr.msk.f32.vlgmr.msra.gmra.mxu0 %vm251_vm5, %v4276_v21 }
0x1040   :  { %16421 = vmatmul.mubr.msk.f32.vlgmr.msra.gmra.mxu1 %vm251_vm5, %v4354_v18  ;;  %16424 = vmatpush3.xpose.msk.msra.mxu0 %vm251_vm5, %v4434_v27 }
0x1041   :  { %16425 = vmatprep.mubr.msk.f32.mxu0 %vm17508_vm4, %v17507_v6  ;;  %16430 = vmatprep.mubr.msk.f32.mxu1 %vm17508_vm4, %v17507_v6 }
0x1042   :  { %16433 = vmatprep.subr.mxu0 %v17507_v6 }
0x1043   :  { %v4512_v30 = vpop.permute.xlu1 %4511  ;;  %16426 = vmatmul.mubr.msk.f32.vlgmr.msra.gmra.mxu0 %vm251_vm5, %v4432_v29 }
0x1044   :  { %16429 = vmatpush3.xpose.msk.msra.mxu1 %vm251_vm5, %v4512_v30  ;;  %16435 = vmatprep.mubr.msk.f32.mxu0 %vm17508_vm4, %v17507_v6 }
0x1045   :  { %16438 = vmatprep.subr.mxu1 %v17507_v6 }
0x1047   :  { %v4510_v31 = vpop.permute.xlu1 %4509 }
0x1048   :  { %16431 = vmatmul.mubr.msk.f32.vlgmr.msra.gmra.mxu1 %vm251_vm5, %v4510_v31 }
0x1049   :  { %16440 = vmatprep.mubr.msk.f32.mxu1 %vm17508_vm4, %v17507_v6 }
0x10ef   :  { %v4037_v32 = vpop.f32.mrf.mxu0 }
0x10f0   :  { %v5211_v33 = vsel %vm1497_vm6, %v4037_v32, -inf }
0x10f1   :  { %5212 = vmax.xlane.f32.xlu0 %v5211_v33  ;;  %v16397_v34 = vpop.f32.mrf.mxu0 }
0x10f3   :  { %v4115_v35 = vpop.f32.mrf.mxu0 }
0x10f4   :  { %v5214_v36 = vsel %vm1497_vm6, %v4115_v35, -inf }
0x10f5   :  { %5215 = vmax.xlane.f32.xlu1 %v5214_v36  ;;  %v16402_v37 = vpop.f32.mrf.mxu0 }
0x10f7   :  { %v4193_v38 = vpop.f32.mrf.mxu0 }
0x10f8   :  { %v5217_v39 = vsel %vm1497_vm6, %v4193_v38, -inf }
0x10f9   :  { %5218 = vmax.xlane.f32.xlu0 %v5217_v39  ;;  %v16407_v40 = vpop.f32.mrf.mxu0 }
0x10fb   :  { %v4271_v60 = vpop.f32.mrf.mxu0 }
0x10fc   :  { %v5220_v41 = vsel %vm1497_vm6, %v4271_v60, -inf }
0x10fd   :  { %5221 = vmax.xlane.f32.xlu0 %v5220_v41  ;;  %v16412_v1 = vpop.f32.mrf.mxu0 }
0x10ff   :  { %v18293_v42 = vpop.f32.mrf.mxu0 }
0x1100   :  { %v18295_v15 = vpop.f32.mrf.mxu1  ;;  %v5223_v31 = vsel %vm1497_vm6, %v18293_v42, -inf }
0x1101   :  { %v16417_v43 = vpop.f32.mrf.mxu0 }
0x1102   :  { %v16422_v19 = vpop.f32.mrf.mxu1 }
0x1103   :  { %v18297_v55 = vpop.f32.mrf.mxu0 }
0x1104   :  { %v5229_v33 = vsel %vm1497_vm6, %v18297_v55, -inf }
0x1105   :  { %v16427_v51 = vpop.f32.mrf.mxu0 }
0x1106   :  { %4667 = vrot.lane.b32.xlu1 %v18209_v9, %s19813_s21 }
0x1108   :  { %v18301_v59 = vpop.f32.mrf.mxu1 }
0x110a   :  { %v16432_v44 = vpop.f32.mrf.mxu1  ;;  %4665 = vrot.lane.b32.xlu1 %v18231_v5, %s19811_s22 }
0x110e   :  { %4823 = vrot.lane.b32.xlu1 %v18209_v9, %s19809_s23 }
0x1112   :  { %4821 = vrot.lane.b32.xlu1 %v18231_v5, %s19843_s25 }
0x1113   :  { %4589 = vrot.lane.b32.xlu0 %v18213_v20, %s19813_s21  ;;  %s19853_s21 = smov 44  }
0x1116   :  { %4979 = vrot.lane.b32.xlu1 %v18209_v9, %s19844_s30 }
0x1117   :  { %4587 = vrot.lane.b32.xlu0 %v18224_v10, %s19811_s22  ;;  %s19861_s22 = smov 84  }
0x111a   :  { %4977 = vrot.lane.b32.xlu1 %v18231_v5, %s19845_s1 }
0x111b   :  { %4745 = vrot.lane.b32.xlu0 %v18213_v20, %s19809_s23  ;;  %s19852_s23 = smov 48  }
0x111e   :  { %5135 = vrot.lane.b32.xlu1 %v18209_v9, %s19846_s24 }
0x111f   :  { %4743 = vrot.lane.b32.xlu0 %v18224_v10, %s19843_s25 }
0x1122   :  { %5133 = vrot.lane.b32.xlu1 %v18231_v5, %s19847_s29 }
0x1123   :  { %4901 = vrot.lane.b32.xlu0 %v18213_v20, %s19844_s30 }
0x1126   :  { %5463 = vrot.lane.b32.xlu1 %v18209_v9, %s19848_s28 }
0x1127   :  { %4899 = vrot.lane.b32.xlu0 %v18224_v10, %s19845_s1 }
0x112b   :  { %5057 = vrot.lane.b32.xlu0 %v18213_v20, %s19846_s24 }
0x112f   :  { %5055 = vrot.lane.b32.xlu0 %v18224_v10, %s19847_s29 }
0x1133   :  { %5387 = vrot.lane.b32.xlu0 %v18213_v20, %s19848_s28 }
0x117a   :  { %v5213_v45 = vpop.xlane.xlu0 %5212 }
0x117b   :  { %v5259_v46 = vsub.f32 %v4037_v32, %v5213_v45  ;;  %v5226_v32 = vsel %vm1497_vm6, %v18295_v15, -inf }
0x117d   :  { %v5275_v47 = vmul.f32 1.442695, %v5259_v46 }
0x117e   :  { %v5216_v26 = vpop.xlane.xlu1 %5215 }
0x117f   :  { %17264 = vpow2.f32 %v5275_v47  ;;  %v5260_v25 = vsub.f32 %v4115_v35, %v5216_v26 }
0x1181   :  { %v5277_v48 = vmul.f32 1.442695, %v5260_v25 }
0x1182   :  { %v4668_v49 = vpop.permute.xlu1 %4667  ;;  %v5219_v50 = vpop.xlane.xlu0 %5218 }
0x1183   :  { %17266 = vpow2.f32 %v5277_v48  ;;  %v5261_v11 = vsub.f32 %v4193_v38, %v5219_v50  ;;  %16439 = vmatpush3.xpose.msk.msra.mxu1 %vm251_vm5, %v4668_v49 }
0x1184   :  { %16448 = vmatprep.subr.mxu1 %v17507_v6 }
0x1185   :  { %v5279_v52 = vmul.f32 1.442695, %v5261_v11 }
0x1186   :  { %v4666_v53 = vpop.permute.xlu1 %4665  ;;  %v5222_v22 = vpop.xlane.xlu0 %5221 }
0x1187   :  { %17268 = vpow2.f32 %v5279_v52  ;;  %v5262_v54 = vsub.f32 %v4271_v60, %v5222_v22  ;;  %16441 = vmatmul.mubr.msk.f32.vlgmr.msra.gmra.mxu1 %vm251_vm5, %v4666_v53 }
0x1188   :  { %16450 = vmatprep.mubr.msk.f32.mxu1 %vm17508_vm4, %v17507_v6 }
0x1189   :  { %v5281_v56 = vmul.f32 1.442695, %v5262_v54 }
0x118a   :  { %v4824_v57 = vpop.permute.xlu1 %4823  ;;  %v4590_v58 = vpop.permute.xlu0 %4589 }
0x118b   :  { %17270 = vpow2.f32 %v5281_v56  ;;  %16434 = vmatpush3.xpose.msk.msra.mxu0 %vm251_vm5, %v4590_v58  ;;  %16449 = vmatpush3.xpose.msk.msra.mxu1 %vm251_vm5, %v4824_v57 }
0x118c   :  { %v18344_v28 = vpop.eup %17264  ;;  %16458 = vmatprep.subr.mxu1 %v17507_v6  ;;  %16443 = vmatprep.subr.mxu0 %v17507_v6 }
0x118d   :  { %v5307_v61 = vsel %vm1497_vm6, %v18344_v28, 0.0 }
0x118e   :  { %5308 = vadd.xlane.f32.xlu1 %v5307_v61  ;;  %v4822_v62 = vpop.permute.xlu1 %4821  ;;  %v4588_v0 = vpop.permute.xlu0 %4587 }
0x118f   :  { %16436 = vmatmul.mubr.msk.f32.vlgmr.msra.gmra.mxu0 %vm251_vm5, %v4588_v0  ;;  %16451 = vmatmul.mubr.msk.f32.vlgmr.msra.gmra.mxu1 %vm251_vm5, %v4822_v62 }
0x1190   :  { %v18352_v2 = vpop.eup %17266  ;;  %16460 = vmatprep.mubr.msk.f32.mxu1 %vm17508_vm4, %v17507_v6  ;;  %16445 = vmatprep.mubr.msk.f32.mxu0 %vm17508_vm4, %v17507_v6 }
0x1191   :  { %v5310_v4 = vsel %vm1497_vm6, %v18352_v2, 0.0 }
0x1192   :  { %v4980_v7 = vpop.permute.xlu1 %4979  ;;  %5311 = vadd.xlane.f32.xlu0 %v5310_v4  ;;  %v4746_v10 = vpop.permute.xlu0 %4745 }
0x1193   :  { %16444 = vmatpush3.xpose.msk.msra.mxu0 %vm251_vm5, %v4746_v10  ;;  %16459 = vmatpush3.xpose.msk.msra.mxu1 %vm251_vm5, %v4980_v7 }
0x1194   :  { %v18362_v5 = vpop.eup %17268  ;;  %16468 = vmatprep.subr.mxu1 %v17507_v6  ;;  %16453 = vmatprep.subr.mxu0 %v17507_v6 }
0x1195   :  { %v5313_v12 = vsel %vm1497_vm6, %v18362_v5, 0.0 }
0x1196   :  { %v4978_v13 = vpop.permute.xlu1 %4977  ;;  %5314 = vadd.xlane.f32.xlu1 %v5313_v12  ;;  %v4744_v14 = vpop.permute.xlu0 %4743  ;;  %v15300_v12 = vld [vmem:[%s19771_s4 + $0x24] sm:$0xf] }
0x1197   :  { %16446 = vmatmul.mubr.msk.f32.vlgmr.msra.gmra.mxu0 %vm251_vm5, %v4744_v14  ;;  %16461 = vmatmul.mubr.msk.f32.vlgmr.msra.gmra.mxu1 %vm251_vm5, %v4978_v13 }
0x1198   :  { %v17271_v16 = vpop.eup %17270  ;;  %16470 = vmatprep.mubr.msk.f32.mxu1 %vm17508_vm4, %v17507_v6  ;;  %16455 = vmatprep.mubr.msk.f32.mxu0 %vm17508_vm4, %v17507_v6 }
0x1199   :  { %v5316_v3 = vsel %vm1497_vm6, %v17271_v16, 0.0 }
0x119a   :  { %v5136_v17 = vpop.permute.xlu1 %5135  ;;  %5317 = vadd.xlane.f32.xlu1 %v5316_v3  ;;  %v4902_v21 = vpop.permute.xlu0 %4901 }
0x119b   :  { %16454 = vmatpush3.xpose.msk.msra.mxu0 %vm251_vm5, %v4902_v21  ;;  %16469 = vmatpush3.xpose.msk.msra.mxu1 %vm251_vm5, %v5136_v17 }
0x119c   :  { %16478 = vmatprep.subr.mxu1 %v17507_v6  ;;  %16463 = vmatprep.subr.mxu0 %v17507_v6 }
0x119e   :  { %v5134_v23 = vpop.permute.xlu1 %5133  ;;  %v4900_v24 = vpop.permute.xlu0 %4899 }
0x119f   :  { %16456 = vmatmul.mubr.msk.f32.vlgmr.msra.gmra.mxu0 %vm251_vm5, %v4900_v24  ;;  %16471 = vmatmul.mubr.msk.f32.vlgmr.msra.gmra.mxu1 %vm251_vm5, %v5134_v23  ;;  %v5232_v23 = vsel %vm1497_vm6, %v18301_v59, -inf }
0x11a0   :  { %16465 = vmatprep.mubr.msk.f32.mxu0 %vm17508_vm4, %v17507_v6  ;;  %16480 = vmatprep.mubr.msk.f32.mxu1 %vm17508_vm4, %v17507_v6 }
0x11a2   :  { %v5464_v27 = vpop.permute.xlu1 %5463  ;;  %v5058_v18 = vpop.permute.xlu0 %5057 }
0x11a3   :  { %16464 = vmatpush3.xpose.msk.msra.mxu0 %vm251_vm5, %v5058_v18  ;;  %16479 = vmatpush3.msra.mxu1 %v5464_v27 }
0x11a4   :  { %16473 = vmatprep.subr.mxu0 %v17507_v6  ;;  %16488 = vmatprep.subr.mxu1 %v17507_v6 }
0x11a6   :  { %v5056_v29 = vpop.permute.xlu0 %5055 }
0x11a7   :  { %16466 = vmatmul.mubr.msk.f32.vlgmr.msra.gmra.mxu0 %vm251_vm5, %v5056_v29 }
0x11a8   :  { %5541 = vrot.lane.b32.xlu0 %v18213_v20, %s19849_s26  ;;  %16475 = vmatprep.mubr.msk.f32.mxu0 %vm17508_vm4, %v17507_v6 }
0x11aa   :  { %v5388_v30 = vpop.permute.xlu0 %5387 }
0x11ab   :  { %5617 = vrot.lane.b32.xlu1 %v18209_v9, %s19849_s26  ;;  %16474 = vmatpush3.msra.mxu0 %v5388_v30 }
0x11ac   :  { %16483 = vmatprep.subr.mxu0 %v17507_v6 }
0x11c7   :  { %5224 = vmax.xlane.f32.xlu0 %v5223_v31 }
0x11cf   :  { %5227 = vmax.xlane.f32.xlu1 %v5226_v32 }
0x11e0   :  { %5863 = vrot.lane.b32.xlu1 %v18213_v20, %s19850_s27 }
0x1204   :  { %5230 = vmax.xlane.f32.xlu1 %v5229_v33 }
0x1217   :  { %v5309_v34 = vpop.xlane.xlu1 %5308 }
0x1218   :  { %17272 = vrcp.f32 %v5309_v34 }
0x121b   :  { %v5312_v35 = vpop.xlane.xlu0 %5311 }
0x121c   :  { %17274 = vrcp.f32 %v5312_v35 }
0x121f   :  { %v5315_v36 = vpop.xlane.xlu1 %5314  ;;  %v5542_v40 = vpop.permute.xlu0 %5541 }
0x1220   :  { %17276 = vrcp.f32 %v5315_v36 }
0x1223   :  { %v5318_v37 = vpop.xlane.xlu1 %5317 }
0x1224   :  { %17278 = vrcp.f32 %v5318_v37 }
0x1225   :  { %v17273_v38 = vpop.eup %17272 }
0x1226   :  { %v5371_v39 = vmul.f32 %v17273_v38, %v18344_v28 }
0x1227   :  { %v5618_v1 = vpop.permute.xlu1 %5617 }
0x1228   :  { %16476 = vmatmul.mubr.msk.f32.vlgmr.msra.gmra.mxu0 %vm1497_vm6, %v5371_v39 }
0x1229   :  { %v17275_v60 = vpop.eup %17274  ;;  %16484 = vmatpush3.msra.mxu0 %v5542_v40  ;;  %16485 = vmatprep.mubr.msk.f32.mxu0 %vm17508_vm4, %v17507_v6 }
0x122a   :  { %v5372_v41 = vmul.f32 %v17275_v60, %v18352_v2  ;;  %16493 = vmatprep.subr.msk.mxu0 %vm1987_vm7, %v15300_v12 }
0x122c   :  { %16481 = vmatmul.mubr.msk.f32.vlgmr.msra.gmra.mxu1 %vm1497_vm6, %v5372_v41 }
0x122d   :  { %v17277_v43 = vpop.eup %17276  ;;  %16489 = vmatpush3.msra.mxu1 %v5618_v1  ;;  %16490 = vmatprep.mubr.msk.f32.mxu1 %vm17508_vm4, %v17507_v6 }
0x122e   :  { %v5373_v19 = vmul.f32 %v17277_v43, %v18362_v5 }
0x1230   :  { %16486 = vmatmul.mubr.msk.f32.vlgmr.msra.gmra.mxu0 %vm1497_vm6, %v5373_v19 }
0x1231   :  { %v17279_v51 = vpop.eup %17278  ;;  %16494 = vmatpush3.msk.msra.mxu0 %vm1987_vm7, %v15300_v12 }
0x1232   :  { %v5374_v44 = vmul.f32 %v17279_v51, %v17271_v16  ;;  %16503 = vmatprep.subr.mxu0 %v17507_v6 }
0x1234   :  { %16491 = vmatmul.mubr.msk.f32.vlgmr.msra.gmra.mxu1 %vm1497_vm6, %v5374_v44 }
0x1247   :  { %v18415_v45 = vpop.f32.mrf.mxu1 }
0x1249   :  { %v16442_v46 = vpop.f32.mrf.mxu1 }
0x124f   :  { %v18417_v47 = vpop.f32.mrf.mxu0  ;;  %v18419_v26 = vpop.f32.mrf.mxu1 }
0x1250   :  { %v5225_v49 = vpop.xlane.xlu0 %5224  ;;  %v5235_v24 = vsel %vm1497_vm6, %v18417_v47, -inf }
0x1251   :  { %v16437_v25 = vpop.f32.mrf.mxu0  ;;  %v16452_v48 = vpop.f32.mrf.mxu1  ;;  %v5263_v50 = vsub.f32 %v18293_v42, %v5225_v49 }
0x1252   :  { %v15309_v48 = vld [vmem:[%s19771_s4 + $0x28] sm:$0xf] }
0x1253   :  { %v5283_v57 = vmul.f32 1.442695, %v5263_v50 }
0x1257   :  { %v18422_v11 = vpop.f32.mrf.mxu0  ;;  %v18424_v52 = vpop.f32.mrf.mxu1 }
0x1258   :  { %v5228_v53 = vpop.xlane.xlu1 %5227 }
0x1259   :  { %v5264_v22 = vsub.f32 %v18295_v15, %v5228_v53  ;;  %v16447_v54 = vpop.f32.mrf.mxu0  ;;  %v16462_v56 = vpop.f32.mrf.mxu1  ;;  %v15297_v15 = vld [vmem:[%s19771_s4 + $0x20] sm:$0xf] }
0x125a   :  { %16498 = vmatprep.subr.msk.mxu1 %vm1987_vm7, %v15297_v15  ;;  %v5238_v54 = vsel %vm1497_vm6, %v18415_v45, -inf  ;;  %v5241_v56 = vsel %vm1497_vm6, %v18422_v11, -inf }
0x125b   :  { %v5285_v58 = vmul.f32 1.442695, %v5264_v22  ;;  %16499 = vmatpush3.msk.msra.mxu1 %vm1987_vm7, %v15297_v15 }
0x125c   :  { %16508 = vmatprep.subr.mxu1 %v17507_v6  ;;  %v5864_v13 = vpop.permute.xlu1 %5863 }
0x125d   :  { %17280 = vpow2.f32 %v5285_v58 }
0x125e   :  { %17282 = vpow2.f32 %v5283_v57 }
0x125f   :  { %v18427_v28 = vpop.f32.mrf.mxu0  ;;  %v18429_v61 = vpop.f32.mrf.mxu1 }
0x1261   :  { %v16457_v62 = vpop.f32.mrf.mxu0  ;;  %v16472_v0 = vpop.f32.mrf.mxu1 }
0x1267   :  { %v18431_v42 = vpop.f32.mrf.mxu0 }
0x1269   :  { %v16467_v2 = vpop.f32.mrf.mxu0 }
0x126a   :  { %v17281_v4 = vpop.eup %17280 }
0x126b   :  { %v5322_v7 = vsel %vm1497_vm6, %v17281_v4, 0.0  ;;  %v17283_v10 = vpop.eup %17282 }
0x126c   :  { %5323 = vadd.xlane.f32.xlu0 %v5322_v7  ;;  %v5319_v5 = vsel %vm1497_vm6, %v17283_v10, 0.0 }
0x1270   :  { %5320 = vadd.xlane.f32.xlu0 %v5319_v5 }
0x1286   :  { %5939 = vrot.lane.b32.xlu0 %v18209_v9, %s19850_s27 }
0x128d   :  { %v5231_v14 = vpop.xlane.xlu1 %5230 }
0x128e   :  { %v5265_v16 = vsub.f32 %v18297_v55, %v5231_v14 }
0x1290   :  { %v5287_v3 = vmul.f32 1.442695, %v5265_v16 }
0x1292   :  { %17284 = vpow2.f32 %v5287_v3 }
0x129f   :  { %v17285_v17 = vpop.eup %17284 }
0x12a0   :  { %v5325_v21 = vsel %vm1497_vm6, %v17285_v17, 0.0 }
0x12a1   :  { %5326 = vadd.xlane.f32.xlu1 %v5325_v21 }
0x12a5   :  { %5233 = vmax.xlane.f32.xlu0 %v5232_v23 }
0x12b2   :  { %6103 = vrot.lane.b32.xlu1 %v18213_v20, %s19851_s20 }
0x12d6   :  { %5236 = vmax.xlane.f32.xlu1 %v5235_v24 }
0x12e8   :  { %v5459_v27 = vpop.f32.mrf.mxu0 }
0x12e9   :  { %16500 = vmatprep.mubr.msk.f32.mxu1 %vm251_vm5, %v5459_v27 }
0x12ea   :  { %v16477_v55 = vpop.f32.mrf.mxu0 }
0x12ec   :  { %v5535_v18 = vpop.f32.mrf.mxu1 }
0x12ed   :  { %16501 = vmatmul.mubr.msk.f32.vlgmr.msra.gmra.mxu1 %vm251_vm5, %v5535_v18  ;;  %v15315_v18 = vld [vmem:[%s19771_s4 + $0x2c] sm:$0xf] }
0x12ee   :  { %v16482_v29 = vpop.f32.mrf.mxu1  ;;  %16510 = vmatprep.mubr.msk.f32.mxu1 %vm17508_vm4, %v17507_v6 }
0x12f0   :  { %v5613_v30 = vpop.f32.mrf.mxu0 }
0x12f1   :  { %16495 = vmatprep.mubr.msk.f32.mxu0 %vm251_vm5, %v5613_v30 }
0x12f2   :  { %v16487_v31 = vpop.f32.mrf.mxu0 }
0x12f4   :  { %v5689_v32 = vpop.f32.mrf.mxu1 }
0x12f5   :  { %v5324_v33 = vpop.xlane.xlu0 %5323  ;;  %16496 = vmatmul.mubr.msk.f32.vlgmr.msra.gmra.mxu0 %vm251_vm5, %v5689_v32 }
0x12f6   :  { %17286 = vrcp.f32 %v5324_v33  ;;  %16504 = vmatpush3.msra.mxu0 %v5864_v13  ;;  %v16492_v34 = vpop.f32.mrf.mxu1  ;;  %16505 = vmatprep.mubr.msk.f32.mxu0 %vm17508_vm4, %v17507_v6 }
0x12f7   :  { %16513 = vmatprep.subr.msk.mxu0 %vm1987_vm7, %v15309_v48 }
0x12f9   :  { %v5321_v35 = vpop.xlane.xlu0 %5320 }
0x12fa   :  { %17288 = vrcp.f32 %v5321_v35  ;;  %v5244_v35 = vsel %vm1497_vm6, %v18419_v26, -inf }
0x12fd   :  { %v5940_v36 = vpop.permute.xlu0 %5939 }
0x12fe   :  { %16509 = vmatpush3.msra.mxu1 %v5940_v36  ;;  %v5247_v36 = vsel %vm1497_vm6, %v18427_v28, -inf }
0x12ff   :  { %16518 = vmatprep.subr.mxu1 %v17507_v6 }
0x1303   :  { %v17287_v37 = vpop.eup %17286 }
0x1304   :  { %v5376_v38 = vmul.f32 %v17287_v37, %v17281_v4 }
0x1306   :  { %16511 = vmatmul.mubr.msk.f32.vlgmr.msra.gmra.mxu1 %vm1497_vm6, %v5376_v38 }
0x1307   :  { %v17289_v39 = vpop.eup %17288  ;;  %16520 = vmatprep.mubr.msk.f32.mxu1 %vm17508_vm4, %v17507_v6 }
0x1308   :  { %v5375_v40 = vmul.f32 %v17289_v39, %v17283_v10 }
0x130a   :  { %16506 = vmatmul.mubr.msk.f32.vlgmr.msra.gmra.mxu0 %vm1497_vm6, %v5375_v40 }
0x130b   :  { %16514 = vmatpush3.msk.msra.mxu0 %vm1987_vm7, %v15309_v48 }
0x130c   :  { %16523 = vmatprep.subr.mxu0 %v17507_v6 }
0x132a   :  { %v5327_v60 = vpop.xlane.xlu1 %5326 }
0x132b   :  { %17290 = vrcp.f32 %v5327_v60 }
0x132e   :  { %v5234_v41 = vpop.xlane.xlu0 %5233  ;;  %v6104_v1 = vpop.permute.xlu1 %6103 }
0x132f   :  { %v5266_v43 = vsub.f32 %v18301_v59, %v5234_v41  ;;  %16519 = vmatpush3.msra.mxu1 %v6104_v1 }
0x1330   :  { %16528 = vmatprep.subr.msk.mxu1 %vm1987_vm7, %v15315_v18 }
0x1331   :  { %v5289_v19 = vmul.f32 1.442695, %v5266_v43 }
0x1333   :  { %17292 = vpow2.f32 %v5289_v19 }
0x1338   :  { %v17291_v51 = vpop.eup %17290 }
0x1339   :  { %v5377_v44 = vmul.f32 %v17291_v51, %v17285_v17 }
0x133b   :  { %16521 = vmatmul.mubr.msk.f32.vlgmr.msra.gmra.mxu1 %vm1497_vm6, %v5377_v44 }
0x133c   :  { %16529 = vmatpush3.msk.msra.mxu1 %vm1987_vm7, %v15315_v18 }
0x133d   :  { %16538 = vmatprep.subr.mxu1 %v17507_v6 }
0x1340   :  { %v17293_v46 = vpop.eup %17292 }
0x1341   :  { %v5328_v25 = vsel %vm1497_vm6, %v17293_v46, 0.0 }
0x1342   :  { %5329 = vadd.xlane.f32.xlu0 %v5328_v25 }
0x1358   :  { %6179 = vrot.lane.b32.xlu0 %v18209_v9, %s19851_s20 }
0x135f   :  { %v5237_v59 = vpop.xlane.xlu1 %5236 }
0x1360   :  { %v5267_v49 = vsub.f32 %v18417_v47, %v5237_v59 }
0x1362   :  { %v5291_v50 = vmul.f32 1.442695, %v5267_v49 }
0x1364   :  { %17294 = vpow2.f32 %v5291_v50 }
0x1371   :  { %v17295_v53 = vpop.eup %17294 }
0x1372   :  { %v5331_v22 = vsel %vm1497_vm6, %v17295_v53, 0.0 }
0x1373   :  { %5332 = vadd.xlane.f32.xlu1 %v5331_v22 }
0x1377   :  { %5239 = vmax.xlane.f32.xlu0 %v5238_v54 }
0x1384   :  { %6343 = vrot.lane.b32.xlu1 %v18213_v20, %s19852_s23 }
0x13a8   :  { %5242 = vmax.xlane.f32.xlu1 %v5241_v56 }
0x13ad   :  { %v16502_v57 = vpop.f32.mrf.mxu1 }
0x13af   :  { %v18489_v62 = vpop.f32.mrf.mxu1 }
0x13b5   :  { %v16497_v58 = vpop.f32.mrf.mxu0 }
0x13b6   :  { %v5860_v47 = vadd.f32 %v16502_v57, %v16497_v58 }
0x13b7   :  { %v18491_v2 = vpop.f32.mrf.mxu0 }
0x13c6   :  { %v6011_v0 = vpop.f32.mrf.mxu1 }
0x13c8   :  { %v16512_v4 = vpop.f32.mrf.mxu1 }
0x13c9   :  { %v5253_v4 = vsel %vm1497_vm6, %v18431_v42, -inf }
0x13ca   :  { %v5935_v15 = vpop.f32.mrf.mxu0 }
0x13cb   :  { %v5330_v7 = vpop.xlane.xlu0 %5329  ;;  %16515 = vmatprep.mubr.msk.f32.mxu0 %vm251_vm5, %v5935_v15 }
0x13cc   :  { %17296 = vrcp.f32 %v5330_v7  ;;  %v16507_v10 = vpop.f32.mrf.mxu0  ;;  %16516 = vmatmul.mubr.msk.f32.vlgmr.msra.gmra.mxu0 %vm251_vm5, %v6011_v0  ;;  %v5250_v0 = vsel %vm1497_vm6, %v18424_v52, -inf }
0x13cd   :  { %16525 = vmatprep.mubr.msk.f32.mxu0 %vm17508_vm4, %v17507_v6 }
0x13cf   :  { %v6180_v5 = vpop.permute.xlu0 %6179 }
0x13d0   :  { %16524 = vmatpush3.msra.mxu0 %v6180_v5 }
0x13d1   :  { %16533 = vmatprep.subr.mxu0 %v17507_v6 }
0x13d9   :  { %v17297_v12 = vpop.eup %17296 }
0x13da   :  { %v5378_v13 = vmul.f32 %v17297_v12, %v17293_v46 }
0x13dc   :  { %16526 = vmatmul.mubr.msk.f32.vlgmr.msra.gmra.mxu0 %vm1497_vm6, %v5378_v13 }
0x13dd   :  { %16535 = vmatprep.mubr.msk.f32.mxu0 %vm17508_vm4, %v17507_v6 }
0x13fb   :  { %v6175_v14 = vpop.f32.mrf.mxu1 }
0x13fc   :  { %v5333_v16 = vpop.xlane.xlu1 %5332  ;;  %16530 = vmatprep.mubr.msk.f32.mxu1 %vm251_vm5, %v6175_v14 }
0x13fd   :  { %17298 = vrcp.f32 %v5333_v16  ;;  %v16522_v3 = vpop.f32.mrf.mxu1 }
0x1400   :  { %v5240_v17 = vpop.xlane.xlu0 %5239  ;;  %v6344_v21 = vpop.permute.xlu1 %6343 }
0x1401   :  { %v5268_v23 = vsub.f32 %v18415_v45, %v5240_v17  ;;  %16534 = vmatpush3.msra.mxu0 %v6344_v21 }
0x1403   :  { %v5293_v24 = vmul.f32 1.442695, %v5268_v23 }
0x1405   :  { %17300 = vpow2.f32 %v5293_v24 }
0x140a   :  { %v17299_v27 = vpop.eup %17298 }
0x140b   :  { %v5379_v55 = vmul.f32 %v17299_v27, %v17295_v53  ;;  %v15321_v53 = vld [vmem:[%s19771_s4 + $0x30] sm:$0xf] }
0x140c   :  { %16543 = vmatprep.subr.msk.mxu0 %vm1987_vm7, %v15321_v53 }
0x140d   :  { %16536 = vmatmul.mubr.msk.f32.vlgmr.msra.gmra.mxu0 %vm1497_vm6, %v5379_v55 }
0x140e   :  { %16544 = vmatpush3.msk.msra.mxu0 %vm1987_vm7, %v15321_v53  ;;  %v15333_v53 = vld [vmem:[%s19771_s4 + $0x38] sm:$0xf] }
0x140f   :  { %16553 = vmatprep.subr.mxu0 %v17507_v6 }
0x1412   :  { %v17301_v29 = vpop.eup %17300 }
0x1413   :  { %v5334_v45 = vsel %vm1497_vm6, %v17301_v29, 0.0 }
0x1414   :  { %5335 = vadd.xlane.f32.xlu0 %v5334_v45 }
0x142a   :  { %6419 = vrot.lane.b32.xlu0 %v18209_v9, %s19852_s23 }
0x1431   :  { %v5243_v30 = vpop.xlane.xlu1 %5242 }
0x1432   :  { %v5269_v31 = vsub.f32 %v18422_v11, %v5243_v30  ;;  %v15327_v30 = vld [vmem:[%s19771_s4 + $0x34] sm:$0xf] }
0x1434   :  { %v5295_v32 = vmul.f32 1.442695, %v5269_v31 }
0x1436   :  { %17302 = vpow2.f32 %v5295_v32 }
0x1443   :  { %v17303_v33 = vpop.eup %17302 }
0x1444   :  { %v5337_v34 = vsel %vm1497_vm6, %v17303_v33, 0.0 }
0x1445   :  { %5338 = vadd.xlane.f32.xlu1 %v5337_v34 }
0x1449   :  { %5245 = vmax.xlane.f32.xlu0 %v5244_v35 }
0x1456   :  { %6583 = vrot.lane.b32.xlu1 %v18213_v20, %s19853_s21 }
0x147a   :  { %5248 = vmax.xlane.f32.xlu1 %v5247_v36 }
0x148c   :  { %v16517_v37 = vpop.f32.mrf.mxu0 }
0x148d   :  { %v6102_v38 = vadd.f32 %v16517_v37, %v5860_v47  ;;  %v5256_v37 = vsel %vm1497_vm6, %v18429_v61, -inf }
0x148e   :  { %v6092_v11 = vpop.f32.mrf.mxu0 }
0x149c   :  { %v6251_v39 = vpop.f32.mrf.mxu0 }
0x149d   :  { %v5336_v40 = vpop.xlane.xlu0 %5335  ;;  %16531 = vmatmul.mubr.msk.f32.vlgmr.msra.gmra.mxu1 %vm251_vm5, %v6251_v39 }
0x149e   :  { %17304 = vrcp.f32 %v5336_v40  ;;  %v16527_v60 = vpop.f32.mrf.mxu0  ;;  %16540 = vmatprep.mubr.msk.f32.mxu1 %vm17508_vm4, %v17507_v6 }
0x14a1   :  { %v6420_v41 = vpop.permute.xlu0 %6419 }
0x14a2   :  { %16539 = vmatpush3.msra.mxu1 %v6420_v41 }
0x14a3   :  { %16548 = vmatprep.subr.mxu1 %v17507_v6 }
0x14ab   :  { %v17305_v1 = vpop.eup %17304 }
0x14ac   :  { %v5380_v43 = vmul.f32 %v17305_v1, %v17301_v29 }
0x14ae   :  { %16541 = vmatmul.mubr.msk.f32.vlgmr.msra.gmra.mxu1 %vm1497_vm6, %v5380_v43 }
0x14af   :  { %16550 = vmatprep.mubr.msk.f32.mxu1 %vm17508_vm4, %v17507_v6 }
0x14cd   :  { %v6415_v19 = vpop.f32.mrf.mxu0 }
0x14ce   :  { %v5339_v51 = vpop.xlane.xlu1 %5338  ;;  %16545 = vmatprep.mubr.msk.f32.mxu0 %vm251_vm5, %v6415_v19 }
0x14cf   :  { %17306 = vrcp.f32 %v5339_v51  ;;  %v16537_v44 = vpop.f32.mrf.mxu0 }
0x14d2   :  { %v5246_v46 = vpop.xlane.xlu0 %5245  ;;  %v6584_v25 = vpop.permute.xlu1 %6583 }
0x14d3   :  { %v5270_v48 = vsub.f32 %v18419_v26, %v5246_v46  ;;  %16549 = vmatpush3.msra.mxu1 %v6584_v25 }
0x14d4   :  { %16558 = vmatprep.subr.msk.mxu1 %vm1987_vm7, %v15327_v30 }
0x14d5   :  { %v5297_v59 = vmul.f32 1.442695, %v5270_v48 }
0x14d7   :  { %17308 = vpow2.f32 %v5297_v59 }
0x14dc   :  { %v17307_v49 = vpop.eup %17306 }
0x14dd   :  { %v5381_v50 = vmul.f32 %v17307_v49, %v17303_v33 }
0x14df   :  { %16551 = vmatmul.mubr.msk.f32.vlgmr.msra.gmra.mxu1 %vm1497_vm6, %v5381_v50 }
0x14e0   :  { %16559 = vmatpush3.msk.msra.mxu1 %vm1987_vm7, %v15327_v30 }
0x14e1   :  { %16568 = vmatprep.subr.mxu1 %v17507_v6 }
0x14e4   :  { %v17309_v22 = vpop.eup %17308 }
0x14e5   :  { %v5340_v26 = vsel %vm1497_vm6, %v17309_v22, 0.0 }
0x14e6   :  { %5341 = vadd.xlane.f32.xlu0 %v5340_v26 }
0x14fc   :  { %6659 = vrot.lane.b32.xlu0 %v18209_v9, %s19853_s21 }
0x1503   :  { %v5249_v54 = vpop.xlane.xlu1 %5248 }
0x1504   :  { %v5271_v56 = vsub.f32 %v18427_v28, %v5249_v54  ;;  %v5855_v28 = vadd.f32 %v18489_v62, %v18491_v2 }
0x1506   :  { %v5299_v57 = vmul.f32 1.442695, %v5271_v56  ;;  %v6101_v7 = vadd.f32 %v6092_v11, %v5855_v28 }
0x1508   :  { %17310 = vpow2.f32 %v5299_v57 }
0x1515   :  { %v17311_v58 = vpop.eup %17310 }
0x1516   :  { %v5343_v47 = vsel %vm1497_vm6, %v17311_v58, 0.0 }
0x1517   :  { %5344 = vadd.xlane.f32.xlu1 %v5343_v47 }
0x151b   :  { %5251 = vmax.xlane.f32.xlu0 %v5250_v0 }
0x1528   :  { %6823 = vrot.lane.b32.xlu1 %v18213_v20, %s19854_s19 }
0x154c   :  { %5254 = vmax.xlane.f32.xlu1 %v5253_v4 }
0x155d   :  { %v16532_v15 = vpop.f32.mrf.mxu1 }
0x155e   :  { %v6342_v10 = vadd.f32 %v16532_v15, %v6102_v38 }
0x155f   :  { %v6332_v5 = vpop.f32.mrf.mxu1 }
0x1560   :  { %v6341_v12 = vadd.f32 %v6332_v5, %v6101_v7 }
0x156e   :  { %v6491_v13 = vpop.f32.mrf.mxu1 }
0x156f   :  { %v5342_v14 = vpop.xlane.xlu0 %5341  ;;  %16546 = vmatmul.mubr.msk.f32.vlgmr.msra.gmra.mxu0 %vm251_vm5, %v6491_v13 }
0x1570   :  { %17312 = vrcp.f32 %v5342_v14  ;;  %v16542_v16 = vpop.f32.mrf.mxu1  ;;  %16555 = vmatprep.mubr.msk.f32.mxu0 %vm17508_vm4, %v17507_v6 }
0x1573   :  { %v6660_v3 = vpop.permute.xlu0 %6659 }
0x1574   :  { %16554 = vmatpush3.msra.mxu0 %v6660_v3 }
0x1575   :  { %16563 = vmatprep.subr.mxu0 %v17507_v6 }
0x157d   :  { %v17313_v17 = vpop.eup %17312 }
0x157e   :  { %v5382_v62 = vmul.f32 %v17313_v17, %v17309_v22 }
0x1580   :  { %16556 = vmatmul.mubr.msk.f32.vlgmr.msra.gmra.mxu0 %vm1497_vm6, %v5382_v62 }
0x1581   :  { %16565 = vmatprep.mubr.msk.f32.mxu0 %vm17508_vm4, %v17507_v6 }
0x159f   :  { %v6655_v2 = vpop.f32.mrf.mxu1 }
0x15a0   :  { %v5345_v21 = vpop.xlane.xlu1 %5344  ;;  %16560 = vmatprep.mubr.msk.f32.mxu1 %vm251_vm5, %v6655_v2 }
0x15a1   :  { %17314 = vrcp.f32 %v5345_v21  ;;  %v16552_v23 = vpop.f32.mrf.mxu1 }
0x15a4   :  { %v5252_v24 = vpop.xlane.xlu0 %5251  ;;  %v6824_v27 = vpop.permute.xlu1 %6823 }
0x15a5   :  { %v5272_v55 = vsub.f32 %v18424_v52, %v5252_v24  ;;  %16564 = vmatpush3.msra.mxu0 %v6824_v27 }
0x15a6   :  { %16573 = vmatprep.subr.msk.mxu0 %vm1987_vm7, %v15333_v53 }
0x15a7   :  { %v5301_v18 = vmul.f32 1.442695, %v5272_v55 }
0x15a9   :  { %17316 = vpow2.f32 %v5301_v18 }
0x15ae   :  { %v17315_v29 = vpop.eup %17314 }
0x15af   :  { %v5383_v45 = vmul.f32 %v17315_v29, %v17311_v58 }
0x15b1   :  { %16566 = vmatmul.mubr.msk.f32.vlgmr.msra.gmra.mxu0 %vm1497_vm6, %v5383_v45 }
0x15b2   :  { %16574 = vmatpush3.msk.msra.mxu0 %vm1987_vm7, %v15333_v53  ;;  %v15345_v53 = vld [vmem:[%s19772_s5 + $0x1] ss:$0 sm:$0xff] }
0x15b3   :  { %16583 = vmatprep.subr.mxu0 %v17507_v6 }
0x15b6   :  { %v17317_v31 = vpop.eup %17316 }
0x15b7   :  { %v5346_v52 = vsel %vm1497_vm6, %v17317_v31, 0.0 }
0x15b8   :  { %5347 = vadd.xlane.f32.xlu0 %v5346_v52 }
0x15ce   :  { %6899 = vrot.lane.b32.xlu0 %v18209_v9, %s19854_s19 }
0x15d5   :  { %v5255_v32 = vpop.xlane.xlu1 %5254 }
0x15d6   :  { %v5273_v33 = vsub.f32 %v18431_v42, %v5255_v32 }
0x15d8   :  { %v5303_v34 = vmul.f32 1.442695, %v5273_v33 }
0x15da   :  { %17318 = vpow2.f32 %v5303_v34  ;;  %v15350_v34 = vld [vmem:[%s19774_s7 + $0x38] sm:$0xff] }
0x15e7   :  { %v17319_v35 = vpop.eup %17318 }
0x15e8   :  { %v5349_v36 = vsel %vm1497_vm6, %v17319_v35, 0.0 }
0x15e9   :  { %5350 = vadd.xlane.f32.xlu1 %v5349_v36  ;;  %v15348_v36 = vld [vmem:[%s19774_s7 + $0x28] sm:$0xff] }
0x15ed   :  { %5257 = vmax.xlane.f32.xlu0 %v5256_v37  ;;  %v15347_v37 = vld [vmem:[%s19774_s7 + $0x20] sm:$0xff] }
0x15fa   :  { %7063 = vrot.lane.b32.xlu1 %v18213_v20, %s19855_s18 }
0x162f   :  { %v16547_v38 = vpop.f32.mrf.mxu0 }
0x1630   :  { %v6582_v11 = vadd.f32 %v16547_v38, %v6342_v10  ;;  %v15339_v10 = vld [vmem:[%s19771_s4 + $0x3c] sm:$0xf] }
0x1631   :  { %v6572_v39 = vpop.f32.mrf.mxu0  ;;  %v15370_v38 = vld [vmem:[%s19776_s9 + $0xf8] sm:$0xff] }
0x1632   :  { %v6581_v40 = vadd.f32 %v6572_v39, %v6341_v12  ;;  %v15368_v39 = vld [vmem:[%s19776_s9 + $0xe8] sm:$0xff] }
0x1640   :  { %v6731_v60 = vpop.f32.mrf.mxu0 }
0x1641   :  { %v5348_v41 = vpop.xlane.xlu0 %5347  ;;  %16561 = vmatmul.mubr.msk.f32.vlgmr.msra.gmra.mxu1 %vm251_vm5, %v6731_v60  ;;  %v15366_v60 = vld [vmem:[%s19776_s9 + $0xd8] sm:$0xff] }
0x1642   :  { %17320 = vrcp.f32 %v5348_v41  ;;  %v16557_v42 = vpop.f32.mrf.mxu0  ;;  %16570 = vmatprep.mubr.msk.f32.mxu1 %vm17508_vm4, %v17507_v6  ;;  %v15365_v41 = vld [vmem:[%s19776_s9 + $0xd0] sm:$0xff] }
0x1643   :  { %v15364_v42 = vld [vmem:[%s19776_s9 + $0xc8] sm:$0xff] }
0x1645   :  { %v6900_v1 = vpop.permute.xlu0 %6899 }
0x1646   :  { %16569 = vmatpush3.msra.mxu1 %v6900_v1  ;;  %v15363_v1 = vld [vmem:[%s19776_s9 + $0xc0] sm:$0xff] }
0x1647   :  { %16578 = vmatprep.subr.mxu1 %v17507_v6 }
0x164f   :  { %v17321_v43 = vpop.eup %17320 }
0x1650   :  { %v5384_v19 = vmul.f32 %v17321_v43, %v17317_v31  ;;  %v15362_v43 = vld [vmem:[%s19776_s9 + $0xb8] sm:$0xff] }
0x1652   :  { %16571 = vmatmul.mubr.msk.f32.vlgmr.msra.gmra.mxu1 %vm1497_vm6, %v5384_v19  ;;  %v15361_v19 = vld [vmem:[%s19776_s9 + $0xb0] sm:$0xff] }
0x1653   :  { %16580 = vmatprep.mubr.msk.f32.mxu1 %vm17508_vm4, %v17507_v6 }
0x1671   :  { %v6895_v20 = vpop.f32.mrf.mxu0 }
0x1672   :  { %v5351_v51 = vpop.xlane.xlu1 %5350  ;;  %16575 = vmatprep.mubr.msk.f32.mxu0 %vm251_vm5, %v6895_v20  ;;  %v15360_v20 = vld [vmem:[%s19776_s9 + $0xa8] sm:$0xff] }
0x1673   :  { %17322 = vrcp.f32 %v5351_v51  ;;  %v16567_v44 = vpop.f32.mrf.mxu0  ;;  %v15359_v51 = vld [vmem:[%s19776_s9 + $0xa0] sm:$0xff] }
0x1676   :  { %v5258_v46 = vpop.xlane.xlu0 %5257  ;;  %v7064_v25 = vpop.permute.xlu1 %7063 }
0x1677   :  { %v5274_v48 = vsub.f32 %v18429_v61, %v5258_v46  ;;  %16579 = vmatpush3.msra.mxu1 %v7064_v25 }
0x1678   :  { %16588 = vmatprep.subr.msk.mxu1 %vm1987_vm7, %v15339_v10 }
0x1679   :  { %v5305_v59 = vmul.f32 1.442695, %v5274_v48 }
0x167b   :  { %17324 = vpow2.f32 %v5305_v59 }
0x1680   :  { %v17323_v49 = vpop.eup %17322 }
0x1681   :  { %v5385_v50 = vmul.f32 %v17323_v49, %v17319_v35  ;;  %v15349_v35 = vld [vmem:[%s19774_s7 + $0x30] sm:$0xff] }
0x1683   :  { %16581 = vmatmul.mubr.msk.f32.vlgmr.msra.gmra.mxu1 %vm1497_vm6, %v5385_v50 }
0x1684   :  { %16589 = vmatpush3.msk.msra.mxu1 %vm1987_vm7, %v15339_v10 }
0x1685   :  { %16604 = vmatprep.subr.mxu1 %v15370_v38 }
0x1688   :  { %v17325_v22 = vpop.eup %17324 }
0x1689   :  { %v5352_v61 = vsel %vm1497_vm6, %v17325_v22, 0.0 }
0x168a   :  { %5353 = vadd.xlane.f32.xlu0 %v5352_v61 }
0x16a0   :  { %7139 = vrot.lane.b32.xlu0 %v18209_v9, %s19855_s18 }
0x1701   :  { %v16562_v26 = vpop.f32.mrf.mxu1 }
0x1702   :  { %v6822_v54 = vadd.f32 %v16562_v26, %v6582_v11  ;;  %v15369_v11 = vld [vmem:[%s19776_s9 + $0xf0] sm:$0xff] }
0x1703   :  { %v6812_v56 = vpop.f32.mrf.mxu1 }
0x1704   :  { %v6821_v57 = vadd.f32 %v6812_v56, %v6581_v40  ;;  %v15367_v40 = vld [vmem:[%s19776_s9 + $0xe0] sm:$0xff] }
0x1705   :  { %v15346_v56 = vld [vmem:[%s19773_s6 + $0x1] ss:$0 sm:$0xff] }
0x1712   :  { %v6971_v58 = vpop.f32.mrf.mxu1 }
0x1713   :  { %v5354_v47 = vpop.xlane.xlu0 %5353  ;;  %16576 = vmatmul.mubr.msk.f32.vlgmr.msra.gmra.mxu0 %vm251_vm5, %v6971_v58 }
0x1714   :  { %17326 = vrcp.f32 %v5354_v47  ;;  %v16572_v0 = vpop.f32.mrf.mxu1  ;;  %16585 = vmatprep.mubr.msk.f32.mxu0 %vm17508_vm4, %v17507_v6 }
0x1715   :  { %v15358_v0 = vld [vmem:[%s19776_s9 + $0x98] sm:$0xff] }
0x1717   :  { %v7140_v4 = vpop.permute.xlu0 %7139 }
0x1718   :  { %16584 = vmatpush3.msra.mxu0 %v7140_v4  ;;  %v15357_v4 = vld [vmem:[%s19776_s9 + $0x90] sm:$0xff] }
0x1719   :  { %16593 = vmatprep.subr.mxu0 %v15350_v34 }
0x1721   :  { %v17327_v28 = vpop.eup %17326 }
0x1722   :  { %v5386_v15 = vmul.f32 %v17327_v28, %v17325_v22  ;;  %v15356_v28 = vld [vmem:[%s19776_s9 + $0x88] sm:$0xff] }
0x1724   :  { %16586 = vmatmul.mubr.msk.f32.vlgmr.msra.gmra.mxu0 %vm1497_vm6, %v5386_v15  ;;  %v15355_v15 = vld [vmem:[%s19776_s9 + $0x80] sm:$0xff] }
0x1725   :  { %16594 = vmatpush3.msra.mxu0 %v15350_v34  ;;  %v15379_v34 = vld [vmem:[%s19770_s3 + $0x50] sm:$0xff] }
0x1726   :  { %16595 = vmatprep.subr.mxu0 %v15349_v35 }
0x1727   :  { %16596 = vmatpush3.msra.mxu0 %v15349_v35  ;;  %v15378_v35 = vld [vmem:[%s19770_s3 + $0x48] sm:$0xff] }
0x1728   :  { %16597 = vmatprep.subr.mxu0 %v15348_v36 }
0x1729   :  { %16598 = vmatpush3.msra.mxu0 %v15348_v36  ;;  %v15377_v36 = vld [vmem:[%s19770_s3 + $0x40] sm:$0xff] }
0x172a   :  { %16599 = vmatprep.subr.mxu0 %v15347_v37 }
0x172b   :  { %16600 = vmatpush3.msra.mxu0 %v15347_v37 }
0x1743   :  { %v7135_v9 = vpop.f32.mrf.mxu1 }
0x1744   :  { %16590 = vmatprep.mubr.msk.f32.mxu1 %vm251_vm5, %v7135_v9  ;;  %v15352_v9 = vld [vmem:[%s19775_s8 + $0x1] ss:$0 sm:$0xff] }
0x1745   :  { %v16582_v7 = vpop.f32.mrf.mxu1 }
0x17d3   :  { %v16577_v5 = vpop.f32.mrf.mxu0 }
0x17d4   :  { %v7062_v12 = vadd.f32 %v16577_v5, %v6822_v54 }
0x17d5   :  { %v7052_v13 = vpop.f32.mrf.mxu0 }
0x17d6   :  { %v7061_v14 = vadd.f32 %v7052_v13, %v6821_v57 }
0x17e4   :  { %v7211_v16 = vpop.f32.mrf.mxu0 }
0x17e5   :  { %16591 = vmatmul.mubr.msk.f32.vlgmr.msra.gmra.mxu1 %vm251_vm5, %v7211_v16  ;;  %v15372_v16 = vld [vmem:[%s19777_s10 + $0x1] ss:$0 sm:$0xff] }
0x17e6   :  { %v16587_v3 = vpop.f32.mrf.mxu0  ;;  %16605 = vmatpush3.msra.mxu1 %v15370_v38 }
0x17e7   :  { %16606 = vmatprep.subr.mxu1 %v15369_v11 }
0x17e8   :  { %16607 = vmatpush3.msra.mxu1 %v15369_v11 }
0x17e9   :  { %16608 = vmatprep.subr.mxu1 %v15368_v39 }
0x17ea   :  { %16609 = vmatpush3.msra.mxu1 %v15368_v39 }
0x17eb   :  { %16610 = vmatprep.subr.mxu1 %v15367_v40 }
0x17ec   :  { %16611 = vmatpush3.msra.mxu1 %v15367_v40 }
0x17ed   :  { %16612 = vmatprep.subr.mxu1 %v15366_v60 }
0x17ee   :  { %16613 = vmatpush3.msra.mxu1 %v15366_v60 }
0x17ef   :  { %16614 = vmatprep.subr.mxu1 %v15365_v41 }
0x17f0   :  { %16615 = vmatpush3.msra.mxu1 %v15365_v41 }
0x17f1   :  { %16616 = vmatprep.subr.mxu1 %v15364_v42 }
0x17f2   :  { %16617 = vmatpush3.msra.mxu1 %v15364_v42  ;;  %v15375_v42 = vld [vmem:[%s19778_s11 + $0x1] ss:$0 sm:$0xff] }
0x17f3   :  { %16618 = vmatprep.subr.mxu1 %v15363_v1 }
0x17f4   :  { %16619 = vmatpush3.msra.mxu1 %v15363_v1 }
0x17f5   :  { %16620 = vmatprep.subr.mxu1 %v15362_v43 }
0x17f6   :  { %16621 = vmatpush3.msra.mxu1 %v15362_v43 }
0x17f7   :  { %16622 = vmatprep.subr.mxu1 %v15361_v19 }
0x17f8   :  { %16623 = vmatpush3.msra.mxu1 %v15361_v19 }
0x17f9   :  { %16624 = vmatprep.subr.mxu1 %v15360_v20 }
0x17fa   :  { %16625 = vmatpush3.msra.mxu1 %v15360_v20 }
0x17fb   :  { %16626 = vmatprep.subr.mxu1 %v15359_v51 }
0x17fc   :  { %16627 = vmatpush3.msra.mxu1 %v15359_v51  ;;  %v15376_v51 = vld [vmem:[%s19779_s12 + $0x1] ss:$0 sm:$0xff] }
0x17fd   :  { %16628 = vmatprep.subr.mxu1 %v15358_v0 }
0x17fe   :  { %16629 = vmatpush3.msra.mxu1 %v15358_v0 }
0x17ff   :  { %16630 = vmatprep.subr.mxu1 %v15357_v4 }
0x1800   :  { %16631 = vmatpush3.msra.mxu1 %v15357_v4 }
0x1801   :  { %16632 = vmatprep.subr.mxu1 %v15356_v28 }
0x1802   :  { %16633 = vmatpush3.msra.mxu1 %v15356_v28 }
0x1803   :  { %16634 = vmatprep.subr.mxu1 %v15355_v15 }
0x1804   :  { %16635 = vmatpush3.msra.mxu1 %v15355_v15 }
0x1805   :  { %16675 = vmatprep.subr.mxu1 %v17507_v6 }
0x18a5   :  { %v16592_v17 = vpop.f32.mrf.mxu1 }
0x18a6   :  { %v7302_v62 = vadd.f32 %v16592_v17, %v7062_v12 }
0x18a7   :  { %v7292_v2 = vpop.f32.mrf.mxu1 }
0x18a8   :  { %v7304_v21 = vadd.f32 %v7302_v62, %v18201_v8  ;;  %v7301_v23 = vadd.f32 %v7292_v2, %v7061_v14 }
0x18aa   :  { %v7303_v24 = vadd.f32 %v7301_v23, %v18199_v63  ;;  %v7312_v27 = vsel %vm164_vm3, %v7304_v21, 0.0 }
0x18ab   :  { %7313 = vadd.xlane.f32.xlu0 %v7312_v27 }
0x18ac   :  { %v7309_v55 = vsel %vm164_vm3, %v7303_v24, 0.0 }
0x18ad   :  { %7310 = vadd.xlane.f32.xlu1 %v7309_v55 }
0x1934   :  { %v7314_v18 = vpop.xlane.xlu0 %7313 }
0x1935   :  { %v7316_v29 = vmul.f32 0.03125, %v7314_v18 }
0x1936   :  { %v7311_v45 = vpop.xlane.xlu1 %7310 }
0x1937   :  { %v18609_v30 = vsub.f32 %v7304_v21, %v7316_v29  ;;  %v7315_v31 = vmul.f32 0.03125, %v7311_v45 }
0x1939   :  { %v18611_v52 = vsub.f32 %v7303_v24, %v7315_v31  ;;  %v7320_v8 = vmul.f32 %v18609_v30, %v18609_v30 }
0x193b   :  { %v7324_v32 = vsel %vm164_vm3, %v7320_v8, 0.0  ;;  %v7319_v63 = vmul.f32 %v18611_v52, %v18611_v52 }
0x193c   :  { %7325 = vadd.xlane.f32.xlu0 %v7324_v32 }
0x193d   :  { %v7321_v33 = vsel %vm164_vm3, %v7319_v63, 0.0 }
0x193e   :  { %7322 = vadd.xlane.f32.xlu1 %v7321_v33  ;;  %v15380_v33 = vld [vmem:[%s19770_s3 + $0x58] sm:$0xff] }
0x193f   :  { %16639 = vmatprep.subr.mxu0 %v15380_v33 }
0x19c5   :  { %v7326_v44 = vpop.xlane.xlu0 %7325 }
0x19c6   :  { %v7328_v46 = vmul.f32 0.03125, %v7326_v44 }
0x19c7   :  { %v7323_v25 = vpop.xlane.xlu1 %7322 }
0x19c8   :  { %v7330_v48 = vadd.f32 1e-05, %v7328_v46  ;;  %v7327_v59 = vmul.f32 0.03125, %v7323_v25 }
0x19ca   :  { %17328 = vrsqrt.f32 %v7330_v48  ;;  %v7329_v49 = vadd.f32 1e-05, %v7327_v59 }
0x19cc   :  { %17330 = vrsqrt.f32 %v7329_v49 }
0x19d7   :  { %v17329_v50 = vpop.eup %17328 }
0x19d8   :  { %v7334_v22 = vmul.f32 %v17329_v50, %v18609_v30 }
0x19d9   :  { %v17331_v61 = vpop.eup %17330 }
0x19da   :  { %v7333_v26 = vmul.f32 %v17331_v61, %v18611_v52  ;;  %v7342_v54 = vmul.f32 %v15345_v53, %v7334_v22 }
0x19dc   :  { %v7341_v57 = vmul.f32 %v15345_v53, %v7333_v26  ;;  %v7350_v47 = vadd.f32 %v15346_v56, %v7342_v54 }
0x19de   :  { %v7349_v58 = vadd.f32 %v15346_v56, %v7341_v57 }
0x19e0   :  { %16601 = vmatprep.mubr.msk.f32.mxu0 %vm164_vm3, %v7349_v58 }
0x19e1   :  { %16602 = vmatmul.mubr.msk.f32.vlgmr.msra.gmra.mxu0 %vm164_vm3, %v7350_v47 }
0x19e2   :  { %16640 = vmatpush3.msra.mxu0 %v15380_v33 }
0x19e3   :  { %16641 = vmatprep.subr.mxu0 %v15379_v34 }
0x19e4   :  { %16642 = vmatpush3.msra.mxu0 %v15379_v34 }
0x19e5   :  { %16643 = vmatprep.subr.mxu0 %v15378_v35 }
0x19e6   :  { %16644 = vmatpush3.msra.mxu0 %v15378_v35 }
0x19e7   :  { %16645 = vmatprep.subr.mxu0 %v15377_v36 }
0x19e8   :  { %16646 = vmatpush3.msra.mxu0 %v15377_v36 }
0x19e9   :  { %16650 = vmatprep.subr.mxu0 %v17507_v6 }
0x1aa1   :  { %v16603_v7 = vpop.f32.mrf.mxu0 }
0x1aa2   :  { %v7442_v10 = vadd.f32 %v16603_v7, %v15352_v9 }
0x1aa3   :  { %v7436_v5 = vpop.f32.mrf.mxu0 }
0x1aa4   :  { %v7437_v12 = vadd.f32 %v15352_v9, %v7436_v5  ;;  %v7446_v14 = vmax.f32 %v7442_v10, 0.0 }
0x1aa6   :  { %v7445_v13 = vmax.f32 %v7437_v12, 0.0 }
0x1aa8   :  { %16636 = vmatprep.mubr.f32.mxu1 %v7445_v13 }
0x1aa9   :  { %16637 = vmatmul.mubr.f32.vlgmr.msra.gmra.mxu1 %v7446_v14 }
0x1aaa   :  { %16677 = vmatprep.mubr.msk.f32.mxu1 %vm17508_vm4, %v17507_v6 }
0x1b69   :  { %v16638_v3 = vpop.f32.mrf.mxu1 }
0x1b6a   :  { %v7544_v17 = vadd.f32 %v16638_v3, %v15372_v16 }
0x1b6b   :  { %v7538_v62 = vpop.f32.mrf.mxu1 }
0x1b6c   :  { %v7548_v2 = vadd.f32 %v7544_v17, %v7350_v47  ;;  %v7539_v21 = vadd.f32 %v15372_v16, %v7538_v62 }
0x1b6e   :  { %v7547_v23 = vadd.f32 %v7539_v21, %v7349_v58  ;;  %v7556_v24 = vsel %vm164_vm3, %v7548_v2, 0.0 }
0x1b6f   :  { %7557 = vadd.xlane.f32.xlu0 %v7556_v24 }
0x1b70   :  { %v7553_v27 = vsel %vm164_vm3, %v7547_v23, 0.0 }
0x1b71   :  { %7554 = vadd.xlane.f32.xlu1 %v7553_v27 }
0x1bf8   :  { %v7558_v55 = vpop.xlane.xlu0 %7557 }
0x1bf9   :  { %v7560_v18 = vmul.f32 0.03125, %v7558_v55 }
0x1bfa   :  { %v7555_v29 = vpop.xlane.xlu1 %7554 }
0x1bfb   :  { %v7562_v45 = vsub.f32 %v7548_v2, %v7560_v18  ;;  %v7559_v30 = vmul.f32 0.03125, %v7555_v29 }
0x1bfd   :  { %v7561_v31 = vsub.f32 %v7547_v23, %v7559_v30  ;;  %v7564_v52 = vmul.f32 %v7562_v45, %v7562_v45 }
0x1bff   :  { %v7568_v8 = vsel %vm164_vm3, %v7564_v52, 0.0  ;;  %v7563_v32 = vmul.f32 %v7561_v31, %v7561_v31 }
0x1c00   :  { %7569 = vadd.xlane.f32.xlu0 %v7568_v8 }
0x1c01   :  { %v7565_v63 = vsel %vm164_vm3, %v7563_v32, 0.0 }
0x1c02   :  { %7566 = vadd.xlane.f32.xlu1 %v7565_v63 }
0x1c89   :  { %v7570_v37 = vpop.xlane.xlu0 %7569 }
0x1c8a   :  { %v7572_v38 = vmul.f32 0.03125, %v7570_v37 }
0x1c8b   :  { %v7567_v11 = vpop.xlane.xlu1 %7566 }
0x1c8c   :  { %v7574_v39 = vadd.f32 1e-05, %v7572_v38  ;;  %v7571_v40 = vmul.f32 0.03125, %v7567_v11 }
0x1c8e   :  { %17332 = vrsqrt.f32 %v7574_v39  ;;  %v7573_v60 = vadd.f32 1e-05, %v7571_v40 }
0x1c90   :  { %17334 = vrsqrt.f32 %v7573_v60 }
0x1c9b   :  { %v17333_v41 = vpop.eup %17332 }
0x1c9c   :  { %v7578_v1 = vmul.f32 %v17333_v41, %v7562_v45 }
0x1c9d   :  { %v17335_v43 = vpop.eup %17334 }
0x1c9e   :  { %v7577_v19 = vmul.f32 %v17335_v43, %v7561_v31  ;;  %v7586_v20 = vmul.f32 %v15375_v42, %v7578_v1 }
0x1ca0   :  { %v7585_v44 = vmul.f32 %v15375_v42, %v7577_v19  ;;  %v18723_v25 = vadd.f32 %v15376_v51, %v7586_v20 }
0x1ca2   :  { %v18721_v46 = vadd.f32 %v15376_v51, %v7585_v44 }
0x1ca4   :  { %16647 = vmatprep.mubr.msk.f32.mxu0 %vm164_vm3, %v18721_v46 }
0x1ca5   :  { %16648 = vmatmul.mubr.msk.f32.vlgmr.msra.gmra.mxu0 %vm164_vm3, %v18723_v25 }
0x1ca6   :  { %16652 = vmatprep.mubr.msk.f32.mxu0 %vm17508_vm4, %v17507_v6 }
0x1d65   :  { %v18731_v48 = vpop.f32.mrf.mxu0 }
0x1d66   :  { %7762 = vrot.lane.b32.xlu0 %v18731_v48, %s19856_s15  ;;  %v18753_v50 = vmul.f32 0.5, %v18731_v48 }
0x1d67   :  { %v18735_v59 = vpop.f32.mrf.mxu0 }
0x1d68   :  { %7684 = vrot.lane.b32.xlu1 %v18735_v59, %s19856_s15  ;;  %v18746_v49 = vmul.f32 0.5, %v18735_v59 }
0x1d6a   :  { %7919 = vrot.lane.b32.xlu0 %v18731_v48, %s19857_s16 }
0x1d6c   :  { %7841 = vrot.lane.b32.xlu1 %v18735_v59, %s19857_s16 }
0x1d6e   :  { %7997 = vrot.lane.b32.xlu0 %v18735_v59, %s19858_s13 }
0x1d70   :  { %7839 = vrot.lane.b32.xlu1 %v18746_v49, %s19859_s14 }
0x1d72   :  { %7995 = vrot.lane.b32.xlu0 %v18746_v49, %s19860_s0 }
0x1d74   :  { %7917 = vrot.lane.b32.xlu1 %v18753_v50, %s19859_s14 }
0x1d76   :  { %8153 = vrot.lane.b32.xlu0 %v18735_v59, %s19861_s22 }
0x1d78   :  { %8075 = vrot.lane.b32.xlu1 %v18731_v48, %s19858_s13 }
0x1d7a   :  { %8151 = vrot.lane.b32.xlu0 %v18746_v49, %s19862_s2 }
0x1d7c   :  { %8073 = vrot.lane.b32.xlu1 %v18753_v50, %s19860_s0 }
0x1d80   :  { %8231 = vrot.lane.b32.xlu1 %v18731_v48, %s19861_s22  ;;  %s19865_s22 = smov 76  }
0x1d84   :  { %8229 = vrot.lane.b32.xlu1 %v18753_v50, %s19862_s2  ;;  %s19864_s2 = smov 112  }
0x1dd8   :  { %v7763_v53 = vpop.permute.xlu0 %7762 }
0x1dda   :  { %v7685_v22 = vpop.permute.xlu1 %7684 }
0x1ddb   :  { %16651 = vmatpush3.xpose.msk.msra.mxu0 %vm251_vm5, %v7685_v22 }
0x1ddc   :  { %v7920_v61 = vpop.permute.xlu0 %7919  ;;  %16655 = vmatprep.subr.mxu0 %v17507_v6 }
0x1dde   :  { %v7842_v26 = vpop.permute.xlu1 %7841  ;;  %16653 = vmatmul.mubr.msk.f32.vlgmr.msra.gmra.mxu0 %vm251_vm5, %v18746_v49 }
0x1ddf   :  { %16656 = vmatpush3.xpose.msk.msra.mxu0 %vm251_vm5, %v7763_v53  ;;  %16657 = vmatprep.mubr.msk.f32.mxu0 %vm17508_vm4, %v17507_v6 }
0x1de0   :  { %v7998_v54 = vpop.permute.xlu0 %7997  ;;  %16660 = vmatprep.subr.mxu0 %v17507_v6 }
0x1de2   :  { %v7840_v56 = vpop.permute.xlu1 %7839  ;;  %16658 = vmatmul.mubr.msk.f32.vlgmr.msra.gmra.mxu0 %vm251_vm5, %v18753_v50 }
0x1de3   :  { %16661 = vmatpush3.xpose.msk.msra.mxu0 %vm251_vm5, %v7842_v26  ;;  %16662 = vmatprep.mubr.msk.f32.mxu0 %vm17508_vm4, %v17507_v6 }
0x1de4   :  { %16665 = vmatprep.subr.mxu0 %v17507_v6  ;;  %v7996_v57 = vpop.permute.xlu0 %7995 }
0x1de6   :  { %v7918_v58 = vpop.permute.xlu1 %7917  ;;  %16663 = vmatmul.mubr.msk.f32.vlgmr.msra.gmra.mxu0 %vm251_vm5, %v7840_v56 }
0x1de7   :  { %16666 = vmatpush3.xpose.msk.msra.mxu0 %vm251_vm5, %v7920_v61  ;;  %16667 = vmatprep.mubr.msk.f32.mxu0 %vm17508_vm4, %v17507_v6 }
0x1de8   :  { %16670 = vmatprep.subr.mxu0 %v17507_v6  ;;  %v8154_v0 = vpop.permute.xlu0 %8153 }
0x1dea   :  { %v8076_v47 = vpop.permute.xlu1 %8075  ;;  %16668 = vmatmul.mubr.msk.f32.vlgmr.msra.gmra.mxu0 %vm251_vm5, %v7918_v58 }
0x1deb   :  { %16671 = vmatpush3.xpose.msk.msra.mxu0 %vm251_vm5, %v7998_v54  ;;  %16676 = vmatpush3.xpose.msk.msra.mxu1 %vm251_vm5, %v8076_v47 }
0x1dec   :  { %16672 = vmatprep.mubr.msk.f32.mxu0 %vm17508_vm4, %v17507_v6  ;;  %16680 = vmatprep.subr.mxu0 %v17507_v6  ;;  %v8152_v28 = vpop.permute.xlu0 %8151 }
0x1ded   :  { %16685 = vmatprep.subr.mxu1 %v17507_v6 }
0x1dee   :  { %v8074_v4 = vpop.permute.xlu1 %8073  ;;  %16673 = vmatmul.mubr.msk.f32.vlgmr.msra.gmra.mxu0 %vm251_vm5, %v7996_v57 }
0x1def   :  { %16678 = vmatmul.mubr.msk.f32.vlgmr.msra.gmra.mxu1 %vm251_vm5, %v8074_v4  ;;  %16681 = vmatpush3.xpose.msk.msra.mxu0 %vm251_vm5, %v8154_v0 }
0x1df0   :  { %16682 = vmatprep.mubr.msk.f32.mxu0 %vm17508_vm4, %v17507_v6  ;;  %16687 = vmatprep.mubr.msk.f32.mxu1 %vm17508_vm4, %v17507_v6 }
0x1df1   :  { %16690 = vmatprep.subr.mxu0 %v17507_v6 }
0x1df2   :  { %v8232_v15 = vpop.permute.xlu1 %8231  ;;  %16683 = vmatmul.mubr.msk.f32.vlgmr.msra.gmra.mxu0 %vm251_vm5, %v8152_v28 }
0x1df3   :  { %16686 = vmatpush3.xpose.msk.msra.mxu1 %vm251_vm5, %v8232_v15  ;;  %16692 = vmatprep.mubr.msk.f32.mxu0 %vm17508_vm4, %v17507_v6 }
0x1df4   :  { %16695 = vmatprep.subr.mxu1 %v17507_v6 }
0x1df6   :  { %v8230_v9 = vpop.permute.xlu1 %8229 }
0x1df7   :  { %16688 = vmatmul.mubr.msk.f32.vlgmr.msra.gmra.mxu1 %vm251_vm5, %v8230_v9 }
0x1df8   :  { %16697 = vmatprep.mubr.msk.f32.mxu1 %vm17508_vm4, %v17507_v6 }
0x1e9e   :  { %v7757_v7 = vpop.f32.mrf.mxu0 }
0x1e9f   :  { %v8931_v10 = vsel %vm1497_vm6, %v7757_v7, -inf }
0x1ea0   :  { %8932 = vmax.xlane.f32.xlu0 %v8931_v10  ;;  %v16654_v5 = vpop.f32.mrf.mxu0 }
0x1ea2   :  { %v7835_v12 = vpop.f32.mrf.mxu0 }
0x1ea3   :  { %v8934_v13 = vsel %vm1497_vm6, %v7835_v12, -inf }
0x1ea4   :  { %8935 = vmax.xlane.f32.xlu1 %v8934_v13  ;;  %v16659_v14 = vpop.f32.mrf.mxu0 }
0x1ea6   :  { %v7913_v16 = vpop.f32.mrf.mxu0 }
0x1ea7   :  { %v8937_v3 = vsel %vm1497_vm6, %v7913_v16, -inf }
0x1ea8   :  { %8938 = vmax.xlane.f32.xlu0 %v8937_v3  ;;  %v16664_v17 = vpop.f32.mrf.mxu0 }
0x1eaa   :  { %v7991_v62 = vpop.f32.mrf.mxu0 }
0x1eab   :  { %v8940_v2 = vsel %vm1497_vm6, %v7991_v62, -inf }
0x1eac   :  { %8941 = vmax.xlane.f32.xlu0 %v8940_v2  ;;  %v16669_v21 = vpop.f32.mrf.mxu0 }
0x1eae   :  { %v18815_v23 = vpop.f32.mrf.mxu0 }
0x1eaf   :  { %v18817_v24 = vpop.f32.mrf.mxu1  ;;  %v8943_v9 = vsel %vm1497_vm6, %v18815_v23, -inf }
0x1eb0   :  { %v16674_v27 = vpop.f32.mrf.mxu0 }
0x1eb1   :  { %v16679_v55 = vpop.f32.mrf.mxu1 }
0x1eb2   :  { %v18819_v18 = vpop.f32.mrf.mxu0 }
0x1eb3   :  { %v8949_v10 = vsel %vm1497_vm6, %v18819_v18, -inf }
0x1eb4   :  { %v16684_v29 = vpop.f32.mrf.mxu0 }
0x1eb5   :  { %8387 = vrot.lane.b32.xlu1 %v18731_v48, %s19863_s17 }
0x1eb7   :  { %v18823_v45 = vpop.f32.mrf.mxu1 }
0x1eb9   :  { %v16689_v30 = vpop.f32.mrf.mxu1  ;;  %8385 = vrot.lane.b32.xlu1 %v18753_v50, %s19864_s2 }
0x1ebd   :  { %8543 = vrot.lane.b32.xlu1 %v18731_v48, %s19865_s22 }
0x1ec1   :  { %8541 = vrot.lane.b32.xlu1 %v18753_v50, %s19843_s25 }
0x1ec2   :  { %8309 = vrot.lane.b32.xlu0 %v18735_v59, %s19863_s17 }
0x1ec5   :  { %8699 = vrot.lane.b32.xlu1 %v18731_v48, %s19844_s30 }
0x1ec6   :  { %8307 = vrot.lane.b32.xlu0 %v18746_v49, %s19864_s2 }
0x1ec9   :  { %8697 = vrot.lane.b32.xlu1 %v18753_v50, %s19845_s1 }
0x1eca   :  { %8465 = vrot.lane.b32.xlu0 %v18735_v59, %s19865_s22 }
0x1ecd   :  { %8855 = vrot.lane.b32.xlu1 %v18731_v48, %s19846_s24 }
0x1ece   :  { %8463 = vrot.lane.b32.xlu0 %v18746_v49, %s19843_s25 }
0x1ed1   :  { %8853 = vrot.lane.b32.xlu1 %v18753_v50, %s19847_s29 }
0x1ed2   :  { %8621 = vrot.lane.b32.xlu0 %v18735_v59, %s19844_s30 }
0x1ed5   :  { %9183 = vrot.lane.b32.xlu1 %v18731_v48, %s19848_s28 }
0x1ed6   :  { %8619 = vrot.lane.b32.xlu0 %v18746_v49, %s19845_s1 }
0x1eda   :  { %8777 = vrot.lane.b32.xlu0 %v18735_v59, %s19846_s24  ;;  %s19874_s24 = smov 40  }
0x1ede   :  { %8775 = vrot.lane.b32.xlu0 %v18746_v49, %s19847_s29 }
0x1ee2   :  { %9107 = vrot.lane.b32.xlu0 %v18735_v59, %s19848_s28  ;;  %s19875_s28 = smov 36  }
0x1f29   :  { %v8933_v31 = vpop.xlane.xlu0 %8932 }
0x1f2a   :  { %v8979_v52 = vsub.f32 %v7757_v7, %v8933_v31  ;;  %v8946_v7 = vsel %vm1497_vm6, %v18817_v24, -inf }
0x1f2c   :  { %v8995_v8 = vmul.f32 1.442695, %v8979_v52 }
0x1f2d   :  { %v8936_v32 = vpop.xlane.xlu1 %8935 }
0x1f2e   :  { %17336 = vpow2.f32 %v8995_v8  ;;  %v8980_v63 = vsub.f32 %v7835_v12, %v8936_v32 }
0x1f30   :  { %v8997_v33 = vmul.f32 1.442695, %v8980_v63 }
0x1f31   :  { %v8388_v34 = vpop.permute.xlu1 %8387  ;;  %v8939_v35 = vpop.xlane.xlu0 %8938 }
0x1f32   :  { %17338 = vpow2.f32 %v8997_v33  ;;  %v8981_v36 = vsub.f32 %v7913_v16, %v8939_v35  ;;  %16696 = vmatpush3.xpose.msk.msra.mxu1 %vm251_vm5, %v8388_v34 }
0x1f33   :  { %16705 = vmatprep.subr.mxu1 %v17507_v6 }
0x1f34   :  { %v8999_v37 = vmul.f32 1.442695, %v8981_v36 }
0x1f35   :  { %v8386_v38 = vpop.permute.xlu1 %8385  ;;  %v8942_v11 = vpop.xlane.xlu0 %8941 }
0x1f36   :  { %17340 = vpow2.f32 %v8999_v37  ;;  %v8982_v39 = vsub.f32 %v7991_v62, %v8942_v11  ;;  %16698 = vmatmul.mubr.msk.f32.vlgmr.msra.gmra.mxu1 %vm251_vm5, %v8386_v38 }
0x1f37   :  { %16707 = vmatprep.mubr.msk.f32.mxu1 %vm17508_vm4, %v17507_v6 }
0x1f38   :  { %v9001_v40 = vmul.f32 1.442695, %v8982_v39 }
0x1f39   :  { %v8544_v60 = vpop.permute.xlu1 %8543  ;;  %v8310_v41 = vpop.permute.xlu0 %8309 }
0x1f3a   :  { %17342 = vpow2.f32 %v9001_v40  ;;  %16691 = vmatpush3.xpose.msk.msra.mxu0 %vm251_vm5, %v8310_v41  ;;  %16706 = vmatpush3.xpose.msk.msra.mxu1 %vm251_vm5, %v8544_v60 }
0x1f3b   :  { %v18866_v42 = vpop.eup %17336  ;;  %16715 = vmatprep.subr.mxu1 %v17507_v6  ;;  %16700 = vmatprep.subr.mxu0 %v17507_v6 }
0x1f3c   :  { %v9027_v1 = vsel %vm1497_vm6, %v18866_v42, 0.0 }
0x1f3d   :  { %9028 = vadd.xlane.f32.xlu1 %v9027_v1  ;;  %v8542_v43 = vpop.permute.xlu1 %8541  ;;  %v8308_v19 = vpop.permute.xlu0 %8307 }
0x1f3e   :  { %16693 = vmatmul.mubr.msk.f32.vlgmr.msra.gmra.mxu0 %vm251_vm5, %v8308_v19  ;;  %16708 = vmatmul.mubr.msk.f32.vlgmr.msra.gmra.mxu1 %vm251_vm5, %v8542_v43 }
0x1f3f   :  { %v18874_v20 = vpop.eup %17338  ;;  %16717 = vmatprep.mubr.msk.f32.mxu1 %vm17508_vm4, %v17507_v6  ;;  %16702 = vmatprep.mubr.msk.f32.mxu0 %vm17508_vm4, %v17507_v6 }
0x1f40   :  { %v9030_v51 = vsel %vm1497_vm6, %v18874_v20, 0.0 }
0x1f41   :  { %v8700_v44 = vpop.permute.xlu1 %8699  ;;  %9031 = vadd.xlane.f32.xlu0 %v9030_v51  ;;  %v8466_v49 = vpop.permute.xlu0 %8465 }
0x1f42   :  { %16701 = vmatpush3.xpose.msk.msra.mxu0 %vm251_vm5, %v8466_v49  ;;  %16716 = vmatpush3.xpose.msk.msra.mxu1 %vm251_vm5, %v8700_v44 }
0x1f43   :  { %v18884_v50 = vpop.eup %17340  ;;  %16725 = vmatprep.subr.mxu1 %v17507_v6  ;;  %16710 = vmatprep.subr.mxu0 %v17507_v6 }
0x1f44   :  { %v9033_v53 = vsel %vm1497_vm6, %v18884_v50, 0.0 }
0x1f45   :  { %v8698_v22 = vpop.permute.xlu1 %8697  ;;  %9034 = vadd.xlane.f32.xlu1 %v9033_v53  ;;  %v8464_v61 = vpop.permute.xlu0 %8463  ;;  %v15420_v53 = vld [vmem:[%s19771_s4 + $0x44] sm:$0xf] }
0x1f46   :  { %16703 = vmatmul.mubr.msk.f32.vlgmr.msra.gmra.mxu0 %vm251_vm5, %v8464_v61  ;;  %16718 = vmatmul.mubr.msk.f32.vlgmr.msra.gmra.mxu1 %vm251_vm5, %v8698_v22 }
0x1f47   :  { %v17343_v26 = vpop.eup %17342  ;;  %16727 = vmatprep.mubr.msk.f32.mxu1 %vm17508_vm4, %v17507_v6  ;;  %16712 = vmatprep.mubr.msk.f32.mxu0 %vm17508_vm4, %v17507_v6 }
0x1f48   :  { %v9036_v54 = vsel %vm1497_vm6, %v17343_v26, 0.0 }
0x1f49   :  { %v8856_v56 = vpop.permute.xlu1 %8855  ;;  %9037 = vadd.xlane.f32.xlu1 %v9036_v54  ;;  %v8622_v57 = vpop.permute.xlu0 %8621 }
0x1f4a   :  { %16711 = vmatpush3.xpose.msk.msra.mxu0 %vm251_vm5, %v8622_v57  ;;  %16726 = vmatpush3.xpose.msk.msra.mxu1 %vm251_vm5, %v8856_v56 }
0x1f4b   :  { %16735 = vmatprep.subr.mxu1 %v17507_v6  ;;  %16720 = vmatprep.subr.mxu0 %v17507_v6 }
0x1f4d   :  { %v8854_v58 = vpop.permute.xlu1 %8853  ;;  %v8620_v47 = vpop.permute.xlu0 %8619 }
0x1f4e   :  { %16713 = vmatmul.mubr.msk.f32.vlgmr.msra.gmra.mxu0 %vm251_vm5, %v8620_v47  ;;  %16728 = vmatmul.mubr.msk.f32.vlgmr.msra.gmra.mxu1 %vm251_vm5, %v8854_v58  ;;  %v8952_v58 = vsel %vm1497_vm6, %v18823_v45, -inf }
0x1f4f   :  { %16722 = vmatprep.mubr.msk.f32.mxu0 %vm17508_vm4, %v17507_v6  ;;  %16737 = vmatprep.mubr.msk.f32.mxu1 %vm17508_vm4, %v17507_v6 }
0x1f51   :  { %v9184_v0 = vpop.permute.xlu1 %9183  ;;  %v8778_v4 = vpop.permute.xlu0 %8777 }
0x1f52   :  { %16721 = vmatpush3.xpose.msk.msra.mxu0 %vm251_vm5, %v8778_v4  ;;  %16736 = vmatpush3.msra.mxu1 %v9184_v0 }
0x1f53   :  { %16730 = vmatprep.subr.mxu0 %v17507_v6  ;;  %16745 = vmatprep.subr.mxu1 %v17507_v6 }
0x1f55   :  { %v8776_v28 = vpop.permute.xlu0 %8775 }
0x1f56   :  { %16723 = vmatmul.mubr.msk.f32.vlgmr.msra.gmra.mxu0 %vm251_vm5, %v8776_v28 }
0x1f57   :  { %9261 = vrot.lane.b32.xlu0 %v18735_v59, %s19849_s26  ;;  %16732 = vmatprep.mubr.msk.f32.mxu0 %vm17508_vm4, %v17507_v6 }
0x1f59   :  { %v9108_v15 = vpop.permute.xlu0 %9107 }
0x1f5a   :  { %9337 = vrot.lane.b32.xlu1 %v18731_v48, %s19849_s26  ;;  %16731 = vmatpush3.msra.mxu0 %v9108_v15  ;;  %s19872_s26 = smov 48  }
0x1f5b   :  { %16740 = vmatprep.subr.mxu0 %v17507_v6 }
0x1f76   :  { %8944 = vmax.xlane.f32.xlu0 %v8943_v9 }
0x1f7e   :  { %8947 = vmax.xlane.f32.xlu1 %v8946_v7 }
0x1f8f   :  { %9583 = vrot.lane.b32.xlu1 %v18735_v59, %s19850_s27 }
0x1fb3   :  { %8950 = vmax.xlane.f32.xlu1 %v8949_v10 }
0x1fc6   :  { %v9029_v5 = vpop.xlane.xlu1 %9028 }
0x1fc7   :  { %17344 = vrcp.f32 %v9029_v5 }
0x1fca   :  { %v9032_v12 = vpop.xlane.xlu0 %9031 }
0x1fcb   :  { %17346 = vrcp.f32 %v9032_v12 }
0x1fce   :  { %v9035_v13 = vpop.xlane.xlu1 %9034  ;;  %v9262_v17 = vpop.permute.xlu0 %9261 }
0x1fcf   :  { %17348 = vrcp.f32 %v9035_v13 }
0x1fd2   :  { %v9038_v14 = vpop.xlane.xlu1 %9037 }
0x1fd3   :  { %17350 = vrcp.f32 %v9038_v14 }
0x1fd4   :  { %v17345_v16 = vpop.eup %17344 }
0x1fd5   :  { %v9091_v3 = vmul.f32 %v17345_v16, %v18866_v42 }
0x1fd6   :  { %v9338_v21 = vpop.permute.xlu1 %9337 }
0x1fd7   :  { %16733 = vmatmul.mubr.msk.f32.vlgmr.msra.gmra.mxu0 %vm1497_vm6, %v9091_v3 }
0x1fd8   :  { %v17347_v62 = vpop.eup %17346  ;;  %16741 = vmatpush3.msra.mxu0 %v9262_v17  ;;  %16742 = vmatprep.mubr.msk.f32.mxu0 %vm17508_vm4, %v17507_v6 }
0x1fd9   :  { %v9092_v2 = vmul.f32 %v17347_v62, %v18874_v20  ;;  %16750 = vmatprep.subr.msk.mxu0 %vm1987_vm7, %v15420_v53 }
0x1fdb   :  { %16738 = vmatmul.mubr.msk.f32.vlgmr.msra.gmra.mxu1 %vm1497_vm6, %v9092_v2 }
0x1fdc   :  { %v17349_v27 = vpop.eup %17348  ;;  %16746 = vmatpush3.msra.mxu1 %v9338_v21  ;;  %16747 = vmatprep.mubr.msk.f32.mxu1 %vm17508_vm4, %v17507_v6 }
0x1fdd   :  { %v9093_v55 = vmul.f32 %v17349_v27, %v18884_v50 }
0x1fdf   :  { %16743 = vmatmul.mubr.msk.f32.vlgmr.msra.gmra.mxu0 %vm1497_vm6, %v9093_v55 }
0x1fe0   :  { %v17351_v29 = vpop.eup %17350  ;;  %16751 = vmatpush3.msk.msra.mxu0 %vm1987_vm7, %v15420_v53 }
0x1fe1   :  { %v9094_v30 = vmul.f32 %v17351_v29, %v17343_v26  ;;  %16760 = vmatprep.subr.mxu0 %v17507_v6 }
0x1fe3   :  { %16748 = vmatmul.mubr.msk.f32.vlgmr.msra.gmra.mxu1 %vm1497_vm6, %v9094_v30 }
0x1ff6   :  { %v18937_v31 = vpop.f32.mrf.mxu1 }
0x1ff8   :  { %v16699_v52 = vpop.f32.mrf.mxu1 }
0x1ffe   :  { %v18939_v8 = vpop.f32.mrf.mxu0  ;;  %v18941_v32 = vpop.f32.mrf.mxu1 }
0x1fff   :  { %v8945_v34 = vpop.xlane.xlu0 %8944  ;;  %v8955_v47 = vsel %vm1497_vm6, %v18939_v8, -inf }
0x2000   :  { %v16694_v63 = vpop.f32.mrf.mxu0  ;;  %v16709_v33 = vpop.f32.mrf.mxu1  ;;  %v8983_v35 = vsub.f32 %v18815_v23, %v8945_v34 }
0x2001   :  { %v15429_v33 = vld [vmem:[%s19771_s4 + $0x48] sm:$0xf] }
0x2002   :  { %v9003_v60 = vmul.f32 1.442695, %v8983_v35 }
0x2006   :  { %v18944_v36 = vpop.f32.mrf.mxu0  ;;  %v18946_v37 = vpop.f32.mrf.mxu1 }
0x2007   :  { %v8948_v38 = vpop.xlane.xlu1 %8947 }
0x2008   :  { %v8984_v11 = vsub.f32 %v18817_v24, %v8948_v38  ;;  %v16704_v39 = vpop.f32.mrf.mxu0  ;;  %v16719_v40 = vpop.f32.mrf.mxu1  ;;  %v15417_v24 = vld [vmem:[%s19771_s4 + $0x40] sm:$0xf] }
0x2009   :  { %16755 = vmatprep.subr.msk.mxu1 %vm1987_vm7, %v15417_v24  ;;  %v8958_v39 = vsel %vm1497_vm6, %v18937_v31, -inf  ;;  %v8961_v40 = vsel %vm1497_vm6, %v18944_v36, -inf }
0x200a   :  { %v9005_v41 = vmul.f32 1.442695, %v8984_v11  ;;  %16756 = vmatpush3.msk.msra.mxu1 %vm1987_vm7, %v15417_v24 }
0x200b   :  { %16765 = vmatprep.subr.mxu1 %v17507_v6  ;;  %v9584_v22 = vpop.permute.xlu1 %9583 }
0x200c   :  { %17352 = vpow2.f32 %v9005_v41 }
0x200d   :  { %17354 = vpow2.f32 %v9003_v60 }
0x200e   :  { %v18949_v42 = vpop.f32.mrf.mxu0  ;;  %v18951_v1 = vpop.f32.mrf.mxu1 }
0x2010   :  { %v16714_v43 = vpop.f32.mrf.mxu0  ;;  %v16729_v19 = vpop.f32.mrf.mxu1 }
0x2016   :  { %v18953_v23 = vpop.f32.mrf.mxu0 }
0x2018   :  { %v16724_v20 = vpop.f32.mrf.mxu0 }
0x2019   :  { %v17353_v51 = vpop.eup %17352 }
0x201a   :  { %v9042_v44 = vsel %vm1497_vm6, %v17353_v51, 0.0  ;;  %v17355_v49 = vpop.eup %17354 }
0x201b   :  { %9043 = vadd.xlane.f32.xlu0 %v9042_v44  ;;  %v9039_v50 = vsel %vm1497_vm6, %v17355_v49, 0.0 }
0x201f   :  { %9040 = vadd.xlane.f32.xlu0 %v9039_v50 }
0x2035   :  { %9659 = vrot.lane.b32.xlu0 %v18731_v48, %s19850_s27 }
0x203c   :  { %v8951_v61 = vpop.xlane.xlu1 %8950 }
0x203d   :  { %v8985_v26 = vsub.f32 %v18819_v18, %v8951_v61 }
0x203f   :  { %v9007_v54 = vmul.f32 1.442695, %v8985_v26 }
0x2041   :  { %17356 = vpow2.f32 %v9007_v54 }
0x204e   :  { %v17357_v56 = vpop.eup %17356 }
0x204f   :  { %v9045_v57 = vsel %vm1497_vm6, %v17357_v56, 0.0 }
0x2050   :  { %9046 = vadd.xlane.f32.xlu1 %v9045_v57 }
0x2054   :  { %8953 = vmax.xlane.f32.xlu0 %v8952_v58 }
0x2061   :  { %9823 = vrot.lane.b32.xlu1 %v18735_v59, %s19851_s20 }
0x2085   :  { %8956 = vmax.xlane.f32.xlu1 %v8955_v47 }
0x2097   :  { %v9179_v0 = vpop.f32.mrf.mxu0 }
0x2098   :  { %16757 = vmatprep.mubr.msk.f32.mxu1 %vm251_vm5, %v9179_v0 }
0x2099   :  { %v16734_v18 = vpop.f32.mrf.mxu0 }
0x209b   :  { %v9255_v4 = vpop.f32.mrf.mxu1 }
0x209c   :  { %16758 = vmatmul.mubr.msk.f32.vlgmr.msra.gmra.mxu1 %vm251_vm5, %v9255_v4 }
0x209d   :  { %v16739_v28 = vpop.f32.mrf.mxu1  ;;  %16767 = vmatprep.mubr.msk.f32.mxu1 %vm17508_vm4, %v17507_v6 }
0x209e   :  { %v15435_v28 = vld [vmem:[%s19771_s4 + $0x4c] sm:$0xf] }
0x209f   :  { %v9333_v15 = vpop.f32.mrf.mxu0 }
0x20a0   :  { %16752 = vmatprep.mubr.msk.f32.mxu0 %vm251_vm5, %v9333_v15 }
0x20a1   :  { %v16744_v9 = vpop.f32.mrf.mxu0 }
0x20a3   :  { %v9409_v7 = vpop.f32.mrf.mxu1 }
0x20a4   :  { %v9044_v10 = vpop.xlane.xlu0 %9043  ;;  %16753 = vmatmul.mubr.msk.f32.vlgmr.msra.gmra.mxu0 %vm251_vm5, %v9409_v7 }
0x20a5   :  { %17358 = vrcp.f32 %v9044_v10  ;;  %16761 = vmatpush3.msra.mxu0 %v9584_v22  ;;  %v16749_v5 = vpop.f32.mrf.mxu1  ;;  %16762 = vmatprep.mubr.msk.f32.mxu0 %vm17508_vm4, %v17507_v6 }
0x20a6   :  { %16770 = vmatprep.subr.msk.mxu0 %vm1987_vm7, %v15429_v33 }
0x20a8   :  { %v9041_v12 = vpop.xlane.xlu0 %9040 }
0x20a9   :  { %17360 = vrcp.f32 %v9041_v12 }
0x20ac   :  { %v9660_v13 = vpop.permute.xlu0 %9659 }
0x20ad   :  { %16766 = vmatpush3.msra.mxu1 %v9660_v13  ;;  %v8964_v13 = vsel %vm1497_vm6, %v18941_v32, -inf }
0x20ae   :  { %16775 = vmatprep.subr.mxu1 %v17507_v6 }
0x20b2   :  { %v17359_v14 = vpop.eup %17358 }
0x20b3   :  { %v9096_v16 = vmul.f32 %v17359_v14, %v17353_v51  ;;  %v8967_v14 = vsel %vm1497_vm6, %v18949_v42, -inf }
0x20b5   :  { %16768 = vmatmul.mubr.msk.f32.vlgmr.msra.gmra.mxu1 %vm1497_vm6, %v9096_v16 }
0x20b6   :  { %v17361_v3 = vpop.eup %17360  ;;  %16777 = vmatprep.mubr.msk.f32.mxu1 %vm17508_vm4, %v17507_v6 }
0x20b7   :  { %v9095_v17 = vmul.f32 %v17361_v3, %v17355_v49 }
0x20b9   :  { %16763 = vmatmul.mubr.msk.f32.vlgmr.msra.gmra.mxu0 %vm1497_vm6, %v9095_v17 }
0x20ba   :  { %16771 = vmatpush3.msk.msra.mxu0 %vm1987_vm7, %v15429_v33 }
0x20bb   :  { %16780 = vmatprep.subr.mxu0 %v17507_v6 }
0x20d9   :  { %v9047_v62 = vpop.xlane.xlu1 %9046 }
0x20da   :  { %17362 = vrcp.f32 %v9047_v62 }
0x20dd   :  { %v8954_v2 = vpop.xlane.xlu0 %8953  ;;  %v9824_v21 = vpop.permute.xlu1 %9823 }
0x20de   :  { %v8986_v27 = vsub.f32 %v18823_v45, %v8954_v2  ;;  %16776 = vmatpush3.msra.mxu1 %v9824_v21 }
0x20df   :  { %16785 = vmatprep.subr.msk.mxu1 %vm1987_vm7, %v15435_v28 }
0x20e0   :  { %v9009_v55 = vmul.f32 1.442695, %v8986_v27 }
0x20e2   :  { %17364 = vpow2.f32 %v9009_v55 }
0x20e7   :  { %v17363_v29 = vpop.eup %17362 }
0x20e8   :  { %v9097_v30 = vmul.f32 %v17363_v29, %v17357_v56 }
0x20ea   :  { %16778 = vmatmul.mubr.msk.f32.vlgmr.msra.gmra.mxu1 %vm1497_vm6, %v9097_v30 }
0x20eb   :  { %16786 = vmatpush3.msk.msra.mxu1 %vm1987_vm7, %v15435_v28 }
0x20ec   :  { %16795 = vmatprep.subr.mxu1 %v17507_v6 }
0x20ef   :  { %v17365_v52 = vpop.eup %17364 }
0x20f0   :  { %v9048_v63 = vsel %vm1497_vm6, %v17365_v52, 0.0 }
0x20f1   :  { %9049 = vadd.xlane.f32.xlu0 %v9048_v63 }
0x2107   :  { %9899 = vrot.lane.b32.xlu0 %v18731_v48, %s19851_s20 }
0x210e   :  { %v8957_v45 = vpop.xlane.xlu1 %8956 }
0x210f   :  { %v8987_v34 = vsub.f32 %v18939_v8, %v8957_v45 }
0x2111   :  { %v9011_v35 = vmul.f32 1.442695, %v8987_v34 }
0x2113   :  { %17366 = vpow2.f32 %v9011_v35 }
0x2120   :  { %v17367_v38 = vpop.eup %17366 }
0x2121   :  { %v9051_v11 = vsel %vm1497_vm6, %v17367_v38, 0.0 }
0x2122   :  { %9052 = vadd.xlane.f32.xlu1 %v9051_v11 }
0x2126   :  { %8959 = vmax.xlane.f32.xlu0 %v8958_v39  ;;  %v15441_v39 = vld [vmem:[%s19771_s4 + $0x50] sm:$0xf] }
0x2133   :  { %10063 = vrot.lane.b32.xlu1 %v18735_v59, %s19852_s23 }
0x2157   :  { %8962 = vmax.xlane.f32.xlu1 %v8961_v40 }
0x215c   :  { %v16759_v60 = vpop.f32.mrf.mxu1 }
0x215e   :  { %v9574_v43 = vpop.f32.mrf.mxu1 }
0x2164   :  { %v16754_v41 = vpop.f32.mrf.mxu0 }
0x2165   :  { %v9580_v8 = vadd.f32 %v16759_v60, %v16754_v41 }
0x2166   :  { %v9490_v19 = vpop.f32.mrf.mxu0 }
0x2167   :  { %v9575_v20 = vadd.f32 %v9574_v43, %v9490_v19 }
0x2175   :  { %v9731_v51 = vpop.f32.mrf.mxu1 }
0x2177   :  { %v16769_v24 = vpop.f32.mrf.mxu1 }
0x2179   :  { %v9655_v44 = vpop.f32.mrf.mxu0 }
0x217a   :  { %v9050_v49 = vpop.xlane.xlu0 %9049  ;;  %16772 = vmatprep.mubr.msk.f32.mxu0 %vm251_vm5, %v9655_v44 }
0x217b   :  { %17368 = vrcp.f32 %v9050_v49  ;;  %v16764_v50 = vpop.f32.mrf.mxu0  ;;  %16773 = vmatmul.mubr.msk.f32.vlgmr.msra.gmra.mxu0 %vm251_vm5, %v9731_v51  ;;  %v8973_v51 = vsel %vm1497_vm6, %v18953_v23, -inf }
0x217c   :  { %16782 = vmatprep.mubr.msk.f32.mxu0 %vm17508_vm4, %v17507_v6 }
0x217e   :  { %v9900_v53 = vpop.permute.xlu0 %9899 }
0x217f   :  { %16781 = vmatpush3.msra.mxu0 %v9900_v53 }
0x2180   :  { %16790 = vmatprep.subr.mxu0 %v17507_v6 }
0x2188   :  { %v17369_v22 = vpop.eup %17368 }
0x2189   :  { %v9098_v61 = vmul.f32 %v17369_v22, %v17365_v52 }
0x218b   :  { %16783 = vmatmul.mubr.msk.f32.vlgmr.msra.gmra.mxu0 %vm1497_vm6, %v9098_v61 }
0x218c   :  { %16792 = vmatprep.mubr.msk.f32.mxu0 %vm17508_vm4, %v17507_v6 }
0x21aa   :  { %v9895_v26 = vpop.f32.mrf.mxu1 }
0x21ab   :  { %v9053_v54 = vpop.xlane.xlu1 %9052  ;;  %16787 = vmatprep.mubr.msk.f32.mxu1 %vm251_vm5, %v9895_v26 }
0x21ac   :  { %17370 = vrcp.f32 %v9053_v54  ;;  %v16779_v56 = vpop.f32.mrf.mxu1 }
0x21af   :  { %v8960_v57 = vpop.xlane.xlu0 %8959  ;;  %v10064_v58 = vpop.permute.xlu1 %10063 }
0x21b0   :  { %v8988_v47 = vsub.f32 %v18937_v31, %v8960_v57  ;;  %16791 = vmatpush3.msra.mxu0 %v10064_v58 }
0x21b1   :  { %16800 = vmatprep.subr.msk.mxu0 %vm1987_vm7, %v15441_v39 }
0x21b2   :  { %v9013_v0 = vmul.f32 1.442695, %v8988_v47 }
0x21b4   :  { %17372 = vpow2.f32 %v9013_v0 }
0x21b9   :  { %v17371_v18 = vpop.eup %17370 }
0x21ba   :  { %v9099_v4 = vmul.f32 %v17371_v18, %v17367_v38 }
0x21bc   :  { %16793 = vmatmul.mubr.msk.f32.vlgmr.msra.gmra.mxu0 %vm1497_vm6, %v9099_v4 }
0x21bd   :  { %16801 = vmatpush3.msk.msra.mxu0 %vm1987_vm7, %v15441_v39 }
0x21be   :  { %16810 = vmatprep.subr.mxu0 %v17507_v6 }
0x21c1   :  { %v17373_v15 = vpop.eup %17372 }
0x21c2   :  { %v9054_v31 = vsel %vm1497_vm6, %v17373_v15, 0.0 }
0x21c3   :  { %9055 = vadd.xlane.f32.xlu0 %v9054_v31  ;;  %v15447_v31 = vld [vmem:[%s19771_s4 + $0x54] sm:$0xf] }
0x21d9   :  { %10139 = vrot.lane.b32.xlu0 %v18731_v48, %s19852_s23 }
0x21e0   :  { %v8963_v9 = vpop.xlane.xlu1 %8962 }
0x21e1   :  { %v8989_v7 = vsub.f32 %v18944_v36, %v8963_v9 }
0x21e3   :  { %v9015_v10 = vmul.f32 1.442695, %v8989_v7 }
0x21e5   :  { %17374 = vpow2.f32 %v9015_v10 }
0x21f2   :  { %v17375_v5 = vpop.eup %17374 }
0x21f3   :  { %v9057_v12 = vsel %vm1497_vm6, %v17375_v5, 0.0 }
0x21f4   :  { %9058 = vadd.xlane.f32.xlu1 %v9057_v12 }
0x21f8   :  { %8965 = vmax.xlane.f32.xlu0 %v8964_v13 }
0x2205   :  { %10303 = vrot.lane.b32.xlu1 %v18735_v59, %s19853_s21 }
0x2229   :  { %8968 = vmax.xlane.f32.xlu1 %v8967_v14  ;;  %v8976_v14 = vsel %vm1497_vm6, %v18951_v1, -inf }
0x223b   :  { %v16774_v16 = vpop.f32.mrf.mxu0 }
0x223c   :  { %v9822_v3 = vadd.f32 %v16774_v16, %v9580_v8 }
0x223d   :  { %v9812_v36 = vpop.f32.mrf.mxu0 }
0x223e   :  { %v9821_v17 = vadd.f32 %v9812_v36, %v9575_v20  ;;  %v8970_v20 = vsel %vm1497_vm6, %v18946_v37, -inf }
0x224b   :  { %v9971_v62 = vpop.f32.mrf.mxu0 }
0x224c   :  { %v9056_v2 = vpop.xlane.xlu0 %9055  ;;  %16788 = vmatmul.mubr.msk.f32.vlgmr.msra.gmra.mxu1 %vm251_vm5, %v9971_v62 }
0x224d   :  { %17376 = vrcp.f32 %v9056_v2  ;;  %v16784_v21 = vpop.f32.mrf.mxu0  ;;  %16797 = vmatprep.mubr.msk.f32.mxu1 %vm17508_vm4, %v17507_v6 }
0x2250   :  { %v10140_v27 = vpop.permute.xlu0 %10139 }
0x2251   :  { %16796 = vmatpush3.msra.mxu1 %v10140_v27 }
0x2252   :  { %16805 = vmatprep.subr.mxu1 %v17507_v6 }
0x225a   :  { %v17377_v55 = vpop.eup %17376 }
0x225b   :  { %v9100_v29 = vmul.f32 %v17377_v55, %v17373_v15 }
0x225d   :  { %16798 = vmatmul.mubr.msk.f32.vlgmr.msra.gmra.mxu1 %vm1497_vm6, %v9100_v29 }
0x225e   :  { %16807 = vmatprep.mubr.msk.f32.mxu1 %vm17508_vm4, %v17507_v6 }
0x227c   :  { %v10135_v30 = vpop.f32.mrf.mxu0 }
0x227d   :  { %v9059_v52 = vpop.xlane.xlu1 %9058  ;;  %16802 = vmatprep.mubr.msk.f32.mxu0 %vm251_vm5, %v10135_v30 }
0x227e   :  { %17378 = vrcp.f32 %v9059_v52  ;;  %v16794_v63 = vpop.f32.mrf.mxu0 }
0x2281   :  { %v8966_v33 = vpop.xlane.xlu0 %8965  ;;  %v10304_v45 = vpop.permute.xlu1 %10303 }
0x2282   :  { %v8990_v34 = vsub.f32 %v18941_v32, %v8966_v33  ;;  %16806 = vmatpush3.msra.mxu1 %v10304_v45 }
0x2283   :  { %16815 = vmatprep.subr.msk.mxu1 %vm1987_vm7, %v15447_v31 }
0x2284   :  { %v9017_v35 = vmul.f32 1.442695, %v8990_v34 }
0x2286   :  { %17380 = vpow2.f32 %v9017_v35 }
0x228b   :  { %v17379_v38 = vpop.eup %17378 }
0x228c   :  { %v9101_v11 = vmul.f32 %v17379_v38, %v17375_v5  ;;  %v15453_v38 = vld [vmem:[%s19771_s4 + $0x58] sm:$0xf] }
0x228e   :  { %16808 = vmatmul.mubr.msk.f32.vlgmr.msra.gmra.mxu1 %vm1497_vm6, %v9101_v11 }
0x228f   :  { %16816 = vmatpush3.msk.msra.mxu1 %vm1987_vm7, %v15447_v31 }
0x2290   :  { %16825 = vmatprep.subr.mxu1 %v17507_v6 }
0x2293   :  { %v17381_v40 = vpop.eup %17380 }
0x2294   :  { %v9060_v32 = vsel %vm1497_vm6, %v17381_v40, 0.0 }
0x2295   :  { %9061 = vadd.xlane.f32.xlu0 %v9060_v32 }
0x22ab   :  { %10379 = vrot.lane.b32.xlu0 %v18731_v48, %s19853_s21 }
0x22b2   :  { %v8969_v60 = vpop.xlane.xlu1 %8968 }
0x22b3   :  { %v8991_v41 = vsub.f32 %v18949_v42, %v8969_v60 }
0x22b5   :  { %v9019_v8 = vmul.f32 1.442695, %v8991_v41 }
0x22b7   :  { %17382 = vpow2.f32 %v9019_v8 }
0x22c4   :  { %v17383_v43 = vpop.eup %17382 }
0x22c5   :  { %v9063_v19 = vsel %vm1497_vm6, %v17383_v43, 0.0 }
0x22c6   :  { %9064 = vadd.xlane.f32.xlu1 %v9063_v19 }
0x22ca   :  { %8971 = vmax.xlane.f32.xlu0 %v8970_v20 }
0x22d7   :  { %10543 = vrot.lane.b32.xlu1 %v18735_v59, %s19854_s19 }
0x22fb   :  { %8974 = vmax.xlane.f32.xlu1 %v8973_v51 }
0x230c   :  { %v16789_v24 = vpop.f32.mrf.mxu1 }
0x230d   :  { %v10062_v44 = vadd.f32 %v16789_v24, %v9822_v3 }
0x230e   :  { %v10052_v42 = vpop.f32.mrf.mxu1 }
0x230f   :  { %v10061_v49 = vadd.f32 %v10052_v42, %v9821_v17 }
0x231d   :  { %v10211_v50 = vpop.f32.mrf.mxu1 }
0x231e   :  { %v9062_v53 = vpop.xlane.xlu0 %9061  ;;  %16803 = vmatmul.mubr.msk.f32.vlgmr.msra.gmra.mxu0 %vm251_vm5, %v10211_v50 }
0x231f   :  { %17384 = vrcp.f32 %v9062_v53  ;;  %v16799_v22 = vpop.f32.mrf.mxu1  ;;  %16812 = vmatprep.mubr.msk.f32.mxu0 %vm17508_vm4, %v17507_v6 }
0x2322   :  { %v10380_v61 = vpop.permute.xlu0 %10379 }
0x2323   :  { %16811 = vmatpush3.msra.mxu0 %v10380_v61 }
0x2324   :  { %16820 = vmatprep.subr.mxu0 %v17507_v6 }
0x232c   :  { %v17385_v26 = vpop.eup %17384 }
0x232d   :  { %v9102_v54 = vmul.f32 %v17385_v26, %v17381_v40 }
0x232f   :  { %16813 = vmatmul.mubr.msk.f32.vlgmr.msra.gmra.mxu0 %vm1497_vm6, %v9102_v54 }
0x2330   :  { %16822 = vmatprep.mubr.msk.f32.mxu0 %vm17508_vm4, %v17507_v6 }
0x234e   :  { %v10375_v56 = vpop.f32.mrf.mxu1 }
0x234f   :  { %v9065_v57 = vpop.xlane.xlu1 %9064  ;;  %16817 = vmatprep.mubr.msk.f32.mxu1 %vm251_vm5, %v10375_v56 }
0x2350   :  { %17386 = vrcp.f32 %v9065_v57  ;;  %v16809_v58 = vpop.f32.mrf.mxu1 }
0x2353   :  { %v8972_v47 = vpop.xlane.xlu0 %8971  ;;  %v10544_v0 = vpop.permute.xlu1 %10543 }
0x2354   :  { %v8992_v18 = vsub.f32 %v18946_v37, %v8972_v47  ;;  %16821 = vmatpush3.msra.mxu0 %v10544_v0 }
0x2355   :  { %16830 = vmatprep.subr.msk.mxu0 %vm1987_vm7, %v15453_v38 }
0x2356   :  { %v9021_v4 = vmul.f32 1.442695, %v8992_v18 }
0x2358   :  { %17388 = vpow2.f32 %v9021_v4 }
0x235d   :  { %v17387_v28 = vpop.eup %17386 }
0x235e   :  { %v9103_v15 = vmul.f32 %v17387_v28, %v17383_v43 }
0x2360   :  { %16823 = vmatmul.mubr.msk.f32.vlgmr.msra.gmra.mxu0 %vm1497_vm6, %v9103_v15 }
0x2361   :  { %16831 = vmatpush3.msk.msra.mxu0 %vm1987_vm7, %v15453_v38  ;;  %v15465_v38 = vld [vmem:[%s19772_s5 + $0x2] ss:$0 sm:$0xff] }
0x2362   :  { %16840 = vmatprep.subr.mxu0 %v17507_v6 }
0x2365   :  { %v17389_v9 = vpop.eup %17388 }
0x2366   :  { %v9066_v37 = vsel %vm1497_vm6, %v17389_v9, 0.0 }
0x2367   :  { %9067 = vadd.xlane.f32.xlu0 %v9066_v37 }
0x237d   :  { %10619 = vrot.lane.b32.xlu0 %v18731_v48, %s19854_s19 }
0x2384   :  { %v8975_v7 = vpop.xlane.xlu1 %8974 }
0x2385   :  { %v8993_v10 = vsub.f32 %v18953_v23, %v8975_v7 }
0x2387   :  { %v9023_v5 = vmul.f32 1.442695, %v8993_v10 }
0x2389   :  { %17390 = vpow2.f32 %v9023_v5  ;;  %v15470_v5 = vld [vmem:[%s19774_s7 + $0x58] sm:$0xff] }
0x2396   :  { %v17391_v12 = vpop.eup %17390 }
0x2397   :  { %v9069_v13 = vsel %vm1497_vm6, %v17391_v12, 0.0 }
0x2398   :  { %9070 = vadd.xlane.f32.xlu1 %v9069_v13  ;;  %v15468_v13 = vld [vmem:[%s19774_s7 + $0x48] sm:$0xff] }
0x239c   :  { %8977 = vmax.xlane.f32.xlu0 %v8976_v14  ;;  %v15467_v14 = vld [vmem:[%s19774_s7 + $0x40] sm:$0xff] }
0x23a9   :  { %10783 = vrot.lane.b32.xlu1 %v18735_v59, %s19855_s18 }
0x23de   :  { %v16804_v16 = vpop.f32.mrf.mxu0 }
0x23df   :  { %v10302_v3 = vadd.f32 %v16804_v16, %v10062_v44  ;;  %v15459_v44 = vld [vmem:[%s19771_s4 + $0x5c] sm:$0xf] }
0x23e0   :  { %v10292_v36 = vpop.f32.mrf.mxu0  ;;  %v15490_v16 = vld [vmem:[%s19776_s9 + $0x178] sm:$0xff] }
0x23e1   :  { %v10301_v17 = vadd.f32 %v10292_v36, %v10061_v49  ;;  %v15488_v36 = vld [vmem:[%s19776_s9 + $0x168] sm:$0xff] }
0x23ef   :  { %v10451_v62 = vpop.f32.mrf.mxu0 }
0x23f0   :  { %v9068_v2 = vpop.xlane.xlu0 %9067  ;;  %16818 = vmatmul.mubr.msk.f32.vlgmr.msra.gmra.mxu1 %vm251_vm5, %v10451_v62  ;;  %v15486_v62 = vld [vmem:[%s19776_s9 + $0x158] sm:$0xff] }
0x23f1   :  { %17392 = vrcp.f32 %v9068_v2  ;;  %v16814_v23 = vpop.f32.mrf.mxu0  ;;  %16827 = vmatprep.mubr.msk.f32.mxu1 %vm17508_vm4, %v17507_v6  ;;  %v15485_v2 = vld [vmem:[%s19776_s9 + $0x150] sm:$0xff] }
0x23f2   :  { %v15484_v23 = vld [vmem:[%s19776_s9 + $0x148] sm:$0xff] }
0x23f4   :  { %v10620_v21 = vpop.permute.xlu0 %10619 }
0x23f5   :  { %16826 = vmatpush3.msra.mxu1 %v10620_v21  ;;  %v15483_v21 = vld [vmem:[%s19776_s9 + $0x140] sm:$0xff] }
0x23f6   :  { %16835 = vmatprep.subr.mxu1 %v17507_v6 }
0x23fe   :  { %v17393_v27 = vpop.eup %17392 }
0x23ff   :  { %v9104_v55 = vmul.f32 %v17393_v27, %v17389_v9  ;;  %v15482_v27 = vld [vmem:[%s19776_s9 + $0x138] sm:$0xff] }
0x2401   :  { %16828 = vmatmul.mubr.msk.f32.vlgmr.msra.gmra.mxu1 %vm1497_vm6, %v9104_v55  ;;  %v15481_v55 = vld [vmem:[%s19776_s9 + $0x130] sm:$0xff] }
0x2402   :  { %16837 = vmatprep.mubr.msk.f32.mxu1 %vm17508_vm4, %v17507_v6 }
0x2420   :  { %v10615_v59 = vpop.f32.mrf.mxu0 }
0x2421   :  { %v9071_v29 = vpop.xlane.xlu1 %9070  ;;  %16832 = vmatprep.mubr.msk.f32.mxu0 %vm251_vm5, %v10615_v59  ;;  %v15480_v59 = vld [vmem:[%s19776_s9 + $0x128] sm:$0xff] }
0x2422   :  { %17394 = vrcp.f32 %v9071_v29  ;;  %v16824_v30 = vpop.f32.mrf.mxu0  ;;  %v15479_v29 = vld [vmem:[%s19776_s9 + $0x120] sm:$0xff] }
0x2425   :  { %v8978_v52 = vpop.xlane.xlu0 %8977  ;;  %v10784_v63 = vpop.permute.xlu1 %10783 }
0x2426   :  { %v8994_v33 = vsub.f32 %v18951_v1, %v8978_v52  ;;  %16836 = vmatpush3.msra.mxu1 %v10784_v63 }
0x2427   :  { %16845 = vmatprep.subr.msk.mxu1 %vm1987_vm7, %v15459_v44 }
0x2428   :  { %v9025_v45 = vmul.f32 1.442695, %v8994_v33 }
0x242a   :  { %17396 = vpow2.f32 %v9025_v45 }
0x242f   :  { %v17395_v34 = vpop.eup %17394 }
0x2430   :  { %v9105_v35 = vmul.f32 %v17395_v34, %v17391_v12  ;;  %v15469_v12 = vld [vmem:[%s19774_s7 + $0x50] sm:$0xff] }
0x2432   :  { %16838 = vmatmul.mubr.msk.f32.vlgmr.msra.gmra.mxu1 %vm1497_vm6, %v9105_v35 }
0x2433   :  { %16846 = vmatpush3.msk.msra.mxu1 %vm1987_vm7, %v15459_v44 }
0x2434   :  { %16861 = vmatprep.subr.mxu1 %v15490_v16 }
0x2437   :  { %v17397_v11 = vpop.eup %17396 }
0x2438   :  { %v9072_v1 = vsel %vm1497_vm6, %v17397_v11, 0.0 }
0x2439   :  { %9073 = vadd.xlane.f32.xlu0 %v9072_v1 }
0x244f   :  { %10859 = vrot.lane.b32.xlu0 %v18731_v48, %s19855_s18  ;;  %s19873_s18 = smov 44  }
0x24b0   :  { %v16819_v39 = vpop.f32.mrf.mxu1 }
0x24b1   :  { %v10542_v40 = vadd.f32 %v16819_v39, %v10302_v3  ;;  %v15489_v3 = vld [vmem:[%s19776_s9 + $0x170] sm:$0xff] }
0x24b2   :  { %v10532_v32 = vpop.f32.mrf.mxu1 }
0x24b3   :  { %v10541_v60 = vadd.f32 %v10532_v32, %v10301_v17  ;;  %v15487_v17 = vld [vmem:[%s19776_s9 + $0x160] sm:$0xff] }
0x24b4   :  { %v15466_v32 = vld [vmem:[%s19773_s6 + $0x2] ss:$0 sm:$0xff] }
0x24c1   :  { %v10691_v41 = vpop.f32.mrf.mxu1 }
0x24c2   :  { %v9074_v8 = vpop.xlane.xlu0 %9073  ;;  %16833 = vmatmul.mubr.msk.f32.vlgmr.msra.gmra.mxu0 %vm251_vm5, %v10691_v41 }
0x24c3   :  { %17398 = vrcp.f32 %v9074_v8  ;;  %v16829_v43 = vpop.f32.mrf.mxu1  ;;  %16842 = vmatprep.mubr.msk.f32.mxu0 %vm17508_vm4, %v17507_v6 }
0x24c4   :  { %v15478_v43 = vld [vmem:[%s19776_s9 + $0x118] sm:$0xff] }
0x24c6   :  { %v10860_v19 = vpop.permute.xlu0 %10859 }
0x24c7   :  { %16841 = vmatpush3.msra.mxu0 %v10860_v19  ;;  %v15477_v19 = vld [vmem:[%s19776_s9 + $0x110] sm:$0xff] }
0x24c8   :  { %16850 = vmatprep.subr.mxu0 %v15470_v5 }
0x24d0   :  { %v17399_v20 = vpop.eup %17398 }
0x24d1   :  { %v9106_v51 = vmul.f32 %v17399_v20, %v17397_v11  ;;  %v15476_v20 = vld [vmem:[%s19776_s9 + $0x108] sm:$0xff] }
0x24d3   :  { %16843 = vmatmul.mubr.msk.f32.vlgmr.msra.gmra.mxu0 %vm1497_vm6, %v9106_v51  ;;  %v15475_v51 = vld [vmem:[%s19776_s9 + $0x100] sm:$0xff] }
0x24d4   :  { %16851 = vmatpush3.msra.mxu0 %v15470_v5  ;;  %v15499_v5 = vld [vmem:[%s19770_s3 + $0x70] sm:$0xff] }
0x24d5   :  { %16852 = vmatprep.subr.mxu0 %v15469_v12 }
0x24d6   :  { %16853 = vmatpush3.msra.mxu0 %v15469_v12  ;;  %v15498_v12 = vld [vmem:[%s19770_s3 + $0x68] sm:$0xff] }
0x24d7   :  { %16854 = vmatprep.subr.mxu0 %v15468_v13 }
0x24d8   :  { %16855 = vmatpush3.msra.mxu0 %v15468_v13  ;;  %v15497_v13 = vld [vmem:[%s19770_s3 + $0x60] sm:$0xff] }
0x24d9   :  { %16856 = vmatprep.subr.mxu0 %v15467_v14 }
0x24da   :  { %16857 = vmatpush3.msra.mxu0 %v15467_v14 }
0x24f2   :  { %v10855_v48 = vpop.f32.mrf.mxu1 }
0x24f3   :  { %16847 = vmatprep.mubr.msk.f32.mxu1 %vm251_vm5, %v10855_v48  ;;  %v15472_v48 = vld [vmem:[%s19775_s8 + $0x2] ss:$0 sm:$0xff] }
0x24f4   :  { %v16839_v24 = vpop.f32.mrf.mxu1 }
0x2582   :  { %v16834_v42 = vpop.f32.mrf.mxu0 }
0x2583   :  { %v10782_v49 = vadd.f32 %v16834_v42, %v10542_v40 }
0x2584   :  { %v10772_v50 = vpop.f32.mrf.mxu0 }
0x2585   :  { %v10781_v53 = vadd.f32 %v10772_v50, %v10541_v60 }
0x2593   :  { %v10931_v22 = vpop.f32.mrf.mxu0 }
0x2594   :  { %16848 = vmatmul.mubr.msk.f32.vlgmr.msra.gmra.mxu1 %vm251_vm5, %v10931_v22  ;;  %v15492_v22 = vld [vmem:[%s19777_s10 + $0x2] ss:$0 sm:$0xff] }
0x2595   :  { %v16844_v61 = vpop.f32.mrf.mxu0  ;;  %16862 = vmatpush3.msra.mxu1 %v15490_v16 }
0x2596   :  { %16863 = vmatprep.subr.mxu1 %v15489_v3 }
0x2597   :  { %16864 = vmatpush3.msra.mxu1 %v15489_v3 }
0x2598   :  { %16865 = vmatprep.subr.mxu1 %v15488_v36 }
0x2599   :  { %16866 = vmatpush3.msra.mxu1 %v15488_v36 }
0x259a   :  { %16867 = vmatprep.subr.mxu1 %v15487_v17 }
0x259b   :  { %16868 = vmatpush3.msra.mxu1 %v15487_v17 }
0x259c   :  { %16869 = vmatprep.subr.mxu1 %v15486_v62 }
0x259d   :  { %16870 = vmatpush3.msra.mxu1 %v15486_v62 }
0x259e   :  { %16871 = vmatprep.subr.mxu1 %v15485_v2 }
0x259f   :  { %16872 = vmatpush3.msra.mxu1 %v15485_v2 }
0x25a0   :  { %16873 = vmatprep.subr.mxu1 %v15484_v23 }
0x25a1   :  { %16874 = vmatpush3.msra.mxu1 %v15484_v23  ;;  %v15495_v23 = vld [vmem:[%s19778_s11 + $0x2] ss:$0 sm:$0xff] }
0x25a2   :  { %16875 = vmatprep.subr.mxu1 %v15483_v21 }
0x25a3   :  { %16876 = vmatpush3.msra.mxu1 %v15483_v21 }
0x25a4   :  { %16877 = vmatprep.subr.mxu1 %v15482_v27 }
0x25a5   :  { %16878 = vmatpush3.msra.mxu1 %v15482_v27 }
0x25a6   :  { %16879 = vmatprep.subr.mxu1 %v15481_v55 }
0x25a7   :  { %16880 = vmatpush3.msra.mxu1 %v15481_v55 }
0x25a8   :  { %16881 = vmatprep.subr.mxu1 %v15480_v59 }
0x25a9   :  { %16882 = vmatpush3.msra.mxu1 %v15480_v59 }
0x25aa   :  { %16883 = vmatprep.subr.mxu1 %v15479_v29 }
0x25ab   :  { %16884 = vmatpush3.msra.mxu1 %v15479_v29  ;;  %v15496_v29 = vld [vmem:[%s19779_s12 + $0x2] ss:$0 sm:$0xff] }
0x25ac   :  { %16885 = vmatprep.subr.mxu1 %v15478_v43 }
0x25ad   :  { %16886 = vmatpush3.msra.mxu1 %v15478_v43 }
0x25ae   :  { %16887 = vmatprep.subr.mxu1 %v15477_v19 }
0x25af   :  { %16888 = vmatpush3.msra.mxu1 %v15477_v19 }
0x25b0   :  { %16889 = vmatprep.subr.mxu1 %v15476_v20 }
0x25b1   :  { %16890 = vmatpush3.msra.mxu1 %v15476_v20 }
0x25b2   :  { %16891 = vmatprep.subr.mxu1 %v15475_v51 }
0x25b3   :  { %16892 = vmatpush3.msra.mxu1 %v15475_v51 }
0x25b4   :  { %16932 = vmatprep.subr.mxu1 %v17507_v6 }
0x2654   :  { %v16849_v26 = vpop.f32.mrf.mxu1 }
0x2655   :  { %v11022_v54 = vadd.f32 %v16849_v26, %v10782_v49 }
0x2656   :  { %v11012_v56 = vpop.f32.mrf.mxu1 }
0x2657   :  { %v11024_v57 = vadd.f32 %v11022_v54, %v18723_v25  ;;  %v11021_v58 = vadd.f32 %v11012_v56, %v10781_v53 }
0x2659   :  { %v11023_v47 = vadd.f32 %v11021_v58, %v18721_v46  ;;  %v11032_v0 = vsel %vm164_vm3, %v11024_v57, 0.0 }
0x265a   :  { %11033 = vadd.xlane.f32.xlu0 %v11032_v0 }
0x265b   :  { %v11029_v18 = vsel %vm164_vm3, %v11023_v47, 0.0 }
0x265c   :  { %11030 = vadd.xlane.f32.xlu1 %v11029_v18 }
0x26e3   :  { %v11034_v4 = vpop.xlane.xlu0 %11033 }
0x26e4   :  { %v11036_v28 = vmul.f32 0.03125, %v11034_v4 }
0x26e5   :  { %v11031_v15 = vpop.xlane.xlu1 %11030 }
0x26e6   :  { %v19125_v31 = vsub.f32 %v11024_v57, %v11036_v28  ;;  %v11035_v9 = vmul.f32 0.03125, %v11031_v15 }
0x26e8   :  { %v19127_v37 = vsub.f32 %v11023_v47, %v11035_v9  ;;  %v11040_v25 = vmul.f32 %v19125_v31, %v19125_v31 }
0x26ea   :  { %v11044_v7 = vsel %vm164_vm3, %v11040_v25, 0.0  ;;  %v11039_v46 = vmul.f32 %v19127_v37, %v19127_v37 }
0x26eb   :  { %11045 = vadd.xlane.f32.xlu0 %v11044_v7 }
0x26ec   :  { %v11041_v10 = vsel %vm164_vm3, %v11039_v46, 0.0 }
0x26ed   :  { %11042 = vadd.xlane.f32.xlu1 %v11041_v10  ;;  %v15500_v10 = vld [vmem:[%s19770_s3 + $0x78] sm:$0xff] }
0x26ee   :  { %16896 = vmatprep.subr.mxu0 %v15500_v10 }
0x2774   :  { %v11046_v30 = vpop.xlane.xlu0 %11045 }
0x2775   :  { %v11048_v52 = vmul.f32 0.03125, %v11046_v30 }
0x2776   :  { %v11043_v63 = vpop.xlane.xlu1 %11042 }
0x2777   :  { %v11050_v33 = vadd.f32 1e-05, %v11048_v52  ;;  %v11047_v45 = vmul.f32 0.03125, %v11043_v63 }
0x2779   :  { %17400 = vrsqrt.f32 %v11050_v33  ;;  %v11049_v34 = vadd.f32 1e-05, %v11047_v45 }
0x277b   :  { %17402 = vrsqrt.f32 %v11049_v34 }
0x2786   :  { %v17401_v35 = vpop.eup %17400 }
0x2787   :  { %v11054_v11 = vmul.f32 %v17401_v35, %v19125_v31 }
0x2788   :  { %v17403_v1 = vpop.eup %17402 }
0x2789   :  { %v11053_v39 = vmul.f32 %v17403_v1, %v19127_v37  ;;  %v11062_v40 = vmul.f32 %v15465_v38, %v11054_v11 }
0x278b   :  { %v11061_v60 = vmul.f32 %v15465_v38, %v11053_v39  ;;  %v11070_v8 = vadd.f32 %v15466_v32, %v11062_v40 }
0x278d   :  { %v11069_v41 = vadd.f32 %v15466_v32, %v11061_v60 }
0x278f   :  { %16858 = vmatprep.mubr.msk.f32.mxu0 %vm164_vm3, %v11069_v41 }
0x2790   :  { %16859 = vmatmul.mubr.msk.f32.vlgmr.msra.gmra.mxu0 %vm164_vm3, %v11070_v8 }
0x2791   :  { %16897 = vmatpush3.msra.mxu0 %v15500_v10 }
0x2792   :  { %16898 = vmatprep.subr.mxu0 %v15499_v5 }
0x2793   :  { %16899 = vmatpush3.msra.mxu0 %v15499_v5 }
0x2794   :  { %16900 = vmatprep.subr.mxu0 %v15498_v12 }
0x2795   :  { %16901 = vmatpush3.msra.mxu0 %v15498_v12 }
0x2796   :  { %16902 = vmatprep.subr.mxu0 %v15497_v13 }
0x2797   :  { %16903 = vmatpush3.msra.mxu0 %v15497_v13 }
0x2798   :  { %16907 = vmatprep.subr.mxu0 %v17507_v6 }
0x2850   :  { %v16860_v24 = vpop.f32.mrf.mxu0 }
0x2851   :  { %v11162_v44 = vadd.f32 %v16860_v24, %v15472_v48 }
0x2852   :  { %v11156_v42 = vpop.f32.mrf.mxu0 }
0x2853   :  { %v11157_v49 = vadd.f32 %v15472_v48, %v11156_v42  ;;  %v11166_v53 = vmax.f32 %v11162_v44, 0.0 }
0x2855   :  { %v11165_v50 = vmax.f32 %v11157_v49, 0.0 }
0x2857   :  { %16893 = vmatprep.mubr.f32.mxu1 %v11165_v50 }
0x2858   :  { %16894 = vmatmul.mubr.f32.vlgmr.msra.gmra.mxu1 %v11166_v53 }
0x2859   :  { %16934 = vmatprep.mubr.msk.f32.mxu1 %vm17508_vm4, %v17507_v6 }
0x2918   :  { %v16895_v61 = vpop.f32.mrf.mxu1 }
0x2919   :  { %v11264_v26 = vadd.f32 %v16895_v61, %v15492_v22 }
0x291a   :  { %v11258_v54 = vpop.f32.mrf.mxu1 }
0x291b   :  { %v11268_v56 = vadd.f32 %v11264_v26, %v11070_v8  ;;  %v11259_v57 = vadd.f32 %v15492_v22, %v11258_v54 }
0x291d   :  { %v11267_v58 = vadd.f32 %v11259_v57, %v11069_v41  ;;  %v11276_v47 = vsel %vm164_vm3, %v11268_v56, 0.0 }
0x291e   :  { %11277 = vadd.xlane.f32.xlu0 %v11276_v47 }
0x291f   :  { %v11273_v0 = vsel %vm164_vm3, %v11267_v58, 0.0 }
0x2920   :  { %11274 = vadd.xlane.f32.xlu1 %v11273_v0 }
0x29a7   :  { %v11278_v18 = vpop.xlane.xlu0 %11277 }
0x29a8   :  { %v11280_v4 = vmul.f32 0.03125, %v11278_v18 }
0x29a9   :  { %v11275_v28 = vpop.xlane.xlu1 %11274 }
0x29aa   :  { %v11282_v15 = vsub.f32 %v11268_v56, %v11280_v4  ;;  %v11279_v31 = vmul.f32 0.03125, %v11275_v28 }
0x29ac   :  { %v11281_v9 = vsub.f32 %v11267_v58, %v11279_v31  ;;  %v11284_v37 = vmul.f32 %v11282_v15, %v11282_v15 }
0x29ae   :  { %v11288_v25 = vsel %vm164_vm3, %v11284_v37, 0.0  ;;  %v11283_v7 = vmul.f32 %v11281_v9, %v11281_v9 }
0x29af   :  { %11289 = vadd.xlane.f32.xlu0 %v11288_v25 }
0x29b0   :  { %v11285_v46 = vsel %vm164_vm3, %v11283_v7, 0.0 }
0x29b1   :  { %11286 = vadd.xlane.f32.xlu1 %v11285_v46 }
0x2a38   :  { %v11290_v14 = vpop.xlane.xlu0 %11289 }
0x2a39   :  { %v11292_v16 = vmul.f32 0.03125, %v11290_v14 }
0x2a3a   :  { %v11287_v3 = vpop.xlane.xlu1 %11286 }
0x2a3b   :  { %v11294_v36 = vadd.f32 1e-05, %v11292_v16  ;;  %v11291_v17 = vmul.f32 0.03125, %v11287_v3 }
0x2a3d   :  { %17404 = vrsqrt.f32 %v11294_v36  ;;  %v11293_v62 = vadd.f32 1e-05, %v11291_v17 }
0x2a3f   :  { %17406 = vrsqrt.f32 %v11293_v62 }
0x2a4a   :  { %v17405_v2 = vpop.eup %17404 }
0x2a4b   :  { %v11298_v21 = vmul.f32 %v17405_v2, %v11282_v15 }
0x2a4c   :  { %v17407_v27 = vpop.eup %17406 }
0x2a4d   :  { %v11297_v55 = vmul.f32 %v17407_v27, %v11281_v9  ;;  %v11306_v59 = vmul.f32 %v15495_v23, %v11298_v21 }
0x2a4f   :  { %v11305_v30 = vmul.f32 %v15495_v23, %v11297_v55  ;;  %v19239_v63 = vadd.f32 %v15496_v29, %v11306_v59 }
0x2a51   :  { %v19237_v52 = vadd.f32 %v15496_v29, %v11305_v30 }
0x2a53   :  { %16904 = vmatprep.mubr.msk.f32.mxu0 %vm164_vm3, %v19237_v52 }
0x2a54   :  { %16905 = vmatmul.mubr.msk.f32.vlgmr.msra.gmra.mxu0 %vm164_vm3, %v19239_v63 }
0x2a55   :  { %16909 = vmatprep.mubr.msk.f32.mxu0 %vm17508_vm4, %v17507_v6 }
0x2b14   :  { %v19247_v33 = vpop.f32.mrf.mxu0 }
0x2b15   :  { %11482 = vrot.lane.b32.xlu0 %v19247_v33, %s19856_s15  ;;  %v19269_v35 = vmul.f32 0.5, %v19247_v33 }
0x2b16   :  { %v19251_v45 = vpop.f32.mrf.mxu0 }
0x2b17   :  { %11404 = vrot.lane.b32.xlu1 %v19251_v45, %s19856_s15  ;;  %v19262_v34 = vmul.f32 0.5, %v19251_v45  ;;  %s19866_s15 = smov 84  }
0x2b19   :  { %11639 = vrot.lane.b32.xlu0 %v19247_v33, %s19857_s16 }
0x2b1b   :  { %11561 = vrot.lane.b32.xlu1 %v19251_v45, %s19857_s16  ;;  %s19867_s16 = smov 116  }
0x2b1d   :  { %11717 = vrot.lane.b32.xlu0 %v19251_v45, %s19858_s13 }
0x2b1f   :  { %11559 = vrot.lane.b32.xlu1 %v19262_v34, %s19859_s14 }
0x2b21   :  { %11715 = vrot.lane.b32.xlu0 %v19262_v34, %s19860_s0 }
0x2b23   :  { %11637 = vrot.lane.b32.xlu1 %v19269_v35, %s19859_s14  ;;  %s19869_s14 = smov 100  }
0x2b25   :  { %11873 = vrot.lane.b32.xlu0 %v19251_v45, %s19866_s15 }
0x2b27   :  { %11795 = vrot.lane.b32.xlu1 %v19247_v33, %s19858_s13  ;;  %s19868_s13 = smov 68  }
0x2b29   :  { %11871 = vrot.lane.b32.xlu0 %v19262_v34, %s19867_s16 }
0x2b2b   :  { %11793 = vrot.lane.b32.xlu1 %v19269_v35, %s19860_s0  ;;  %s19870_s0 = smov 64  }
0x2b2f   :  { %11951 = vrot.lane.b32.xlu1 %v19247_v33, %s19866_s15 }
0x2b33   :  { %11949 = vrot.lane.b32.xlu1 %v19269_v35, %s19867_s16 }
0x2b87   :  { %v11483_v38 = vpop.permute.xlu0 %11482 }
0x2b89   :  { %v11405_v11 = vpop.permute.xlu1 %11404 }
0x2b8a   :  { %16908 = vmatpush3.xpose.msk.msra.mxu0 %vm251_vm5, %v11405_v11 }
0x2b8b   :  { %v11640_v1 = vpop.permute.xlu0 %11639  ;;  %16912 = vmatprep.subr.mxu0 %v17507_v6 }
0x2b8d   :  { %v11562_v39 = vpop.permute.xlu1 %11561  ;;  %16910 = vmatmul.mubr.msk.f32.vlgmr.msra.gmra.mxu0 %vm251_vm5, %v19262_v34 }
0x2b8e   :  { %16913 = vmatpush3.xpose.msk.msra.mxu0 %vm251_vm5, %v11483_v38  ;;  %16914 = vmatprep.mubr.msk.f32.mxu0 %vm17508_vm4, %v17507_v6 }
0x2b8f   :  { %v11718_v40 = vpop.permute.xlu0 %11717  ;;  %16917 = vmatprep.subr.mxu0 %v17507_v6 }
0x2b91   :  { %v11560_v32 = vpop.permute.xlu1 %11559  ;;  %16915 = vmatmul.mubr.msk.f32.vlgmr.msra.gmra.mxu0 %vm251_vm5, %v19269_v35 }
0x2b92   :  { %16918 = vmatpush3.xpose.msk.msra.mxu0 %vm251_vm5, %v11562_v39  ;;  %16919 = vmatprep.mubr.msk.f32.mxu0 %vm17508_vm4, %v17507_v6 }
0x2b93   :  { %16922 = vmatprep.subr.mxu0 %v17507_v6  ;;  %v11716_v60 = vpop.permute.xlu0 %11715 }
0x2b95   :  { %v11638_v41 = vpop.permute.xlu1 %11637  ;;  %16920 = vmatmul.mubr.msk.f32.vlgmr.msra.gmra.mxu0 %vm251_vm5, %v11560_v32 }
0x2b96   :  { %16923 = vmatpush3.xpose.msk.msra.mxu0 %vm251_vm5, %v11640_v1  ;;  %16924 = vmatprep.mubr.msk.f32.mxu0 %vm17508_vm4, %v17507_v6 }
0x2b97   :  { %16927 = vmatprep.subr.mxu0 %v17507_v6  ;;  %v11874_v43 = vpop.permute.xlu0 %11873 }
0x2b99   :  { %v11796_v8 = vpop.permute.xlu1 %11795  ;;  %16925 = vmatmul.mubr.msk.f32.vlgmr.msra.gmra.mxu0 %vm251_vm5, %v11638_v41 }
0x2b9a   :  { %16928 = vmatpush3.xpose.msk.msra.mxu0 %vm251_vm5, %v11718_v40  ;;  %16933 = vmatpush3.xpose.msk.msra.mxu1 %vm251_vm5, %v11796_v8 }
0x2b9b   :  { %16929 = vmatprep.mubr.msk.f32.mxu0 %vm17508_vm4, %v17507_v6  ;;  %16937 = vmatprep.subr.mxu0 %v17507_v6  ;;  %v11872_v20 = vpop.permute.xlu0 %11871 }
0x2b9c   :  { %16942 = vmatprep.subr.mxu1 %v17507_v6 }
0x2b9d   :  { %v11794_v19 = vpop.permute.xlu1 %11793  ;;  %16930 = vmatmul.mubr.msk.f32.vlgmr.msra.gmra.mxu0 %vm251_vm5, %v11716_v60 }
0x2b9e   :  { %16935 = vmatmul.mubr.msk.f32.vlgmr.msra.gmra.mxu1 %vm251_vm5, %v11794_v19  ;;  %16938 = vmatpush3.xpose.msk.msra.mxu0 %vm251_vm5, %v11874_v43 }
0x2b9f   :  { %16939 = vmatprep.mubr.msk.f32.mxu0 %vm17508_vm4, %v17507_v6  ;;  %16944 = vmatprep.mubr.msk.f32.mxu1 %vm17508_vm4, %v17507_v6 }
0x2ba0   :  { %16947 = vmatprep.subr.mxu0 %v17507_v6 }
0x2ba1   :  { %v11952_v51 = vpop.permute.xlu1 %11951  ;;  %16940 = vmatmul.mubr.msk.f32.vlgmr.msra.gmra.mxu0 %vm251_vm5, %v11872_v20 }
0x2ba2   :  { %16943 = vmatpush3.xpose.msk.msra.mxu1 %vm251_vm5, %v11952_v51  ;;  %16949 = vmatprep.mubr.msk.f32.mxu0 %vm17508_vm4, %v17507_v6 }
0x2ba3   :  { %16952 = vmatprep.subr.mxu1 %v17507_v6 }
0x2ba5   :  { %v11950_v48 = vpop.permute.xlu1 %11949 }
0x2ba6   :  { %16945 = vmatmul.mubr.msk.f32.vlgmr.msra.gmra.mxu1 %vm251_vm5, %v11950_v48 }
0x2ba7   :  { %16954 = vmatprep.mubr.msk.f32.mxu1 %vm17508_vm4, %v17507_v6 }
0x2c4d   :  { %v11477_v24 = vpop.f32.mrf.mxu0 }
0x2c4e   :  { %v12651_v44 = vsel %vm1497_vm6, %v11477_v24, -inf }
0x2c4f   :  { %12652 = vmax.xlane.f32.xlu0 %v12651_v44  ;;  %v16911_v42 = vpop.f32.mrf.mxu0 }
0x2c51   :  { %v11555_v49 = vpop.f32.mrf.mxu0 }
0x2c52   :  { %v12654_v50 = vsel %vm1497_vm6, %v11555_v49, -inf }
0x2c53   :  { %12655 = vmax.xlane.f32.xlu1 %v12654_v50  ;;  %v16916_v53 = vpop.f32.mrf.mxu0 }
0x2c55   :  { %v11633_v22 = vpop.f32.mrf.mxu0 }
0x2c56   :  { %v12657_v61 = vsel %vm1497_vm6, %v11633_v22, -inf }
0x2c57   :  { %12658 = vmax.xlane.f32.xlu0 %v12657_v61  ;;  %v16921_v26 = vpop.f32.mrf.mxu0 }
0x2c59   :  { %v11711_v54 = vpop.f32.mrf.mxu0 }
0x2c5a   :  { %v12660_v56 = vsel %vm1497_vm6, %v11711_v54, -inf }
0x2c5b   :  { %12661 = vmax.xlane.f32.xlu0 %v12660_v56  ;;  %v16926_v57 = vpop.f32.mrf.mxu0 }
0x2c5d   :  { %v19331_v58 = vpop.f32.mrf.mxu0 }
0x2c5e   :  { %v19333_v47 = vpop.f32.mrf.mxu1  ;;  %v12663_v48 = vsel %vm1497_vm6, %v19331_v58, -inf }
0x2c5f   :  { %v16931_v0 = vpop.f32.mrf.mxu0 }
0x2c60   :  { %v16936_v18 = vpop.f32.mrf.mxu1 }
0x2c61   :  { %v19335_v4 = vpop.f32.mrf.mxu0 }
0x2c62   :  { %v12669_v44 = vsel %vm1497_vm6, %v19335_v4, -inf }
0x2c63   :  { %v16941_v28 = vpop.f32.mrf.mxu0 }
0x2c64   :  { %12107 = vrot.lane.b32.xlu1 %v19247_v33, %s19863_s17 }
0x2c66   :  { %v19339_v15 = vpop.f32.mrf.mxu1 }
0x2c68   :  { %v16946_v31 = vpop.f32.mrf.mxu1  ;;  %12105 = vrot.lane.b32.xlu1 %v19269_v35, %s19864_s2 }
0x2c6c   :  { %12263 = vrot.lane.b32.xlu1 %v19247_v33, %s19865_s22 }
0x2c70   :  { %12261 = vrot.lane.b32.xlu1 %v19269_v35, %s19843_s25 }
0x2c71   :  { %12029 = vrot.lane.b32.xlu0 %v19251_v45, %s19863_s17  ;;  %s19877_s17 = sld [smem:[#allocation6_spill]] }
0x2c74   :  { %12419 = vrot.lane.b32.xlu1 %v19247_v33, %s19844_s30 }
0x2c75   :  { %12027 = vrot.lane.b32.xlu0 %v19262_v34, %s19864_s2 }
0x2c78   :  { %12417 = vrot.lane.b32.xlu1 %v19269_v35, %s19845_s1 }
0x2c79   :  { %12185 = vrot.lane.b32.xlu0 %v19251_v45, %s19865_s22 }
0x2c7c   :  { %12575 = vrot.lane.b32.xlu1 %v19247_v33, %s19868_s13 }
0x2c7d   :  { %12183 = vrot.lane.b32.xlu0 %v19262_v34, %s19843_s25  ;;  %s19871_s25 = smov 60  }
0x2c80   :  { %12573 = vrot.lane.b32.xlu1 %v19269_v35, %s19869_s14 }
0x2c81   :  { %12341 = vrot.lane.b32.xlu0 %v19251_v45, %s19844_s30 }
0x2c84   :  { %12903 = vrot.lane.b32.xlu1 %v19247_v33, %s19870_s0 }
0x2c85   :  { %12339 = vrot.lane.b32.xlu0 %v19262_v34, %s19845_s1 }
0x2c89   :  { %12497 = vrot.lane.b32.xlu0 %v19251_v45, %s19868_s13 }
0x2c8d   :  { %12495 = vrot.lane.b32.xlu0 %v19262_v34, %s19869_s14 }
0x2c91   :  { %12827 = vrot.lane.b32.xlu0 %v19251_v45, %s19870_s0 }
0x2cd8   :  { %v12653_v9 = vpop.xlane.xlu0 %12652 }
0x2cd9   :  { %v12699_v37 = vsub.f32 %v11477_v24, %v12653_v9  ;;  %v12666_v24 = vsel %vm1497_vm6, %v19333_v47, -inf }
0x2cdb   :  { %v12715_v25 = vmul.f32 1.442695, %v12699_v37 }
0x2cdc   :  { %v12656_v7 = vpop.xlane.xlu1 %12655 }
0x2cdd   :  { %17408 = vpow2.f32 %v12715_v25  ;;  %v12700_v46 = vsub.f32 %v11555_v49, %v12656_v7 }
0x2cdf   :  { %v12717_v10 = vmul.f32 1.442695, %v12700_v46 }
0x2ce0   :  { %v12108_v5 = vpop.permute.xlu1 %12107  ;;  %v12659_v12 = vpop.xlane.xlu0 %12658 }
0x2ce1   :  { %17410 = vpow2.f32 %v12717_v10  ;;  %v12701_v13 = vsub.f32 %v11633_v22, %v12659_v12  ;;  %16953 = vmatpush3.xpose.msk.msra.mxu1 %vm251_vm5, %v12108_v5 }
0x2ce2   :  { %16962 = vmatprep.subr.mxu1 %v17507_v6 }
0x2ce3   :  { %v12719_v14 = vmul.f32 1.442695, %v12701_v13 }
0x2ce4   :  { %v12106_v16 = vpop.permute.xlu1 %12105  ;;  %v12662_v3 = vpop.xlane.xlu0 %12661 }
0x2ce5   :  { %17412 = vpow2.f32 %v12719_v14  ;;  %v12702_v36 = vsub.f32 %v11711_v54, %v12662_v3  ;;  %16955 = vmatmul.mubr.msk.f32.vlgmr.msra.gmra.mxu1 %vm251_vm5, %v12106_v16 }
0x2ce6   :  { %16964 = vmatprep.mubr.msk.f32.mxu1 %vm17508_vm4, %v17507_v6 }
0x2ce7   :  { %v12721_v17 = vmul.f32 1.442695, %v12702_v36 }
0x2ce8   :  { %v12264_v62 = vpop.permute.xlu1 %12263  ;;  %v12030_v2 = vpop.permute.xlu0 %12029 }
0x2ce9   :  { %17414 = vpow2.f32 %v12721_v17  ;;  %16948 = vmatpush3.xpose.msk.msra.mxu0 %vm251_vm5, %v12030_v2  ;;  %16963 = vmatpush3.xpose.msk.msra.mxu1 %vm251_vm5, %v12264_v62 }
0x2cea   :  { %v19382_v23 = vpop.eup %17408  ;;  %16972 = vmatprep.subr.mxu1 %v17507_v6  ;;  %16957 = vmatprep.subr.mxu0 %v17507_v6 }
0x2ceb   :  { %v12747_v21 = vsel %vm1497_vm6, %v19382_v23, 0.0 }
0x2cec   :  { %12748 = vadd.xlane.f32.xlu1 %v12747_v21  ;;  %v12262_v27 = vpop.permute.xlu1 %12261  ;;  %v12028_v55 = vpop.permute.xlu0 %12027 }
0x2ced   :  { %16950 = vmatmul.mubr.msk.f32.vlgmr.msra.gmra.mxu0 %vm251_vm5, %v12028_v55  ;;  %16965 = vmatmul.mubr.msk.f32.vlgmr.msra.gmra.mxu1 %vm251_vm5, %v12262_v27 }
0x2cee   :  { %v19390_v59 = vpop.eup %17410  ;;  %16974 = vmatprep.mubr.msk.f32.mxu1 %vm17508_vm4, %v17507_v6  ;;  %16959 = vmatprep.mubr.msk.f32.mxu0 %vm17508_vm4, %v17507_v6 }
0x2cef   :  { %v12750_v29 = vsel %vm1497_vm6, %v19390_v59, 0.0 }
0x2cf0   :  { %v12420_v30 = vpop.permute.xlu1 %12419  ;;  %12751 = vadd.xlane.f32.xlu0 %v12750_v29  ;;  %v12186_v34 = vpop.permute.xlu0 %12185 }
0x2cf1   :  { %16958 = vmatpush3.xpose.msk.msra.mxu0 %vm251_vm5, %v12186_v34  ;;  %16973 = vmatpush3.xpose.msk.msra.mxu1 %vm251_vm5, %v12420_v30 }
0x2cf2   :  { %v19400_v35 = vpop.eup %17412  ;;  %16982 = vmatprep.subr.mxu1 %v17507_v6  ;;  %16967 = vmatprep.subr.mxu0 %v17507_v6 }
0x2cf3   :  { %v12753_v38 = vsel %vm1497_vm6, %v19400_v35, 0.0 }
0x2cf4   :  { %v12418_v11 = vpop.permute.xlu1 %12417  ;;  %12754 = vadd.xlane.f32.xlu1 %v12753_v38  ;;  %v12184_v1 = vpop.permute.xlu0 %12183  ;;  %v15540_v38 = vld [vmem:[%s19771_s4 + $0x64] sm:$0xf] }
0x2cf5   :  { %16960 = vmatmul.mubr.msk.f32.vlgmr.msra.gmra.mxu0 %vm251_vm5, %v12184_v1  ;;  %16975 = vmatmul.mubr.msk.f32.vlgmr.msra.gmra.mxu1 %vm251_vm5, %v12418_v11 }
0x2cf6   :  { %v17415_v39 = vpop.eup %17414  ;;  %16984 = vmatprep.mubr.msk.f32.mxu1 %vm17508_vm4, %v17507_v6  ;;  %16969 = vmatprep.mubr.msk.f32.mxu0 %vm17508_vm4, %v17507_v6 }
0x2cf7   :  { %v12756_v40 = vsel %vm1497_vm6, %v17415_v39, 0.0 }
0x2cf8   :  { %v12576_v32 = vpop.permute.xlu1 %12575  ;;  %12757 = vadd.xlane.f32.xlu1 %v12756_v40  ;;  %v12342_v60 = vpop.permute.xlu0 %12341 }
0x2cf9   :  { %16968 = vmatpush3.xpose.msk.msra.mxu0 %vm251_vm5, %v12342_v60  ;;  %16983 = vmatpush3.xpose.msk.msra.mxu1 %vm251_vm5, %v12576_v32 }
0x2cfa   :  { %16992 = vmatprep.subr.mxu1 %v17507_v6  ;;  %16977 = vmatprep.subr.mxu0 %v17507_v6 }
0x2cfc   :  { %v12574_v41 = vpop.permute.xlu1 %12573  ;;  %v12340_v8 = vpop.permute.xlu0 %12339 }
0x2cfd   :  { %16970 = vmatmul.mubr.msk.f32.vlgmr.msra.gmra.mxu0 %vm251_vm5, %v12340_v8  ;;  %16985 = vmatmul.mubr.msk.f32.vlgmr.msra.gmra.mxu1 %vm251_vm5, %v12574_v41  ;;  %v12672_v41 = vsel %vm1497_vm6, %v19339_v15, -inf }
0x2cfe   :  { %16979 = vmatprep.mubr.msk.f32.mxu0 %vm17508_vm4, %v17507_v6  ;;  %16994 = vmatprep.mubr.msk.f32.mxu1 %vm17508_vm4, %v17507_v6 }
0x2d00   :  { %v12904_v43 = vpop.permute.xlu1 %12903  ;;  %v12498_v19 = vpop.permute.xlu0 %12497 }
0x2d01   :  { %16978 = vmatpush3.xpose.msk.msra.mxu0 %vm251_vm5, %v12498_v19  ;;  %16993 = vmatpush3.msra.mxu1 %v12904_v43 }
0x2d02   :  { %16987 = vmatprep.subr.mxu0 %v17507_v6  ;;  %17002 = vmatprep.subr.mxu1 %v17507_v6 }
0x2d04   :  { %v12496_v20 = vpop.permute.xlu0 %12495 }
0x2d05   :  { %16980 = vmatmul.mubr.msk.f32.vlgmr.msra.gmra.mxu0 %vm251_vm5, %v12496_v20 }
0x2d06   :  { %12981 = vrot.lane.b32.xlu0 %v19251_v45, %s19871_s25  ;;  %16989 = vmatprep.mubr.msk.f32.mxu0 %vm17508_vm4, %v17507_v6 }
0x2d08   :  { %v12828_v51 = vpop.permute.xlu0 %12827 }
0x2d09   :  { %13057 = vrot.lane.b32.xlu1 %v19247_v33, %s19871_s25  ;;  %16988 = vmatpush3.msra.mxu0 %v12828_v51 }
0x2d0a   :  { %16997 = vmatprep.subr.mxu0 %v17507_v6 }
0x2d25   :  { %12664 = vmax.xlane.f32.xlu0 %v12663_v48 }
0x2d2d   :  { %12667 = vmax.xlane.f32.xlu1 %v12666_v24 }
0x2d3e   :  { %13303 = vrot.lane.b32.xlu1 %v19251_v45, %s19850_s27 }
0x2d62   :  { %12670 = vmax.xlane.f32.xlu1 %v12669_v44 }
0x2d75   :  { %v12749_v42 = vpop.xlane.xlu1 %12748 }
0x2d76   :  { %17416 = vrcp.f32 %v12749_v42 }
0x2d79   :  { %v12752_v49 = vpop.xlane.xlu0 %12751 }
0x2d7a   :  { %17418 = vrcp.f32 %v12752_v49 }
0x2d7d   :  { %v12755_v50 = vpop.xlane.xlu1 %12754  ;;  %v12982_v26 = vpop.permute.xlu0 %12981 }
0x2d7e   :  { %17420 = vrcp.f32 %v12755_v50 }
0x2d81   :  { %v12758_v53 = vpop.xlane.xlu1 %12757 }
0x2d82   :  { %17422 = vrcp.f32 %v12758_v53 }
0x2d83   :  { %v17417_v22 = vpop.eup %17416 }
0x2d84   :  { %v12811_v61 = vmul.f32 %v17417_v22, %v19382_v23 }
0x2d85   :  { %v13058_v57 = vpop.permute.xlu1 %13057 }
0x2d86   :  { %16990 = vmatmul.mubr.msk.f32.vlgmr.msra.gmra.mxu0 %vm1497_vm6, %v12811_v61 }
0x2d87   :  { %v17419_v54 = vpop.eup %17418  ;;  %16998 = vmatpush3.msra.mxu0 %v12982_v26  ;;  %16999 = vmatprep.mubr.msk.f32.mxu0 %vm17508_vm4, %v17507_v6 }
0x2d88   :  { %v12812_v56 = vmul.f32 %v17419_v54, %v19390_v59  ;;  %17007 = vmatprep.subr.msk.mxu0 %vm1987_vm7, %v15540_v38 }
0x2d8a   :  { %16995 = vmatmul.mubr.msk.f32.vlgmr.msra.gmra.mxu1 %vm1497_vm6, %v12812_v56 }
0x2d8b   :  { %v17421_v0 = vpop.eup %17420  ;;  %17003 = vmatpush3.msra.mxu1 %v13058_v57  ;;  %17004 = vmatprep.mubr.msk.f32.mxu1 %vm17508_vm4, %v17507_v6 }
0x2d8c   :  { %v12813_v18 = vmul.f32 %v17421_v0, %v19400_v35 }
0x2d8e   :  { %17000 = vmatmul.mubr.msk.f32.vlgmr.msra.gmra.mxu0 %vm1497_vm6, %v12813_v18 }
0x2d8f   :  { %v17423_v28 = vpop.eup %17422  ;;  %17008 = vmatpush3.msk.msra.mxu0 %vm1987_vm7, %v15540_v38 }
0x2d90   :  { %v12814_v31 = vmul.f32 %v17423_v28, %v17415_v39  ;;  %17017 = vmatprep.subr.mxu0 %v17507_v6 }
0x2d92   :  { %17005 = vmatmul.mubr.msk.f32.vlgmr.msra.gmra.mxu1 %vm1497_vm6, %v12814_v31 }
0x2da5   :  { %v19453_v9 = vpop.f32.mrf.mxu1 }
0x2da7   :  { %v16956_v37 = vpop.f32.mrf.mxu1 }
0x2dad   :  { %v19455_v25 = vpop.f32.mrf.mxu0  ;;  %v19457_v7 = vpop.f32.mrf.mxu1 }
0x2dae   :  { %v12665_v5 = vpop.xlane.xlu0 %12664  ;;  %v12675_v8 = vsel %vm1497_vm6, %v19455_v25, -inf }
0x2daf   :  { %v16951_v46 = vpop.f32.mrf.mxu0  ;;  %v16966_v10 = vpop.f32.mrf.mxu1  ;;  %v12703_v12 = vsub.f32 %v19331_v58, %v12665_v5 }
0x2db0   :  { %v15549_v10 = vld [vmem:[%s19771_s4 + $0x68] sm:$0xf] }
0x2db1   :  { %v12723_v62 = vmul.f32 1.442695, %v12703_v12 }
0x2db5   :  { %v19460_v13 = vpop.f32.mrf.mxu0  ;;  %v19462_v14 = vpop.f32.mrf.mxu1 }
0x2db6   :  { %v12668_v16 = vpop.xlane.xlu1 %12667 }
0x2db7   :  { %v12704_v3 = vsub.f32 %v19333_v47, %v12668_v16  ;;  %v16961_v36 = vpop.f32.mrf.mxu0  ;;  %v16976_v17 = vpop.f32.mrf.mxu1  ;;  %v15537_v47 = vld [vmem:[%s19771_s4 + $0x60] sm:$0xf] }
0x2db8   :  { %17012 = vmatprep.subr.msk.mxu1 %vm1987_vm7, %v15537_v47  ;;  %v12678_v36 = vsel %vm1497_vm6, %v19453_v9, -inf  ;;  %v12681_v17 = vsel %vm1497_vm6, %v19460_v13, -inf }
0x2db9   :  { %v12725_v2 = vmul.f32 1.442695, %v12704_v3  ;;  %17013 = vmatpush3.msk.msra.mxu1 %vm1987_vm7, %v15537_v47 }
0x2dba   :  { %17022 = vmatprep.subr.mxu1 %v17507_v6  ;;  %v13304_v11 = vpop.permute.xlu1 %13303 }
0x2dbb   :  { %17424 = vpow2.f32 %v12725_v2 }
0x2dbc   :  { %17426 = vpow2.f32 %v12723_v62 }
0x2dbd   :  { %v19465_v23 = vpop.f32.mrf.mxu0  ;;  %v19467_v21 = vpop.f32.mrf.mxu1 }
0x2dbf   :  { %v16971_v27 = vpop.f32.mrf.mxu0  ;;  %v16986_v55 = vpop.f32.mrf.mxu1 }
0x2dc5   :  { %v19469_v58 = vpop.f32.mrf.mxu0 }
0x2dc7   :  { %v16981_v59 = vpop.f32.mrf.mxu0 }
0x2dc8   :  { %v17425_v29 = vpop.eup %17424 }
0x2dc9   :  { %v12762_v30 = vsel %vm1497_vm6, %v17425_v29, 0.0  ;;  %v17427_v34 = vpop.eup %17426 }
0x2dca   :  { %12763 = vadd.xlane.f32.xlu0 %v12762_v30  ;;  %v12759_v35 = vsel %vm1497_vm6, %v17427_v34, 0.0 }
0x2dce   :  { %12760 = vadd.xlane.f32.xlu0 %v12759_v35 }
0x2de4   :  { %13379 = vrot.lane.b32.xlu0 %v19247_v33, %s19850_s27 }
0x2deb   :  { %v12671_v1 = vpop.xlane.xlu1 %12670 }
0x2dec   :  { %v12705_v39 = vsub.f32 %v19335_v4, %v12671_v1 }
0x2dee   :  { %v12727_v40 = vmul.f32 1.442695, %v12705_v39 }
0x2df0   :  { %17428 = vpow2.f32 %v12727_v40 }
0x2dfd   :  { %v17429_v32 = vpop.eup %17428 }
0x2dfe   :  { %v12765_v60 = vsel %vm1497_vm6, %v17429_v32, 0.0 }
0x2dff   :  { %12766 = vadd.xlane.f32.xlu1 %v12765_v60 }
0x2e03   :  { %12673 = vmax.xlane.f32.xlu0 %v12672_v41 }
0x2e10   :  { %13543 = vrot.lane.b32.xlu1 %v19251_v45, %s19851_s20 }
0x2e34   :  { %12676 = vmax.xlane.f32.xlu1 %v12675_v8 }
0x2e46   :  { %v12899_v43 = vpop.f32.mrf.mxu0 }
0x2e47   :  { %17014 = vmatprep.mubr.msk.f32.mxu1 %vm251_vm5, %v12899_v43 }
0x2e48   :  { %v16991_v4 = vpop.f32.mrf.mxu0 }
0x2e4a   :  { %v12975_v19 = vpop.f32.mrf.mxu1 }
0x2e4b   :  { %17015 = vmatmul.mubr.msk.f32.vlgmr.msra.gmra.mxu1 %vm251_vm5, %v12975_v19 }
0x2e4c   :  { %v16996_v20 = vpop.f32.mrf.mxu1  ;;  %17024 = vmatprep.mubr.msk.f32.mxu1 %vm17508_vm4, %v17507_v6 }
0x2e4d   :  { %v15555_v20 = vld [vmem:[%s19771_s4 + $0x6c] sm:$0xf] }
0x2e4e   :  { %v13053_v51 = vpop.f32.mrf.mxu0 }
0x2e4f   :  { %17009 = vmatprep.mubr.msk.f32.mxu0 %vm251_vm5, %v13053_v51 }
0x2e50   :  { %v17001_v48 = vpop.f32.mrf.mxu0 }
0x2e52   :  { %v13129_v24 = vpop.f32.mrf.mxu1 }
0x2e53   :  { %v12764_v44 = vpop.xlane.xlu0 %12763  ;;  %17010 = vmatmul.mubr.msk.f32.vlgmr.msra.gmra.mxu0 %vm251_vm5, %v13129_v24 }
0x2e54   :  { %17430 = vrcp.f32 %v12764_v44  ;;  %17018 = vmatpush3.msra.mxu0 %v13304_v11  ;;  %v17006_v42 = vpop.f32.mrf.mxu1  ;;  %17019 = vmatprep.mubr.msk.f32.mxu0 %vm17508_vm4, %v17507_v6 }
0x2e55   :  { %17027 = vmatprep.subr.msk.mxu0 %vm1987_vm7, %v15549_v10 }
0x2e57   :  { %v12761_v49 = vpop.xlane.xlu0 %12760 }
0x2e58   :  { %17432 = vrcp.f32 %v12761_v49 }
0x2e5b   :  { %v13380_v50 = vpop.permute.xlu0 %13379 }
0x2e5c   :  { %17023 = vmatpush3.msra.mxu1 %v13380_v50  ;;  %v12684_v50 = vsel %vm1497_vm6, %v19457_v7, -inf }
0x2e5d   :  { %17032 = vmatprep.subr.mxu1 %v17507_v6 }
0x2e61   :  { %v17431_v53 = vpop.eup %17430 }
0x2e62   :  { %v12816_v22 = vmul.f32 %v17431_v53, %v17425_v29  ;;  %v12687_v53 = vsel %vm1497_vm6, %v19465_v23, -inf }
0x2e64   :  { %17025 = vmatmul.mubr.msk.f32.vlgmr.msra.gmra.mxu1 %vm1497_vm6, %v12816_v22 }
0x2e65   :  { %v17433_v61 = vpop.eup %17432  ;;  %17034 = vmatprep.mubr.msk.f32.mxu1 %vm17508_vm4, %v17507_v6 }
0x2e66   :  { %v12815_v26 = vmul.f32 %v17433_v61, %v17427_v34 }
0x2e68   :  { %17020 = vmatmul.mubr.msk.f32.vlgmr.msra.gmra.mxu0 %vm1497_vm6, %v12815_v26 }
0x2e69   :  { %17028 = vmatpush3.msk.msra.mxu0 %vm1987_vm7, %v15549_v10 }
0x2e6a   :  { %17037 = vmatprep.subr.mxu0 %v17507_v6 }
0x2e88   :  { %v12767_v54 = vpop.xlane.xlu1 %12766 }
0x2e89   :  { %17434 = vrcp.f32 %v12767_v54 }
0x2e8c   :  { %v12674_v56 = vpop.xlane.xlu0 %12673  ;;  %v13544_v57 = vpop.permute.xlu1 %13543 }
0x2e8d   :  { %v12706_v0 = vsub.f32 %v19339_v15, %v12674_v56  ;;  %17033 = vmatpush3.msra.mxu1 %v13544_v57 }
0x2e8e   :  { %17042 = vmatprep.subr.msk.mxu1 %vm1987_vm7, %v15555_v20 }
0x2e8f   :  { %v12729_v18 = vmul.f32 1.442695, %v12706_v0 }
0x2e91   :  { %17436 = vpow2.f32 %v12729_v18 }
0x2e96   :  { %v17435_v28 = vpop.eup %17434 }
0x2e97   :  { %v12817_v31 = vmul.f32 %v17435_v28, %v17429_v32 }
0x2e99   :  { %17035 = vmatmul.mubr.msk.f32.vlgmr.msra.gmra.mxu1 %vm1497_vm6, %v12817_v31 }
0x2e9a   :  { %17043 = vmatpush3.msk.msra.mxu1 %vm1987_vm7, %v15555_v20 }
0x2e9b   :  { %17052 = vmatprep.subr.mxu1 %v17507_v6 }
0x2e9e   :  { %v17437_v37 = vpop.eup %17436 }
0x2e9f   :  { %v12768_v46 = vsel %vm1497_vm6, %v17437_v37, 0.0 }
0x2ea0   :  { %12769 = vadd.xlane.f32.xlu0 %v12768_v46 }
0x2eb6   :  { %13619 = vrot.lane.b32.xlu0 %v19247_v33, %s19851_s20 }
0x2ebd   :  { %v12677_v15 = vpop.xlane.xlu1 %12676 }
0x2ebe   :  { %v12707_v5 = vsub.f32 %v19455_v25, %v12677_v15 }
0x2ec0   :  { %v12731_v12 = vmul.f32 1.442695, %v12707_v5 }
0x2ec2   :  { %17438 = vpow2.f32 %v12731_v12 }
0x2ecf   :  { %v17439_v16 = vpop.eup %17438 }
0x2ed0   :  { %v12771_v3 = vsel %vm1497_vm6, %v17439_v16, 0.0 }
0x2ed1   :  { %12772 = vadd.xlane.f32.xlu1 %v12771_v3 }
0x2ed5   :  { %12679 = vmax.xlane.f32.xlu0 %v12678_v36  ;;  %v15561_v36 = vld [vmem:[%s19771_s4 + $0x70] sm:$0xf] }
0x2ee2   :  { %13783 = vrot.lane.b32.xlu1 %v19251_v45, %s19872_s26 }
0x2f06   :  { %12682 = vmax.xlane.f32.xlu1 %v12681_v17 }
0x2f0b   :  { %v17016_v62 = vpop.f32.mrf.mxu1 }
0x2f0d   :  { %v13294_v27 = vpop.f32.mrf.mxu1 }
0x2f13   :  { %v17011_v2 = vpop.f32.mrf.mxu0 }
0x2f14   :  { %v13300_v25 = vadd.f32 %v17016_v62, %v17011_v2 }
0x2f15   :  { %v13210_v55 = vpop.f32.mrf.mxu0 }
0x2f16   :  { %v13295_v59 = vadd.f32 %v13294_v27, %v13210_v55 }
0x2f24   :  { %v13451_v29 = vpop.f32.mrf.mxu1 }
0x2f26   :  { %v17026_v47 = vpop.f32.mrf.mxu1 }
0x2f28   :  { %v13375_v30 = vpop.f32.mrf.mxu0 }
0x2f29   :  { %v12770_v34 = vpop.xlane.xlu0 %12769  ;;  %17029 = vmatprep.mubr.msk.f32.mxu0 %vm251_vm5, %v13375_v30 }
0x2f2a   :  { %17440 = vrcp.f32 %v12770_v34  ;;  %v17021_v35 = vpop.f32.mrf.mxu0  ;;  %17030 = vmatmul.mubr.msk.f32.vlgmr.msra.gmra.mxu0 %vm251_vm5, %v13451_v29  ;;  %v12693_v29 = vsel %vm1497_vm6, %v19469_v58, -inf }
0x2f2b   :  { %17039 = vmatprep.mubr.msk.f32.mxu0 %vm17508_vm4, %v17507_v6 }
0x2f2d   :  { %v13620_v38 = vpop.permute.xlu0 %13619 }
0x2f2e   :  { %17038 = vmatpush3.msra.mxu0 %v13620_v38 }
0x2f2f   :  { %17047 = vmatprep.subr.mxu0 %v17507_v6 }
0x2f37   :  { %v17441_v11 = vpop.eup %17440 }
0x2f38   :  { %v12818_v1 = vmul.f32 %v17441_v11, %v17437_v37 }
0x2f3a   :  { %17040 = vmatmul.mubr.msk.f32.vlgmr.msra.gmra.mxu0 %vm1497_vm6, %v12818_v1 }
0x2f3b   :  { %17049 = vmatprep.mubr.msk.f32.mxu0 %vm17508_vm4, %v17507_v6 }
0x2f59   :  { %v13615_v39 = vpop.f32.mrf.mxu1 }
0x2f5a   :  { %v12773_v40 = vpop.xlane.xlu1 %12772  ;;  %17044 = vmatprep.mubr.msk.f32.mxu1 %vm251_vm5, %v13615_v39 }
0x2f5b   :  { %17442 = vrcp.f32 %v12773_v40  ;;  %v17036_v32 = vpop.f32.mrf.mxu1 }
0x2f5e   :  { %v12680_v60 = vpop.xlane.xlu0 %12679  ;;  %v13784_v41 = vpop.permute.xlu1 %13783 }
0x2f5f   :  { %v12708_v8 = vsub.f32 %v19453_v9, %v12680_v60  ;;  %17048 = vmatpush3.msra.mxu0 %v13784_v41 }
0x2f60   :  { %17057 = vmatprep.subr.msk.mxu0 %vm1987_vm7, %v15561_v36 }
0x2f61   :  { %v12733_v43 = vmul.f32 1.442695, %v12708_v8 }
0x2f63   :  { %17444 = vpow2.f32 %v12733_v43 }
0x2f68   :  { %v17443_v4 = vpop.eup %17442 }
0x2f69   :  { %v12819_v19 = vmul.f32 %v17443_v4, %v17439_v16 }
0x2f6b   :  { %17050 = vmatmul.mubr.msk.f32.vlgmr.msra.gmra.mxu0 %vm1497_vm6, %v12819_v19 }
0x2f6c   :  { %17058 = vmatpush3.msk.msra.mxu0 %vm1987_vm7, %v15561_v36 }
0x2f6d   :  { %17067 = vmatprep.subr.mxu0 %v17507_v6 }
0x2f70   :  { %v17445_v51 = vpop.eup %17444 }
0x2f71   :  { %v12774_v9 = vsel %vm1497_vm6, %v17445_v51, 0.0 }
0x2f72   :  { %12775 = vadd.xlane.f32.xlu0 %v12774_v9  ;;  %v15567_v9 = vld [vmem:[%s19771_s4 + $0x74] sm:$0xf] }
0x2f88   :  { %13859 = vrot.lane.b32.xlu0 %v19247_v33, %s19872_s26  ;;  %s17532_s26 = smov [#allocation2]  }
0x2f89   :  { %s15156_s20 = sshll.u32 %s17532_s26, 4  ;;  %s15157_s20 = int_to_ptr.vmem [resolvable:$true] %s15156_s20 }
0x2f8a   :  { %s17484_s19 = scalar_lea.vmem %s15157_s20, 32  ;;  %p17489_p1 = scmp.lt.s32.totalorder %s15157_s20, %s15157_s20 }
0x2f8b   :  { %p17485_p0 = scmp.ne.s32.totalorder %s15157_s20, %s17484_s19  ;;  %p17490_p2 = scmp.lt.s32.totalorder %s17484_s19, %s17484_s19 }
0x2f8d   :  { %p17491_p3 = por %p17490_p2, %p17489_p1 }
0x2f8f   :  { %v12683_v48 = vpop.xlane.xlu1 %12682  ;;  %p17492_p4 = pnand %p17491_p3, %p17485_p0 }
0x2f90   :  { %v12709_v24 = vsub.f32 %v19460_v13, %v12683_v48 }
0x2f92   :  { %v12735_v44 = vmul.f32 1.442695, %v12709_v24 }
0x2f94   :  { %17446 = vpow2.f32 %v12735_v44 }
0x2fa1   :  { %v17447_v42 = vpop.eup %17446 }
0x2fa2   :  { %v12777_v49 = vsel %vm1497_vm6, %v17447_v42, 0.0 }
0x2fa3   :  { %12778 = vadd.xlane.f32.xlu1 %v12777_v49 }
0x2fa7   :  { %12685 = vmax.xlane.f32.xlu0 %v12684_v50 }
0x2fb4   :  { %14023 = vrot.lane.b32.xlu1 %v19251_v45, %s19873_s18 }
0x2fd8   :  { %12688 = vmax.xlane.f32.xlu1 %v12687_v53  ;;  %v12696_v53 = vsel %vm1497_vm6, %v19467_v21, -inf }
0x2fea   :  { %v17031_v22 = vpop.f32.mrf.mxu0 }
0x2feb   :  { %v13542_v61 = vadd.f32 %v17031_v22, %v13300_v25 }
0x2fec   :  { %v13532_v13 = vpop.f32.mrf.mxu0 }
0x2fed   :  { %v13541_v26 = vadd.f32 %v13532_v13, %v13295_v59  ;;  %v12690_v59 = vsel %vm1497_vm6, %v19462_v14, -inf }
0x2ffa   :  { %v13691_v54 = vpop.f32.mrf.mxu0 }
0x2ffb   :  { %v12776_v56 = vpop.xlane.xlu0 %12775  ;;  %17045 = vmatmul.mubr.msk.f32.vlgmr.msra.gmra.mxu1 %vm251_vm5, %v13691_v54 }
0x2ffc   :  { %17448 = vrcp.f32 %v12776_v56  ;;  %v17041_v57 = vpop.f32.mrf.mxu0  ;;  %17054 = vmatprep.mubr.msk.f32.mxu1 %vm17508_vm4, %v17507_v6 }
0x2fff   :  { %v13860_v0 = vpop.permute.xlu0 %13859 }
0x3000   :  { %17053 = vmatpush3.msra.mxu1 %v13860_v0 }
0x3001   :  { %17062 = vmatprep.subr.mxu1 %v17507_v6 }
0x3009   :  { %v17449_v18 = vpop.eup %17448 }
0x300a   :  { %v12820_v28 = vmul.f32 %v17449_v18, %v17445_v51 }
0x300c   :  { %17055 = vmatmul.mubr.msk.f32.vlgmr.msra.gmra.mxu1 %vm1497_vm6, %v12820_v28 }
0x300d   :  { %17064 = vmatprep.mubr.msk.f32.mxu1 %vm17508_vm4, %v17507_v6 }
0x302b   :  { %v13855_v31 = vpop.f32.mrf.mxu0 }
0x302c   :  { %v12779_v37 = vpop.xlane.xlu1 %12778  ;;  %17059 = vmatprep.mubr.msk.f32.mxu0 %vm251_vm5, %v13855_v31 }
0x302d   :  { %17450 = vrcp.f32 %v12779_v37  ;;  %v17051_v46 = vpop.f32.mrf.mxu0 }
0x3030   :  { %v12686_v10 = vpop.xlane.xlu0 %12685  ;;  %v14024_v15 = vpop.permute.xlu1 %14023 }
0x3031   :  { %v12710_v5 = vsub.f32 %v19457_v7, %v12686_v10  ;;  %17063 = vmatpush3.msra.mxu1 %v14024_v15 }
0x3032   :  { %17072 = vmatprep.subr.msk.mxu1 %vm1987_vm7, %v15567_v9 }
0x3033   :  { %v12737_v12 = vmul.f32 1.442695, %v12710_v5 }
0x3035   :  { %17452 = vpow2.f32 %v12737_v12 }
0x303a   :  { %v17451_v16 = vpop.eup %17450 }
0x303b   :  { %v12821_v3 = vmul.f32 %v17451_v16, %v17447_v42  ;;  %v15573_v16 = vld [vmem:[%s19771_s4 + $0x78] sm:$0xf] }
0x303d   :  { %17065 = vmatmul.mubr.msk.f32.vlgmr.msra.gmra.mxu1 %vm1497_vm6, %v12821_v3 }
0x303e   :  { %17073 = vmatpush3.msk.msra.mxu1 %vm1987_vm7, %v15567_v9 }
0x303f   :  { %17082 = vmatprep.subr.mxu1 %v17507_v6 }
0x3042   :  { %v17453_v17 = vpop.eup %17452 }
0x3043   :  { %v12780_v7 = vsel %vm1497_vm6, %v17453_v17, 0.0 }
0x3044   :  { %12781 = vadd.xlane.f32.xlu0 %v12780_v7 }
0x305a   :  { %14099 = vrot.lane.b32.xlu0 %v19247_v33, %s19873_s18 }
0x3061   :  { %v12689_v62 = vpop.xlane.xlu1 %12688 }
0x3062   :  { %v12711_v2 = vsub.f32 %v19465_v23, %v12689_v62 }
0x3064   :  { %v12739_v25 = vmul.f32 1.442695, %v12711_v2 }
0x3066   :  { %17454 = vpow2.f32 %v12739_v25 }
0x3073   :  { %v17455_v27 = vpop.eup %17454 }
0x3074   :  { %v12783_v55 = vsel %vm1497_vm6, %v17455_v27, 0.0 }
0x3075   :  { %12784 = vadd.xlane.f32.xlu1 %v12783_v55 }
0x3079   :  { %12691 = vmax.xlane.f32.xlu0 %v12690_v59 }
0x3086   :  { %14263 = vrot.lane.b32.xlu1 %v19251_v45, %s19874_s24 }
0x30aa   :  { %12694 = vmax.xlane.f32.xlu1 %v12693_v29 }
0x30bb   :  { %v17046_v47 = vpop.f32.mrf.mxu1 }
0x30bc   :  { %v13782_v30 = vadd.f32 %v17046_v47, %v13542_v61 }
0x30bd   :  { %v13772_v23 = vpop.f32.mrf.mxu1 }
0x30be   :  { %v13781_v34 = vadd.f32 %v13772_v23, %v13541_v26 }
0x30cc   :  { %v13931_v35 = vpop.f32.mrf.mxu1 }
0x30cd   :  { %v12782_v38 = vpop.xlane.xlu0 %12781  ;;  %17060 = vmatmul.mubr.msk.f32.vlgmr.msra.gmra.mxu0 %vm251_vm5, %v13931_v35 }
0x30ce   :  { %17456 = vrcp.f32 %v12782_v38  ;;  %v17056_v11 = vpop.f32.mrf.mxu1  ;;  %17069 = vmatprep.mubr.msk.f32.mxu0 %vm17508_vm4, %v17507_v6 }
0x30d1   :  { %v14100_v1 = vpop.permute.xlu0 %14099 }
0x30d2   :  { %17068 = vmatpush3.msra.mxu0 %v14100_v1 }
0x30d3   :  { %17077 = vmatprep.subr.mxu0 %v17507_v6 }
0x30db   :  { %v17457_v39 = vpop.eup %17456 }
0x30dc   :  { %v12822_v40 = vmul.f32 %v17457_v39, %v17453_v17 }
0x30de   :  { %17070 = vmatmul.mubr.msk.f32.vlgmr.msra.gmra.mxu0 %vm1497_vm6, %v12822_v40 }
0x30df   :  { %17079 = vmatprep.mubr.msk.f32.mxu0 %vm17508_vm4, %v17507_v6 }
0x30fd   :  { %v14095_v32 = vpop.f32.mrf.mxu1 }
0x30fe   :  { %v12785_v60 = vpop.xlane.xlu1 %12784  ;;  %17074 = vmatprep.mubr.msk.f32.mxu1 %vm251_vm5, %v14095_v32 }
0x30ff   :  { %17458 = vrcp.f32 %v12785_v60  ;;  %v17066_v41 = vpop.f32.mrf.mxu1 }
0x3102   :  { %v12692_v8 = vpop.xlane.xlu0 %12691  ;;  %v14264_v43 = vpop.permute.xlu1 %14263 }
0x3103   :  { %v12712_v4 = vsub.f32 %v19462_v14, %v12692_v8  ;;  %17078 = vmatpush3.msra.mxu0 %v14264_v43 }
0x3104   :  { %17087 = vmatprep.subr.msk.mxu0 %vm1987_vm7, %v15573_v16 }
0x3105   :  { %v12741_v19 = vmul.f32 1.442695, %v12712_v4 }
0x3107   :  { %17460 = vpow2.f32 %v12741_v19 }
0x310c   :  { %v17459_v20 = vpop.eup %17458 }
0x310d   :  { %v12823_v51 = vmul.f32 %v17459_v20, %v17455_v27 }
0x310f   :  { %17080 = vmatmul.mubr.msk.f32.vlgmr.msra.gmra.mxu0 %vm1497_vm6, %v12823_v51 }
0x3110   :  { %17088 = vmatpush3.msk.msra.mxu0 %vm1987_vm7, %v15573_v16  ;;  %v15585_v16 = vld [vmem:[%s19772_s5 + $0x3] ss:$0 sm:$0xff] }
0x3111   :  { %17097 = vmatprep.subr.mxu0 %v17507_v6 }
0x3114   :  { %v17461_v48 = vpop.eup %17460 }
0x3115   :  { %v12786_v14 = vsel %vm1497_vm6, %v17461_v48, 0.0 }
0x3116   :  { %12787 = vadd.xlane.f32.xlu0 %v12786_v14 }
0x312c   :  { %14339 = vrot.lane.b32.xlu0 %v19247_v33, %s19874_s24 }
0x3133   :  { %v12695_v24 = vpop.xlane.xlu1 %12694 }
0x3134   :  { %v12713_v44 = vsub.f32 %v19469_v58, %v12695_v24 }
0x3136   :  { %v12743_v42 = vmul.f32 1.442695, %v12713_v44 }
0x3138   :  { %17462 = vpow2.f32 %v12743_v42  ;;  %v15590_v42 = vld [vmem:[%s19774_s7 + $0x78] sm:$0xff] }
0x3145   :  { %v17463_v49 = vpop.eup %17462 }
0x3146   :  { %v12789_v50 = vsel %vm1497_vm6, %v17463_v49, 0.0 }
0x3147   :  { %12790 = vadd.xlane.f32.xlu1 %v12789_v50  ;;  %v15588_v50 = vld [vmem:[%s19774_s7 + $0x68] sm:$0xff] }
0x314b   :  { %12697 = vmax.xlane.f32.xlu0 %v12696_v53  ;;  %v15587_v53 = vld [vmem:[%s19774_s7 + $0x60] sm:$0xff] }
0x3158   :  { %14503 = vrot.lane.b32.xlu1 %v19251_v45, %s19875_s28 }
0x318d   :  { %v17061_v22 = vpop.f32.mrf.mxu0 }
0x318e   :  { %v14022_v61 = vadd.f32 %v17061_v22, %v13782_v30  ;;  %v15579_v30 = vld [vmem:[%s19771_s4 + $0x7c] sm:$0xf] }
0x318f   :  { %v14012_v13 = vpop.f32.mrf.mxu0  ;;  %v15610_v22 = vld [vmem:[%s19776_s9 + $0x1f8] sm:$0xff] }
0x3190   :  { %v14021_v26 = vadd.f32 %v14012_v13, %v13781_v34  ;;  %v15608_v13 = vld [vmem:[%s19776_s9 + $0x1e8] sm:$0xff] }
0x319e   :  { %v14171_v54 = vpop.f32.mrf.mxu0 }
0x319f   :  { %v12788_v56 = vpop.xlane.xlu0 %12787  ;;  %17075 = vmatmul.mubr.msk.f32.vlgmr.msra.gmra.mxu1 %vm251_vm5, %v14171_v54  ;;  %v15606_v54 = vld [vmem:[%s19776_s9 + $0x1d8] sm:$0xff] }
0x31a0   :  { %17464 = vrcp.f32 %v12788_v56  ;;  %v17071_v58 = vpop.f32.mrf.mxu0  ;;  %17084 = vmatprep.mubr.msk.f32.mxu1 %vm17508_vm4, %v17507_v6  ;;  %v15605_v56 = vld [vmem:[%s19776_s9 + $0x1d0] sm:$0xff] }
0x31a1   :  { %v15604_v58 = vld [vmem:[%s19776_s9 + $0x1c8] sm:$0xff] }
0x31a3   :  { %v14340_v57 = vpop.permute.xlu0 %14339 }
0x31a4   :  { %17083 = vmatpush3.msra.mxu1 %v14340_v57  ;;  %v15603_v57 = vld [vmem:[%s19776_s9 + $0x1c0] sm:$0xff] }
0x31a5   :  { %17092 = vmatprep.subr.mxu1 %v17507_v6 }
0x31ad   :  { %v17465_v0 = vpop.eup %17464 }
0x31ae   :  { %v12824_v18 = vmul.f32 %v17465_v0, %v17461_v48  ;;  %v15602_v0 = vld [vmem:[%s19776_s9 + $0x1b8] sm:$0xff] }
0x31b0   :  { %17085 = vmatmul.mubr.msk.f32.vlgmr.msra.gmra.mxu1 %vm1497_vm6, %v12824_v18  ;;  %v15601_v18 = vld [vmem:[%s19776_s9 + $0x1b0] sm:$0xff] }
0x31b1   :  { %17094 = vmatprep.mubr.msk.f32.mxu1 %vm17508_vm4, %v17507_v6 }
0x31cf   :  { %v14335_v45 = vpop.f32.mrf.mxu0 }
0x31d0   :  { %v12791_v28 = vpop.xlane.xlu1 %12790  ;;  %17089 = vmatprep.mubr.msk.f32.mxu0 %vm251_vm5, %v14335_v45  ;;  %v15600_v45 = vld [vmem:[%s19776_s9 + $0x1a8] sm:$0xff] }
0x31d1   :  { %17466 = vrcp.f32 %v12791_v28  ;;  %v17081_v31 = vpop.f32.mrf.mxu0  ;;  %v15599_v28 = vld [vmem:[%s19776_s9 + $0x1a0] sm:$0xff] }
0x31d4   :  { %v12698_v37 = vpop.xlane.xlu0 %12697  ;;  %v14504_v46 = vpop.permute.xlu1 %14503 }
0x31d5   :  { %v12714_v10 = vsub.f32 %v19467_v21, %v12698_v37  ;;  %17093 = vmatpush3.msra.mxu1 %v14504_v46 }
0x31d6   :  { %17102 = vmatprep.subr.msk.mxu1 %vm1987_vm7, %v15579_v30 }
0x31d7   :  { %v12745_v15 = vmul.f32 1.442695, %v12714_v10 }
0x31d9   :  { %17468 = vpow2.f32 %v12745_v15 }
0x31de   :  { %v17467_v5 = vpop.eup %17466 }
0x31df   :  { %v12825_v12 = vmul.f32 %v17467_v5, %v17463_v49  ;;  %v15589_v49 = vld [vmem:[%s19774_s7 + $0x70] sm:$0xff] }
0x31e1   :  { %17095 = vmatmul.mubr.msk.f32.vlgmr.msra.gmra.mxu1 %vm1497_vm6, %v12825_v12 }
0x31e2   :  { %17103 = vmatpush3.msk.msra.mxu1 %vm1987_vm7, %v15579_v30 }
0x31e3   :  { %17118 = vmatprep.subr.mxu1 %v15610_v22 }
0x31e6   :  { %v17469_v3 = vpop.eup %17468 }
0x31e7   :  { %v12792_v21 = vsel %vm1497_vm6, %v17469_v3, 0.0 }
0x31e8   :  { %12793 = vadd.xlane.f32.xlu0 %v12792_v21 }
0x31fe   :  { %14579 = vrot.lane.b32.xlu0 %v19247_v33, %s19875_s28 }
0x325f   :  { %v17076_v36 = vpop.f32.mrf.mxu1 }
0x3260   :  { %v14262_v17 = vadd.f32 %v17076_v36, %v14022_v61  ;;  %v15609_v61 = vld [vmem:[%s19776_s9 + $0x1f0] sm:$0xff] }
0x3261   :  { %v14252_v7 = vpop.f32.mrf.mxu1 }
0x3262   :  { %v14261_v62 = vadd.f32 %v14252_v7, %v14021_v26  ;;  %v15607_v26 = vld [vmem:[%s19776_s9 + $0x1e0] sm:$0xff] }
0x3263   :  { %v15586_v7 = vld [vmem:[%s19773_s6 + $0x3] ss:$0 sm:$0xff] }
0x3270   :  { %v14411_v2 = vpop.f32.mrf.mxu1 }
0x3271   :  { %v12794_v25 = vpop.xlane.xlu0 %12793  ;;  %17090 = vmatmul.mubr.msk.f32.vlgmr.msra.gmra.mxu0 %vm251_vm5, %v14411_v2 }
0x3272   :  { %17470 = vrcp.f32 %v12794_v25  ;;  %v17086_v27 = vpop.f32.mrf.mxu1  ;;  %17099 = vmatprep.mubr.msk.f32.mxu0 %vm17508_vm4, %v17507_v6 }
0x3273   :  { %v15598_v27 = vld [vmem:[%s19776_s9 + $0x198] sm:$0xff] }
0x3275   :  { %v14580_v55 = vpop.permute.xlu0 %14579 }
0x3276   :  { %17098 = vmatpush3.msra.mxu0 %v14580_v55  ;;  %v15597_v55 = vld [vmem:[%s19776_s9 + $0x190] sm:$0xff] }
0x3277   :  { %17107 = vmatprep.subr.mxu0 %v15590_v42 }
0x327f   :  { %v17471_v59 = vpop.eup %17470 }
0x3280   :  { %v12826_v29 = vmul.f32 %v17471_v59, %v17469_v3  ;;  %v15596_v59 = vld [vmem:[%s19776_s9 + $0x188] sm:$0xff] }
0x3282   :  { %17100 = vmatmul.mubr.msk.f32.vlgmr.msra.gmra.mxu0 %vm1497_vm6, %v12826_v29  ;;  %v15595_v29 = vld [vmem:[%s19776_s9 + $0x180] sm:$0xff] }
0x3283   :  { %17108 = vmatpush3.msra.mxu0 %v15590_v42 }
0x3284   :  { %17109 = vmatprep.subr.mxu0 %v15589_v49 }
0x3285   :  { %17110 = vmatpush3.msra.mxu0 %v15589_v49 }
0x3286   :  { %17111 = vmatprep.subr.mxu0 %v15588_v50 }
0x3287   :  { %17112 = vmatpush3.msra.mxu0 %v15588_v50 }
0x3288   :  { %17113 = vmatprep.subr.mxu0 %v15587_v53 }
0x3289   :  { %17114 = vmatpush3.msra.mxu0 %v15587_v53 }
0x328a   :  { %17153 = vmatprep.subr.mxu0 %v17507_v6 }
0x32a1   :  { %v14575_v33 = vpop.f32.mrf.mxu1 }
0x32a2   :  { %17104 = vmatprep.mubr.msk.f32.mxu1 %vm251_vm5, %v14575_v33  ;;  %v15592_v33 = vld [vmem:[%s19775_s8 + $0x3] ss:$0 sm:$0xff] }
0x32a3   :  { %v17096_v47 = vpop.f32.mrf.mxu1 }
0x3331   :  { %v17091_v23 = vpop.f32.mrf.mxu0 }
0x3332   :  { %v14502_v34 = vadd.f32 %v17091_v23, %v14262_v17 }
0x3333   :  { %v14492_v35 = vpop.f32.mrf.mxu0 }
0x3334   :  { %v14501_v38 = vadd.f32 %v14492_v35, %v14261_v62 }
0x3342   :  { %v14651_v11 = vpop.f32.mrf.mxu0 }
0x3343   :  { %17105 = vmatmul.mubr.msk.f32.vlgmr.msra.gmra.mxu1 %vm251_vm5, %v14651_v11  ;;  %v15612_v11 = vld [vmem:[%s19777_s10 + $0x3] ss:$0 sm:$0xff]  ;;  %s19876_s10 = sld [smem:[#allocation5_spill]] }
0x3344   :  { %v17101_v1 = vpop.f32.mrf.mxu0  ;;  %17119 = vmatpush3.msra.mxu1 %v15610_v22 }
0x3345   :  { %17120 = vmatprep.subr.mxu1 %v15609_v61 }
0x3346   :  { %17121 = vmatpush3.msra.mxu1 %v15609_v61 }
0x3347   :  { %17122 = vmatprep.subr.mxu1 %v15608_v13 }
0x3348   :  { %17123 = vmatpush3.msra.mxu1 %v15608_v13 }
0x3349   :  { %17124 = vmatprep.subr.mxu1 %v15607_v26  ;;  %v15051_v42 = vld [vmem:[%s19876_s10 + $0x10] sm:$0xff]  ;;  %v15050_v49 = vld [vmem:[%s19876_s10 + $0x8] sm:$0xff]  ;;  %v15049_v50 = vld [vmem:[%s19876_s10] sm:$0xff] }
0x334a   :  { %17125 = vmatpush3.msra.mxu1 %v15607_v26 }
0x334b   :  { %17126 = vmatprep.subr.mxu1 %v15606_v54 }
0x334c   :  { %17127 = vmatpush3.msra.mxu1 %v15606_v54 }
0x334d   :  { %17128 = vmatprep.subr.mxu1 %v15605_v56 }
0x334e   :  { %17129 = vmatpush3.msra.mxu1 %v15605_v56 }
0x334f   :  { %17130 = vmatprep.subr.mxu1 %v15604_v58 }
0x3350   :  { %17131 = vmatpush3.msra.mxu1 %v15604_v58  ;;  %v15615_v58 = vld [vmem:[%s19778_s11 + $0x3] ss:$0 sm:$0xff] }
0x3351   :  { %17132 = vmatprep.subr.mxu1 %v15603_v57 }
0x3352   :  { %17133 = vmatpush3.msra.mxu1 %v15603_v57 }
0x3353   :  { %17134 = vmatprep.subr.mxu1 %v15602_v0 }
0x3354   :  { %17135 = vmatpush3.msra.mxu1 %v15602_v0 }
0x3355   :  { %17136 = vmatprep.subr.mxu1 %v15601_v18 }
0x3356   :  { %17137 = vmatpush3.msra.mxu1 %v15601_v18 }
0x3357   :  { %17138 = vmatprep.subr.mxu1 %v15600_v45 }
0x3358   :  { %17139 = vmatpush3.msra.mxu1 %v15600_v45 }
0x3359   :  { %17140 = vmatprep.subr.mxu1 %v15599_v28 }
0x335a   :  { %17141 = vmatpush3.msra.mxu1 %v15599_v28 }
0x335b   :  { %17142 = vmatprep.subr.mxu1 %v15598_v27 }
0x335c   :  { %17143 = vmatpush3.msra.mxu1 %v15598_v27 }
0x335d   :  { %17144 = vmatprep.subr.mxu1 %v15597_v55 }
0x335e   :  { %17145 = vmatpush3.msra.mxu1 %v15597_v55  ;;  %v15617_v55 = vld [vmem:[%s19877_s17] ss:$0 sm:$0xff] }
0x335f   :  { %17146 = vmatprep.subr.mxu1 %v15596_v59 }
0x3360   :  { %17147 = vmatpush3.msra.mxu1 %v15596_v59 }
0x3361   :  { %17148 = vmatprep.subr.mxu1 %v15595_v29 }
0x3362   :  { %17149 = vmatpush3.msra.mxu1 %v15595_v29 }
0x3403   :  { %v17106_v39 = vpop.f32.mrf.mxu1 }
0x3404   :  { %v14742_v40 = vadd.f32 %v17106_v39, %v14502_v34 }
0x3405   :  { %v14732_v32 = vpop.f32.mrf.mxu1 }
0x3406   :  { %v14744_v60 = vadd.f32 %v14742_v40, %v19239_v63  ;;  %v14741_v41 = vadd.f32 %v14732_v32, %v14501_v38 }
0x3408   :  { %v14743_v8 = vadd.f32 %v14741_v41, %v19237_v52  ;;  %v14752_v43 = vsel %vm164_vm3, %v14744_v60, 0.0 }
0x3409   :  { %14753 = vadd.xlane.f32.xlu0 %v14752_v43 }
0x340a   :  { %v14749_v4 = vsel %vm164_vm3, %v14743_v8, 0.0 }
0x340b   :  { %14750 = vadd.xlane.f32.xlu1 %v14749_v4 }
0x3492   :  { %v14754_v19 = vpop.xlane.xlu0 %14753 }
0x3493   :  { %v14756_v20 = vmul.f32 0.03125, %v14754_v19 }
0x3494   :  { %v14751_v51 = vpop.xlane.xlu1 %14750 }
0x3495   :  { %v19641_v9 = vsub.f32 %v14744_v60, %v14756_v20  ;;  %v14755_v48 = vmul.f32 0.03125, %v14751_v51 }
0x3497   :  { %v19643_v14 = vsub.f32 %v14743_v8, %v14755_v48  ;;  %v14760_v63 = vmul.f32 %v19641_v9, %v19641_v9 }
0x3499   :  { %v14764_v24 = vsel %vm164_vm3, %v14760_v63, 0.0  ;;  %v14759_v52 = vmul.f32 %v19643_v14, %v19643_v14 }
0x349a   :  { %14765 = vadd.xlane.f32.xlu0 %v14764_v24 }
0x349b   :  { %v14761_v44 = vsel %vm164_vm3, %v14759_v52, 0.0 }
0x349c   :  { %14762 = vadd.xlane.f32.xlu1 %v14761_v44  ;;  %v15052_v44 = vld [vmem:[%s19876_s10 + $0x18] sm:$0xff] }
0x3523   :  { %v14766_v31 = vpop.xlane.xlu0 %14765 }
0x3524   :  { %v14768_v37 = vmul.f32 0.03125, %v14766_v31 }
0x3525   :  { %v14763_v46 = vpop.xlane.xlu1 %14762 }
0x3526   :  { %v14770_v10 = vadd.f32 1e-05, %v14768_v37  ;;  %v14767_v15 = vmul.f32 0.03125, %v14763_v46 }
0x3528   :  { %17472 = vrsqrt.f32 %v14770_v10  ;;  %v14769_v5 = vadd.f32 1e-05, %v14767_v15 }
0x352a   :  { %17474 = vrsqrt.f32 %v14769_v5 }
0x3535   :  { %v17473_v12 = vpop.eup %17472 }
0x3536   :  { %v14774_v3 = vmul.f32 %v17473_v12, %v19641_v9 }
0x3537   :  { %v17475_v21 = vpop.eup %17474 }
0x3538   :  { %v14773_v36 = vmul.f32 %v17475_v21, %v19643_v14  ;;  %v14782_v17 = vmul.f32 %v15585_v16, %v14774_v3 }
0x353a   :  { %v14781_v62 = vmul.f32 %v15585_v16, %v14773_v36  ;;  %v14790_v25 = vadd.f32 %v15586_v7, %v14782_v17 }
0x353c   :  { %v14789_v2 = vadd.f32 %v15586_v7, %v14781_v62 }
0x353e   :  { %17115 = vmatprep.mubr.msk.f32.mxu0 %vm164_vm3, %v14789_v2 }
0x353f   :  { %17116 = vmatmul.mubr.msk.f32.vlgmr.msra.gmra.mxu0 %vm164_vm3, %v14790_v25 }
0x3540   :  { %17161 = vmatprep.mubr.msk.f32.mxu0 %vm17508_vm4, %v17507_v6  ;;  %17154 = vmatpush3.msra.mxu0 %v15052_v44 }
0x3541   :  { %17155 = vmatprep.subr.mxu0 %v17507_v6 }
0x3542   :  { %17156 = vmatpush3.msra.mxu0 %v15051_v42 }
0x3543   :  { %17157 = vmatprep.subr.mxu0 %v17507_v6 }
0x3544   :  { %17158 = vmatpush3.msra.mxu0 %v15050_v49 }
0x3545   :  { %17159 = vmatprep.subr.mxu0 %v17507_v6  ;;  %v15616_v6 = vld [vmem:[%s19779_s12 + $0x3] ss:$0 sm:$0xff] }
0x3546   :  { %17160 = vmatpush3.msra.mxu0 %v15049_v50 }
0x35ff   :  { %v17117_v47 = vpop.f32.mrf.mxu0 }
0x3600   :  { %v14882_v30 = vadd.f32 %v17117_v47, %v15592_v33 }
0x3601   :  { %v14876_v23 = vpop.f32.mrf.mxu0 }
0x3602   :  { %v14877_v34 = vadd.f32 %v15592_v33, %v14876_v23  ;;  %v14886_v38 = vmax.f32 %v14882_v30, 0.0 }
0x3604   :  { %v14885_v35 = vmax.f32 %v14877_v34, 0.0 }
0x3606   :  { %17150 = vmatprep.mubr.f32.mxu1 %v14885_v35 }
0x3607   :  { %17151 = vmatmul.mubr.f32.vlgmr.msra.gmra.mxu1 %v14886_v38 }
0x36c7   :  { %v17152_v1 = vpop.f32.mrf.mxu1 }
0x36c8   :  { %v14984_v39 = vadd.f32 %v17152_v1, %v15612_v11 }
0x36c9   :  { %v14978_v40 = vpop.f32.mrf.mxu1 }
0x36ca   :  { %v14988_v32 = vadd.f32 %v14984_v39, %v14790_v25  ;;  %v14979_v60 = vadd.f32 %v15612_v11, %v14978_v40 }
0x36cc   :  { %v14987_v41 = vadd.f32 %v14979_v60, %v14789_v2  ;;  %v14996_v8 = vsel %vm164_vm3, %v14988_v32, 0.0 }
0x36cd   :  { %14997 = vadd.xlane.f32.xlu0 %v14996_v8 }
0x36ce   :  { %v14993_v43 = vsel %vm164_vm3, %v14987_v41, 0.0 }
0x36cf   :  { %14994 = vadd.xlane.f32.xlu1 %v14993_v43 }
0x3756   :  { %v14998_v4 = vpop.xlane.xlu0 %14997 }
0x3757   :  { %v15000_v19 = vmul.f32 0.03125, %v14998_v4 }
0x3758   :  { %v14995_v20 = vpop.xlane.xlu1 %14994 }
0x3759   :  { %v15002_v51 = vsub.f32 %v14988_v32, %v15000_v19  ;;  %v14999_v9 = vmul.f32 0.03125, %v14995_v20 }
0x375b   :  { %v15001_v48 = vsub.f32 %v14987_v41, %v14999_v9  ;;  %v15004_v14 = vmul.f32 %v15002_v51, %v15002_v51 }
0x375d   :  { %v15008_v63 = vsel %vm164_vm3, %v15004_v14, 0.0  ;;  %v15003_v24 = vmul.f32 %v15001_v48, %v15001_v48 }
0x375e   :  { %15009 = vadd.xlane.f32.xlu0 %v15008_v63 }
0x375f   :  { %v15005_v52 = vsel %vm164_vm3, %v15003_v24, 0.0 }
0x3760   :  { %15006 = vadd.xlane.f32.xlu1 %v15005_v52 }
0x37e7   :  { %v15010_v53 = vpop.xlane.xlu0 %15009 }
0x37e8   :  { %v15012_v22 = vmul.f32 0.03125, %v15010_v53 }
0x37e9   :  { %v15007_v61 = vpop.xlane.xlu1 %15006 }
0x37ea   :  { %v15014_v13 = vadd.f32 1e-05, %v15012_v22  ;;  %v15011_v26 = vmul.f32 0.03125, %v15007_v61 }
0x37ec   :  { %17476 = vrsqrt.f32 %v15014_v13  ;;  %v15013_v54 = vadd.f32 1e-05, %v15011_v26 }
0x37ee   :  { %17478 = vrsqrt.f32 %v15013_v54 }
0x37f9   :  { %v17477_v56 = vpop.eup %17476 }
0x37fa   :  { %v15018_v57 = vmul.f32 %v17477_v56, %v15002_v51 }
0x37fb   :  { %v17479_v0 = vpop.eup %17478 }
0x37fc   :  { %v15026_v18 = vmul.f32 %v15615_v58, %v15018_v57  ;;  %v15017_v45 = vmul.f32 %v17479_v0, %v15001_v48 }
0x37fe   :  { %v15034_v28 = vadd.f32 %v15616_v6, %v15026_v18  ;;  %v15025_v31 = vmul.f32 %v15615_v58, %v15017_v45 }
0x3800   :  { %v15033_v37 = vadd.f32 %v15616_v6, %v15025_v31  ;;  %v15042_v46 = vsel %vm164_vm3, %v15034_v28, -inf }
0x3801   :  { %v15043_v10 = vrot.slane %v15042_v46, 4 }
0x3802   :  { %v15035_v15 = vsel %vm164_vm3, %v15033_v37, -inf }
0x3803   :  { %v15036_v5 = vrot.slane %v15035_v15, 4  ;;  %v15044_v12 = vmax.f32 %v15042_v46, %v15043_v10 }
0x3805   :  { %v15037_v16 = vmax.f32 %v15035_v15, %v15036_v5  ;;  %v15045_v3 = vrot.slane %v15044_v12, 2 }
0x3807   :  { %v15038_v21 = vrot.slane %v15037_v16, 2  ;;  %v15046_v36 = vmax.f32 %v15044_v12, %v15045_v3 }
0x3809   :  { %v15039_v17 = vmax.f32 %v15037_v16, %v15038_v21  ;;  %v15047_v7 = vrot.slane %v15046_v36, 1 }
0x380b   :  { %v15040_v62 = vrot.slane %v15039_v17, 1  ;;  %v15048_v25 = vmax.f32 %v15046_v36, %v15047_v7 }
0x380d   :  { %v15041_v2 = vmax.f32 %v15039_v17, %v15040_v62 }
0x380f   :  { %v15063_v27 = vsel %vm15062_vm8, %v15048_v25, %v15041_v2 }
0x3810   :  { %17162 = vmatmul.mubr.msk.f32.vlgmr.msra.gmra.mxu0 %vm164_vm3, %v15063_v27 }
0x38d0   :  { %v15132_v59 = vpop.f32.mrf.mxu0 }
0x38d1   :  { %v15133_v29 = vadd.f32 %v15617_v55, %v15132_v59 }
0x38d2   :  { %v17163_v33 = vpop.f32.mrf.mxu0 }
0x38d3   :  { %v15137_v47 = vsel %vm15136_vm9, %v15133_v29, -inf }
0x38d4   :  { %15138 = vmax.xlane.f32.xlu1 %v15137_v47 }
0x395d   :  { %v15139_v30 = vpop.xlane.xlu1 %15138 }
0x395e   :  { %v15140_v23 = vsub.f32 %v15133_v29, %v15139_v30 }
0x3960   :  { %v15141_v34 = vmul.f32 1.442695, %v15140_v23 }
0x3962   :  { %17480 = vpow2.f32 %v15141_v34 }
0x396f   :  { %v17481_v35 = vpop.eup %17480 }
0x3970   :  { %v15143_v38 = vsel %vm15136_vm9, %v17481_v35, 0.0 }
0x3971   :  { %15144 = vadd.xlane.f32.xlu0 %v15143_v38 }
0x39fa   :  { %v15145_v11 = vpop.xlane.xlu0 %15144 }
0x39fb   :  { %17482 = vlog2.f32 %v15145_v11 }
0x3a08   :  { %v17483_v1 = vpop.eup %17482 }
0x3a09   :  { %v15147_v39 = vmul.f32 0.6931472, %v17483_v1 }
0x3a0b   :  { %v15148_v40 = vsub.f32 %v15140_v23, %v15147_v39 }
0x3a0d   :  { %15149 = vst.msk [vmem:[#allocation2] sm:$0x3] %vm15136_vm9, %v15148_v40 }
0x3a0e   :  { %17495 = shalt.err (!%p17492_p4)
}
0x3a0f   :  { %s19878_s23 = sld [smem:[#allocation7_spill]] }
0x3a15   :  { %15159 = dma.vmem_to_hbm [thread:$0]  %s15157_s20, 32, %s19878_s23, [#allocation3]  }
0x3a16   :  { %17504 = dma.done.wait [#allocation3], 32  }
0x3a17   :  { %17505 = vsyncadd [#allocation3], 4294967264 }
0x3a18   :  { %15163 = vsyncpa [#allocation3], 1 }

</bundles_post_ra>
